<compile_context>
chip_gen: v5e
topology: v5e:2x2
jax: 0.10.0
libtpu: 0.0.40
codegen_flags: <defaults>
</compile_context>

<pallas_src>
import math
from functools import partial

import jax
import jax.numpy as jnp
from jax import lax
from jax.experimental import pallas as pl
from jax.experimental.pallas import tpu as pltpu

_NEG = -1e30  # finite sentinel for masked max (avoids -inf -> NaN risk downstream)
_VMEM_LIMIT = 48 * 1024 * 1024  # leave headroom below v7x's 64 MiB physical VMEM


def _round_up(x, m):
    return ((x + m - 1) // m) * m


def _full_spec(arr):
    """Whole-array block, same block for every grid step (stays resident in VMEM)."""
    nd = arr.ndim
    return pl.BlockSpec(arr.shape, lambda *_: (0,) * nd)


# ----------------------------- Pallas kernels --------------------------------

def _neighbor_mlp_max_kernel(u_ref, mask_ref, cterm_ref, w2, b2, w3, b3,
                             out_ref, acc_ref):
    """PointNetConv hot path for one (centroid tile, neighbor chunk) grid step.

    u_ref:    (kc, tm, c1) bf16 gathered layer-1 preactivations (neighbor-major).
    mask_ref: (kc, tm) f32 validity mask.
    cterm_ref:(tm, c1) bf16 per-centroid layer-1 term (b1 - W1r.pos_i).
    Running masked max over neighbor chunks lives in acc_ref (tm, c3) f32.
    """
    kc, tm, c1 = u_ref.shape
    k = pl.program_id(1)

    @pl.when(k == 0)
    def _init():
        acc_ref[...] = jnp.full(acc_ref.shape, _NEG, jnp.float32)

    # Layer 1 (Linear -> ReLU) was algebraically absorbed into the per-point /
    # per-centroid precompute: it is just a bf16 add + ReLU here.
    h1 = jnp.maximum(u_ref[...] + cterm_ref[...][None, :, :], 0)   # (kc, tm, c1) bf16
    h1 = h1.reshape(kc * tm, c1)

    h2 = jnp.dot(h1, w2[...], preferred_element_type=jnp.float32) + b2[...]
    h2 = jnp.maximum(h2.astype(jnp.bfloat16), 0)                   # ReLU on bf16 vregs
    h3 = jnp.dot(h2, w3[...], preferred_element_type=jnp.float32)  # b3 deferred
    c3 = h3.shape[-1]
    h3 = h3.reshape(kc, tm, c3)

    valid = mask_ref[...][:, :, None] > 0.5
    chunk_max = jnp.max(jnp.where(valid, h3, _NEG), axis=0)        # (tm, c3)
    acc_ref[...] = jnp.maximum(acc_ref[...], chunk_max)

    @pl.when(k == pl.num_programs(1) - 1)
    def _finish():
        # Deferred layer-3 bias (constant per column, commutes with the max).
        out_ref[...] = (acc_ref[...] + b3[...]).astype(out_ref.dtype)


def _global_pool_kernel(x_ref, pos_ref, gw1x, gw1p, gb1, gw2, gb2, gw3, gb3, out_ref):
    """GlobalSAModule: per-cloud MLP([259,256,512,1024]) + per-cloud max pool.

    One grid step == bc clouds.  x_ref: (bc, n, 256) bf16; pos_ref: (bc, n, 8) bf16
    (pos zero-padded 3->8 cols); out_ref: (bc, 1, 1024) bf16.
    """
    bc = x_ref.shape[0]
    for b in range(bc):                      # static unroll over clouds in this block
        f = x_ref[b]                         # (n, 256) bf16 (lane-dense)
        p = pos_ref[b]                       # (n, 8)  bf16
        h = (jnp.dot(f, gw1x[...], preferred_element_type=jnp.float32)
             + jnp.dot(p, gw1p[...], preferred_element_type=jnp.float32)
             + gb1[...])
        h = jnp.maximum(h.astype(jnp.bfloat16), 0)
        h = jnp.dot(h, gw2[...], preferred_element_type=jnp.float32) + gb2[...]
        h = jnp.maximum(h.astype(jnp.bfloat16), 0)
        h = jnp.dot(h, gw3[...], preferred_element_type=jnp.float32) + gb3[...]  # (n, 1024)
        out_ref[b] = jnp.max(h, axis=0, keepdims=True).astype(out_ref.dtype)


def _head_kernel(pooled_ref, hw1, hb1, hw2, hb2, hw3, hb3, out_ref):
    """Head MLP([1024, 512, 256, 10]) + log_softmax, batched over all B clouds."""
    z = jnp.maximum(jnp.dot(pooled_ref[...], hw1[...],
                            preferred_element_type=jnp.float32) + hb1[...], 0.0)
    z = jnp.maximum(jnp.dot(z.astype(jnp.bfloat16), hw2[...],
                            preferred_element_type=jnp.float32) + hb2[...], 0.0)
    logits = jnp.dot(z.astype(jnp.bfloat16), hw3[...],
                     preferred_element_type=jnp.float32) + hb3[...]        # (B, ncls)
    m = jnp.max(logits, axis=-1, keepdims=True)
    zz = logits - m
    lse = jnp.log(jnp.sum(jnp.exp(zz), axis=-1, keepdims=True))
    out_ref[...] = zz - lse


# ----------------------------- kernel wrappers --------------------------------

def pointnet_conv_mlp_max(u_g, mask, cterm, l2, l3):
    """u_g: [K, M, c1] bf16 (neighbor-major layer-1 preactivations), mask: [K, M],
    cterm: [M, c1] bf16 -> per-centroid max-aggregated features [M, c3] bf16."""
    K, M, c1 = u_g.shape
    (w2, b2), (w3, b3) = l2, l3
    w2 = w2.astype(jnp.bfloat16)
    w3 = w3.astype(jnp.bfloat16)
    c3 = w3.shape[1]

    # Centroid tile (parallel axis) and neighbor chunk (reduction axis).
    tm = min(_round_up(M, 8), 128)
    mpad = _round_up(M, tm)
    kc = min(K, 32)          # 32 keeps h3 (kc*tm*c3*4B) + double-buffered u under ~10 MB
    kpad = _round_up(K, kc)

    u_g = jnp.pad(u_g, ((0, kpad - K), (0, mpad - M), (0, 0)))
    mask = jnp.pad(mask.astype(jnp.float32), ((0, kpad - K), (0, mpad - M)))
    cterm = jnp.pad(cterm, ((0, mpad - M), (0, 0)))

    grid_spec = pltpu.PrefetchScalarGridSpec(
        num_scalar_prefetch=0,
        grid=(mpad // tm, kpad // kc),
        in_specs=[pl.BlockSpec((kc, tm, c1), lambda i, k: (k, i, 0)),
                  pl.BlockSpec((kc, tm), lambda i, k: (k, i)),
                  pl.BlockSpec((tm, c1), lambda i, k: (i, 0))]
                 + [_full_spec(a) for a in (w2, b2, w3, b3)],
        out_specs=pl.BlockSpec((tm, c3), lambda i, k: (i, 0)),
        scratch_shapes=[pltpu.VMEM((tm, c3), jnp.float32)],
    )
    out = pl.pallas_call(
        _neighbor_mlp_max_kernel,
        out_shape=jax.ShapeDtypeStruct((mpad, c3), jnp.bfloat16),
        grid_spec=grid_spec,
        compiler_params=pltpu.CompilerParams(
            # TODO(synk): if a v7x profile shows one TensorCore idle, switch the centroid
            #             axis to pltpu.CORE_PARALLEL.
            dimension_semantics=("parallel", "arbitrary"),
            vmem_limit_bytes=_VMEM_LIMIT),
    )(u_g, mask, cterm, w2, b2, w3, b3)
    return out[:M]


def global_sa_head(x, pos, B, sa3_params, head_params):
    """x: [N, 256], pos: [N, 3] (equal-size contiguous clouds) -> log-probs [B, ncls]."""
    N = pos.shape[0]
    n = N // B
    cx = x.shape[1]

    (gw1, gb1), (gw2, gb2), (gw3, gb3) = sa3_params
    # Split gw1 so the dominant x operand stays lane-dense (256) instead of 259 -> 384.
    gw1x = gw1[:cx].astype(jnp.bfloat16)                               # (256, 256)
    gw1p = jnp.pad(gw1[cx:], ((0, 5), (0, 0))).astype(jnp.bfloat16)    # (8, 256)
    gw2b, gw3b = gw2.astype(jnp.bfloat16), gw3.astype(jnp.bfloat16)
    cmid = gw3.shape[1]                                                # 1024

    xb = x.astype(jnp.bfloat16).reshape(B, n, cx)
    pb = jnp.pad(pos, ((0, 0), (0, 5))).astype(jnp.bfloat16).reshape(B, n, 8)

    bc = min(B, 8)                      # clouds per grid step (amortizes step overhead)
    bpad = _round_up(B, bc)
    if bpad > B:
        xb = jnp.pad(xb, ((0, bpad - B), (0, 0), (0, 0)))
        pb = jnp.pad(pb, ((0, bpad - B), (0, 0), (0, 0)))

    pool_weights = (gw1x, gw1p, gb1, gw2b, gb2, gw3b, gb3)
    pooled = pl.pallas_call(
        _global_pool_kernel,
        out_shape=jax.ShapeDtypeStruct((bpad, 1, cmid), jnp.bfloat16),
        grid_spec=pltpu.PrefetchScalarGridSpec(
            num_scalar_prefetch=0,
            grid=(bpad // bc,),
            in_specs=[pl.BlockSpec((bc, n, cx), lambda b: (b, 0, 0)),
                      pl.BlockSpec((bc, n, 8), lambda b: (b, 0, 0))]
                     + [_full_spec(a) for a in pool_weights],
            out_specs=pl.BlockSpec((bc, 1, cmid), lambda b: (b, 0, 0)),
        ),
        compiler_params=pltpu.CompilerParams(
            dimension_semantics=("parallel",),
            vmem_limit_bytes=_VMEM_LIMIT),
    )(xb, pb, *pool_weights)
    pooled = pooled.reshape(bpad, cmid)[:B]

    # Head MLP + log_softmax in a second call, batched over all B clouds at once.
    (hw1, hb1), (hw2, hb2), (hw3, hb3) = head_params
    head_weights = (hw1.astype(jnp.bfloat16), hb1, hw2.astype(jnp.bfloat16), hb2,
                    hw3.astype(jnp.bfloat16), hb3)
    ncls = hw3.shape[1]
    out = pl.pallas_call(
        _head_kernel,
        out_shape=jax.ShapeDtypeStruct((B, ncls), jnp.float32),
        grid_spec=pltpu.PrefetchScalarGridSpec(
            num_scalar_prefetch=0,
            grid=(1,),
            in_specs=[_full_spec(pooled)] + [_full_spec(a) for a in head_weights],
            out_specs=pl.BlockSpec((B, ncls), lambda i: (0, 0)),
        ),
        compiler_params=pltpu.CompilerParams(
            dimension_semantics=("arbitrary",),
            vmem_limit_bytes=_VMEM_LIMIT),
    )(pooled, *head_weights)
    return out


# ----------------------------- JAX glue (index building) ----------------------

def fps_equal_clouds(pos, B, n_per_cloud, num_samples):
    """Deterministic farthest-point sampling per (equal-size) cloud. Returns global indices."""
    pts = pos.reshape(B, n_per_cloud, 3)

    def fps_single(p):
        def body(i, state):
            idxs, dists = state
            last = p[idxs[i - 1]]
            d = jnp.sum((p - last) ** 2, axis=-1)
            dists = jnp.minimum(dists, d)
            nxt = jnp.argmax(dists).astype(jnp.int32)
            return idxs.at[i].set(nxt), dists

        idxs0 = jnp.zeros((num_samples,), jnp.int32)
        dists0 = jnp.full((n_per_cloud,), jnp.inf, jnp.float32)
        idxs, _ = lax.fori_loop(1, num_samples, body, (idxs0, dists0))
        return idxs

    local = jax.vmap(fps_single)(pts)                         # [B, num_samples]
    offsets = (jnp.arange(B, dtype=jnp.int32) * n_per_cloud)[:, None]
    return (local + offsets).reshape(-1)


def radius_neighbors(pos, batch, centroid_idx, r, max_neighbors):
    """Brute-force radius query (same batch, dist <= r), up to K neighbors per centroid."""
    N = pos.shape[0]
    K = min(max_neighbors, N)
    cpos = pos[centroid_idx]
    cbatch = batch[centroid_idx]
    d2 = jnp.sum((cpos[:, None, :] - pos[None, :, :]) ** 2, axis=-1)     # [M, N]
    valid = (d2 <= r * r) & (cbatch[:, None] == batch[None, :])
    big = jnp.int32(N + 1)
    key = jnp.where(valid, jnp.arange(N, dtype=jnp.int32)[None, :], big)
    order = jnp.argsort(key, axis=1)[:, :K]                              # neighbor indices
    key_sorted = jnp.sort(key, axis=1)[:, :K]
    mask = (key_sorted < big).astype(jnp.float32)
    return order, mask


# ----------------------------- modules ----------------------------------------

def sa_module(x, pos, batch, B, n_per_cloud, ratio, r, params, max_neighbors=64):
    num_samples = int(math.ceil(ratio * n_per_cloud))
    idx = fps_equal_clouds(pos, B, n_per_cloud, num_samples)   # TODO(synk): custom sampler
    nbr_idx, mask = radius_neighbors(pos, batch, idx, r, max_neighbors)  # [M,K], [M,K]
    cpos = pos[idx]                                            # [M, 3]

    (w1, b1), (w2, b2), (w3, b3) = params
    c1, c2 = w1.shape[1], w2.shape[1]
    c1p, c2p = _round_up(c1, 128), _round_up(c2, 128)

    # Lane-pad sa1's 64-wide hidden layers to 128 (zero rows/cols -> numerically exact).
    w1p = jnp.pad(w1, ((0, 0), (0, c1p - c1)))
    b1p = jnp.pad(b1, ((0, 0), (0, c1p - c1)))
    w2p = jnp.pad(w2, ((0, c1p - c1), (0, c2p - c2)))
    b2p = jnp.pad(b2, ((0, 0), (0, c2p - c2)))
    w3p = jnp.pad(w3, ((0, c2p - c2), (0, 0)))

    # Layer 1 is linear in cat([x_j, pos_j - pos_i]); distribute it:
    #   relu(W1 [x_j, pos_j - pos_i] + b1) = relu(u_j + cterm_i)
    #   u_j     = W1x.x_j + W1r.pos_j   (per point, computed once)
    #   cterm_i = b1 - W1r.pos_i        (per centroid)
    # so the per-EDGE layer-1 matmul leaves the kernel and the gathered per-edge
    # array stays lane-dense (c1p wide instead of (Cx+3) lane-padded to 256).
    if x is None:
        w1r = w1p
        u_all = jnp.dot(pos, w1r, preferred_element_type=jnp.float32)
    else:
        cx = x.shape[1]
        w1x, w1r = w1p[:cx], w1p[cx:]
        u_all = (jnp.dot(x.astype(jnp.float32), w1x, preferred_element_type=jnp.float32)
                 + jnp.dot(pos, w1r, preferred_element_type=jnp.float32))
    cterm = b1p - jnp.dot(cpos, w1r, preferred_element_type=jnp.float32)

    # Neighbor-major [K, M, c1p] gather of the per-point layer-1 preactivations.
    # TODO(synk): fuse this gather into the kernel (scalar-prefetch nbr_idx + in-kernel
    #             DMA from pl.ANY refs) to remove the [K, M, c1] HBM round trip at large N.
    u_g = u_all.astype(jnp.bfloat16)[nbr_idx.T]                # [K, M, c1p]

    x_out = pointnet_conv_mlp_max(u_g, mask.T, cterm.astype(jnp.bfloat16),
                                  (w2p, b2p), (w3p, b3))
    return x_out, cpos, batch[idx], num_samples


def net_forward(params, x, pos, batch, B, n_per_cloud):
    x1, pos1, batch1, n1 = sa_module(x, pos, batch, B, n_per_cloud, 0.5, 0.2, params["sa1"])
    x2, pos2, batch2, n2 = sa_module(x1, pos1, batch1, B, n1, 0.25, 0.4, params["sa2"])
    return global_sa_head(x2, pos2, B, params["sa3"], params["head"])


# ----------------------------- parameter init ---------------------------------

def init_linear(key, cin, cout):
    w = jax.random.normal(key, (cin, cout), jnp.float32) * (1.0 / math.sqrt(cin))
    b = jnp.zeros((1, cout), jnp.float32)
    return w, b


def init_mlp(key, dims):
    keys = jax.random.split(key, len(dims) - 1)
    return [init_linear(k, dims[i], dims[i + 1]) for i, k in enumerate(keys)]


def init_params(key):
    k1, k2, k3, k4 = jax.random.split(key, 4)
    return {
        "sa1": init_mlp(k1, [3, 64, 64, 128]),
        "sa2": init_mlp(k2, [128 + 3, 128, 128, 256]),
        "sa3": init_mlp(k3, [256 + 3, 256, 512, 1024]),
        "head": init_mlp(k4, [1024, 512, 256, 10]),
    }


# ----------------------------- main --------------------------------------------

if __name__ == "__main__":
    key = jax.random.PRNGKey(0)
    kp, kparams = jax.random.split(key)

    B = 2               # number of point clouds in the batch
    n_per_cloud = 16    # points per cloud
    pos = jax.random.uniform(kp, (B * n_per_cloud, 3), jnp.float32)
    batch = jnp.repeat(jnp.arange(B, dtype=jnp.int32), n_per_cloud)
    x = None            # data.x is None (ModelNet-style input), sa1 MLP input dim = 3

    params = init_params(kparams)

    fwd = jax.jit(partial(net_forward, B=B, n_per_cloud=n_per_cloud))
    out = jax.block_until_ready(fwd(params, x, pos, batch))
    assert out.shape == (B, 10)
    assert bool(jnp.all(jnp.isfinite(out)))
    print("KERNEL_OK")
</pallas_src>

<mosaic_0001>
module attributes {stable_mosaic.version = 11 : i64} {
  func.func @_neighbor_mlp_max_kernel(%arg0: i32, %arg1: i32, %arg2: memref<32x16x128xbf16, #tpu.memory_space<vmem>>, %arg3: memref<32x16xf32, #tpu.memory_space<vmem>>, %arg4: memref<16x128xbf16, #tpu.memory_space<vmem>>, %arg5: memref<128x128xbf16, #tpu.memory_space<vmem>>, %arg6: memref<1x128xf32, #tpu.memory_space<vmem>>, %arg7: memref<128x128xbf16, #tpu.memory_space<vmem>>, %arg8: memref<1x128xf32, #tpu.memory_space<vmem>>, %arg9: memref<16x128xbf16, #tpu.memory_space<vmem>>, %arg10: memref<16x128xf32, #tpu.memory_space<vmem>>) attributes {dimension_semantics = [#tpu.dimension_semantics<parallel>, #tpu.dimension_semantics<arbitrary>], iteration_bounds = array<i64: 1, 1>, scalar_prefetch = 0 : i64, scratch_operands = 1 : i64, tpu.core_type = #tpu.core_type<tc>, window_params = [{transform_indices = @transform_0, window_bounds = array<i64: 32, 16, 128>}, {transform_indices = @transform_1, window_bounds = array<i64: 32, 16>}, {transform_indices = @transform_2, window_bounds = array<i64: 16, 128>}, {pipeline_mode = #tpu.pipeline_mode<synchronous>, transform_indices = @transform_3, window_bounds = array<i64: 128, 128>}, {pipeline_mode = #tpu.pipeline_mode<synchronous>, transform_indices = @transform_4, window_bounds = array<i64: 1, 128>}, {pipeline_mode = #tpu.pipeline_mode<synchronous>, transform_indices = @transform_5, window_bounds = array<i64: 128, 128>}, {pipeline_mode = #tpu.pipeline_mode<synchronous>, transform_indices = @transform_6, window_bounds = array<i64: 1, 128>}, {transform_indices = @transform_7, window_bounds = array<i64: 16, 128>}]} {
    %c0_i32 = arith.constant 0 : i32
    %0 = arith.cmpi eq, %arg1, %c0_i32 : i32
    %1 = arith.extui %0 : i1 to i32
    %c0_i32_0 = arith.constant 0 : i32
    %2 = arith.cmpi ne, %1, %c0_i32_0 : i32
    scf.if %2 {
      %cst_25 = arith.constant -1.000000e+30 : f32
      %37 = vector.broadcast %cst_25 : f32 to vector<16x128xf32>
      %c0_26 = arith.constant 0 : index
      %c0_27 = arith.constant 0 : index
      %38 = vector.load %arg10[%c0_26, %c0_27] : memref<16x128xf32, #tpu.memory_space<vmem>>, vector<16x128xf32>
      tpu.vector_store %arg10[%c0_26, %c0_27], %37 {strides = array<i32>} : memref<16x128xf32, #tpu.memory_space<vmem>>, vector<16x128xf32>,
    } else {
    }
    %c0 = arith.constant 0 : index
    %c0_1 = arith.constant 0 : index
    %c0_2 = arith.constant 0 : index
    %3 = vector.load %arg2[%c0, %c0_1, %c0_2] : memref<32x16x128xbf16, #tpu.memory_space<vmem>>, vector<32x16x128xbf16>
    %c0_3 = arith.constant 0 : index
    %c0_4 = arith.constant 0 : index
    %4 = vector.load %arg4[%c0_3, %c0_4] : memref<16x128xbf16, #tpu.memory_space<vmem>>, vector<16x128xbf16>
    %5 = vector.shape_cast %4 : vector<16x128xbf16> to vector<1x16x128xbf16>
    %6 = vector.broadcast %5 : vector<1x16x128xbf16> to vector<32x16x128xbf16>
    %7 = arith.addf %3, %6 : vector<32x16x128xbf16>
    %cst = arith.constant 0.000000e+00 : bf16
    %8 = vector.broadcast %cst : bf16 to vector<32x16x128xbf16>
    %9 = arith.maximumf %7, %8 : vector<32x16x128xbf16>
    %10 = vector.shape_cast %9 : vector<32x16x128xbf16> to vector<512x128xbf16>
    %c0_5 = arith.constant 0 : index
    %c0_6 = arith.constant 0 : index
    %11 = vector.load %arg5[%c0_5, %c0_6] : memref<128x128xbf16, #tpu.memory_space<vmem>>, vector<128x128xbf16>
    %cst_7 = arith.constant dense<0.000000e+00> : vector<512x128xf32>
    %12 = tpu.matmul %10, %11, %cst_7 {dimension_numbers = #tpu.dot_dimension_numbers<[1], [0], [0], [1], [0, 0, 1, 1], [], []>} : vector<512x128xbf16>, vector<128x128xbf16>, vector<512x128xf32> -> vector<512x128xf32>
    %c0_8 = arith.constant 0 : index
    %c0_9 = arith.constant 0 : index
    %13 = vector.load %arg6[%c0_8, %c0_9] : memref<1x128xf32, #tpu.memory_space<vmem>>, vector<1x128xf32>
    %14 = vector.broadcast %13 : vector<1x128xf32> to vector<512x128xf32>
    %15 = arith.addf %12, %14 : vector<512x128xf32>
    %16 = arith.truncf %15 : vector<512x128xf32> to vector<512x128xbf16>
    %cst_10 = arith.constant 0.000000e+00 : bf16
    %17 = vector.broadcast %cst_10 : bf16 to vector<512x128xbf16>
    %18 = arith.maximumf %16, %17 : vector<512x128xbf16>
    %c0_11 = arith.constant 0 : index
    %c0_12 = arith.constant 0 : index
    %19 = vector.load %arg7[%c0_11, %c0_12] : memref<128x128xbf16, #tpu.memory_space<vmem>>, vector<128x128xbf16>
    %cst_13 = arith.constant dense<0.000000e+00> : vector<512x128xf32>
    %20 = tpu.matmul %18, %19, %cst_13 {dimension_numbers = #tpu.dot_dimension_numbers<[1], [0], [0], [1], [0, 0, 1, 1], [], []>} : vector<512x128xbf16>, vector<128x128xbf16>, vector<512x128xf32> -> vector<512x128xf32>
    %21 = vector.shape_cast %20 : vector<512x128xf32> to vector<32x16x128xf32>
    %c0_14 = arith.constant 0 : index
    %c0_15 = arith.constant 0 : index
    %22 = vector.load %arg3[%c0_14, %c0_15] : memref<32x16xf32, #tpu.memory_space<vmem>>, vector<32x16xf32>
    %23 = vector.shape_cast %22 : vector<32x16xf32> to vector<32x16x1xf32>
    %cst_16 = arith.constant 5.000000e-01 : f32
    %24 = vector.broadcast %cst_16 : f32 to vector<32x16x1xf32>
    %25 = arith.cmpf ogt, %23, %24 : vector<32x16x1xf32>
    %cst_17 = arith.constant -1.000000e+30 : f32
    %26 = vector.shape_cast %25 : vector<32x16x1xi1> to vector<32x16x1xi1>
    %27 = vector.broadcast %26 : vector<32x16x1xi1> to vector<32x16x128xi1>
    %28 = vector.broadcast %cst_17 : f32 to vector<32x16x128xf32>
    %29 = arith.select %27, %21, %28 : vector<32x16x128xi1>, vector<32x16x128xf32>
    %cst_18 = arith.constant dense<0xFF800000> : vector<16x128xf32>
    %30 = vector.multi_reduction <maximumf>, %29, %cst_18 [0] : vector<32x16x128xf32> to vector<16x128xf32>
    %c0_19 = arith.constant 0 : index
    %c0_20 = arith.constant 0 : index
    %31 = vector.load %arg10[%c0_19, %c0_20] : memref<16x128xf32, #tpu.memory_space<vmem>>, vector<16x128xf32>
    %32 = arith.maximumf %31, %30 : vector<16x128xf32>
    %c0_21 = arith.constant 0 : index
    %c0_22 = arith.constant 0 : index
    %33 = vector.load %arg10[%c0_21, %c0_22] : memref<16x128xf32, #tpu.memory_space<vmem>>, vector<16x128xf32>
    tpu.vector_store %arg10[%c0_21, %c0_22], %32 {strides = array<i32>} : memref<16x128xf32, #tpu.memory_space<vmem>>, vector<16x128xf32>,
    %c0_i32_23 = arith.constant 0 : i32
    %34 = arith.cmpi eq, %arg1, %c0_i32_23 : i32
    %35 = arith.extui %34 : i1 to i32
    %c0_i32_24 = arith.constant 0 : i32
    %36 = arith.cmpi ne, %35, %c0_i32_24 : i32
    scf.if %36 {
      %c0_25 = arith.constant 0 : index
      %c0_26 = arith.constant 0 : index
      %37 = vector.load %arg10[%c0_25, %c0_26] : memref<16x128xf32, #tpu.memory_space<vmem>>, vector<16x128xf32>
      %c0_27 = arith.constant 0 : index
      %c0_28 = arith.constant 0 : index
      %38 = vector.load %arg8[%c0_27, %c0_28] : memref<1x128xf32, #tpu.memory_space<vmem>>, vector<1x128xf32>
      %39 = vector.broadcast %38 : vector<1x128xf32> to vector<16x128xf32>
      %40 = arith.addf %37, %39 : vector<16x128xf32>
      %41 = arith.truncf %40 : vector<16x128xf32> to vector<16x128xbf16>
      %c0_29 = arith.constant 0 : index
      %c0_30 = arith.constant 0 : index
      %42 = vector.load %arg9[%c0_29, %c0_30] : memref<16x128xbf16, #tpu.memory_space<vmem>>, vector<16x128xbf16>
      tpu.vector_store %arg9[%c0_29, %c0_30], %41 {strides = array<i32>} : memref<16x128xbf16, #tpu.memory_space<vmem>>, vector<16x128xbf16>,
    } else {
    }
    return
  }
  func.func @transform_0(%arg0: i32, %arg1: i32) -> (i32, i32, i32) {
    %c0_i32 = arith.constant 0 : i32
    %c0_i32_0 = arith.constant 0 : i32
    return %arg1, %arg0, %c0_i32 : i32, i32, i32
  }
  func.func @transform_1(%arg0: i32, %arg1: i32) -> (i32, i32) {
    %c0_i32 = arith.constant 0 : i32
    return %arg1, %arg0 : i32, i32
  }
  func.func @transform_2(%arg0: i32, %arg1: i32) -> (i32, i32) {
    %c0_i32 = arith.constant 0 : i32
    %c0_i32_0 = arith.constant 0 : i32
    return %arg0, %c0_i32 : i32, i32
  }
  func.func @transform_3(%arg0: i32, %arg1: i32) -> (i32, i32) {
    %c0_i32 = arith.constant 0 : i32
    %c0_i32_0 = arith.constant 0 : i32
    %c0_i32_1 = arith.constant 0 : i32
    return %c0_i32, %c0_i32_0 : i32, i32
  }
  func.func @transform_4(%arg0: i32, %arg1: i32) -> (i32, i32) {
    %c0_i32 = arith.constant 0 : i32
    %c0_i32_0 = arith.constant 0 : i32
    %c0_i32_1 = arith.constant 0 : i32
    return %c0_i32, %c0_i32_0 : i32, i32
  }
  func.func @transform_5(%arg0: i32, %arg1: i32) -> (i32, i32) {
    %c0_i32 = arith.constant 0 : i32
    %c0_i32_0 = arith.constant 0 : i32
    %c0_i32_1 = arith.constant 0 : i32
    return %c0_i32, %c0_i32_0 : i32, i32
  }
  func.func @transform_6(%arg0: i32, %arg1: i32) -> (i32, i32) {
    %c0_i32 = arith.constant 0 : i32
    %c0_i32_0 = arith.constant 0 : i32
    %c0_i32_1 = arith.constant 0 : i32
    return %c0_i32, %c0_i32_0 : i32, i32
  }
  func.func @transform_7(%arg0: i32, %arg1: i32) -> (i32, i32) {
    %c0_i32 = arith.constant 0 : i32
    %c0_i32_0 = arith.constant 0 : i32
    return %arg0, %c0_i32 : i32, i32
  }
}

module attributes {stable_mosaic.version = 11 : i64} {
  func.func @_neighbor_mlp_max_kernel(%arg0: i32, %arg1: i32, %arg2: memref<16x8x128xbf16, #tpu.memory_space<vmem>>, %arg3: memref<16x8xf32, #tpu.memory_space<vmem>>, %arg4: memref<8x128xbf16, #tpu.memory_space<vmem>>, %arg5: memref<128x128xbf16, #tpu.memory_space<vmem>>, %arg6: memref<1x128xf32, #tpu.memory_space<vmem>>, %arg7: memref<128x256xbf16, #tpu.memory_space<vmem>>, %arg8: memref<1x256xf32, #tpu.memory_space<vmem>>, %arg9: memref<8x256xbf16, #tpu.memory_space<vmem>>, %arg10: memref<8x256xf32, #tpu.memory_space<vmem>>) attributes {dimension_semantics = [#tpu.dimension_semantics<parallel>, #tpu.dimension_semantics<arbitrary>], iteration_bounds = array<i64: 1, 1>, scalar_prefetch = 0 : i64, scratch_operands = 1 : i64, tpu.core_type = #tpu.core_type<tc>, window_params = [{transform_indices = @transform_0, window_bounds = array<i64: 16, 8, 128>}, {transform_indices = @transform_1, window_bounds = array<i64: 16, 8>}, {transform_indices = @transform_2, window_bounds = array<i64: 8, 128>}, {pipeline_mode = #tpu.pipeline_mode<synchronous>, transform_indices = @transform_3, window_bounds = array<i64: 128, 128>}, {pipeline_mode = #tpu.pipeline_mode<synchronous>, transform_indices = @transform_4, window_bounds = array<i64: 1, 128>}, {pipeline_mode = #tpu.pipeline_mode<synchronous>, transform_indices = @transform_5, window_bounds = array<i64: 128, 256>}, {pipeline_mode = #tpu.pipeline_mode<synchronous>, transform_indices = @transform_6, window_bounds = array<i64: 1, 256>}, {transform_indices = @transform_7, window_bounds = array<i64: 8, 256>}]} {
    %c0_i32 = arith.constant 0 : i32
    %0 = arith.cmpi eq, %arg1, %c0_i32 : i32
    %1 = arith.extui %0 : i1 to i32
    %c0_i32_0 = arith.constant 0 : i32
    %2 = arith.cmpi ne, %1, %c0_i32_0 : i32
    scf.if %2 {
      %cst_25 = arith.constant -1.000000e+30 : f32
      %37 = vector.broadcast %cst_25 : f32 to vector<8x256xf32>
      %c0_26 = arith.constant 0 : index
      %c0_27 = arith.constant 0 : index
      %38 = vector.load %arg10[%c0_26, %c0_27] : memref<8x256xf32, #tpu.memory_space<vmem>>, vector<8x256xf32>
      tpu.vector_store %arg10[%c0_26, %c0_27], %37 {strides = array<i32>} : memref<8x256xf32, #tpu.memory_space<vmem>>, vector<8x256xf32>,
    } else {
    }
    %c0 = arith.constant 0 : index
    %c0_1 = arith.constant 0 : index
    %c0_2 = arith.constant 0 : index
    %3 = vector.load %arg2[%c0, %c0_1, %c0_2] : memref<16x8x128xbf16, #tpu.memory_space<vmem>>, vector<16x8x128xbf16>
    %c0_3 = arith.constant 0 : index
    %c0_4 = arith.constant 0 : index
    %4 = vector.load %arg4[%c0_3, %c0_4] : memref<8x128xbf16, #tpu.memory_space<vmem>>, vector<8x128xbf16>
    %5 = vector.shape_cast %4 : vector<8x128xbf16> to vector<1x8x128xbf16>
    %6 = vector.broadcast %5 : vector<1x8x128xbf16> to vector<16x8x128xbf16>
    %7 = arith.addf %3, %6 : vector<16x8x128xbf16>
    %cst = arith.constant 0.000000e+00 : bf16
    %8 = vector.broadcast %cst : bf16 to vector<16x8x128xbf16>
    %9 = arith.maximumf %7, %8 : vector<16x8x128xbf16>
    %10 = vector.shape_cast %9 : vector<16x8x128xbf16> to vector<128x128xbf16>
    %c0_5 = arith.constant 0 : index
    %c0_6 = arith.constant 0 : index
    %11 = vector.load %arg5[%c0_5, %c0_6] : memref<128x128xbf16, #tpu.memory_space<vmem>>, vector<128x128xbf16>
    %cst_7 = arith.constant dense<0.000000e+00> : vector<128x128xf32>
    %12 = tpu.matmul %10, %11, %cst_7 {dimension_numbers = #tpu.dot_dimension_numbers<[1], [0], [0], [1], [0, 0, 1, 1], [], []>} : vector<128x128xbf16>, vector<128x128xbf16>, vector<128x128xf32> -> vector<128x128xf32>
    %c0_8 = arith.constant 0 : index
    %c0_9 = arith.constant 0 : index
    %13 = vector.load %arg6[%c0_8, %c0_9] : memref<1x128xf32, #tpu.memory_space<vmem>>, vector<1x128xf32>
    %14 = vector.broadcast %13 : vector<1x128xf32> to vector<128x128xf32>
    %15 = arith.addf %12, %14 : vector<128x128xf32>
    %16 = arith.truncf %15 : vector<128x128xf32> to vector<128x128xbf16>
    %cst_10 = arith.constant 0.000000e+00 : bf16
    %17 = vector.broadcast %cst_10 : bf16 to vector<128x128xbf16>
    %18 = arith.maximumf %16, %17 : vector<128x128xbf16>
    %c0_11 = arith.constant 0 : index
    %c0_12 = arith.constant 0 : index
    %19 = vector.load %arg7[%c0_11, %c0_12] : memref<128x256xbf16, #tpu.memory_space<vmem>>, vector<128x256xbf16>
    %cst_13 = arith.constant dense<0.000000e+00> : vector<128x256xf32>
    %20 = tpu.matmul %18, %19, %cst_13 {dimension_numbers = #tpu.dot_dimension_numbers<[1], [0], [0], [1], [0, 0, 1, 1], [], []>} : vector<128x128xbf16>, vector<128x256xbf16>, vector<128x256xf32> -> vector<128x256xf32>
    %21 = vector.shape_cast %20 : vector<128x256xf32> to vector<16x8x256xf32>
    %c0_14 = arith.constant 0 : index
    %c0_15 = arith.constant 0 : index
    %22 = vector.load %arg3[%c0_14, %c0_15] : memref<16x8xf32, #tpu.memory_space<vmem>>, vector<16x8xf32>
    %23 = vector.shape_cast %22 : vector<16x8xf32> to vector<16x8x1xf32>
    %cst_16 = arith.constant 5.000000e-01 : f32
    %24 = vector.broadcast %cst_16 : f32 to vector<16x8x1xf32>
    %25 = arith.cmpf ogt, %23, %24 : vector<16x8x1xf32>
    %cst_17 = arith.constant -1.000000e+30 : f32
    %26 = vector.shape_cast %25 : vector<16x8x1xi1> to vector<16x8x1xi1>
    %27 = vector.broadcast %26 : vector<16x8x1xi1> to vector<16x8x256xi1>
    %28 = vector.broadcast %cst_17 : f32 to vector<16x8x256xf32>
    %29 = arith.select %27, %21, %28 : vector<16x8x256xi1>, vector<16x8x256xf32>
    %cst_18 = arith.constant dense<0xFF800000> : vector<8x256xf32>
    %30 = vector.multi_reduction <maximumf>, %29, %cst_18 [0] : vector<16x8x256xf32> to vector<8x256xf32>
    %c0_19 = arith.constant 0 : index
    %c0_20 = arith.constant 0 : index
    %31 = vector.load %arg10[%c0_19, %c0_20] : memref<8x256xf32, #tpu.memory_space<vmem>>, vector<8x256xf32>
    %32 = arith.maximumf %31, %30 : vector<8x256xf32>
    %c0_21 = arith.constant 0 : index
    %c0_22 = arith.constant 0 : index
    %33 = vector.load %arg10[%c0_21, %c0_22] : memref<8x256xf32, #tpu.memory_space<vmem>>, vector<8x256xf32>
    tpu.vector_store %arg10[%c0_21, %c0_22], %32 {strides = array<i32>} : memref<8x256xf32, #tpu.memory_space<vmem>>, vector<8x256xf32>,
    %c0_i32_23 = arith.constant 0 : i32
    %34 = arith.cmpi eq, %arg1, %c0_i32_23 : i32
    %35 = arith.extui %34 : i1 to i32
    %c0_i32_24 = arith.constant 0 : i32
    %36 = arith.cmpi ne, %35, %c0_i32_24 : i32
    scf.if %36 {
      %c0_25 = arith.constant 0 : index
      %c0_26 = arith.constant 0 : index
      %37 = vector.load %arg10[%c0_25, %c0_26] : memref<8x256xf32, #tpu.memory_space<vmem>>, vector<8x256xf32>
      %c0_27 = arith.constant 0 : index
      %c0_28 = arith.constant 0 : index
      %38 = vector.load %arg8[%c0_27, %c0_28] : memref<1x256xf32, #tpu.memory_space<vmem>>, vector<1x256xf32>
      %39 = vector.broadcast %38 : vector<1x256xf32> to vector<8x256xf32>
      %40 = arith.addf %37, %39 : vector<8x256xf32>
      %41 = arith.truncf %40 : vector<8x256xf32> to vector<8x256xbf16>
      %c0_29 = arith.constant 0 : index
      %c0_30 = arith.constant 0 : index
      %42 = vector.load %arg9[%c0_29, %c0_30] : memref<8x256xbf16, #tpu.memory_space<vmem>>, vector<8x256xbf16>
      tpu.vector_store %arg9[%c0_29, %c0_30], %41 {strides = array<i32>} : memref<8x256xbf16, #tpu.memory_space<vmem>>, vector<8x256xbf16>,
    } else {
    }
    return
  }
  func.func @transform_0(%arg0: i32, %arg1: i32) -> (i32, i32, i32) {
    %c0_i32 = arith.constant 0 : i32
    %c0_i32_0 = arith.constant 0 : i32
    return %arg1, %arg0, %c0_i32 : i32, i32, i32
  }
  func.func @transform_1(%arg0: i32, %arg1: i32) -> (i32, i32) {
    %c0_i32 = arith.constant 0 : i32
    return %arg1, %arg0 : i32, i32
  }
  func.func @transform_2(%arg0: i32, %arg1: i32) -> (i32, i32) {
    %c0_i32 = arith.constant 0 : i32
    %c0_i32_0 = arith.constant 0 : i32
    return %arg0, %c0_i32 : i32, i32
  }
  func.func @transform_3(%arg0: i32, %arg1: i32) -> (i32, i32) {
    %c0_i32 = arith.constant 0 : i32
    %c0_i32_0 = arith.constant 0 : i32
    %c0_i32_1 = arith.constant 0 : i32
    return %c0_i32, %c0_i32_0 : i32, i32
  }
  func.func @transform_4(%arg0: i32, %arg1: i32) -> (i32, i32) {
    %c0_i32 = arith.constant 0 : i32
    %c0_i32_0 = arith.constant 0 : i32
    %c0_i32_1 = arith.constant 0 : i32
    return %c0_i32, %c0_i32_0 : i32, i32
  }
  func.func @transform_5(%arg0: i32, %arg1: i32) -> (i32, i32) {
    %c0_i32 = arith.constant 0 : i32
    %c0_i32_0 = arith.constant 0 : i32
    %c0_i32_1 = arith.constant 0 : i32
    return %c0_i32, %c0_i32_0 : i32, i32
  }
  func.func @transform_6(%arg0: i32, %arg1: i32) -> (i32, i32) {
    %c0_i32 = arith.constant 0 : i32
    %c0_i32_0 = arith.constant 0 : i32
    %c0_i32_1 = arith.constant 0 : i32
    return %c0_i32, %c0_i32_0 : i32, i32
  }
  func.func @transform_7(%arg0: i32, %arg1: i32) -> (i32, i32) {
    %c0_i32 = arith.constant 0 : i32
    %c0_i32_0 = arith.constant 0 : i32
    return %arg0, %c0_i32 : i32, i32
  }
}

module attributes {stable_mosaic.version = 11 : i64} {
  func.func @_global_pool_kernel(%arg0: i32, %arg1: memref<2x2x256xbf16, #tpu.memory_space<vmem>>, %arg2: memref<2x2x8xbf16, #tpu.memory_space<vmem>>, %arg3: memref<256x256xbf16, #tpu.memory_space<vmem>>, %arg4: memref<8x256xbf16, #tpu.memory_space<vmem>>, %arg5: memref<1x256xf32, #tpu.memory_space<vmem>>, %arg6: memref<256x512xbf16, #tpu.memory_space<vmem>>, %arg7: memref<1x512xf32, #tpu.memory_space<vmem>>, %arg8: memref<512x1024xbf16, #tpu.memory_space<vmem>>, %arg9: memref<1x1024xf32, #tpu.memory_space<vmem>>, %arg10: memref<2x1x1024xbf16, #tpu.memory_space<vmem>>) attributes {dimension_semantics = [#tpu.dimension_semantics<parallel>], iteration_bounds = array<i64: 1>, scalar_prefetch = 0 : i64, scratch_operands = 0 : i64, tpu.core_type = #tpu.core_type<tc>, window_params = [{transform_indices = @transform_0, window_bounds = array<i64: 2, 2, 256>}, {transform_indices = @transform_1, window_bounds = array<i64: 2, 2, 8>}, {pipeline_mode = #tpu.pipeline_mode<synchronous>, transform_indices = @transform_2, window_bounds = array<i64: 256, 256>}, {pipeline_mode = #tpu.pipeline_mode<synchronous>, transform_indices = @transform_3, window_bounds = array<i64: 8, 256>}, {pipeline_mode = #tpu.pipeline_mode<synchronous>, transform_indices = @transform_4, window_bounds = array<i64: 1, 256>}, {pipeline_mode = #tpu.pipeline_mode<synchronous>, transform_indices = @transform_5, window_bounds = array<i64: 256, 512>}, {pipeline_mode = #tpu.pipeline_mode<synchronous>, transform_indices = @transform_6, window_bounds = array<i64: 1, 512>}, {pipeline_mode = #tpu.pipeline_mode<synchronous>, transform_indices = @transform_7, window_bounds = array<i64: 512, 1024>}, {pipeline_mode = #tpu.pipeline_mode<synchronous>, transform_indices = @transform_8, window_bounds = array<i64: 1, 1024>}, {transform_indices = @transform_9, window_bounds = array<i64: 2, 1, 1024>}]} {
    %c0 = arith.constant 0 : index
    %c0_0 = arith.constant 0 : index
    %c0_1 = arith.constant 0 : index
    %0 = vector.load %arg1[%c0, %c0_0, %c0_1] : memref<2x2x256xbf16, #tpu.memory_space<vmem>>, vector<1x2x256xbf16>
    %1 = vector.shape_cast %0 : vector<1x2x256xbf16> to vector<2x256xbf16>
    %c0_2 = arith.constant 0 : index
    %c0_3 = arith.constant 0 : index
    %c0_4 = arith.constant 0 : index
    %2 = vector.load %arg2[%c0_2, %c0_3, %c0_4] : memref<2x2x8xbf16, #tpu.memory_space<vmem>>, vector<1x2x8xbf16>
    %3 = vector.shape_cast %2 : vector<1x2x8xbf16> to vector<2x8xbf16>
    %c0_5 = arith.constant 0 : index
    %c0_6 = arith.constant 0 : index
    %4 = vector.load %arg3[%c0_5, %c0_6] : memref<256x256xbf16, #tpu.memory_space<vmem>>, vector<256x256xbf16>
    %cst = arith.constant dense<0.000000e+00> : vector<2x256xf32>
    %5 = tpu.matmul %1, %4, %cst {dimension_numbers = #tpu.dot_dimension_numbers<[1], [0], [0], [1], [0, 0, 1, 1], [], []>} : vector<2x256xbf16>, vector<256x256xbf16>, vector<2x256xf32> -> vector<2x256xf32>
    %c0_7 = arith.constant 0 : index
    %c0_8 = arith.constant 0 : index
    %6 = vector.load %arg4[%c0_7, %c0_8] : memref<8x256xbf16, #tpu.memory_space<vmem>>, vector<8x256xbf16>
    %cst_9 = arith.constant dense<0.000000e+00> : vector<2x256xf32>
    %7 = tpu.matmul %3, %6, %cst_9 {dimension_numbers = #tpu.dot_dimension_numbers<[1], [0], [0], [1], [0, 0, 1, 1], [], []>} : vector<2x8xbf16>, vector<8x256xbf16>, vector<2x256xf32> -> vector<2x256xf32>
    %8 = arith.addf %5, %7 : vector<2x256xf32>
    %c0_10 = arith.constant 0 : index
    %c0_11 = arith.constant 0 : index
    %9 = vector.load %arg5[%c0_10, %c0_11] : memref<1x256xf32, #tpu.memory_space<vmem>>, vector<1x256xf32>
    %10 = vector.broadcast %9 : vector<1x256xf32> to vector<2x256xf32>
    %11 = arith.addf %8, %10 : vector<2x256xf32>
    %12 = arith.truncf %11 : vector<2x256xf32> to vector<2x256xbf16>
    %cst_12 = arith.constant 0.000000e+00 : bf16
    %13 = vector.broadcast %cst_12 : bf16 to vector<2x256xbf16>
    %14 = arith.maximumf %12, %13 : vector<2x256xbf16>
    %c0_13 = arith.constant 0 : index
    %c0_14 = arith.constant 0 : index
    %15 = vector.load %arg6[%c0_13, %c0_14] : memref<256x512xbf16, #tpu.memory_space<vmem>>, vector<256x512xbf16>
    %cst_15 = arith.constant dense<0.000000e+00> : vector<2x512xf32>
    %16 = tpu.matmul %14, %15, %cst_15 {dimension_numbers = #tpu.dot_dimension_numbers<[1], [0], [0], [1], [0, 0, 1, 1], [], []>} : vector<2x256xbf16>, vector<256x512xbf16>, vector<2x512xf32> -> vector<2x512xf32>
    %c0_16 = arith.constant 0 : index
    %c0_17 = arith.constant 0 : index
    %17 = vector.load %arg7[%c0_16, %c0_17] : memref<1x512xf32, #tpu.memory_space<vmem>>, vector<1x512xf32>
    %18 = vector.broadcast %17 : vector<1x512xf32> to vector<2x512xf32>
    %19 = arith.addf %16, %18 : vector<2x512xf32>
    %20 = arith.truncf %19 : vector<2x512xf32> to vector<2x512xbf16>
    %cst_18 = arith.constant 0.000000e+00 : bf16
    %21 = vector.broadcast %cst_18 : bf16 to vector<2x512xbf16>
    %22 = arith.maximumf %20, %21 : vector<2x512xbf16>
    %c0_19 = arith.constant 0 : index
    %c0_20 = arith.constant 0 : index
    %23 = vector.load %arg8[%c0_19, %c0_20] : memref<512x1024xbf16, #tpu.memory_space<vmem>>, vector<512x1024xbf16>
    %cst_21 = arith.constant dense<0.000000e+00> : vector<2x1024xf32>
    %24 = tpu.matmul %22, %23, %cst_21 {dimension_numbers = #tpu.dot_dimension_numbers<[1], [0], [0], [1], [0, 0, 1, 1], [], []>} : vector<2x512xbf16>, vector<512x1024xbf16>, vector<2x1024xf32> -> vector<2x1024xf32>
    %c0_22 = arith.constant 0 : index
    %c0_23 = arith.constant 0 : index
    %25 = vector.load %arg9[%c0_22, %c0_23] : memref<1x1024xf32, #tpu.memory_space<vmem>>, vector<1x1024xf32>
    %26 = vector.broadcast %25 : vector<1x1024xf32> to vector<2x1024xf32>
    %27 = arith.addf %24, %26 : vector<2x1024xf32>
    %cst_24 = arith.constant dense<0xFF800000> : vector<1024xf32>
    %28 = vector.multi_reduction <maximumf>, %27, %cst_24 [0] : vector<2x1024xf32> to vector<1024xf32>
    %29 = vector.shape_cast %28 : vector<1024xf32> to vector<1x1024xf32>
    %30 = arith.truncf %29 : vector<1x1024xf32> to vector<1x1024xbf16>
    %c0_25 = arith.constant 0 : index
    %c0_26 = arith.constant 0 : index
    %c0_27 = arith.constant 0 : index
    %31 = vector.load %arg10[%c0_25, %c0_26, %c0_27] : memref<2x1x1024xbf16, #tpu.memory_space<vmem>>, vector<1x1x1024xbf16>
    %32 = vector.shape_cast %31 : vector<1x1x1024xbf16> to vector<1x1024xbf16>
    %33 = vector.shape_cast %30 : vector<1x1024xbf16> to vector<1x1x1024xbf16>
    tpu.vector_store %arg10[%c0_25, %c0_26, %c0_27], %33 {strides = array<i32>} : memref<2x1x1024xbf16, #tpu.memory_space<vmem>>, vector<1x1x1024xbf16>,
    %c1 = arith.constant 1 : index
    %c0_28 = arith.constant 0 : index
    %c0_29 = arith.constant 0 : index
    %34 = vector.load %arg1[%c1, %c0_28, %c0_29] : memref<2x2x256xbf16, #tpu.memory_space<vmem>>, vector<1x2x256xbf16>
    %35 = vector.shape_cast %34 : vector<1x2x256xbf16> to vector<2x256xbf16>
    %c1_30 = arith.constant 1 : index
    %c0_31 = arith.constant 0 : index
    %c0_32 = arith.constant 0 : index
    %36 = vector.load %arg2[%c1_30, %c0_31, %c0_32] : memref<2x2x8xbf16, #tpu.memory_space<vmem>>, vector<1x2x8xbf16>
    %37 = vector.shape_cast %36 : vector<1x2x8xbf16> to vector<2x8xbf16>
    %c0_33 = arith.constant 0 : index
    %c0_34 = arith.constant 0 : index
    %38 = vector.load %arg3[%c0_33, %c0_34] : memref<256x256xbf16, #tpu.memory_space<vmem>>, vector<256x256xbf16>
    %cst_35 = arith.constant dense<0.000000e+00> : vector<2x256xf32>
    %39 = tpu.matmul %35, %38, %cst_35 {dimension_numbers = #tpu.dot_dimension_numbers<[1], [0], [0], [1], [0, 0, 1, 1], [], []>} : vector<2x256xbf16>, vector<256x256xbf16>, vector<2x256xf32> -> vector<2x256xf32>
    %c0_36 = arith.constant 0 : index
    %c0_37 = arith.constant 0 : index
    %40 = vector.load %arg4[%c0_36, %c0_37] : memref<8x256xbf16, #tpu.memory_space<vmem>>, vector<8x256xbf16>
    %cst_38 = arith.constant dense<0.000000e+00> : vector<2x256xf32>
    %41 = tpu.matmul %37, %40, %cst_38 {dimension_numbers = #tpu.dot_dimension_numbers<[1], [0], [0], [1], [0, 0, 1, 1], [], []>} : vector<2x8xbf16>, vector<8x256xbf16>, vector<2x256xf32> -> vector<2x256xf32>
    %42 = arith.addf %39, %41 : vector<2x256xf32>
    %c0_39 = arith.constant 0 : index
    %c0_40 = arith.constant 0 : index
    %43 = vector.load %arg5[%c0_39, %c0_40] : memref<1x256xf32, #tpu.memory_space<vmem>>, vector<1x256xf32>
    %44 = vector.broadcast %43 : vector<1x256xf32> to vector<2x256xf32>
    %45 = arith.addf %42, %44 : vector<2x256xf32>
    %46 = arith.truncf %45 : vector<2x256xf32> to vector<2x256xbf16>
    %cst_41 = arith.constant 0.000000e+00 : bf16
    %47 = vector.broadcast %cst_41 : bf16 to vector<2x256xbf16>
    %48 = arith.maximumf %46, %47 : vector<2x256xbf16>
    %c0_42 = arith.constant 0 : index
    %c0_43 = arith.constant 0 : index
    %49 = vector.load %arg6[%c0_42, %c0_43] : memref<256x512xbf16, #tpu.memory_space<vmem>>, vector<256x512xbf16>
    %cst_44 = arith.constant dense<0.000000e+00> : vector<2x512xf32>
    %50 = tpu.matmul %48, %49, %cst_44 {dimension_numbers = #tpu.dot_dimension_numbers<[1], [0], [0], [1], [0, 0, 1, 1], [], []>} : vector<2x256xbf16>, vector<256x512xbf16>, vector<2x512xf32> -> vector<2x512xf32>
    %c0_45 = arith.constant 0 : index
    %c0_46 = arith.constant 0 : index
    %51 = vector.load %arg7[%c0_45, %c0_46] : memref<1x512xf32, #tpu.memory_space<vmem>>, vector<1x512xf32>
    %52 = vector.broadcast %51 : vector<1x512xf32> to vector<2x512xf32>
    %53 = arith.addf %50, %52 : vector<2x512xf32>
    %54 = arith.truncf %53 : vector<2x512xf32> to vector<2x512xbf16>
    %cst_47 = arith.constant 0.000000e+00 : bf16
    %55 = vector.broadcast %cst_47 : bf16 to vector<2x512xbf16>
    %56 = arith.maximumf %54, %55 : vector<2x512xbf16>
    %c0_48 = arith.constant 0 : index
    %c0_49 = arith.constant 0 : index
    %57 = vector.load %arg8[%c0_48, %c0_49] : memref<512x1024xbf16, #tpu.memory_space<vmem>>, vector<512x1024xbf16>
    %cst_50 = arith.constant dense<0.000000e+00> : vector<2x1024xf32>
    %58 = tpu.matmul %56, %57, %cst_50 {dimension_numbers = #tpu.dot_dimension_numbers<[1], [0], [0], [1], [0, 0, 1, 1], [], []>} : vector<2x512xbf16>, vector<512x1024xbf16>, vector<2x1024xf32> -> vector<2x1024xf32>
    %c0_51 = arith.constant 0 : index
    %c0_52 = arith.constant 0 : index
    %59 = vector.load %arg9[%c0_51, %c0_52] : memref<1x1024xf32, #tpu.memory_space<vmem>>, vector<1x1024xf32>
    %60 = vector.broadcast %59 : vector<1x1024xf32> to vector<2x1024xf32>
    %61 = arith.addf %58, %60 : vector<2x1024xf32>
    %cst_53 = arith.constant dense<0xFF800000> : vector<1024xf32>
    %62 = vector.multi_reduction <maximumf>, %61, %cst_53 [0] : vector<2x1024xf32> to vector<1024xf32>
    %63 = vector.shape_cast %62 : vector<1024xf32> to vector<1x1024xf32>
    %64 = arith.truncf %63 : vector<1x1024xf32> to vector<1x1024xbf16>
    %c1_54 = arith.constant 1 : index
    %c0_55 = arith.constant 0 : index
    %c0_56 = arith.constant 0 : index
    %65 = vector.load %arg10[%c1_54, %c0_55, %c0_56] : memref<2x1x1024xbf16, #tpu.memory_space<vmem>>, vector<1x1x1024xbf16>
    %66 = vector.shape_cast %65 : vector<1x1x1024xbf16> to vector<1x1024xbf16>
    %67 = vector.shape_cast %64 : vector<1x1024xbf16> to vector<1x1x1024xbf16>
    tpu.vector_store %arg10[%c1_54, %c0_55, %c0_56], %67 {strides = array<i32>} : memref<2x1x1024xbf16, #tpu.memory_space<vmem>>, vector<1x1x1024xbf16>,
    return
  }
  func.func @transform_0(%arg0: i32) -> (i32, i32, i32) {
    %c0_i32 = arith.constant 0 : i32
    %c0_i32_0 = arith.constant 0 : i32
    %c0_i32_1 = arith.constant 0 : i32
    return %arg0, %c0_i32, %c0_i32_0 : i32, i32, i32
  }
  func.func @transform_1(%arg0: i32) -> (i32, i32, i32) {
    %c0_i32 = arith.constant 0 : i32
    %c0_i32_0 = arith.constant 0 : i32
    %c0_i32_1 = arith.constant 0 : i32
    return %arg0, %c0_i32, %c0_i32_0 : i32, i32, i32
  }
  func.func @transform_2(%arg0: i32) -> (i32, i32) {
    %c0_i32 = arith.constant 0 : i32
    %c0_i32_0 = arith.constant 0 : i32
    %c0_i32_1 = arith.constant 0 : i32
    return %c0_i32, %c0_i32_0 : i32, i32
  }
  func.func @transform_3(%arg0: i32) -> (i32, i32) {
    %c0_i32 = arith.constant 0 : i32
    %c0_i32_0 = arith.constant 0 : i32
    %c0_i32_1 = arith.constant 0 : i32
    return %c0_i32, %c0_i32_0 : i32, i32
  }
  func.func @transform_4(%arg0: i32) -> (i32, i32) {
    %c0_i32 = arith.constant 0 : i32
    %c0_i32_0 = arith.constant 0 : i32
    %c0_i32_1 = arith.constant 0 : i32
    return %c0_i32, %c0_i32_0 : i32, i32
  }
  func.func @transform_5(%arg0: i32) -> (i32, i32) {
    %c0_i32 = arith.constant 0 : i32
    %c0_i32_0 = arith.constant 0 : i32
    %c0_i32_1 = arith.constant 0 : i32
    return %c0_i32, %c0_i32_0 : i32, i32
  }
  func.func @transform_6(%arg0: i32) -> (i32, i32) {
    %c0_i32 = arith.constant 0 : i32
    %c0_i32_0 = arith.constant 0 : i32
    %c0_i32_1 = arith.constant 0 : i32
    return %c0_i32, %c0_i32_0 : i32, i32
  }
  func.func @transform_7(%arg0: i32) -> (i32, i32) {
    %c0_i32 = arith.constant 0 : i32
    %c0_i32_0 = arith.constant 0 : i32
    %c0_i32_1 = arith.constant 0 : i32
    return %c0_i32, %c0_i32_0 : i32, i32
  }
  func.func @transform_8(%arg0: i32) -> (i32, i32) {
    %c0_i32 = arith.constant 0 : i32
    %c0_i32_0 = arith.constant 0 : i32
    %c0_i32_1 = arith.constant 0 : i32
    return %c0_i32, %c0_i32_0 : i32, i32
  }
  func.func @transform_9(%arg0: i32) -> (i32, i32, i32) {
    %c0_i32 = arith.constant 0 : i32
    %c0_i32_0 = arith.constant 0 : i32
    %c0_i32_1 = arith.constant 0 : i32
    return %arg0, %c0_i32, %c0_i32_0 : i32, i32, i32
  }
}

module attributes {stable_mosaic.version = 11 : i64} {
  func.func @_head_kernel(%arg0: i32, %arg1: memref<2x1024xbf16, #tpu.memory_space<vmem>>, %arg2: memref<1024x512xbf16, #tpu.memory_space<vmem>>, %arg3: memref<1x512xf32, #tpu.memory_space<vmem>>, %arg4: memref<512x256xbf16, #tpu.memory_space<vmem>>, %arg5: memref<1x256xf32, #tpu.memory_space<vmem>>, %arg6: memref<256x10xbf16, #tpu.memory_space<vmem>>, %arg7: memref<1x10xf32, #tpu.memory_space<vmem>>, %arg8: memref<2x10xf32, #tpu.memory_space<vmem>>) attributes {dimension_semantics = [#tpu.dimension_semantics<arbitrary>], iteration_bounds = array<i64: 1>, scalar_prefetch = 0 : i64, scratch_operands = 0 : i64, tpu.core_type = #tpu.core_type<tc>, window_params = [{pipeline_mode = #tpu.pipeline_mode<synchronous>, transform_indices = @transform_0, window_bounds = array<i64: 2, 1024>}, {pipeline_mode = #tpu.pipeline_mode<synchronous>, transform_indices = @transform_1, window_bounds = array<i64: 1024, 512>}, {pipeline_mode = #tpu.pipeline_mode<synchronous>, transform_indices = @transform_2, window_bounds = array<i64: 1, 512>}, {pipeline_mode = #tpu.pipeline_mode<synchronous>, transform_indices = @transform_3, window_bounds = array<i64: 512, 256>}, {pipeline_mode = #tpu.pipeline_mode<synchronous>, transform_indices = @transform_4, window_bounds = array<i64: 1, 256>}, {pipeline_mode = #tpu.pipeline_mode<synchronous>, transform_indices = @transform_5, window_bounds = array<i64: 256, 10>}, {pipeline_mode = #tpu.pipeline_mode<synchronous>, transform_indices = @transform_6, window_bounds = array<i64: 1, 10>}, {pipeline_mode = #tpu.pipeline_mode<synchronous>, transform_indices = @transform_7, window_bounds = array<i64: 2, 10>}]} {
    %c0 = arith.constant 0 : index
    %c0_0 = arith.constant 0 : index
    %0 = vector.load %arg1[%c0, %c0_0] : memref<2x1024xbf16, #tpu.memory_space<vmem>>, vector<2x1024xbf16>
    %c0_1 = arith.constant 0 : index
    %c0_2 = arith.constant 0 : index
    %1 = vector.load %arg2[%c0_1, %c0_2] : memref<1024x512xbf16, #tpu.memory_space<vmem>>, vector<1024x512xbf16>
    %cst = arith.constant dense<0.000000e+00> : vector<2x512xf32>
    %2 = tpu.matmul %0, %1, %cst {dimension_numbers = #tpu.dot_dimension_numbers<[1], [0], [0], [1], [0, 0, 1, 1], [], []>} : vector<2x1024xbf16>, vector<1024x512xbf16>, vector<2x512xf32> -> vector<2x512xf32>
    %c0_3 = arith.constant 0 : index
    %c0_4 = arith.constant 0 : index
    %3 = vector.load %arg3[%c0_3, %c0_4] : memref<1x512xf32, #tpu.memory_space<vmem>>, vector<1x512xf32>
    %4 = vector.broadcast %3 : vector<1x512xf32> to vector<2x512xf32>
    %5 = arith.addf %2, %4 : vector<2x512xf32>
    %cst_5 = arith.constant 0.000000e+00 : f32
    %6 = vector.broadcast %cst_5 : f32 to vector<2x512xf32>
    %7 = arith.maximumf %5, %6 : vector<2x512xf32>
    %8 = arith.truncf %7 : vector<2x512xf32> to vector<2x512xbf16>
    %c0_6 = arith.constant 0 : index
    %c0_7 = arith.constant 0 : index
    %9 = vector.load %arg4[%c0_6, %c0_7] : memref<512x256xbf16, #tpu.memory_space<vmem>>, vector<512x256xbf16>
    %cst_8 = arith.constant dense<0.000000e+00> : vector<2x256xf32>
    %10 = tpu.matmul %8, %9, %cst_8 {dimension_numbers = #tpu.dot_dimension_numbers<[1], [0], [0], [1], [0, 0, 1, 1], [], []>} : vector<2x512xbf16>, vector<512x256xbf16>, vector<2x256xf32> -> vector<2x256xf32>
    %c0_9 = arith.constant 0 : index
    %c0_10 = arith.constant 0 : index
    %11 = vector.load %arg5[%c0_9, %c0_10] : memref<1x256xf32, #tpu.memory_space<vmem>>, vector<1x256xf32>
    %12 = vector.broadcast %11 : vector<1x256xf32> to vector<2x256xf32>
    %13 = arith.addf %10, %12 : vector<2x256xf32>
    %cst_11 = arith.constant 0.000000e+00 : f32
    %14 = vector.broadcast %cst_11 : f32 to vector<2x256xf32>
    %15 = arith.maximumf %13, %14 : vector<2x256xf32>
    %16 = arith.truncf %15 : vector<2x256xf32> to vector<2x256xbf16>
    %c0_12 = arith.constant 0 : index
    %c0_13 = arith.constant 0 : index
    %17 = vector.load %arg6[%c0_12, %c0_13] : memref<256x10xbf16, #tpu.memory_space<vmem>>, vector<256x10xbf16>
    %cst_14 = arith.constant dense<0.000000e+00> : vector<2x10xf32>
    %18 = tpu.matmul %16, %17, %cst_14 {dimension_numbers = #tpu.dot_dimension_numbers<[1], [0], [0], [1], [0, 0, 1, 1], [], []>} : vector<2x256xbf16>, vector<256x10xbf16>, vector<2x10xf32> -> vector<2x10xf32>
    %c0_15 = arith.constant 0 : index
    %c0_16 = arith.constant 0 : index
    %19 = vector.load %arg7[%c0_15, %c0_16] : memref<1x10xf32, #tpu.memory_space<vmem>>, vector<1x10xf32>
    %20 = vector.broadcast %19 : vector<1x10xf32> to vector<2x10xf32>
    %21 = arith.addf %18, %20 : vector<2x10xf32>
    %cst_17 = arith.constant dense<0xFF800000> : vector<2xf32>
    %22 = vector.multi_reduction <maximumf>, %21, %cst_17 [1] : vector<2x10xf32> to vector<2xf32>
    %23 = vector.shape_cast %22 : vector<2xf32> to vector<2x1xf32>
    %24 = vector.broadcast %23 : vector<2x1xf32> to vector<2x10xf32>
    %25 = arith.subf %21, %24 : vector<2x10xf32>
    %26 = math.exp %25 : vector<2x10xf32>
    %cst_18 = arith.constant dense<0.000000e+00> : vector<2xf32>
    %27 = vector.multi_reduction <add>, %26, %cst_18 [1] : vector<2x10xf32> to vector<2xf32>
    %28 = vector.shape_cast %27 : vector<2xf32> to vector<2x1xf32>
    %29 = math.log %28 : vector<2x1xf32>
    %30 = vector.broadcast %29 : vector<2x1xf32> to vector<2x10xf32>
    %31 = arith.subf %25, %30 : vector<2x10xf32>
    %c0_19 = arith.constant 0 : index
    %c0_20 = arith.constant 0 : index
    %32 = vector.load %arg8[%c0_19, %c0_20] : memref<2x10xf32, #tpu.memory_space<vmem>>, vector<2x10xf32>
    tpu.vector_store %arg8[%c0_19, %c0_20], %31 {strides = array<i32>} : memref<2x10xf32, #tpu.memory_space<vmem>>, vector<2x10xf32>,
    return
  }
  func.func @transform_0(%arg0: i32) -> (i32, i32) {
    %c0_i32 = arith.constant 0 : i32
    %c0_i32_0 = arith.constant 0 : i32
    %c0_i32_1 = arith.constant 0 : i32
    return %c0_i32, %c0_i32_0 : i32, i32
  }
  func.func @transform_1(%arg0: i32) -> (i32, i32) {
    %c0_i32 = arith.constant 0 : i32
    %c0_i32_0 = arith.constant 0 : i32
    %c0_i32_1 = arith.constant 0 : i32
    return %c0_i32, %c0_i32_0 : i32, i32
  }
  func.func @transform_2(%arg0: i32) -> (i32, i32) {
    %c0_i32 = arith.constant 0 : i32
    %c0_i32_0 = arith.constant 0 : i32
    %c0_i32_1 = arith.constant 0 : i32
    return %c0_i32, %c0_i32_0 : i32, i32
  }
  func.func @transform_3(%arg0: i32) -> (i32, i32) {
    %c0_i32 = arith.constant 0 : i32
    %c0_i32_0 = arith.constant 0 : i32
    %c0_i32_1 = arith.constant 0 : i32
    return %c0_i32, %c0_i32_0 : i32, i32
  }
  func.func @transform_4(%arg0: i32) -> (i32, i32) {
    %c0_i32 = arith.constant 0 : i32
    %c0_i32_0 = arith.constant 0 : i32
    %c0_i32_1 = arith.constant 0 : i32
    return %c0_i32, %c0_i32_0 : i32, i32
  }
  func.func @transform_5(%arg0: i32) -> (i32, i32) {
    %c0_i32 = arith.constant 0 : i32
    %c0_i32_0 = arith.constant 0 : i32
    %c0_i32_1 = arith.constant 0 : i32
    return %c0_i32, %c0_i32_0 : i32, i32
  }
  func.func @transform_6(%arg0: i32) -> (i32, i32) {
    %c0_i32 = arith.constant 0 : i32
    %c0_i32_0 = arith.constant 0 : i32
    %c0_i32_1 = arith.constant 0 : i32
    return %c0_i32, %c0_i32_0 : i32, i32
  }
  func.func @transform_7(%arg0: i32) -> (i32, i32) {
    %c0_i32 = arith.constant 0 : i32
    %c0_i32_0 = arith.constant 0 : i32
    %c0_i32_1 = arith.constant 0 : i32
    return %c0_i32, %c0_i32_0 : i32, i32
  }
}

</mosaic_0001>

<bundles_post_ra>
// kernel: custom-call.4
= control target key start
LH: loop header
LB: loop body
LE: loop exit
PB: predicated region body
PF: predicated region fallthrough
CT: control target
= control target key end

     0   :  { %s6_s0 = inlined_call_operand.vmem [shape: f32[2,16], index: 0, kind: output, shape index: {}]  }

// kernel: net_forward.5
= control target key start
LH: loop header
LB: loop body
LE: loop exit
PB: predicated region body
PF: predicated region fallthrough
CT: control target
= control target key end

     0   :  { %s1333_s3 = inlined_call_operand.vmem [shape: bf16[128,128], index: 3, kind: input, shape index: {}]   ;;  %s1334_s0 = inlined_call_operand.vmem [shape: bf16[16,8,128], index: 0, kind: input, shape index: {}]   ;;  %s1335_s2 = inlined_call_operand.vmem [shape: bf16[8,128], index: 2, kind: input, shape index: {}]   ;;  %s1336_s4 = inlined_call_operand.vmem [shape: f32[1,128], index: 4, kind: input, shape index: {}]   ;;  %s1337_s5 = inlined_call_operand.vmem [shape: bf16[128,256], index: 5, kind: input, shape index: {}]   ;;  %s1338_s1 = inlined_call_operand.vmem [shape: f32[16,8], index: 1, kind: input, shape index: {}]   ;;  %s1339_s6 = inlined_call_operand.vmem [shape: f32[1,256], index: 6, kind: input, shape index: {}]   ;;  %s1340_s7 = inlined_call_operand.vmem [shape: bf16[8,256], index: 7, kind: output, shape index: {}]  }
   0x1   :  { %v913_v0 = vld [vmem:[%s1333_s3 + $0x38] sm:$0xff]  ;;  %v912_v1 = vld [vmem:[%s1333_s3 + $0x30] sm:$0xff]  ;;  %v931_v2 = vld [vmem:[%s1334_s0] sm:$0xff]  }
   0x2   :  { %262 = vmatpush.bf16.msra.mxu0 %v913_v0  ;;  %969 = vmatpush.bf16.msra.mxu3 %v913_v0  ;;  %v911_v3 = vld [vmem:[%s1333_s3 + $0x28] sm:$0xff]  ;;  %v48_v4 = vld [vmem:[%s1335_s2] sm:$0xf]  ;;  %v967_v5 = vld [vmem:[%s1334_s0 + $0x30] sm:$0xff]   ;;  %v932_v6 = vunpack.c.l.bf16 %v931_v2  ;;  %v933_v7 = vunpack.c.h.bf16 %v931_v2 }
   0x3   :  { %v1055_v8 = vunpack.c.l.bf16 %v48_v4  ;;  %v956_v9 = vunpack.c.l.bf16 %v967_v5  ;;  %v957_v10 = vunpack.c.h.bf16 %v967_v5  ;;  %v910_v11 = vld [vmem:[%s1333_s3 + $0x20] sm:$0xff]  ;;  %v909_v16 = vld [vmem:[%s1333_s3 + $0x18] sm:$0xff]  ;;  %v908_v21 = vld [vmem:[%s1333_s3 + $0x10] sm:$0xff] }
   0x4   :  { %v962_v26 = vld [vmem:[%s1334_s0 + $0x8] sm:$0xff]   ;;  %v968_v27 = vld [vmem:[%s1334_s0 + $0x38] sm:$0xff]   ;;  %v906_v37 = vld [vmem:[%s1333_s3] sm:$0xff] }
   0x5   :  { %v66_v12 = vadd.f32 %v932_v6, %v1055_v8  ;;  %v67_v13 = vadd.f32 %v933_v7, %v1055_v8  ;;  %v78_v14 = vadd.f32 %v956_v9, %v1055_v8  ;;  %v79_v15 = vadd.f32 %v957_v10, %v1055_v8  ;;  %v907_v28 = vld [vmem:[%s1333_s3 + $0x8] sm:$0xff]  ;;  %v963_v52 = vld [vmem:[%s1334_s0 + $0x10] sm:$0xff]   ;;  %v964_v9 = vld [vmem:[%s1334_s0 + $0x18] sm:$0xff]  }
   0x6   :  { %263 = vmatpush.bf16.msra.mxu0 %v912_v1  ;;  %970 = vmatpush.bf16.msra.mxu3 %v912_v1  ;;  %v936_v29 = vunpack.c.l.bf16 %v962_v26  ;;  %v937_v30 = vunpack.c.h.bf16 %v962_v26  ;;  %v960_v31 = vunpack.c.l.bf16 %v968_v27  ;;  %v961_v32 = vunpack.c.h.bf16 %v968_v27  ;;  %v965_v1 = vld [vmem:[%s1334_s0 + $0x20] sm:$0xff]   ;;  %v966_v26 = vld [vmem:[%s1334_s0 + $0x28] sm:$0xff]  }
   0x7   :  { %v114_v17 = vmax.f32 %v66_v12, 0.0  ;;  %v115_v18 = vmax.f32 %v67_v13, 0.0  ;;  %v126_v19 = vmax.f32 %v78_v14, 0.0  ;;  %v127_v20 = vmax.f32 %v79_v15, 0.0 }
   0x8   :  { %v68_v38 = vadd.f32 %v936_v29, %v1055_v8  ;;  %v69_v39 = vadd.f32 %v937_v30, %v1055_v8  ;;  %v80_v42 = vadd.f32 %v960_v31, %v1055_v8  ;;  %v81_v43 = vadd.f32 %v961_v32, %v1055_v8 }
   0x9   :  { %v130_v22 = vpack.c.bf16 %v114_v17, %v114_v17  ;;  %v131_v23 = vpack.c.bf16 %v115_v18, %v115_v18  ;;  %v142_v24 = vpack.c.bf16 %v126_v19, %v126_v19  ;;  %v143_v25 = vpack.c.bf16 %v127_v20, %v127_v20 }
   0xa   :  { %264 = vmatpush.bf16.msra.mxu0 %v911_v3  ;;  %971 = vmatpush.bf16.msra.mxu3 %v911_v3  ;;  %v116_v44 = vmax.f32 %v68_v38, 0.0  ;;  %v117_v45 = vmax.f32 %v69_v39, 0.0  ;;  %v128_v46 = vmax.f32 %v80_v42, 0.0  ;;  %v129_v47 = vmax.f32 %v81_v43, 0.0  ;;  %v900_v43 = vld [vmem:[%s1337_s5 + $0x70] sm:$0xf] }
   0xb   :  { %v182_v33 = vunpack.c.l.b16 %v130_v22  ;;  %v183_v34 = vunpack.c.l.b16 %v131_v23  ;;  %v194_v35 = vunpack.c.l.b16 %v142_v24  ;;  %v195_v36 = vunpack.c.l.b16 %v143_v25 }
   0xc   :  { %v132_v48 = vpack.c.bf16 %v116_v44, %v116_v44  ;;  %v133_v49 = vpack.c.bf16 %v117_v45, %v117_v45  ;;  %v144_v50 = vpack.c.bf16 %v128_v46, %v128_v46  ;;  %v145_v51 = vpack.c.bf16 %v129_v47, %v129_v47  ;;  %v928_v44 = vld [vmem:[%s1337_s5 + $0x74] sm:$0xf]  ;;  %v902_v46 = vld [vmem:[%s1337_s5 + $0x78] sm:$0xf0]  ;;  %v892_v47 = vld [vmem:[%s1337_s5 + $0x60] sm:$0xf] }
   0xd   :  { %v198_v40 = vpack.c.b16 %v183_v34, %v182_v33  ;;  %v204_v41 = vpack.c.b16 %v195_v36, %v194_v35  ;;  %v940_v57 = vunpack.c.l.bf16 %v963_v52  ;;  %v941_v58 = vunpack.c.h.bf16 %v963_v52 }
   0xe   :  { %265 = vmatpush.bf16.msra.mxu0 %v910_v11  ;;  %972 = vmatpush.bf16.msra.mxu3 %v910_v11  ;;  %v184_v53 = vunpack.c.l.b16 %v132_v48  ;;  %v185_v54 = vunpack.c.l.b16 %v133_v49  ;;  %v196_v55 = vunpack.c.l.b16 %v144_v50  ;;  %v197_v56 = vunpack.c.l.b16 %v145_v51  ;;  %v927_v48 = vld [vmem:[%s1337_s5 + $0x64] sm:$0xf0]  ;;  %v926_v50 = vld [vmem:[%s1337_s5 + $0x64] sm:$0xf]  ;;  %v894_v51 = vld [vmem:[%s1337_s5 + $0x68] sm:$0xf0] }
   0xf   :  { %v70_v61 = vadd.f32 %v940_v57, %v1055_v8  ;;  %v71_v62 = vadd.f32 %v941_v58, %v1055_v8  ;;  %v948_v2 = vunpack.c.l.bf16 %v965_v1  ;;  %v949_v3 = vunpack.c.h.bf16 %v965_v1  ;;  %v886_v57 = vld [vmem:[%s1337_s5 + $0x58] sm:$0xf0] }
  0x10   :  { %v199_v59 = vpack.c.b16 %v185_v54, %v184_v53  ;;  %v205_v60 = vpack.c.b16 %v197_v56, %v196_v55  ;;  %v945_v17 = vunpack.c.h.bf16 %v964_v9  ;;  %v952_v27 = vunpack.c.l.bf16 %v966_v26  ;;  %v884_v54 = vld [vmem:[%s1337_s5 + $0x50] sm:$0xf]  ;;  %v925_v55 = vld [vmem:[%s1337_s5 + $0x54] sm:$0xf0]  ;;  %v924_v56 = vld [vmem:[%s1337_s5 + $0x54] sm:$0xf] }
  0x11   :  { %v118_v63 = vmax.f32 %v70_v61, 0.0  ;;  %v119_v0 = vmax.f32 %v71_v62, 0.0  ;;  %v74_v4 = vadd.f32 %v948_v2, %v1055_v8  ;;  %v75_v5 = vadd.f32 %v949_v3, %v1055_v8  ;;  %v923_v61 = vld [vmem:[%s1337_s5 + $0x44] sm:$0xf0]  ;;  %v922_v62 = vld [vmem:[%s1337_s5 + $0x44] sm:$0xf] }
  0x12   :  { %266 = vmatpush.bf16.msra.mxu0 %v909_v16  ;;  %973 = vmatpush.bf16.msra.mxu3 %v909_v16  ;;  %v944_v16 = vunpack.c.l.bf16 %v964_v9  ;;  %v73_v23 = vadd.f32 %v945_v17, %v1055_v8  ;;  %v76_v29 = vadd.f32 %v952_v27, %v1055_v8  ;;  %v1124_v49 = vor.u32 %v928_v44, %v902_v46  ;;  %v868_v2 = vld [vmem:[%s1337_s5 + $0x30] sm:$0xf]  ;;  %v921_v3 = vld [vmem:[%s1337_s5 + $0x34] sm:$0xf0]  ;;  %v860_v9 = vld [vmem:[%s1337_s5 + $0x20] sm:$0xf] }
  0x13   :  { %v134_v6 = vpack.c.bf16 %v118_v63, %v118_v63  ;;  %v135_v7 = vpack.c.bf16 %v119_v0, %v119_v0  ;;  %v122_v10 = vmax.f32 %v74_v4, 0.0  ;;  %v123_v11 = vmax.f32 %v75_v5, 0.0  ;;  %v878_v63 = vld [vmem:[%s1337_s5 + $0x48] sm:$0xf0]  ;;  %v920_v4 = vld [vmem:[%s1337_s5 + $0x34] sm:$0xf] }
  0x14   :  { %v72_v22 = vadd.f32 %v944_v16, %v1055_v8  ;;  %v121_v25 = vmax.f32 %v73_v23, 0.0  ;;  %v124_v33 = vmax.f32 %v76_v29, 0.0  ;;  %v893_v52 = vor.u32 %v927_v48, %v892_v47  ;;  %512 = vmatpush.bf16.msra.mxu2 %v1124_v49  ;;  %v917_v16 = vld [vmem:[%s1337_s5 + $0x14] sm:$0xf0]  ;;  %v916_v17 = vld [vmem:[%s1337_s5 + $0x14] sm:$0xf] }
  0x15   :  { %v138_v12 = vpack.c.bf16 %v122_v10, %v122_v10  ;;  %v139_v13 = vpack.c.bf16 %v123_v11, %v123_v11  ;;  %v186_v14 = vunpack.c.l.b16 %v134_v6  ;;  %v187_v15 = vunpack.c.l.b16 %v135_v7  ;;  %v870_v6 = vld [vmem:[%s1337_s5 + $0x38] sm:$0xf0]  ;;  %v919_v10 = vld [vmem:[%s1337_s5 + $0x24] sm:$0xf0]  ;;  %v918_v11 = vld [vmem:[%s1337_s5 + $0x24] sm:$0xf] }
  0x16   :  { %267 = vmatpush.bf16.msra.mxu0 %v908_v21  ;;  %974 = vmatpush.bf16.msra.mxu3 %v908_v21  ;;  %v120_v24 = vmax.f32 %v72_v22, 0.0  ;;  %v137_v32 = vpack.c.bf16 %v121_v25, %v121_v25  ;;  %v140_v35 = vpack.c.bf16 %v124_v33, %v124_v33  ;;  %v1133_v53 = vor.u32 %v926_v50, %v894_v51  ;;  %v915_v22 = vld [vmem:[%s1337_s5 + $0x4] sm:$0xf0]  ;;  %v914_v23 = vld [vmem:[%s1337_s5 + $0x4] sm:$0xf] }
  0x17   :  { %v190_v18 = vunpack.c.l.b16 %v138_v12  ;;  %v191_v19 = vunpack.c.l.b16 %v139_v13  ;;  %v200_v21 = vpack.c.b16 %v187_v15, %v186_v14  ;;  %v885_v58 = vor.u32 %v925_v55, %v884_v54  ;;  %v862_v13 = vld [vmem:[%s1337_s5 + $0x28] sm:$0xf0]  ;;  %v852_v15 = vld [vmem:[%s1337_s5 + $0x10] sm:$0xf]  ;;  %v1213_v29 = vld [vmem:[%s1338_s1] sm:$0xff] }
  0x18   :  { %v136_v31 = vpack.c.bf16 %v120_v24, %v120_v24  ;;  %v189_v38 = vunpack.c.l.b16 %v137_v32  ;;  %v192_v39 = vunpack.c.l.b16 %v140_v35  ;;  %513 = vmatpush.bf16.msra.mxu2 %v1133_v53  ;;  %v881_v1 = vor.u32 %v922_v62, %v878_v63  ;;  %v846_v25 = vld [vmem:[%s1337_s5 + $0x8] sm:$0xf0]  ;;  %v1222_v35 = vld [vmem:[%s1336_s4] ss:$0 sm:$0xff] }
  0x19   :  { %v202_v20 = vpack.c.b16 %v191_v19, %v190_v18  ;;  %v869_v5 = vor.u32 %v921_v3, %v868_v2  ;;  %v873_v7 = vor.u32 %v920_v4, %v870_v6  ;;  %v861_v12 = vor.u32 %v919_v10, %v860_v9  ;;  %v854_v19 = vld [vmem:[%s1337_s5 + $0x18] sm:$0xf0]  ;;  %v1232_v46 = vld [vmem:[%s1338_s1 + $0x8] sm:$0xff] }
  0x1a   :  { %268 = vmatpush.bf16.msra.mxu0 %v907_v28  ;;  %975 = vmatpush.bf16.msra.mxu3 %v907_v28  ;;  %v953_v28 = vunpack.c.h.bf16 %v966_v26  ;;  %v865_v14 = vor.u32 %v918_v11, %v862_v13  ;;  %v853_v18 = vor.u32 %v917_v16, %v852_v15  ;;  %v849_v26 = vor.u32 %v914_v23, %v846_v25 }
  0x1b   :  { %v564_v27 = vlaneseq  ;;  %v570_v32 = vperm.slane %v1213_v29, 1  ;;  %v633_v51 = vperm.slane %v1232_v46, 2  ;;  %v598_v11 = vperm.slane %v1213_v29, 5 }
  0x1c   :  { %v77_v30 = vadd.f32 %v953_v28, %v1055_v8  ;;  %v929_v8 = vld [vmem:[%s1337_s5 + $0x74] sm:$0xf0]  ;;  %v661_v25 = vperm.slane %v1232_v46, 6 }
  0x1d   :  { %v901_v45 = vor.u32 %v929_v8, %v900_v43  ;;  %v565_v28 = vshrl.u32 %v564_v27, 7 }
  0x1e   :  { %269 = vmatpush.bf16.msra.mxu0 %v906_v37  ;;  %976 = vmatpush.bf16.msra.mxu3 %v906_v37  ;;  %v125_v34 = vmax.f32 %v77_v30, 0.0  ;;  %v188_v37 = vunpack.c.l.b16 %v136_v31  ;;  %v563_v30 = vperm.slane %v1213_v29, 0  ;;  %v577_v31 = vperm.slane %v1213_v29, 2 }
  0x1f   :  { %463 = vmatpush.bf16.msra.mxu1 %v901_v45  ;;  %993 = vset.pattern.permute.xlu0 %v565_v28 }
  0x20   :  { %v141_v36 = vpack.c.bf16 %v125_v34, %v125_v34  ;;  %v201_v42 = vpack.c.b16 %v189_v38, %v188_v37  ;;  %994 = vset.pattern.permute.xlu1 %v565_v28  ;;  %995 = vset.pattern.permute.xlu2 %v565_v28  ;;  %v584_v34 = vperm.slane %v1213_v29, 3 }
  0x21   :  { %270 = vmatmul.bf16.vlgmr.msra.gmra.mxu0 %v198_v40  ;;  %300 = vmatmul.bf16.vlgmr.msra.gmra.mxu3 %v204_v41 }
  0x22   :  { %v193_v40 = vunpack.c.l.b16 %v141_v36  ;;  %977 = vmatpush.bf16.msrb.mxu3 %v901_v45 }
  0x23   :  { %464 = vmatpush.bf16.msra.mxu1 %v893_v52 }
  0x24   :  { %v203_v41 = vpack.c.b16 %v193_v40, %v192_v39  ;;  %v612_v40 = vperm.slane %v1213_v29, 7 }
  0x26   :  { %978 = vmatpush.bf16.msrb.mxu3 %v893_v52  ;;  %v626_v52 = vperm.slane %v1232_v46, 1 }
  0x27   :  { %465 = vmatpush.bf16.msra.mxu1 %v885_v58  ;;  %568 = vperm.xlu0 %993, %v563_v30  }
  0x28   :  { %582 = vperm.xlu1 %994, %v577_v31  }
  0x2a   :  { %979 = vmatpush.bf16.msrb.mxu3 %v885_v58  ;;  %v654_v58 = vperm.slane %v1232_v46, 5 }
  0x2f   :  { %575 = vperm.xlu0 %993, %v570_v32  }
  0x30   :  { %589 = vperm.xlu1 %994, %v584_v34  }
  0x31   :  { %275 = vmatmul.bf16.gmra.mxu0 %v199_v59  ;;  %305 = vmatmul.bf16.gmra.mxu3 %v205_v60  ;;  %v889_v59 = vor.u32 %v924_v56, %v886_v57  ;;  %v876_v60 = vld [vmem:[%s1337_s5 + $0x40] sm:$0xf] }
  0x32   :  { %v877_v0 = vor.u32 %v923_v61, %v876_v60 }
  0x33   :  { %514 = vmatpush.bf16.msra.mxu2 %v889_v59 }
  0x34   :  { %466 = vmatpush.bf16.msra.mxu1 %v877_v0  ;;  %980 = vmatpush.bf16.msrb.mxu3 %v877_v0 }
  0x37   :  { %515 = vmatpush.bf16.msra.mxu2 %v881_v1 }
  0x38   :  { %467 = vmatpush.bf16.msra.mxu1 %v869_v5  ;;  %981 = vmatpush.bf16.msrb.mxu3 %v869_v5  ;;  %v591_v5 = vperm.slane %v1213_v29, 4 }
  0x39   :  { %617 = vperm.xlu1 %994, %v612_v40  }
  0x3a   :  { %596 = vperm.xlu2 %995, %v591_v5  }
  0x3b   :  { %516 = vmatpush.bf16.msra.mxu2 %v873_v7 }
  0x3c   :  { %468 = vmatpush.bf16.msra.mxu1 %v861_v12  ;;  %982 = vmatpush.bf16.msrb.mxu3 %v861_v12  ;;  %v668_v12 = vperm.slane %v1232_v46, 7 }
  0x3f   :  { %517 = vmatpush.bf16.msra.mxu2 %v865_v14 }
  0x40   :  { %469 = vmatpush.bf16.msra.mxu1 %v853_v18  ;;  %983 = vmatpush.bf16.msrb.mxu3 %v853_v18 }
  0x41   :  { %280 = vmatmul.bf16.gmra.mxu0 %v200_v21  ;;  %v844_v21 = vld [vmem:[%s1337_s5] sm:$0xf]  ;;  %638 = vperm.xlu1 %994, %v633_v51  }
  0x42   :  { %v845_v24 = vor.u32 %v915_v22, %v844_v21  ;;  %603 = vperm.xlu2 %995, %v598_v11   ;;  %v640_v21 = vperm.slane %v1232_v46, 3 }
  0x44   :  { %470 = vmatpush.bf16.msra.mxu1 %v845_v24  ;;  %984 = vmatpush.bf16.msrb.mxu3 %v845_v24 }
  0x48   :  { %985 = vmatpush.bf16.msra.mxu3 %v1124_v49 }
  0x49   :  { %659 = vperm.xlu1 %994, %v654_v58  }
  0x4c   :  { %986 = vmatpush.bf16.msra.mxu3 %v1133_v53 }
  0x50   :  { %987 = vmatpush.bf16.msra.mxu3 %v889_v59  ;;  %v647_v59 = vperm.slane %v1232_v46, 4 }
  0x51   :  { %285 = vmatmul.bf16.gmra.mxu0 %v201_v42 }
  0x54   :  { %988 = vmatpush.bf16.msra.mxu3 %v881_v1 }
  0x58   :  { %989 = vmatpush.bf16.msra.mxu3 %v873_v7 }
  0x5c   :  { %990 = vmatpush.bf16.msra.mxu3 %v865_v14 }
  0x61   :  { %290 = vmatmul.bf16.gmra.mxu0 %v202_v20  ;;  %v857_v20 = vor.u32 %v916_v17, %v854_v19  ;;  %v619_v17 = vperm.slane %v1232_v46, 0 }
  0x63   :  { %518 = vmatpush.bf16.msra.mxu2 %v857_v20  ;;  %991 = vmatpush.bf16.msra.mxu3 %v857_v20 }
  0x64   :  { %624 = vperm.xlu2 %995, %v619_v17  }
  0x67   :  { %519 = vmatpush.bf16.msra.mxu2 %v849_v26  ;;  %992 = vmatpush.bf16.msra.mxu3 %v849_v26 }
  0x6c   :  { %645 = vperm.xlu2 %995, %v640_v21  }
  0x71   :  { %295 = vmatmul.bf16.gmra.mxu0 %v203_v41  ;;  %v605_v41 = vperm.slane %v1213_v29, 6 }
  0x73   :  { %610 = vperm.xlu0 %993, %v605_v41  }
  0x74   :  { %666 = vperm.xlu2 %995, %v661_v25  }
  0x7b   :  { %631 = vperm.xlu0 %993, %v626_v52  }
  0x83   :  { %652 = vperm.xlu0 %993, %v647_v59  }
  0x8b   :  { %673 = vperm.xlu0 %993, %v668_v12  }
  0x9e   :  { %v271_v33 = vpop.f32.mrf.mxu0 }
  0x9f   :  { %v272_v37 = vadd.f32 %v1222_v35, %v271_v33 }
  0xa1   :  { %v343_v42 = vmax.f32 %v272_v37, 0.0 }
  0xa4   :  { %v301_v36 = vpop.f32.mrf.mxu3 }
  0xa5   :  { %v302_v43 = vadd.f32 %v1222_v35, %v301_v36 }
  0xa6   :  { %v273_v38 = vpop.f32.mrf.mxu0 }
  0xa7   :  { %v274_v39 = vadd.f32 %v1222_v35, %v273_v38  ;;  %v355_v47 = vmax.f32 %v302_v43, 0.0 }
  0xa9   :  { %v344_v8 = vmax.f32 %v274_v39, 0.0 }
  0xab   :  { %v359_v44 = vpack.c.bf16 %v344_v8, %v343_v42  ;;  %v569_v8 = vpop.permute.xlu0 %568 }
  0xac   :  { %v303_v45 = vpop.f32.mrf.mxu3  ;;  %vm675_vm0 = vcmp.gt.f32.partialorder %v569_v8, 0.5 }
  0xad   :  { %v304_v48 = vadd.f32 %v1222_v35, %v303_v45  ;;  %471 = vmatmul.bf16.vlgmr.msra.gmra.mxu1 %v359_v44  ;;  %520 = vmatmul.bf16.vlgmr.msra.gmra.mxu2 %v359_v44  ;;  %v583_v44 = vpop.permute.xlu1 %582 }
  0xae   :  { %v276_v49 = vpop.f32.mrf.mxu0  ;;  %vm677_vm1 = vcmp.gt.f32.partialorder %v583_v44, 0.5 }
  0xaf   :  { %v356_v50 = vmax.f32 %v304_v48, 0.0  ;;  %v277_v55 = vadd.f32 %v1222_v35, %v276_v49 }
  0xb1   :  { %v365_v53 = vpack.c.bf16 %v356_v50, %v355_v47  ;;  %v345_v60 = vmax.f32 %v277_v55, 0.0 }
  0xb3   :  { %501 = vmatmul.bf16.vlgmr.msrb.gmra.mxu3 %v365_v53 }
  0xb4   :  { %v306_v54 = vpop.f32.mrf.mxu3 }
  0xb5   :  { %v307_v61 = vadd.f32 %v1222_v35, %v306_v54 }
  0xb6   :  { %v278_v56 = vpop.f32.mrf.mxu0 }
  0xb7   :  { %v279_v57 = vadd.f32 %v1222_v35, %v278_v56  ;;  %v357_v1 = vmax.f32 %v307_v61, 0.0 }
  0xb9   :  { %v346_v62 = vmax.f32 %v279_v57, 0.0 }
  0xbb   :  { %v360_v63 = vpack.c.bf16 %v346_v62, %v345_v60  ;;  %v597_v60 = vpop.permute.xlu2 %596 }
  0xbc   :  { %v308_v0 = vpop.f32.mrf.mxu3  ;;  %vm679_vm2 = vcmp.gt.f32.partialorder %v597_v60, 0.5 }
  0xbd   :  { %v309_v2 = vadd.f32 %v1222_v35, %v308_v0  ;;  %476 = vmatmul.bf16.gmra.mxu1 %v360_v63  ;;  %525 = vmatmul.bf16.gmra.mxu2 %v360_v63  ;;  %v576_v0 = vpop.permute.xlu0 %575 }
  0xbe   :  { %v281_v3 = vpop.f32.mrf.mxu0  ;;  %vm676_vm5 = vcmp.gt.f32.partialorder %v576_v0, 0.5 }
  0xbf   :  { %v358_v4 = vmax.f32 %v309_v2, 0.0  ;;  %v282_v7 = vadd.f32 %v1222_v35, %v281_v3 }
  0xc1   :  { %v366_v6 = vpack.c.bf16 %v358_v4, %v357_v1  ;;  %v347_v13 = vmax.f32 %v282_v7, 0.0  ;;  %v590_v1 = vpop.permute.xlu1 %589 }
  0xc2   :  { %vm678_vm3 = vcmp.gt.f32.partialorder %v590_v1, 0.5 }
  0xc3   :  { %506 = vmatmul.bf16.gmra.mxu3 %v366_v6  ;;  %v604_v2 = vpop.permute.xlu2 %603 }
  0xc4   :  { %vm680_vm6 = vcmp.gt.f32.partialorder %v604_v2, 0.5 }
  0xc6   :  { %v283_v9 = vpop.f32.mrf.mxu0 }
  0xc7   :  { %v284_v10 = vadd.f32 %v1222_v35, %v283_v9 }
  0xc9   :  { %v348_v14 = vmax.f32 %v284_v10, 0.0  ;;  %v618_v7 = vpop.permute.xlu1 %617 }
  0xca   :  { %vm682_vm8 = vcmp.gt.f32.partialorder %v618_v7, 0.5 }
  0xcb   :  { %v361_v15 = vpack.c.bf16 %v348_v14, %v347_v13  ;;  %v625_v10 = vpop.permute.xlu2 %624 }
  0xcc   :  { %vm683_vm7 = vcmp.gt.f32.partialorder %v625_v10, 0.5 }
  0xcd   :  { %481 = vmatmul.bf16.gmra.mxu1 %v361_v15  ;;  %530 = vmatmul.bf16.gmra.mxu2 %v361_v15 }
  0xce   :  { %v286_v16 = vpop.f32.mrf.mxu0 }
  0xcf   :  { %v287_v18 = vadd.f32 %v1222_v35, %v286_v16 }
  0xd1   :  { %v349_v22 = vmax.f32 %v287_v18, 0.0  ;;  %v639_v15 = vpop.permute.xlu1 %638 }
  0xd2   :  { %vm685_vm10 = vcmp.gt.f32.partialorder %v639_v15, 0.5 }
  0xd3   :  { %550 = vmatmul.bf16.vlgmr.msra.gmra.mxu3 %v365_v53  ;;  %v1275_v17 = vpop.permute.xlu2 %645 }
  0xd4   :  { %vm686_vm13 = vcmp.gt.f32.partialorder %v1275_v17, 0.5 }
  0xd6   :  { %v288_v19 = vpop.f32.mrf.mxu0 }
  0xd7   :  { %v289_v20 = vadd.f32 %v1222_v35, %v288_v19 }
  0xd9   :  { %v350_v23 = vmax.f32 %v289_v20, 0.0 }
  0xdb   :  { %v362_v24 = vpack.c.bf16 %v350_v23, %v349_v22 }
  0xdd   :  { %486 = vmatmul.bf16.gmra.mxu1 %v362_v24  ;;  %535 = vmatmul.bf16.gmra.mxu2 %v362_v24 }
  0xde   :  { %v291_v26 = vpop.f32.mrf.mxu0 }
  0xdf   :  { %v292_v27 = vadd.f32 %v1222_v35, %v291_v26 }
  0xe1   :  { %v351_v30 = vmax.f32 %v292_v27, 0.0  ;;  %v660_v27 = vpop.permute.xlu1 %659 }
  0xe2   :  { %vm688_vm12 = vcmp.gt.f32.partialorder %v660_v27, 0.5 }
  0xe3   :  { %555 = vmatmul.bf16.gmra.mxu3 %v366_v6 }
  0xe5   :  { %v611_v6 = vpop.permute.xlu0 %610 }
  0xe6   :  { %v293_v28 = vpop.f32.mrf.mxu0  ;;  %vm681_vm4 = vcmp.gt.f32.partialorder %v611_v6, 0.5 }
  0xe7   :  { %v294_v29 = vadd.f32 %v1222_v35, %v293_v28 }
  0xe9   :  { %v352_v31 = vmax.f32 %v294_v29, 0.0 }
  0xeb   :  { %v363_v32 = vpack.c.bf16 %v352_v31, %v351_v30 }
  0xed   :  { %491 = vmatmul.bf16.gmra.mxu1 %v363_v32  ;;  %540 = vmatmul.bf16.gmra.mxu2 %v363_v32  ;;  %v1273_v13 = vpop.permute.xlu0 %631 }
  0xee   :  { %v296_v33 = vpop.f32.mrf.mxu0  ;;  %vm684_vm11 = vcmp.gt.f32.partialorder %v1273_v13, 0.5 }
  0xef   :  { %v297_v34 = vadd.f32 %v1222_v35, %v296_v33 }
  0xf1   :  { %v353_v38 = vmax.f32 %v297_v34, 0.0 }
  0xf5   :  { %v1280_v20 = vpop.permute.xlu0 %652 }
  0xf6   :  { %v298_v36 = vpop.f32.mrf.mxu0  ;;  %vm687_vm9 = vcmp.gt.f32.partialorder %v1280_v20, 0.5  ;;  %v796_v20 = vld [vmem:[%s1339_s6] sm:$0x3] }
  0xf7   :  { %v299_v37 = vadd.f32 %v1222_v35, %v298_v36 }
  0xf9   :  { %v354_v39 = vmax.f32 %v299_v37, 0.0 }
  0xfb   :  { %v364_v40 = vpack.c.bf16 %v354_v39, %v353_v38  ;;  %v667_v38 = vpop.permute.xlu2 %666 }
  0xfc   :  { %vm689_vm14 = vcmp.gt.f32.partialorder %v667_v38, 0.5 }
  0xfd   :  { %496 = vmatmul.bf16.gmra.mxu1 %v364_v40  ;;  %545 = vmatmul.bf16.gmra.mxu2 %v364_v40 }
 0x12a   :  { %v472_v41 = vpop.f32.mrf.mxu1 }
 0x12b   :  { %v723_v47 = vsel %vm675_vm0, %v472_v41, -1e+30  ;;  %v674_v41 = vpop.permute.xlu0 %673 }
 0x12c   :  { %vm690_vm15 = vcmp.gt.f32.partialorder %v674_v41, 0.5 }
 0x130   :  { %v521_v42 = vpop.f32.mrf.mxu2 }
 0x131   :  { %v1259_v35 = vsel %vm675_vm0, %v521_v42, -1e+30 }
 0x132   :  { %v474_v43 = vpop.f32.mrf.mxu1 }
 0x133   :  { %v725_v26 = vsel %vm676_vm5, %v474_v43, -1e+30 }
 0x136   :  { %v502_v54 = vpop.f32.mrf.mxu3 }
 0x137   :  { %v747_v36 = vsel %vm687_vm9, %v502_v54, -1e+30 }
 0x138   :  { %v1257_v45 = vpop.f32.mrf.mxu2 }
 0x139   :  { %v726_v8 = vsel %vm676_vm5, %v1257_v45, -1e+30 }
 0x13a   :  { %v477_v46 = vpop.f32.mrf.mxu1 }
 0x13b   :  { %v727_v48 = vsel %vm677_vm1, %v477_v46, -1e+30 }
 0x13c   :  { %v755_v49 = vmax.f32 %v723_v47, %v727_v48 }
 0x13e   :  { %v1265_v57 = vpop.f32.mrf.mxu3 }
 0x140   :  { %v526_v50 = vpop.f32.mrf.mxu2 }
 0x141   :  { %v1261_v51 = vsel %vm677_vm1, %v526_v50, -1e+30 }
 0x142   :  { %v770_v52 = vmax.f32 %v1259_v35, %v1261_v51  ;;  %v479_v53 = vpop.f32.mrf.mxu1 }
 0x143   :  { %v729_v22 = vsel %vm678_vm3, %v479_v53, -1e+30 }
 0x144   :  { %v756_v30 = vmax.f32 %v725_v26, %v729_v22  ;;  %v799_v26 = vperm.slane %v796_v20, 1 }
 0x146   :  { %v1267_v61 = vpop.f32.mrf.mxu3 }
 0x148   :  { %v528_v55 = vpop.f32.mrf.mxu2 }
 0x149   :  { %v730_v40 = vsel %vm678_vm3, %v528_v55, -1e+30 }
 0x14a   :  { %v482_v56 = vpop.f32.mrf.mxu1  ;;  %v771_v54 = vmax.f32 %v726_v8, %v730_v40 }
 0x14b   :  { %v731_v19 = vsel %vm679_vm2, %v482_v56, -1e+30 }
 0x14c   :  { %v757_v24 = vmax.f32 %v755_v49, %v731_v19 }
 0x14e   :  { %v1269_v4 = vpop.f32.mrf.mxu3 }
 0x14f   :  { %v753_v6 = vsel %vm690_vm15, %v1269_v4, -1e+30 }
 0x150   :  { %v531_v58 = vpop.f32.mrf.mxu2 }
 0x151   :  { %v732_v32 = vsel %vm679_vm2, %v531_v58, -1e+30 }
 0x152   :  { %v484_v59 = vpop.f32.mrf.mxu1  ;;  %v772_v44 = vmax.f32 %v770_v52, %v732_v32 }
 0x153   :  { %v733_v28 = vsel %vm680_vm6, %v484_v59, -1e+30 }
 0x154   :  { %v758_v37 = vmax.f32 %v756_v30, %v733_v28 }
 0x156   :  { %v1271_v12 = vpop.f32.mrf.mxu3 }
 0x158   :  { %v533_v62 = vpop.f32.mrf.mxu2 }
 0x159   :  { %v734_v50 = vsel %vm680_vm6, %v533_v62, -1e+30  ;;  %v749_v62 = vsel %vm688_vm12, %v1265_v57, -1e+30  ;;  %v748_v57 = vsel %vm687_vm9, %v1271_v12, -1e+30 }
 0x15a   :  { %v487_v63 = vpop.f32.mrf.mxu1  ;;  %v773_v52 = vmax.f32 %v771_v54, %v734_v50 }
 0x15b   :  { %v735_v23 = vsel %vm681_vm4, %v487_v63, -1e+30 }
 0x15c   :  { %v759_v31 = vmax.f32 %v757_v24, %v735_v23  ;;  %v798_v24 = vperm.slane %v796_v20, 0 }
 0x15e   :  { %v1277_v18 = vpop.f32.mrf.mxu3 }
 0x160   :  { %v536_v3 = vpop.f32.mrf.mxu2 }
 0x161   :  { %v736_v42 = vsel %vm681_vm4, %v536_v3, -1e+30 }
 0x162   :  { %v489_v5 = vpop.f32.mrf.mxu1  ;;  %v774_v55 = vmax.f32 %v772_v44, %v736_v42 }
 0x163   :  { %v737_v33 = vsel %vm682_vm8, %v489_v5, -1e+30  ;;  %v751_v5 = vsel %vm689_vm14, %v1267_v61, -1e+30  ;;  %v750_v61 = vsel %vm688_vm12, %v1277_v18, -1e+30 }
 0x164   :  { %v760_v46 = vmax.f32 %v758_v37, %v737_v33 }
 0x166   :  { %v556_v47 = vpop.f32.mrf.mxu3 }
 0x167   :  { %v752_v4 = vsel %vm689_vm14, %v556_v47, -1e+30 }
 0x168   :  { %v538_v9 = vpop.f32.mrf.mxu2 }
 0x169   :  { %v738_v58 = vsel %vm682_vm8, %v538_v9, -1e+30 }
 0x16a   :  { %v492_v11 = vpop.f32.mrf.mxu1  ;;  %v775_v1 = vmax.f32 %v773_v52, %v738_v58 }
 0x16b   :  { %v739_v29 = vsel %vm683_vm7, %v492_v11, -1e+30 }
 0x16c   :  { %v761_v39 = vmax.f32 %v759_v31, %v739_v29 }
 0x170   :  { %v541_v14 = vpop.f32.mrf.mxu2 }
 0x171   :  { %v740_v53 = vsel %vm683_vm7, %v541_v14, -1e+30  ;;  %v558_v14 = vpop.f32.mrf.mxu3 }
 0x172   :  { %v494_v16 = vpop.f32.mrf.mxu1  ;;  %v776_v59 = vmax.f32 %v774_v55, %v740_v53  ;;  %v754_v22 = vsel %vm690_vm15, %v558_v14, -1e+30 }
 0x173   :  { %v741_v43 = vsel %vm684_vm11, %v494_v16, -1e+30 }
 0x174   :  { %v762_v56 = vmax.f32 %v760_v46, %v741_v43 }
 0x178   :  { %v543_v21 = vpop.f32.mrf.mxu2 }
 0x179   :  { %v742_v0 = vsel %vm684_vm11, %v543_v21, -1e+30 }
 0x17a   :  { %v497_v25 = vpop.f32.mrf.mxu1  ;;  %v777_v7 = vmax.f32 %v775_v1, %v742_v0 }
 0x17b   :  { %v743_v34 = vsel %vm685_vm10, %v497_v25, -1e+30 }
 0x17c   :  { %v763_v48 = vmax.f32 %v761_v39, %v743_v34 }
 0x17e   :  { %v765_v60 = vmax.f32 %v763_v48, %v747_v36 }
 0x180   :  { %v546_v49 = vpop.f32.mrf.mxu2  ;;  %v767_v9 = vmax.f32 %v765_v60, %v751_v5 }
 0x181   :  { %v744_v35 = vsel %vm685_vm10, %v546_v49, -1e+30 }
 0x182   :  { %v499_v45 = vpop.f32.mrf.mxu1  ;;  %v778_v2 = vmax.f32 %v776_v59, %v744_v35 }
 0x183   :  { %v745_v51 = vsel %vm686_vm13, %v499_v45, -1e+30 }
 0x184   :  { %v764_v63 = vmax.f32 %v762_v56, %v745_v51  ;;  %v780_v15 = vmax.f32 %v778_v2, %v748_v57 }
 0x186   :  { %v766_v3 = vmax.f32 %v764_v63, %v749_v62  ;;  %v782_v12 = vmax.f32 %v780_v15, %v752_v4 }
 0x188   :  { %v768_v10 = vmax.f32 %v766_v3, %v753_v6  ;;  %v548_v11 = vpop.f32.mrf.mxu2 }
 0x189   :  { %v746_v13 = vsel %vm686_vm13, %v548_v11, -1e+30 }
 0x18a   :  { %v769_v16 = vmax.f32 %v767_v9, %v768_v10  ;;  %v779_v19 = vmax.f32 %v777_v7, %v746_v13 }
 0x18c   :  { %v781_v21 = vmax.f32 %v779_v19, %v750_v61  ;;  %v787_v17 = vmax.f32 %v769_v16, -1e+30 }
 0x18e   :  { %v783_v23 = vmax.f32 %v781_v21, %v754_v22  ;;  %v802_v29 = vadd.f32 %v798_v24, %v787_v17 }
 0x190   :  { %v784_v25 = vmax.f32 %v782_v12, %v783_v23 }
 0x192   :  { %v788_v28 = vmax.f32 %v784_v25, -1e+30 }
 0x194   :  { %v803_v30 = vadd.f32 %v799_v26, %v788_v28 }
 0x196   :  { %v804_v27 = vpack.c.bf16 %v803_v30, %v802_v29 }
 0x198   :  { %805 = vst [vmem:[%s1340_s7] sm:$0xff] %v804_v27 }

// kernel: net_forward.4
= control target key start
LH: loop header
LB: loop body
LE: loop exit
PB: predicated region body
PF: predicated region fallthrough
CT: control target
= control target key end

     0   :  { %v1375_v0 = vlaneseq  ;;  %s2997_s3 = inlined_call_operand.vmem [shape: bf16[128,128], index: 3, kind: input, shape index: {}]   ;;  %s2998_s1 = inlined_call_operand.vmem [shape: f32[32,16], index: 1, kind: input, shape index: {}]   ;;  %s2999_s0 = inlined_call_operand.vmem [shape: bf16[32,16,128], index: 0, kind: input, shape index: {}]   ;;  %s3000_s2 = inlined_call_operand.vmem [shape: bf16[16,128], index: 2, kind: input, shape index: {}]   ;;  %s3001_s4 = inlined_call_operand.vmem [shape: f32[1,128], index: 4, kind: input, shape index: {}]   ;;  %s3002_s5 = inlined_call_operand.vmem [shape: bf16[128,128], index: 5, kind: input, shape index: {}]   ;;  %s3003_s6 = inlined_call_operand.vmem [shape: f32[1,128], index: 6, kind: input, shape index: {}]   ;;  %s3004_s7 = inlined_call_operand.vmem [shape: bf16[16,128], index: 7, kind: output, shape index: {}]  }
   0x1   :  { %v2204_v1 = vld [vmem:[%s2997_s3 + $0x38] sm:$0xff]  ;;  %v2203_v3 = vld [vmem:[%s2997_s3 + $0x30] sm:$0xff]  ;;  %v2483_v4 = vld [vmem:[%s2998_s1] sm:$0xff] }
   0x2   :  { %v2473_v2 = vshrl.u32 %v1375_v0, 7  ;;  %744 = vmatpush.bf16.msra.mxu0 %v2204_v1  ;;  %2381 = vmatpush.bf16.msra.mxu2 %v2204_v1  ;;  %v2214_v5 = vld [vmem:[%s2999_s0] sm:$0xff]   ;;  %v2202_v7 = vld [vmem:[%s2997_s3 + $0x28] sm:$0xff]  ;;  %v1387_v9 = vperm.slane %v2483_v4, 1  ;;  %v2200_v21 = vld [vmem:[%s2997_s3 + $0x18] sm:$0xff]  ;;  %v1400_v54 = vperm.slane %v2483_v4, 2 }
   0x3   :  { %v2342_v6 = vld [vmem:[%s3000_s2] sm:$0xff]   ;;  %v2215_v10 = vunpack.c.l.bf16 %v2214_v5  ;;  %v2216_v12 = vunpack.c.h.bf16 %v2214_v5  ;;  %v2199_v27 = vld [vmem:[%s2997_s3 + $0x10] sm:$0xff]  ;;  %v2350_v32 = vld [vmem:[%s2999_s0 + $0x8] sm:$0xff]   ;;  %v1413_v61 = vperm.slane %v2483_v4, 3 }
   0x4   :  { %2398 = vset.pattern.permute.xlu1 %v2473_v2  ;;  %2399 = vset.pattern.permute.xlu2 %v2473_v2  ;;  %v2365_v8 = vld [vmem:[%s2999_s0 + $0x80] sm:$0xff]   ;;  %v2499_v11 = vunpack.c.l.bf16 %v2342_v6  ;;  %v2501_v13 = vunpack.c.h.bf16 %v2342_v6  ;;  %v2514_v26 = vadd.s32 8, %v2473_v2  ;;  %v2366_v33 = vld [vmem:[%s2999_s0 + $0x88] sm:$0xff]   ;;  %v2219_v35 = vunpack.c.l.bf16 %v2350_v32  ;;  %v2351_v59 = vld [vmem:[%s2999_s0 + $0x10] sm:$0xff]  }
   0x5   :  { %2397 = vset.pattern.permute.xlu0 %v2473_v2  ;;  %v2279_v14 = vunpack.c.l.bf16 %v2365_v8  ;;  %v2280_v15 = vunpack.c.h.bf16 %v2365_v8  ;;  %v2201_v16 = vld [vmem:[%s2997_s3 + $0x20] sm:$0xff]  ;;  %v2198_v34 = vld [vmem:[%s2997_s3 + $0x8] sm:$0xff]  ;;  %v2220_v36 = vunpack.c.h.bf16 %v2350_v32  ;;  %v2283_v37 = vunpack.c.l.bf16 %v2366_v33  ;;  %v2367_v60 = vld [vmem:[%s2999_s0 + $0x90] sm:$0xff]  }
   0x6   :  { %745 = vmatpush.bf16.msra.mxu0 %v2203_v3  ;;  %2382 = vmatpush.bf16.msra.mxu2 %v2203_v3  ;;  %v164_v17 = vadd.f32 %v2499_v11, %v2215_v10  ;;  %v165_v18 = vadd.f32 %v2501_v13, %v2216_v12  ;;  %v2284_v38 = vunpack.c.h.bf16 %v2366_v33  ;;  %v2197_v43 = vld [vmem:[%s2997_s3] sm:$0xff]  ;;  %v166_v44 = vadd.f32 %v2499_v11, %v2219_v35 }
   0x7   :  { %v196_v19 = vadd.f32 %v2499_v11, %v2279_v14  ;;  %v197_v20 = vadd.f32 %v2501_v13, %v2280_v15  ;;  %v167_v45 = vadd.f32 %v2501_v13, %v2220_v36  ;;  %v198_v48 = vadd.f32 %v2499_v11, %v2283_v37 }
   0x8   :  { %v356_v22 = vmax.f32 %v164_v17, 0.0  ;;  %v357_v23 = vmax.f32 %v165_v18, 0.0  ;;  %v199_v49 = vadd.f32 %v2501_v13, %v2284_v38  ;;  %v358_v50 = vmax.f32 %v166_v44, 0.0 }
   0x9   :  { %v388_v24 = vmax.f32 %v196_v19, 0.0  ;;  %v389_v25 = vmax.f32 %v197_v20, 0.0  ;;  %v359_v51 = vmax.f32 %v167_v45, 0.0  ;;  %v390_v52 = vmax.f32 %v198_v48, 0.0 }
   0xa   :  { %746 = vmatpush.bf16.msra.mxu0 %v2202_v7  ;;  %2383 = vmatpush.bf16.msra.mxu2 %v2202_v7  ;;  %v420_v28 = vpack.c.bf16 %v356_v22, %v356_v22  ;;  %v421_v29 = vpack.c.bf16 %v357_v23, %v357_v23  ;;  %v391_v53 = vmax.f32 %v199_v49, 0.0  ;;  %v422_v55 = vpack.c.bf16 %v358_v50, %v358_v50 }
   0xb   :  { %v452_v30 = vpack.c.bf16 %v388_v24, %v388_v24  ;;  %v453_v31 = vpack.c.bf16 %v389_v25, %v389_v25  ;;  %v423_v56 = vpack.c.bf16 %v359_v51, %v359_v51  ;;  %v454_v57 = vpack.c.bf16 %v390_v52, %v390_v52  ;;  %v2352_v24 = vld [vmem:[%s2999_s0 + $0x18] sm:$0xff]   ;;  %v2353_v51 = vld [vmem:[%s2999_s0 + $0x20] sm:$0xff]  }
   0xc   :  { %1392 = vperm.xlu1 %2398, %v1387_v9   ;;  %v568_v39 = vunpack.c.l.b16 %v420_v28  ;;  %v569_v40 = vunpack.c.l.b16 %v421_v29  ;;  %1405 = vperm.xlu2 %2399, %v1400_v54   ;;  %v455_v58 = vpack.c.bf16 %v391_v53, %v391_v53  ;;  %v570_v62 = vunpack.c.l.b16 %v422_v55  ;;  %v2368_v25 = vld [vmem:[%s2999_s0 + $0x98] sm:$0xff]   ;;  %v2369_v52 = vld [vmem:[%s2999_s0 + $0xa0] sm:$0xff]  }
   0xd   :  { %v600_v41 = vunpack.c.l.b16 %v452_v30  ;;  %v601_v42 = vunpack.c.l.b16 %v453_v31  ;;  %v2223_v63 = vunpack.c.l.bf16 %v2351_v59  ;;  %v2224_v0 = vunpack.c.h.bf16 %v2351_v59 }
   0xe   :  { %747 = vmatpush.bf16.msra.mxu0 %v2201_v16  ;;  %2384 = vmatpush.bf16.msra.mxu2 %v2201_v16  ;;  %v632_v46 = vpack.c.b16 %v569_v40, %v568_v39  ;;  %v2287_v1 = vunpack.c.l.bf16 %v2367_v60  ;;  %v571_v3 = vunpack.c.l.b16 %v423_v56  ;;  %v602_v5 = vunpack.c.l.b16 %v454_v57 }
   0xf   :  { %v648_v47 = vpack.c.b16 %v601_v42, %v600_v41  ;;  %v603_v6 = vunpack.c.l.b16 %v455_v58  ;;  %v2288_v7 = vunpack.c.h.bf16 %v2367_v60  ;;  %v168_v8 = vadd.f32 %v2499_v11, %v2223_v63 }
  0x10   :  { %v200_v10 = vadd.f32 %v2499_v11, %v2287_v1  ;;  %v633_v12 = vpack.c.b16 %v571_v3, %v570_v62  ;;  %v2227_v31 = vunpack.c.l.bf16 %v2352_v24  ;;  %v2228_v33 = vunpack.c.h.bf16 %v2352_v24 }
  0x11   :  { %v649_v14 = vpack.c.b16 %v603_v6, %v602_v5  ;;  %v201_v15 = vadd.f32 %v2501_v13, %v2288_v7  ;;  %v360_v16 = vmax.f32 %v168_v8, 0.0  ;;  %v2292_v35 = vunpack.c.h.bf16 %v2368_v25 }
  0x12   :  { %748 = vmatpush.bf16.msra.mxu0 %v2200_v21  ;;  %2385 = vmatpush.bf16.msra.mxu2 %v2200_v21  ;;  %v392_v18 = vmax.f32 %v200_v10, 0.0  ;;  %v170_v37 = vadd.f32 %v2499_v11, %v2227_v31  ;;  %v171_v39 = vadd.f32 %v2501_v13, %v2228_v33  ;;  %v2232_v55 = vunpack.c.h.bf16 %v2353_v51 }
  0x13   :  { %v393_v19 = vmax.f32 %v201_v15, 0.0  ;;  %v424_v20 = vpack.c.bf16 %v360_v16, %v360_v16  ;;  %v203_v41 = vadd.f32 %v2501_v13, %v2292_v35  ;;  %v2295_v56 = vunpack.c.l.bf16 %v2369_v52  ;;  %v2587_v16 = vld [vmem:[%s2998_s1 + $0x8] sm:$0xff] }
  0x14   :  { %2400 = vset.pattern.permute.xlu1 %v2514_v26  ;;  %2402 = vset.pattern.permute.xlu2 %v2514_v26  ;;  %v456_v22 = vpack.c.bf16 %v392_v18, %v392_v18  ;;  %v362_v42 = vmax.f32 %v170_v37, 0.0  ;;  %v2296_v60 = vunpack.c.h.bf16 %v2369_v52  ;;  %v173_v62 = vadd.f32 %v2501_v13, %v2232_v55 }
  0x15   :  { %v457_v23 = vpack.c.bf16 %v393_v19, %v393_v19  ;;  %v572_v28 = vunpack.c.l.b16 %v424_v20  ;;  %v395_v45 = vmax.f32 %v203_v41, 0.0  ;;  %v204_v63 = vadd.f32 %v2499_v11, %v2295_v56  ;;  %v2354_v19 = vld [vmem:[%s2999_s0 + $0x28] sm:$0xff]  }
  0x16   :  { %749 = vmatpush.bf16.msra.mxu0 %v2199_v27  ;;  %2386 = vmatpush.bf16.msra.mxu2 %v2199_v27  ;;  %v1426_v27 = vperm.slane %v2483_v4, 4  ;;  %v604_v30 = vunpack.c.l.b16 %v456_v22  ;;  %v205_v3 = vadd.f32 %v2501_v13, %v2296_v60  ;;  %v365_v6 = vmax.f32 %v173_v62, 0.0  ;;  %v2370_v20 = vld [vmem:[%s2999_s0 + $0xa8] sm:$0xff]  }
  0x17   :  { %v605_v32 = vunpack.c.l.b16 %v457_v23  ;;  %v459_v50 = vpack.c.bf16 %v395_v45, %v395_v45  ;;  %v396_v7 = vmax.f32 %v204_v63, 0.0  ;;  %v1374_v10 = vperm.slane %v2483_v4, 0 }
  0x18   :  { %v397_v8 = vmax.f32 %v205_v3, 0.0  ;;  %v429_v15 = vpack.c.bf16 %v365_v6, %v365_v6  ;;  %v2235_v24 = vunpack.c.l.bf16 %v2354_v19  ;;  %v2300_v31 = vunpack.c.h.bf16 %v2370_v20  ;;  %v2211_v3 = vld [vmem:[%s3002_s5 + $0x30] sm:$0xff] }
  0x19   :  { %v650_v38 = vpack.c.b16 %v605_v32, %v604_v30  ;;  %v607_v59 = vunpack.c.l.b16 %v459_v50  ;;  %1379 = vperm.xlu0 %2397, %v1374_v10   ;;  %v2299_v30 = vunpack.c.l.bf16 %v2370_v20 }
  0x1a   :  { %750 = vmatpush.bf16.msra.mxu0 %v2198_v34  ;;  %2387 = vmatpush.bf16.msra.mxu2 %v2198_v34  ;;  %v2291_v34 = vunpack.c.l.bf16 %v2368_v25  ;;  %v461_v18 = vpack.c.bf16 %v397_v8, %v397_v8  ;;  %v577_v23 = vunpack.c.l.b16 %v429_v15  ;;  %v2236_v25 = vunpack.c.h.bf16 %v2354_v19  ;;  %v2356_v15 = vld [vmem:[%s2999_s0 + $0x38] sm:$0xff]  }
  0x1b   :  { %v174_v32 = vadd.f32 %v2499_v11, %v2235_v24  ;;  %v207_v37 = vadd.f32 %v2501_v13, %v2300_v31  ;;  %v1504_v8 = vperm.slane %v2587_v16, 2  ;;  %v2243_v24 = vunpack.c.l.bf16 %v2356_v15 }
  0x1c   :  { %1398 = vperm.xlu1 %2400, %v1387_v9   ;;  %v169_v9 = vadd.f32 %v2501_v13, %v2224_v0  ;;  %1411 = vperm.xlu2 %2402, %v1400_v54   ;;  %v202_v40 = vadd.f32 %v2499_v11, %v2291_v34  ;;  %v2231_v54 = vunpack.c.l.bf16 %v2353_v51  ;;  %v175_v33 = vadd.f32 %v2501_v13, %v2236_v25 }
  0x1d   :  { %v399_v41 = vmax.f32 %v207_v37, 0.0  ;;  %v2244_v25 = vunpack.c.h.bf16 %v2356_v15 }
  0x1e   :  { %751 = vmatpush.bf16.msra.mxu0 %v2197_v43  ;;  %2388 = vmatpush.bf16.msra.mxu2 %v2197_v43  ;;  %v361_v17 = vmax.f32 %v169_v9, 0.0  ;;  %v363_v43 = vmax.f32 %v171_v39, 0.0  ;;  %v394_v44 = vmax.f32 %v202_v40, 0.0  ;;  %v1465_v9 = vperm.slane %v2483_v4, 7 }
  0x1f   :  { %v367_v39 = vmax.f32 %v175_v33, 0.0 }
  0x20   :  { %v425_v21 = vpack.c.bf16 %v361_v17, %v361_v17  ;;  %v427_v48 = vpack.c.bf16 %v363_v43, %v363_v43  ;;  %v458_v49 = vpack.c.bf16 %v394_v44, %v394_v44  ;;  %v460_v17 = vpack.c.bf16 %v396_v7, %v396_v7 }
  0x21   :  { %752 = vmatmul.bf16.vlgmr.msra.gmra.mxu0 %v632_v46  ;;  %832 = vmatmul.bf16.vlgmr.msra.gmra.mxu2 %v648_v47  ;;  %v1439_v46 = vperm.slane %v2483_v4, 5  ;;  %v426_v47 = vpack.c.bf16 %v362_v42, %v362_v42  ;;  %v2212_v42 = vld [vmem:[%s3002_s5 + $0x38] sm:$0xff]  ;;  %v431_v44 = vpack.c.bf16 %v367_v39, %v367_v39 }
  0x22   :  { %v573_v29 = vunpack.c.l.b16 %v425_v21  ;;  %v575_v57 = vunpack.c.l.b16 %v427_v48  ;;  %v606_v58 = vunpack.c.l.b16 %v458_v49  ;;  %v1478_v21 = vperm.slane %v2587_v16, 0  ;;  %1431 = vperm.xlu0 %2397, %v1426_v27   ;;  %1201 = vmatpush.bf16.msra.mxu1 %v2212_v42  ;;  %v2371_v48 = vld [vmem:[%s2999_s0 + $0xb0] sm:$0xff]   ;;  %v2208_v39 = vld [vmem:[%s3002_s5 + $0x18] sm:$0xff] }
  0x23   :  { %v574_v53 = vunpack.c.l.b16 %v426_v47  ;;  %v2355_v47 = vld [vmem:[%s2999_s0 + $0x30] sm:$0xff]   ;;  %2389 = vmatpush.bf16.msra.mxu3 %v2212_v42  ;;  %v1556_v49 = vperm.slane %v2587_v16, 6  ;;  %v579_v51 = vunpack.c.l.b16 %v431_v44  ;;  %v2303_v56 = vunpack.c.l.bf16 %v2371_v48 }
  0x24   :  { %2401 = vset.pattern.permute.xlu1 %v2473_v2  ;;  %1424 = vperm.xlu2 %2402, %v1413_v61   ;;  %v634_v36 = vpack.c.b16 %v573_v29, %v572_v28  ;;  %v651_v1 = vpack.c.b16 %v607_v59, %v606_v58  ;;  %v608_v28 = vunpack.c.l.b16 %v460_v17  ;;  %v609_v29 = vunpack.c.l.b16 %v461_v18  ;;  %v2643_v17 = vld [vmem:[%s2998_s1 + $0x18] sm:$0xff] }
  0x25   :  { %v635_v0 = vpack.c.b16 %v575_v57, %v574_v53  ;;  %v2239_v52 = vunpack.c.l.bf16 %v2355_v47  ;;  %v2240_v53 = vunpack.c.h.bf16 %v2355_v47  ;;  %v2304_v57 = vunpack.c.h.bf16 %v2371_v48 }
  0x26   :  { %v652_v35 = vpack.c.b16 %v609_v29, %v608_v28  ;;  %v208_v62 = vadd.f32 %v2499_v11, %v2303_v56  ;;  %1202 = vmatpush.bf16.msra.mxu1 %v2211_v3  ;;  %v1686_v28 = vperm.slane %v2643_v17, 0  ;;  %v1751_v47 = vperm.slane %v2643_v17, 5 }
  0x27   :  { %v176_v58 = vadd.f32 %v2499_v11, %v2239_v52  ;;  %v177_v59 = vadd.f32 %v2501_v13, %v2240_v53  ;;  %v209_v63 = vadd.f32 %v2501_v13, %v2304_v57  ;;  %2390 = vmatpush.bf16.msra.mxu3 %v2211_v3  ;;  %v2206_v53 = vld [vmem:[%s3002_s5 + $0x8] sm:$0xff]  ;;  %v1543_v3 = vperm.slane %v2587_v16, 5 }
  0x28   :  { %v400_v6 = vmax.f32 %v208_v62, 0.0  ;;  %v2205_v62 = vld [vmem:[%s3002_s5] sm:$0xff] }
  0x29   :  { %v401_v7 = vmax.f32 %v209_v63, 0.0 }
  0x2a   :  { %v464_v20 = vpack.c.bf16 %v400_v6, %v400_v6 }
  0x2c   :  { %1418 = vperm.xlu1 %2401, %v1413_v61   ;;  %2404 = vset.pattern.permute.xlu2 %v2473_v2  ;;  %v172_v61 = vadd.f32 %v2499_v11, %v2231_v54  ;;  %v612_v33 = vunpack.c.l.b16 %v464_v20 }
  0x2e   :  { %v364_v5 = vmax.f32 %v172_v61, 0.0 }
  0x31   :  { %757 = vmatmul.bf16.gmra.mxu0 %v633_v12  ;;  %837 = vmatmul.bf16.gmra.mxu2 %v649_v14  ;;  %v1452_v12 = vperm.slane %v2483_v4, 6  ;;  %v428_v14 = vpack.c.bf16 %v364_v5, %v364_v5  ;;  %v2627_v5 = vld [vmem:[%s2998_s1 + $0x10] sm:$0xff] }
  0x33   :  { %v576_v22 = vunpack.c.l.b16 %v428_v14  ;;  %v2210_v14 = vld [vmem:[%s3002_s5 + $0x28] sm:$0xff] }
  0x34   :  { %2403 = vset.pattern.permute.xlu1 %v2514_v26  ;;  %1444 = vperm.xlu2 %2404, %v1439_v46  }
  0x35   :  { %v636_v34 = vpack.c.b16 %v577_v23, %v576_v22  ;;  %v2372_v22 = vld [vmem:[%s2999_s0 + $0xb8] sm:$0xff]   ;;  %1203 = vmatpush.bf16.msra.mxu1 %v2210_v14  ;;  %v2209_v23 = vld [vmem:[%s3002_s5 + $0x20] sm:$0xff]  ;;  %2391 = vmatpush.bf16.msra.mxu3 %v2210_v14 }
  0x36   :  { %v2307_v29 = vunpack.c.l.bf16 %v2372_v22 }
  0x38   :  { %v210_v37 = vadd.f32 %v2499_v11, %v2307_v29 }
  0x39   :  { %1204 = vmatpush.bf16.msra.mxu1 %v2209_v23  ;;  %2392 = vmatpush.bf16.msra.mxu3 %v2209_v23 }
  0x3c   :  { %1437 = vperm.xlu1 %2403, %v1426_v27   ;;  %1457 = vperm.xlu2 %2404, %v1452_v12   ;;  %v1491_v27 = vperm.slane %v2587_v16, 1 }
  0x3d   :  { %1205 = vmatpush.bf16.msra.mxu1 %v2208_v39  ;;  %2393 = vmatpush.bf16.msra.mxu3 %v2208_v39 }
  0x3e   :  { %1496 = vperm.xlu0 %2397, %v1491_v27  }
  0x41   :  { %762 = vmatmul.bf16.gmra.mxu0 %v634_v36  ;;  %842 = vmatmul.bf16.gmra.mxu2 %v650_v38  ;;  %v206_v36 = vadd.f32 %v2499_v11, %v2299_v30  ;;  %v366_v38 = vmax.f32 %v174_v32, 0.0  ;;  %v2308_v30 = vunpack.c.h.bf16 %v2372_v22 }
  0x43   :  { %v398_v40 = vmax.f32 %v206_v36, 0.0  ;;  %v430_v43 = vpack.c.bf16 %v366_v38, %v366_v38  ;;  %v179_v36 = vadd.f32 %v2501_v13, %v2244_v25  ;;  %v211_v38 = vadd.f32 %v2501_v13, %v2308_v30 }
  0x44   :  { %1450 = vperm.xlu1 %2403, %v1439_v46   ;;  %2406 = vset.pattern.permute.xlu2 %v2514_v26  ;;  %v463_v46 = vpack.c.bf16 %v399_v41, %v399_v41 }
  0x45   :  { %v462_v45 = vpack.c.bf16 %v398_v40, %v398_v40  ;;  %v578_v50 = vunpack.c.l.b16 %v430_v43  ;;  %v371_v42 = vmax.f32 %v179_v36, 0.0  ;;  %v402_v43 = vmax.f32 %v210_v37, 0.0 }
  0x46   :  { %v611_v55 = vunpack.c.l.b16 %v463_v46  ;;  %1561 = vperm.xlu0 %2397, %v1556_v49   ;;  %v403_v44 = vmax.f32 %v211_v38, 0.0  ;;  %v1530_v46 = vperm.slane %v2587_v16, 4 }
  0x47   :  { %v610_v54 = vunpack.c.l.b16 %v462_v45  ;;  %v637_v60 = vpack.c.b16 %v579_v51, %v578_v50  ;;  %v2207_v45 = vld [vmem:[%s3002_s5 + $0x10] sm:$0xff]  ;;  %v435_v50 = vpack.c.bf16 %v371_v42, %v371_v42  ;;  %v466_v51 = vpack.c.bf16 %v402_v43, %v402_v43 }
  0x48   :  { %1206 = vmatpush.bf16.msra.mxu1 %v2207_v45  ;;  %2394 = vmatpush.bf16.msra.mxu3 %v2207_v45  ;;  %v467_v52 = vpack.c.bf16 %v403_v44, %v403_v44 }
  0x49   :  { %v653_v61 = vpack.c.b16 %v611_v55, %v610_v54  ;;  %v2357_v54 = vld [vmem:[%s2999_s0 + $0x40] sm:$0xff]   ;;  %v583_v57 = vunpack.c.l.b16 %v435_v50 }
  0x4a   :  { %v2373_v55 = vld [vmem:[%s2999_s0 + $0xc0] sm:$0xff]  }
  0x4b   :  { %v2311_v63 = vunpack.c.l.bf16 %v2373_v55 }
  0x4c   :  { %2405 = vset.pattern.permute.xlu1 %v2473_v2  ;;  %1476 = vperm.xlu2 %2406, %v1465_v9  }
  0x4d   :  { %1207 = vmatpush.bf16.msra.mxu1 %v2206_v53  ;;  %2395 = vmatpush.bf16.msra.mxu3 %v2206_v53  ;;  %v212_v15 = vadd.f32 %v2499_v11, %v2311_v63 }
  0x51   :  { %767 = vmatmul.bf16.gmra.mxu0 %v635_v0  ;;  %847 = vmatmul.bf16.gmra.mxu2 %v651_v1  ;;  %v368_v0 = vmax.f32 %v176_v58, 0.0  ;;  %v369_v1 = vmax.f32 %v177_v59, 0.0  ;;  %v614_v58 = vunpack.c.l.b16 %v466_v51  ;;  %v615_v59 = vunpack.c.l.b16 %v467_v52 }
  0x52   :  { %1208 = vmatpush.bf16.msra.mxu1 %v2205_v62  ;;  %2396 = vmatpush.bf16.msra.mxu3 %v2205_v62  ;;  %v1569_v51 = vperm.slane %v2587_v16, 7 }
  0x53   :  { %v432_v18 = vpack.c.bf16 %v368_v0, %v368_v0  ;;  %v433_v19 = vpack.c.bf16 %v369_v1, %v369_v1  ;;  %v2312_v0 = vunpack.c.h.bf16 %v2373_v55  ;;  %v1517_v1 = vperm.slane %v2587_v16, 3  ;;  %v2359_v55 = vld [vmem:[%s2999_s0 + $0x50] sm:$0xff]  }
  0x54   :  { %1470 = vperm.xlu1 %2405, %v1465_v9   ;;  %1489 = vperm.xlu2 %2406, %v1478_v21   ;;  %v1621_v9 = vperm.slane %v2627_v5, 3 }
  0x55   :  { %v580_v31 = vunpack.c.l.b16 %v432_v18  ;;  %v581_v32 = vunpack.c.l.b16 %v433_v19  ;;  %v213_v18 = vadd.f32 %v2501_v13, %v2312_v0  ;;  %v2256_v0 = vunpack.c.h.bf16 %v2359_v55 }
  0x56   :  { %1626 = vperm.xlu0 %2397, %v1621_v9  }
  0x57   :  { %v638_v40 = vpack.c.b16 %v581_v32, %v580_v31  ;;  %v405_v22 = vmax.f32 %v213_v18, 0.0  ;;  %v2374_v31 = vld [vmem:[%s2999_s0 + $0xc8] sm:$0xff]  }
  0x58   :  { %v2316_v39 = vunpack.c.h.bf16 %v2374_v31 }
  0x59   :  { %v469_v30 = vpack.c.bf16 %v405_v22, %v405_v22 }
  0x5a   :  { %v215_v43 = vadd.f32 %v2501_v13, %v2316_v39 }
  0x5b   :  { %v617_v38 = vunpack.c.l.b16 %v469_v30 }
  0x5c   :  { %1483 = vperm.xlu1 %2405, %v1478_v21   ;;  %2408 = vset.pattern.permute.xlu2 %v2473_v2  ;;  %v465_v21 = vpack.c.bf16 %v401_v7, %v401_v7 }
  0x5e   :  { %1691 = vperm.xlu0 %2397, %v1686_v28  }
  0x61   :  { %772 = vmatmul.bf16.gmra.mxu0 %v636_v34  ;;  %852 = vmatmul.bf16.gmra.mxu2 %v652_v35  ;;  %v613_v34 = vunpack.c.l.b16 %v465_v21  ;;  %v178_v35 = vadd.f32 %v2499_v11, %v2243_v24  ;;  %v404_v21 = vmax.f32 %v212_v15, 0.0  ;;  %v2358_v24 = vld [vmem:[%s2999_s0 + $0x48] sm:$0xff]  }
  0x62   :  { %v2251_v32 = vunpack.c.l.bf16 %v2358_v24 }
  0x63   :  { %v654_v41 = vpack.c.b16 %v613_v34, %v612_v33  ;;  %v468_v29 = vpack.c.bf16 %v404_v21, %v404_v21  ;;  %v2252_v34 = vunpack.c.h.bf16 %v2358_v24 }
  0x64   :  { %2407 = vset.pattern.permute.xlu1 %v2514_v26  ;;  %1509 = vperm.xlu2 %2408, %v1504_v8  }
  0x65   :  { %v616_v37 = vunpack.c.l.b16 %v468_v29 }
  0x66   :  { %1756 = vperm.xlu0 %2397, %v1751_v47  }
  0x67   :  { %v656_v42 = vpack.c.b16 %v617_v38, %v616_v37  ;;  %v1595_v37 = vperm.slane %v2627_v5, 1 }
  0x6c   :  { %1502 = vperm.xlu1 %2407, %v1491_v27   ;;  %v370_v27 = vmax.f32 %v178_v35, 0.0  ;;  %1522 = vperm.xlu2 %2408, %v1517_v1   ;;  %v2315_v35 = vunpack.c.l.bf16 %v2374_v31 }
  0x6e   :  { %v434_v48 = vpack.c.bf16 %v370_v27, %v370_v27  ;;  %2423 = vset.pattern.permute.xlu0 %v2514_v26 }
  0x70   :  { %v582_v56 = vunpack.c.l.b16 %v434_v48 }
  0x71   :  { %777 = vmatmul.bf16.gmra.mxu0 %v637_v60  ;;  %857 = vmatmul.bf16.gmra.mxu2 %v653_v61  ;;  %v2247_v60 = vunpack.c.l.bf16 %v2357_v54  ;;  %v2248_v61 = vunpack.c.h.bf16 %v2357_v54 }
  0x72   :  { %v639_v6 = vpack.c.b16 %v583_v57, %v582_v56  ;;  %v2375_v57 = vld [vmem:[%s2999_s0 + $0xd0] sm:$0xff]  }
  0x73   :  { %v180_v7 = vadd.f32 %v2499_v11, %v2247_v60  ;;  %v181_v14 = vadd.f32 %v2501_v13, %v2248_v61  ;;  %v2255_v61 = vunpack.c.l.bf16 %v2359_v55 }
  0x74   :  { %1515 = vperm.xlu1 %2407, %v1504_v8   ;;  %v655_v8 = vpack.c.b16 %v615_v59, %v614_v58  ;;  %2410 = vset.pattern.permute.xlu2 %v2514_v26 }
  0x75   :  { %v372_v19 = vmax.f32 %v180_v7, 0.0  ;;  %v373_v20 = vmax.f32 %v181_v14, 0.0  ;;  %v184_v18 = vadd.f32 %v2499_v11, %v2255_v61 }
  0x76   :  { %1385 = vperm.xlu0 %2423, %v1374_v10   ;;  %v183_v10 = vadd.f32 %v2501_v13, %v2252_v34 }
  0x77   :  { %v436_v23 = vpack.c.bf16 %v372_v19, %v372_v19  ;;  %v437_v25 = vpack.c.bf16 %v373_v20, %v373_v20  ;;  %v185_v20 = vadd.f32 %v2501_v13, %v2256_v0 }
  0x78   :  { %v375_v48 = vmax.f32 %v183_v10, 0.0 }
  0x79   :  { %v584_v33 = vunpack.c.l.b16 %v436_v23  ;;  %v585_v36 = vunpack.c.l.b16 %v437_v25 }
  0x7a   :  { %v439_v53 = vpack.c.bf16 %v375_v48, %v375_v48 }
  0x7b   :  { %v640_v27 = vpack.c.b16 %v585_v36, %v584_v33  ;;  %v377_v33 = vmax.f32 %v185_v20, 0.0 }
  0x7c   :  { %2409 = vset.pattern.permute.xlu1 %v2473_v2  ;;  %1541 = vperm.xlu2 %2410, %v1530_v46   ;;  %v587_v62 = vunpack.c.l.b16 %v439_v53 }
  0x7d   :  { %v441_v10 = vpack.c.bf16 %v377_v33, %v377_v33  ;;  %v2377_v33 = vld [vmem:[%s2999_s0 + $0xe0] sm:$0xff]  }
  0x7e   :  { %1463 = vperm.xlu0 %2423, %v1452_v12  }
  0x81   :  { %782 = vmatmul.bf16.gmra.mxu0 %v638_v40  ;;  %862 = vmatmul.bf16.gmra.mxu2 %v654_v41  ;;  %v182_v40 = vadd.f32 %v2499_v11, %v2251_v32  ;;  %v214_v41 = vadd.f32 %v2499_v11, %v2315_v35  ;;  %v376_v32 = vmax.f32 %v184_v18, 0.0 }
  0x83   :  { %v374_v45 = vmax.f32 %v182_v40, 0.0  ;;  %v406_v50 = vmax.f32 %v214_v41, 0.0  ;;  %v440_v39 = vpack.c.bf16 %v376_v32, %v376_v32 }
  0x84   :  { %1535 = vperm.xlu1 %2409, %v1530_v46   ;;  %v2709_v46 = vld [vmem:[%s3001_s4] ss:$0 sm:$0xff]  ;;  %1554 = vperm.xlu2 %2410, %v1543_v3  }
  0x85   :  { %v438_v12 = vpack.c.bf16 %v374_v45, %v374_v45  ;;  %v470_v54 = vpack.c.bf16 %v406_v50, %v406_v50  ;;  %v588_v50 = vunpack.c.l.b16 %v440_v39 }
  0x86   :  { %1528 = vperm.xlu0 %2423, %v1517_v1   ;;  %v1582_v1 = vperm.slane %v2627_v5, 0 }
  0x87   :  { %v586_v60 = vunpack.c.l.b16 %v438_v12  ;;  %v618_v63 = vunpack.c.l.b16 %v470_v54 }
  0x89   :  { %v641_v23 = vpack.c.b16 %v587_v62, %v586_v60 }
  0x8c   :  { %1548 = vperm.xlu1 %2409, %v1543_v3   ;;  %v2319_v3 = vunpack.c.l.bf16 %v2375_v57  ;;  %2412 = vset.pattern.permute.xlu2 %v2473_v2 }
  0x8e   :  { %v216_v21 = vadd.f32 %v2499_v11, %v2319_v3  ;;  %1593 = vperm.xlu0 %2423, %v1582_v1  }
  0x90   :  { %v408_v34 = vmax.f32 %v216_v21, 0.0  ;;  %v1608_v21 = vperm.slane %v2627_v5, 2 }
  0x91   :  { %787 = vmatmul.bf16.gmra.mxu0 %v639_v6  ;;  %867 = vmatmul.bf16.gmra.mxu2 %v655_v8  ;;  %v2320_v8 = vunpack.c.h.bf16 %v2375_v57 }
  0x92   :  { %v472_v41 = vpack.c.bf16 %v408_v34, %v408_v34 }
  0x93   :  { %v217_v25 = vadd.f32 %v2501_v13, %v2320_v8 }
  0x94   :  { %2411 = vset.pattern.permute.xlu1 %v2514_v26  ;;  %1574 = vperm.xlu2 %2412, %v1569_v51  }
  0x95   :  { %v409_v36 = vmax.f32 %v217_v25, 0.0 }
  0x9c   :  { %1567 = vperm.xlu1 %2411, %v1556_v49   ;;  %v407_v49 = vmax.f32 %v215_v43, 0.0  ;;  %1587 = vperm.xlu2 %2412, %v1582_v1  }
  0x9e   :  { %v753_v44 = vpop.f32.mrf.mxu0  ;;  %v471_v56 = vpack.c.bf16 %v407_v49, %v407_v49  ;;  %v589_v49 = vunpack.c.l.b16 %v441_v10 }
  0x9f   :  { %v754_v4 = vadd.f32 %v2709_v46, %v753_v44  ;;  %v2376_v44 = vld [vmem:[%s2999_s0 + $0xd8] sm:$0xff]  }
  0xa0   :  { %v619_v7 = vunpack.c.l.b16 %v471_v56  ;;  %v2323_v54 = vunpack.c.l.bf16 %v2376_v44  ;;  %v2324_v55 = vunpack.c.h.bf16 %v2376_v44  ;;  %v2740_v56 = vpop.permute.xlu2 %1405  ;;  %v2328_v44 = vunpack.c.h.bf16 %v2377_v33 }
  0xa1   :  { %792 = vmatmul.bf16.gmra.mxu0 %v640_v27  ;;  %872 = vmatmul.bf16.gmra.mxu2 %v656_v42  ;;  %v1041_v16 = vmax.f32 %v754_v4, 0.0  ;;  %v473_v27 = vpack.c.bf16 %v409_v36, %v409_v36  ;;  %v2360_v42 = vld [vmem:[%s2999_s0 + $0x58] sm:$0xff]   ;;  %vm1794_vm7 = vcmp.gt.f32.partialorder %v2740_v56, 0.5 }
  0xa2   :  { %v657_v24 = vpack.c.b16 %v619_v7, %v618_v63  ;;  %v2259_v4 = vunpack.c.l.bf16 %v2360_v42  ;;  %v2260_v12 = vunpack.c.h.bf16 %v2360_v42  ;;  %v218_v0 = vadd.f32 %v2499_v11, %v2323_v54 }
  0xa3   :  { %v621_v53 = vunpack.c.l.b16 %v473_v27  ;;  %v219_v3 = vadd.f32 %v2501_v13, %v2324_v55  ;;  %v221_v55 = vadd.f32 %v2501_v13, %v2328_v44 }
  0xa4   :  { %1580 = vperm.xlu1 %2411, %v1569_v51   ;;  %v833_v52 = vpop.f32.mrf.mxu2  ;;  %v620_v51 = vunpack.c.l.b16 %v472_v41  ;;  %v186_v60 = vadd.f32 %v2499_v11, %v2259_v4  ;;  %v187_v61 = vadd.f32 %v2501_v13, %v2260_v12  ;;  %2414 = vset.pattern.permute.xlu2 %v2514_v26  ;;  %v2327_v41 = vunpack.c.l.bf16 %v2377_v33 }
  0xa5   :  { %v834_v14 = vadd.f32 %v2709_v46, %v833_v52  ;;  %v411_v20 = vmax.f32 %v219_v3, 0.0 }
  0xa6   :  { %v755_v58 = vpop.f32.mrf.mxu0  ;;  %v658_v63 = vpack.c.b16 %v621_v53, %v620_v51  ;;  %v378_v1 = vmax.f32 %v186_v60, 0.0  ;;  %v220_v12 = vadd.f32 %v2499_v11, %v2327_v41 }
  0xa7   :  { %v756_v59 = vadd.f32 %v2709_v46, %v755_v58  ;;  %v1073_v30 = vmax.f32 %v834_v14, 0.0  ;;  %v2748_v14 = vpop.permute.xlu1 %1392  ;;  %v475_v32 = vpack.c.bf16 %v411_v20, %v411_v20 }
  0xa8   :  { %v442_v25 = vpack.c.bf16 %v378_v1, %v378_v1  ;;  %vm1792_vm2 = vcmp.gt.f32.partialorder %v2748_v14, 0.5 }
  0xa9   :  { %v1042_v6 = vmax.f32 %v756_v59, 0.0  ;;  %v642_v59 = vpack.c.b16 %v589_v49, %v588_v50 }
  0xaa   :  { %v590_v39 = vunpack.c.l.b16 %v442_v25 }
  0xab   :  { %v1105_v15 = vpack.c.bf16 %v1042_v6, %v1041_v16 }
  0xac   :  { %2413 = vset.pattern.permute.xlu1 %v2473_v2  ;;  %v835_v19 = vpop.f32.mrf.mxu2  ;;  %1606 = vperm.xlu2 %2414, %v1595_v37  }
  0xad   :  { %v836_v22 = vadd.f32 %v2709_v46, %v835_v19  ;;  %1209 = vmatmul.bf16.vlgmr.msra.gmra.mxu1 %v1105_v15  ;;  %v379_v15 = vmax.f32 %v187_v61, 0.0  ;;  %v410_v19 = vmax.f32 %v218_v0, 0.0  ;;  %v413_v0 = vmax.f32 %v221_v55, 0.0 }
  0xae   :  { %v758_v29 = vpop.f32.mrf.mxu0 }
  0xaf   :  { %v1074_v31 = vmax.f32 %v836_v22, 0.0  ;;  %v759_v38 = vadd.f32 %v2709_v46, %v758_v29  ;;  %v443_v29 = vpack.c.bf16 %v379_v15, %v379_v15  ;;  %v477_v15 = vpack.c.bf16 %v413_v0, %v413_v0 }
  0xb1   :  { %797 = vmatmul.bf16.gmra.mxu0 %v641_v23  ;;  %877 = vmatmul.bf16.gmra.mxu2 %v657_v24  ;;  %v1121_v35 = vpack.c.bf16 %v1074_v31, %v1073_v30  ;;  %v1043_v45 = vmax.f32 %v759_v38, 0.0  ;;  %v2752_v23 = vpop.permute.xlu2 %1411  ;;  %v2361_v30 = vld [vmem:[%s2999_s0 + $0x60] sm:$0xff]   ;;  %v474_v31 = vpack.c.bf16 %v410_v19, %v410_v19  ;;  %v2362_v19 = vld [vmem:[%s2999_s0 + $0x68] sm:$0xff]  }
  0xb2   :  { %v2263_v38 = vunpack.c.l.bf16 %v2361_v30  ;;  %v2264_v10 = vunpack.c.h.bf16 %v2361_v30  ;;  %vm1795_vm9 = vcmp.gt.f32.partialorder %v2752_v23, 0.5 }
  0xb3   :  { %1289 = vmatmul.bf16.vlgmr.msra.gmra.mxu3 %v1121_v35  ;;  %v622_v42 = vunpack.c.l.b16 %v474_v31  ;;  %v2267_v31 = vunpack.c.l.bf16 %v2362_v19 }
  0xb4   :  { %v838_v40 = vpop.f32.mrf.mxu2  ;;  %1600 = vperm.xlu1 %2413, %v1595_v37   ;;  %v188_v49 = vadd.f32 %v2499_v11, %v2263_v38  ;;  %v189_v4 = vadd.f32 %v2501_v13, %v2264_v10  ;;  %1619 = vperm.xlu2 %2414, %v1608_v21  }
  0xb5   :  { %v839_v57 = vadd.f32 %v2709_v46, %v838_v40  ;;  %v591_v40 = vunpack.c.l.b16 %v443_v29  ;;  %v190_v41 = vadd.f32 %v2499_v11, %v2267_v31 }
  0xb6   :  { %v760_v43 = vpop.f32.mrf.mxu0  ;;  %v380_v60 = vmax.f32 %v188_v49, 0.0  ;;  %v381_v61 = vmax.f32 %v189_v4, 0.0 }
  0xb7   :  { %v761_v48 = vadd.f32 %v2709_v46, %v760_v43  ;;  %v1075_v7 = vmax.f32 %v839_v57, 0.0  ;;  %v623_v43 = vunpack.c.l.b16 %v475_v32  ;;  %v643_v53 = vpack.c.b16 %v591_v40, %v590_v39 }
  0xb8   :  { %v444_v3 = vpack.c.bf16 %v380_v60, %v380_v60  ;;  %v2268_v32 = vunpack.c.h.bf16 %v2362_v19  ;;  %v2363_v60 = vld [vmem:[%s2999_s0 + $0x70] sm:$0xff]  }
  0xb9   :  { %v1044_v52 = vmax.f32 %v761_v48, 0.0  ;;  %v659_v54 = vpack.c.b16 %v623_v43, %v622_v42  ;;  %v2773_v57 = vpop.permute.xlu2 %1424 }
  0xba   :  { %vm1797_vm13 = vcmp.gt.f32.partialorder %v2773_v57, 0.5 }
  0xbb   :  { %v1106_v58 = vpack.c.bf16 %v1044_v52, %v1043_v45  ;;  %v2762_v45 = vpop.permute.xlu1 %1398 }
  0xbc   :  { %v840_v16 = vpop.f32.mrf.mxu2  ;;  %1613 = vperm.xlu1 %2413, %v1608_v21   ;;  %2416 = vset.pattern.permute.xlu2 %v2473_v2  ;;  %vm1793_vm5 = vcmp.gt.f32.partialorder %v2762_v45, 0.5 }
  0xbd   :  { %v841_v62 = vadd.f32 %v2709_v46, %v840_v16  ;;  %1214 = vmatmul.bf16.gmra.mxu1 %v1106_v58 }
  0xbe   :  { %v763_v6 = vpop.f32.mrf.mxu0 }
  0xbf   :  { %v1076_v8 = vmax.f32 %v841_v62, 0.0  ;;  %v764_v22 = vadd.f32 %v2709_v46, %v763_v6  ;;  %v412_v62 = vmax.f32 %v220_v12, 0.0 }
  0xc1   :  { %802 = vmatmul.bf16.gmra.mxu0 %v642_v59  ;;  %882 = vmatmul.bf16.gmra.mxu2 %v658_v63  ;;  %v1122_v18 = vpack.c.bf16 %v1076_v8, %v1075_v7  ;;  %v1045_v35 = vmax.f32 %v764_v22, 0.0  ;;  %v445_v8 = vpack.c.bf16 %v381_v61, %v381_v61  ;;  %v476_v1 = vpack.c.bf16 %v412_v62, %v412_v62  ;;  %v2378_v22 = vld [vmem:[%s2999_s0 + $0xe8] sm:$0xff]   ;;  %v2789_v29 = vpop.permute.xlu2 %1444 }
  0xc3   :  { %1294 = vmatmul.bf16.gmra.mxu3 %v1122_v18  ;;  %v2776_v6 = vpop.permute.xlu1 %1418  ;;  %v2780_v18 = vpop.permute.xlu0 %1379  ;;  %v593_v30 = vunpack.c.l.b16 %v445_v8  ;;  %v624_v21 = vunpack.c.l.b16 %v476_v1  ;;  %v2271_v8 = vunpack.c.l.bf16 %v2363_v60 }
  0xc4   :  { %v843_v24 = vpop.f32.mrf.mxu2  ;;  %2415 = vset.pattern.permute.xlu1 %v2514_v26  ;;  %vm1790_vm0 = vcmp.gt.f32.partialorder %v2780_v18, 0.5  ;;  %vm1796_vm11 = vcmp.gt.f32.partialorder %v2776_v6, 0.5 }
  0xc5   :  { %v844_v48 = vadd.f32 %v2709_v46, %v843_v24 }
  0xc6   :  { %v765_v34 = vpop.f32.mrf.mxu0 }
  0xc7   :  { %v766_v36 = vadd.f32 %v2709_v46, %v765_v34  ;;  %v1077_v16 = vmax.f32 %v844_v48, 0.0  ;;  %v625_v34 = vunpack.c.l.b16 %v477_v15 }
  0xc9   :  { %v1046_v27 = vmax.f32 %v766_v36, 0.0  ;;  %v2332_v36 = vunpack.c.h.bf16 %v2378_v22  ;;  %v660_v43 = vpack.c.b16 %v625_v34, %v624_v21  ;;  %v192_v34 = vadd.f32 %v2499_v11, %v2271_v8  ;;  %v2380_v8 = vld [vmem:[%s2999_s0 + $0xf8] sm:$0xff]  }
  0xcb   :  { %v1107_v50 = vpack.c.bf16 %v1046_v27, %v1045_v35  ;;  %v2331_v35 = vunpack.c.l.bf16 %v2378_v22  ;;  %v191_v27 = vadd.f32 %v2501_v13, %v2268_v32  ;;  %v223_v48 = vadd.f32 %v2501_v13, %v2332_v36  ;;  %v2800_v12 = vpop.permute.xlu0 %1431 }
  0xcc   :  { %v845_v51 = vpop.f32.mrf.mxu2  ;;  %1632 = vperm.xlu1 %2415, %v1621_v9   ;;  %v592_v9 = vunpack.c.l.b16 %v444_v3  ;;  %v2379_v3 = vld [vmem:[%s2999_s0 + $0xf0] sm:$0xff]   ;;  %vm1798_vm15 = vcmp.gt.f32.partialorder %v2800_v12, 0.5 }
  0xcd   :  { %v846_v52 = vadd.f32 %v2709_v46, %v845_v51  ;;  %1219 = vmatmul.bf16.gmra.mxu1 %v1107_v50  ;;  %v222_v44 = vadd.f32 %v2499_v11, %v2331_v35  ;;  %v2798_v50 = vpop.permute.xlu1 %1437 }
  0xce   :  { %v768_v58 = vpop.f32.mrf.mxu0  ;;  %v644_v10 = vpack.c.b16 %v593_v30, %v592_v9  ;;  %v2336_v9 = vunpack.c.h.bf16 %v2379_v3 }
  0xcf   :  { %v1078_v59 = vmax.f32 %v846_v52, 0.0  ;;  %v769_v37 = vadd.f32 %v2709_v46, %v768_v58  ;;  %v382_v52 = vmax.f32 %v190_v41, 0.0  ;;  %v414_v55 = vmax.f32 %v222_v44, 0.0 }
  0xd0   :  { %v415_v58 = vmax.f32 %v223_v48, 0.0  ;;  %v225_v41 = vadd.f32 %v2501_v13, %v2336_v9 }
  0xd1   :  { %807 = vmatmul.bf16.gmra.mxu0 %v643_v53  ;;  %887 = vmatmul.bf16.gmra.mxu2 %v659_v54  ;;  %v1123_v63 = vpack.c.bf16 %v1078_v59, %v1077_v16  ;;  %v1047_v24 = vmax.f32 %v769_v37, 0.0  ;;  %v383_v53 = vmax.f32 %v191_v27, 0.0  ;;  %v2802_v16 = vpop.permute.xlu2 %1457  ;;  %v446_v62 = vpack.c.bf16 %v382_v52, %v382_v52 }
  0xd2   :  { %v478_v0 = vpack.c.bf16 %v414_v55, %v414_v55  ;;  %v479_v37 = vpack.c.bf16 %v415_v58, %v415_v58 }
  0xd3   :  { %1299 = vmatmul.bf16.gmra.mxu3 %v1123_v63  ;;  %v447_v63 = vpack.c.bf16 %v383_v53, %v383_v53  ;;  %v594_v22 = vunpack.c.l.b16 %v446_v62  ;;  %v2814_v32 = vpop.permute.xlu0 %1496  ;;  %v417_v53 = vmax.f32 %v225_v41, 0.0 }
  0xd4   :  { %v848_v7 = vpop.f32.mrf.mxu2  ;;  %v626_v21 = vunpack.c.l.b16 %v478_v0  ;;  %v627_v31 = vunpack.c.l.b16 %v479_v37 }
  0xd5   :  { %v849_v38 = vadd.f32 %v2709_v46, %v848_v7  ;;  %v2812_v19 = vpop.permute.xlu1 %1450  ;;  %v481_v0 = vpack.c.bf16 %v417_v53, %v417_v53 }
  0xd6   :  { %v770_v20 = vpop.f32.mrf.mxu0 }
  0xd7   :  { %v771_v25 = vadd.f32 %v2709_v46, %v770_v20  ;;  %v1079_v51 = vmax.f32 %v849_v38, 0.0  ;;  %v2272_v20 = vunpack.c.h.bf16 %v2363_v60 }
  0xd9   :  { %v1048_v33 = vmax.f32 %v771_v25, 0.0  ;;  %v2335_v25 = vunpack.c.l.bf16 %v2379_v3  ;;  %v2819_v38 = vpop.permute.xlu2 %1476  ;;  %v2364_v3 = vld [vmem:[%s2999_s0 + $0x78] sm:$0xff]  }
  0xda   :  { %v2275_v9 = vunpack.c.l.bf16 %v2364_v3 }
  0xdb   :  { %v1108_v39 = vpack.c.bf16 %v1048_v33, %v1047_v24  ;;  %v595_v24 = vunpack.c.l.b16 %v447_v63  ;;  %v1634_v33 = vperm.slane %v2627_v5, 4 }
  0xdc   :  { %v850_v40 = vpop.f32.mrf.mxu2  ;;  %v194_v41 = vadd.f32 %v2499_v11, %v2275_v9 }
  0xdd   :  { %v851_v42 = vadd.f32 %v2709_v46, %v850_v40  ;;  %1224 = vmatmul.bf16.gmra.mxu1 %v1108_v39  ;;  %v193_v39 = vadd.f32 %v2501_v13, %v2272_v20  ;;  %1645 = vperm.xlu1 %2415, %v1634_v33   ;;  %v2825_v55 = vpop.permute.xlu1 %1470 }
  0xde   :  { %v773_v49 = vpop.f32.mrf.mxu0  ;;  %1639 = vperm.xlu2 %2416, %v1634_v33   ;;  %v2340_v33 = vunpack.c.h.bf16 %v2380_v8 }
  0xdf   :  { %v1080_v4 = vmax.f32 %v851_v42, 0.0  ;;  %v774_v59 = vadd.f32 %v2709_v46, %v773_v49  ;;  %v645_v42 = vpack.c.b16 %v595_v24, %v594_v22 }
  0xe1   :  { %812 = vmatmul.bf16.gmra.mxu0 %v644_v10  ;;  %892 = vmatmul.bf16.gmra.mxu2 %v660_v43  ;;  %v1124_v54 = vpack.c.bf16 %v1080_v4, %v1079_v51  ;;  %v1049_v1 = vmax.f32 %v774_v59, 0.0  ;;  %v224_v10 = vadd.f32 %v2499_v11, %v2335_v25  ;;  %v661_v43 = vpack.c.b16 %v627_v31, %v626_v21  ;;  %v2831_v37 = vpop.permute.xlu2 %1489 }
  0xe2   :  { %v384_v51 = vmax.f32 %v192_v34, 0.0  ;;  %v385_v4 = vmax.f32 %v193_v39, 0.0  ;;  %v629_v25 = vunpack.c.l.b16 %v481_v0  ;;  %v2339_v31 = vunpack.c.l.bf16 %v2380_v8 }
  0xe3   :  { %1304 = vmatmul.bf16.gmra.mxu3 %v1124_v54  ;;  %v416_v52 = vmax.f32 %v224_v10, 0.0  ;;  %v1647_v34 = vperm.slane %v2627_v5, 5 }
  0xe4   :  { %v853_v61 = vpop.f32.mrf.mxu2  ;;  %v448_v59 = vpack.c.bf16 %v384_v51, %v384_v51  ;;  %v449_v60 = vpack.c.bf16 %v385_v4, %v385_v4 }
  0xe5   :  { %v854_v35 = vadd.f32 %v2709_v46, %v853_v61  ;;  %v2828_v61 = vpop.permute.xlu0 %1561  ;;  %2417 = vset.pattern.permute.xlu1 %v2473_v2  ;;  %v480_v63 = vpack.c.bf16 %v416_v52, %v416_v52  ;;  %v2842_v39 = vpop.permute.xlu1 %1483  ;;  %1658 = vperm.xlu0 %2423, %v1647_v34  }
  0xe6   :  { %v775_v7 = vpop.f32.mrf.mxu0  ;;  %v596_v20 = vunpack.c.l.b16 %v448_v59  ;;  %v597_v22 = vunpack.c.l.b16 %v449_v60  ;;  %1652 = vperm.xlu2 %2416, %v1647_v34  }
  0xe7   :  { %v776_v15 = vadd.f32 %v2709_v46, %v775_v7  ;;  %v1081_v48 = vmax.f32 %v854_v35, 0.0  ;;  %v628_v24 = vunpack.c.l.b16 %v480_v63  ;;  %v1660_v63 = vperm.slane %v2627_v5, 6 }
  0xe8   :  { %v646_v10 = vpack.c.b16 %v597_v22, %v596_v20 }
  0xe9   :  { %v1050_v30 = vmax.f32 %v776_v15, 0.0  ;;  %v2851_v53 = vpop.permute.xlu2 %1509 }
  0xeb   :  { %v1109_v36 = vpack.c.bf16 %v1050_v30, %v1049_v1  ;;  %v2276_v30 = vunpack.c.h.bf16 %v2364_v3 }
  0xec   :  { %v855_v40 = vpop.f32.mrf.mxu2 }
  0xed   :  { %v856_v27 = vadd.f32 %v2709_v46, %v855_v40  ;;  %1229 = vmatmul.bf16.gmra.mxu1 %v1109_v36  ;;  %1665 = vperm.xlu1 %2417, %v1660_v63  }
  0xee   :  { %v778_v44 = vpop.f32.mrf.mxu0  ;;  %2418 = vset.pattern.permute.xlu2 %v2514_v26 }
  0xef   :  { %v1082_v49 = vmax.f32 %v856_v27, 0.0  ;;  %v779_v58 = vadd.f32 %v2709_v46, %v778_v44  ;;  %v195_v27 = vadd.f32 %v2501_v13, %v2276_v30  ;;  %v2847_v44 = vpop.permute.xlu0 %1626 }
  0xf0   :  { %vm1828_vm14 = vcmp.gt.f32.partialorder %v2847_v44, 0.5 }
  0xf1   :  { %817 = vmatmul.bf16.gmra.mxu0 %v645_v42  ;;  %897 = vmatmul.bf16.gmra.mxu2 %v661_v43  ;;  %v1125_v54 = vpack.c.bf16 %v1082_v49, %v1081_v48  ;;  %v1051_v1 = vmax.f32 %v779_v58, 0.0  ;;  %v662_v43 = vpack.c.b16 %v629_v25, %v628_v24  ;;  %v226_v48 = vadd.f32 %v2499_v11, %v2339_v31 }
  0xf2   :  { %v227_v49 = vadd.f32 %v2501_v13, %v2340_v33  ;;  %v387_v58 = vmax.f32 %v195_v27, 0.0  ;;  %v2861_v33 = vpop.permute.xlu2 %1522 }
  0xf3   :  { %1309 = vmatmul.bf16.gmra.mxu3 %v1125_v54  ;;  %v386_v54 = vmax.f32 %v194_v41, 0.0  ;;  %v418_v60 = vmax.f32 %v226_v48, 0.0 }
  0xf4   :  { %v858_v62 = vpop.f32.mrf.mxu2  ;;  %v451_v3 = vpack.c.bf16 %v387_v58, %v387_v58 }
  0xf5   :  { %v859_v35 = vadd.f32 %v2709_v46, %v858_v62  ;;  %v419_v62 = vmax.f32 %v227_v49, 0.0  ;;  %v450_v13 = vpack.c.bf16 %v386_v54, %v386_v54 }
  0xf6   :  { %v780_v7 = vpop.f32.mrf.mxu0  ;;  %v599_v30 = vunpack.c.l.b16 %v451_v3  ;;  %1671 = vperm.xlu2 %2418, %v1660_v63  }
  0xf7   :  { %v781_v15 = vadd.f32 %v2709_v46, %v780_v7  ;;  %v1083_v4 = vmax.f32 %v859_v35, 0.0  ;;  %v482_v7 = vpack.c.bf16 %v418_v60, %v418_v60  ;;  %v483_v8 = vpack.c.bf16 %v419_v62, %v419_v62  ;;  %v2859_v24 = vpop.permute.xlu0 %1691 }
  0xf8   :  { %v598_v25 = vunpack.c.l.b16 %v450_v13 }
  0xf9   :  { %v1052_v21 = vmax.f32 %v781_v15, 0.0  ;;  %v631_v31 = vunpack.c.l.b16 %v483_v8 }
  0xfa   :  { %v2871_v54 = vpop.permute.xlu2 %1541 }
  0xfb   :  { %v1110_v36 = vpack.c.bf16 %v1052_v21, %v1051_v1  ;;  %v2856_v1 = vpop.permute.xlu1 %1502  ;;  %v630_v21 = vunpack.c.l.b16 %v482_v7 }
  0xfc   :  { %v860_v40 = vpop.f32.mrf.mxu2 }
  0xfd   :  { %v861_v42 = vadd.f32 %v2709_v46, %v860_v40  ;;  %1234 = vmatmul.bf16.gmra.mxu1 %v1110_v36  ;;  %v663_v41 = vpack.c.b16 %v631_v31, %v630_v21 }
  0xfe   :  { %v783_v51 = vpop.f32.mrf.mxu0 }
  0xff   :  { %v1084_v52 = vmax.f32 %v861_v42, 0.0  ;;  %v784_v0 = vadd.f32 %v2709_v46, %v783_v51  ;;  %v2867_v51 = vpop.permute.xlu0 %1756 }
 0x101   :  { %822 = vmatmul.bf16.gmra.mxu0 %v646_v10  ;;  %902 = vmatmul.bf16.gmra.mxu2 %v662_v43  ;;  %v1126_v59 = vpack.c.bf16 %v1084_v52, %v1083_v4  ;;  %v1053_v20 = vmax.f32 %v784_v0, 0.0  ;;  %v647_v10 = vpack.c.b16 %v599_v30, %v598_v25  ;;  %v1673_v4 = vperm.slane %v2627_v5, 7 }
 0x102   :  { %v2882_v8 = vpop.permute.xlu2 %1554 }
 0x103   :  { %1314 = vmatmul.bf16.gmra.mxu3 %v1126_v59  ;;  %v2865_v48 = vpop.permute.xlu1 %1515  ;;  %1678 = vperm.xlu1 %2417, %v1673_v4  }
 0x104   :  { %v863_v11 = vpop.f32.mrf.mxu2  ;;  %1684 = vperm.xlu2 %2418, %v1673_v4  }
 0x105   :  { %v864_v34 = vadd.f32 %v2709_v46, %v863_v11 }
 0x106   :  { %v785_v15 = vpop.f32.mrf.mxu0 }
 0x107   :  { %v786_v22 = vadd.f32 %v2709_v46, %v785_v15  ;;  %v1085_v42 = vmax.f32 %v864_v34, 0.0  ;;  %v2877_v3 = vpop.permute.xlu0 %1385 }
 0x108   :  { %vm1791_vm3 = vcmp.gt.f32.partialorder %v2877_v3, 0.5 }
 0x109   :  { %v1054_v9 = vmax.f32 %v786_v22, 0.0 }
 0x10b   :  { %v1111_v35 = vpack.c.bf16 %v1054_v9, %v1053_v20  ;;  %v2874_v0 = vpop.permute.xlu1 %1535  ;;  %2419 = vset.pattern.permute.xlu1 %v2514_v26 }
 0x10c   :  { %v865_v36 = vpop.f32.mrf.mxu2  ;;  %2420 = vset.pattern.permute.xlu2 %v2473_v2 }
 0x10d   :  { %v866_v40 = vadd.f32 %v2709_v46, %v865_v36  ;;  %1239 = vmatmul.bf16.gmra.mxu1 %v1111_v35 }
 0x10e   :  { %v788_v27 = vpop.f32.mrf.mxu0 }
 0x10f   :  { %v1086_v43 = vmax.f32 %v866_v40, 0.0  ;;  %v789_v52 = vadd.f32 %v2709_v46, %v788_v27  ;;  %v2889_v31 = vpop.permute.xlu0 %1463  ;;  %v2892_v40 = vpop.permute.xlu2 %1574 }
 0x111   :  { %827 = vmatmul.bf16.gmra.mxu0 %v647_v10  ;;  %907 = vmatmul.bf16.gmra.mxu2 %v663_v41  ;;  %v1127_v49 = vpack.c.bf16 %v1086_v43, %v1085_v42  ;;  %v1055_v60 = vmax.f32 %v789_v52, 0.0 }
 0x113   :  { %1319 = vmatmul.bf16.gmra.mxu3 %v1127_v49  ;;  %v2885_v30 = vpop.permute.xlu1 %1548  ;;  %1697 = vperm.xlu1 %2419, %v1686_v28  }
 0x114   :  { %v868_v58 = vpop.f32.mrf.mxu2 }
 0x115   :  { %v869_v11 = vadd.f32 %v2709_v46, %v868_v58 }
 0x116   :  { %v790_v59 = vpop.f32.mrf.mxu0 }
 0x117   :  { %v791_v62 = vadd.f32 %v2709_v46, %v790_v59  ;;  %v1087_v20 = vmax.f32 %v869_v11, 0.0 }
 0x119   :  { %v1056_v63 = vmax.f32 %v791_v62, 0.0 }
 0x11b   :  { %v1112_v13 = vpack.c.bf16 %v1056_v63, %v1055_v60  ;;  %v2897_v4 = vpop.permute.xlu1 %1567  ;;  %v2899_v60 = vpop.permute.xlu0 %1528 }
 0x11c   :  { %v870_v5 = vpop.f32.mrf.mxu2  ;;  %v1588_v63 = vpop.permute.xlu2 %1587 }
 0x11d   :  { %v871_v7 = vadd.f32 %v2709_v46, %v870_v5  ;;  %1244 = vmatmul.bf16.gmra.mxu1 %v1112_v13  ;;  %vm1822_vm1 = vcmp.gt.f32.partialorder %v1588_v63, 0.5 }
 0x11e   :  { %v793_v15 = vpop.f32.mrf.mxu0 }
 0x11f   :  { %v1088_v22 = vmax.f32 %v871_v7, 0.0  ;;  %v794_v9 = vadd.f32 %v2709_v46, %v793_v15 }
 0x121   :  { %v1128_v25 = vpack.c.bf16 %v1088_v22, %v1087_v20  ;;  %v1057_v35 = vmax.f32 %v794_v9, 0.0 }
 0x123   :  { %1324 = vmatmul.bf16.gmra.mxu3 %v1128_v25  ;;  %v2903_v25 = vpop.permute.xlu1 %1580 }
 0x124   :  { %v873_v21 = vpop.f32.mrf.mxu2 }
 0x125   :  { %v874_v27 = vadd.f32 %v2709_v46, %v873_v21 }
 0x126   :  { %v795_v34 = vpop.f32.mrf.mxu0 }
 0x127   :  { %v796_v36 = vadd.f32 %v2709_v46, %v795_v34  ;;  %v1089_v58 = vmax.f32 %v874_v27, 0.0  ;;  %v1594_v34 = vpop.permute.xlu0 %1593 }
 0x128   :  { %vm1823_vm4 = vcmp.gt.f32.partialorder %v1594_v34, 0.5 }
 0x129   :  { %v1058_v10 = vmax.f32 %v796_v36, 0.0 }
 0x12a   :  { %v1210_v41 = vpop.f32.mrf.mxu1 }
 0x12b   :  { %v1982_v42 = vsel %vm1790_vm0, %v1210_v41, -1e+30  ;;  %v1113_v43 = vpack.c.bf16 %v1058_v10, %v1057_v35  ;;  %v2908_v35 = vld [vmem:[%s2998_s1 + $0x18] sm:$0xff] }
 0x12c   :  { %v875_v49 = vpop.f32.mrf.mxu2  ;;  %v1699_v36 = vperm.slane %v2908_v35, 1  ;;  %v1738_v6 = vperm.slane %v2908_v35, 4 }
 0x12d   :  { %v876_v28 = vadd.f32 %v2709_v46, %v875_v49  ;;  %1249 = vmatmul.bf16.gmra.mxu1 %v1113_v43 }
 0x12e   :  { %v798_v52 = vpop.f32.mrf.mxu0  ;;  %1710 = vperm.xlu1 %2419, %v1699_v36   ;;  %1704 = vperm.xlu2 %2420, %v1699_v36  }
 0x12f   :  { %v1090_v59 = vmax.f32 %v876_v28, 0.0  ;;  %v799_v11 = vadd.f32 %v2709_v46, %v798_v52  ;;  %v1712_v52 = vperm.slane %v2908_v35, 2 }
 0x131   :  { %v1129_v62 = vpack.c.bf16 %v1090_v59, %v1089_v58  ;;  %v1059_v15 = vmax.f32 %v799_v11, 0.0  ;;  %1723 = vperm.xlu0 %2423, %v1712_v52  }
 0x132   :  { %v1212_v18 = vpop.f32.mrf.mxu1 }
 0x133   :  { %1329 = vmatmul.bf16.gmra.mxu3 %v1129_v62  ;;  %v1983_v14 = vsel %vm1791_vm3, %v1212_v18, -1e+30  ;;  %v1777_v18 = vperm.slane %v2908_v35, 7  ;;  %vm1800_vm3 = vcmp.gt.f32.partialorder %v2789_v29, 0.5 }
 0x134   :  { %v878_v13 = vpop.f32.mrf.mxu2 }
 0x135   :  { %v879_v41 = vadd.f32 %v2709_v46, %v878_v13 }
 0x136   :  { %v800_v5 = vpop.f32.mrf.mxu0  ;;  %v1290_v7 = vpop.f32.mrf.mxu3  ;;  %2421 = vset.pattern.permute.xlu1 %v2473_v2  ;;  %1717 = vperm.xlu2 %2420, %v1712_v52  }
 0x137   :  { %v801_v20 = vadd.f32 %v2709_v46, %v800_v5  ;;  %v2014_v22 = vsel %vm1822_vm1, %v1290_v7, -1e+30  ;;  %v1091_v62 = vmax.f32 %v879_v41, 0.0  ;;  %v1601_v7 = vpop.permute.xlu1 %1600  ;;  %vm1799_vm1 = vcmp.gt.f32.partialorder %v2798_v50, 0.5 }
 0x138   :  { %v2046_v9 = vmax.f32 %v1982_v42, %v2014_v22  ;;  %vm1824_vm6 = vcmp.gt.f32.partialorder %v1601_v7, 0.5 }
 0x139   :  { %v1060_v21 = vmax.f32 %v801_v20, 0.0  ;;  %1788 = vperm.xlu0 %2423, %v1777_v18  }
 0x13a   :  { %v1215_v10 = vpop.f32.mrf.mxu1 }
 0x13b   :  { %v1984_v27 = vsel %vm1792_vm2, %v1215_v10, -1e+30  ;;  %v1114_v43 = vpack.c.bf16 %v1060_v21, %v1059_v15 }
 0x13c   :  { %v2047_v42 = vmax.f32 %v1984_v27, %v2046_v9  ;;  %v880_v49 = vpop.f32.mrf.mxu2 }
 0x13d   :  { %v881_v28 = vadd.f32 %v2709_v46, %v880_v49  ;;  %1254 = vmatmul.bf16.gmra.mxu1 %v1114_v43  ;;  %v1607_v43 = vpop.permute.xlu2 %1606 }
 0x13e   :  { %v803_v58 = vpop.f32.mrf.mxu0  ;;  %v1292_v59 = vpop.f32.mrf.mxu3  ;;  %vm1825_vm8 = vcmp.gt.f32.partialorder %v1607_v43, 0.5  ;;  %2422 = vset.pattern.permute.xlu2 %v2514_v26 }
 0x13f   :  { %v1092_v63 = vmax.f32 %v881_v28, 0.0  ;;  %v2015_v11 = vsel %vm1823_vm4, %v1292_v59, -1e+30  ;;  %v804_v15 = vadd.f32 %v2709_v46, %v803_v58 }
 0x140   :  { %v2077_v13 = vmax.f32 %v1983_v14, %v2015_v11 }
 0x141   :  { %v1130_v5 = vpack.c.bf16 %v1092_v63, %v1091_v62  ;;  %v1061_v36 = vmax.f32 %v804_v15, 0.0  ;;  %v1725_v15 = vperm.slane %v2908_v35, 3 }
 0x142   :  { %v1217_v3 = vpop.f32.mrf.mxu1 }
 0x143   :  { %v1985_v20 = vsel %vm1793_vm5, %v1217_v3, -1e+30  ;;  %1334 = vmatmul.bf16.gmra.mxu3 %v1130_v5  ;;  %v1614_v3 = vpop.permute.xlu1 %1613  ;;  %1730 = vperm.xlu1 %2421, %v1725_v15   ;;  %vm1801_vm5 = vcmp.gt.f32.partialorder %v2812_v19, 0.5 }
 0x144   :  { %v2078_v22 = vmax.f32 %v1985_v20, %v2077_v13  ;;  %v883_v9 = vpop.f32.mrf.mxu2  ;;  %vm1826_vm10 = vcmp.gt.f32.partialorder %v1614_v3, 0.5 }
 0x145   :  { %v884_v28 = vadd.f32 %v2709_v46, %v883_v9 }
 0x146   :  { %v805_v21 = vpop.f32.mrf.mxu0  ;;  %v1295_v34 = vpop.f32.mrf.mxu3  ;;  %1736 = vperm.xlu2 %2422, %v1725_v15  }
 0x147   :  { %v806_v10 = vadd.f32 %v2709_v46, %v805_v21  ;;  %v2016_v41 = vsel %vm1824_vm6, %v1295_v34, -1e+30 }
 0x148   :  { %v2048_v45 = vmax.f32 %v2016_v41, %v2047_v42  ;;  %v1093_v42 = vmax.f32 %v884_v28, 0.0  ;;  %v1620_v28 = vpop.permute.xlu2 %1619 }
 0x149   :  { %v1062_v27 = vmax.f32 %v806_v10, 0.0  ;;  %vm1827_vm12 = vcmp.gt.f32.partialorder %v1620_v28, 0.5 }
 0x14a   :  { %v1220_v49 = vpop.f32.mrf.mxu1 }
 0x14b   :  { %v1986_v52 = vsel %vm1794_vm7, %v1220_v49, -1e+30  ;;  %v1115_v58 = vpack.c.bf16 %v1062_v27, %v1061_v36  ;;  %1743 = vperm.xlu1 %2421, %v1738_v6   ;;  %vm1802_vm7 = vcmp.gt.f32.partialorder %v2802_v16, 0.5 }
 0x14c   :  { %v2049_v59 = vmax.f32 %v1986_v52, %v2048_v45  ;;  %v885_v14 = vpop.f32.mrf.mxu2 }
 0x14d   :  { %v886_v62 = vadd.f32 %v2709_v46, %v885_v14  ;;  %1259 = vmatmul.bf16.gmra.mxu1 %v1115_v58 }
 0x14e   :  { %v808_v63 = vpop.f32.mrf.mxu0  ;;  %v1297_v11 = vpop.f32.mrf.mxu3  ;;  %1749 = vperm.xlu2 %2422, %v1738_v6  }
 0x14f   :  { %v1094_v13 = vmax.f32 %v886_v62, 0.0  ;;  %v2017_v5 = vsel %vm1825_vm8, %v1297_v11, -1e+30  ;;  %v809_v9 = vadd.f32 %v2709_v46, %v808_v63 }
 0x150   :  { %v2079_v7 = vmax.f32 %v2017_v5, %v2078_v22 }
 0x151   :  { %v1131_v56 = vpack.c.bf16 %v1094_v13, %v1093_v42  ;;  %v1063_v45 = vmax.f32 %v809_v9, 0.0 }
 0x152   :  { %v1222_v20 = vpop.f32.mrf.mxu1 }
 0x153   :  { %v1987_v21 = vsel %vm1795_vm9, %v1222_v20, -1e+30  ;;  %1339 = vmatmul.bf16.gmra.mxu3 %v1131_v56  ;;  %2424 = vset.pattern.permute.xlu1 %v2514_v26  ;;  %vm1803_vm9 = vcmp.gt.f32.partialorder %v2889_v31, 0.5 }
 0x154   :  { %v2080_v34 = vmax.f32 %v1987_v21, %v2079_v7  ;;  %v888_v36 = vpop.f32.mrf.mxu2 }
 0x155   :  { %v889_v52 = vadd.f32 %v2709_v46, %v888_v36 }
 0x156   :  { %v810_v10 = vpop.f32.mrf.mxu0  ;;  %v1300_v41 = vpop.f32.mrf.mxu3  ;;  %2425 = vset.pattern.permute.xlu2 %v2473_v2 }
 0x157   :  { %v811_v22 = vadd.f32 %v2709_v46, %v810_v10  ;;  %v2018_v27 = vsel %vm1826_vm10, %v1300_v41, -1e+30  ;;  %v1095_v5 = vmax.f32 %v889_v52, 0.0 }
 0x158   :  { %v2050_v43 = vmax.f32 %v2018_v27, %v2049_v59 }
 0x159   :  { %v1064_v49 = vmax.f32 %v811_v22, 0.0 }
 0x15a   :  { %v1225_v23 = vpop.f32.mrf.mxu1 }
 0x15b   :  { %v1988_v58 = vsel %vm1796_vm11, %v1225_v23, -1e+30  ;;  %v1116_v14 = vpack.c.bf16 %v1064_v49, %v1063_v45  ;;  %1762 = vperm.xlu1 %2424, %v1751_v47   ;;  %vm1804_vm11 = vcmp.gt.f32.partialorder %v2825_v55, 0.5 }
 0x15c   :  { %v2051_v62 = vmax.f32 %v1988_v58, %v2050_v43  ;;  %v890_v63 = vpop.f32.mrf.mxu2  ;;  %v1633_v43 = vpop.permute.xlu1 %1632 }
 0x15d   :  { %v891_v11 = vadd.f32 %v2709_v46, %v890_v63  ;;  %1264 = vmatmul.bf16.gmra.mxu1 %v1116_v14  ;;  %vm1829_vm0 = vcmp.gt.f32.partialorder %v1633_v43, 0.5 }
 0x15e   :  { %v813_v42 = vpop.f32.mrf.mxu0  ;;  %v1302_v13 = vpop.f32.mrf.mxu3 }
 0x15f   :  { %v1096_v7 = vmax.f32 %v891_v11, 0.0  ;;  %v2019_v59 = vsel %vm1827_vm12, %v1302_v13, -1e+30  ;;  %v814_v20 = vadd.f32 %v2709_v46, %v813_v42 }
 0x160   :  { %v2081_v56 = vmax.f32 %v2019_v59, %v2080_v34  ;;  %v2941_v34 = vld [vmem:[%s3001_s4] ss:$0 sm:$0xff] }
 0x161   :  { %v1132_v3 = vpack.c.bf16 %v1096_v7, %v1095_v5  ;;  %v1065_v45 = vmax.f32 %v814_v20, 0.0  ;;  %v1640_v7 = vpop.permute.xlu2 %1639 }
 0x162   :  { %v1227_v15 = vpop.f32.mrf.mxu1  ;;  %vm1830_vm2 = vcmp.gt.f32.partialorder %v1640_v7, 0.5 }
 0x163   :  { %v1989_v9 = vsel %vm1797_vm13, %v1227_v15, -1e+30  ;;  %1344 = vmatmul.bf16.gmra.mxu3 %v1132_v3  ;;  %vm1805_vm13 = vcmp.gt.f32.partialorder %v2819_v38, 0.5 }
 0x164   :  { %v2082_v21 = vmax.f32 %v1989_v9, %v2081_v56  ;;  %v893_v36 = vpop.f32.mrf.mxu2  ;;  %v1646_v50 = vpop.permute.xlu1 %1645 }
 0x165   :  { %v894_v49 = vadd.f32 %v2941_v34, %v893_v36  ;;  %vm1831_vm4 = vcmp.gt.f32.partialorder %v1646_v50, 0.5 }
 0x166   :  { %v815_v10 = vpop.f32.mrf.mxu0  ;;  %v1305_v41 = vpop.f32.mrf.mxu3 }
 0x167   :  { %v816_v57 = vadd.f32 %v2941_v34, %v815_v10  ;;  %v2020_v22 = vsel %vm1828_vm14, %v1305_v41, -1e+30 }
 0x168   :  { %v2052_v46 = vmax.f32 %v2020_v22, %v2051_v62  ;;  %v1097_v62 = vmax.f32 %v894_v49, 0.0 }
 0x169   :  { %v1066_v27 = vmax.f32 %v816_v57, 0.0 }
 0x16a   :  { %v1230_v44 = vpop.f32.mrf.mxu1 }
 0x16b   :  { %v1117_v28 = vpack.c.bf16 %v1066_v27, %v1065_v45  ;;  %v1990_v23 = vsel %vm1798_vm15, %v1230_v44, -1e+30  ;;  %vm1806_vm15 = vcmp.gt.f32.partialorder %v2842_v39, 0.5 }
 0x16c   :  { %v2053_v52 = vmax.f32 %v1990_v23, %v2052_v46  ;;  %v895_v58 = vpop.f32.mrf.mxu2 }
 0x16d   :  { %v896_v14 = vadd.f32 %v2941_v34, %v895_v58  ;;  %1269 = vmatmul.bf16.gmra.mxu1 %v1117_v28  ;;  %v1653_v58 = vpop.permute.xlu2 %1652 }
 0x16e   :  { %v818_v63 = vpop.f32.mrf.mxu0  ;;  %v1307_v12 = vpop.f32.mrf.mxu3  ;;  %vm1832_vm6 = vcmp.gt.f32.partialorder %v1653_v58, 0.5 }
 0x16f   :  { %v1098_v11 = vmax.f32 %v896_v14, 0.0  ;;  %v2021_v42 = vsel %vm1829_vm0, %v1307_v12, -1e+30  ;;  %v819_v26 = vadd.f32 %v2941_v34, %v818_v63 }
 0x170   :  { %v2083_v13 = vmax.f32 %v2021_v42, %v2082_v21 }
 0x171   :  { %v1133_v5 = vpack.c.bf16 %v1098_v11, %v1097_v62  ;;  %v1067_v20 = vmax.f32 %v819_v26, 0.0 }
 0x172   :  { %v1232_v59 = vpop.f32.mrf.mxu1 }
 0x173   :  { %v1991_v56 = vsel %vm1799_vm1, %v1232_v59, -1e+30  ;;  %1349 = vmatmul.bf16.gmra.mxu3 %v1133_v5  ;;  %vm1807_vm1 = vcmp.gt.f32.partialorder %v2831_v37, 0.5 }
 0x174   :  { %v2084_v2 = vmax.f32 %v1991_v56, %v2083_v13  ;;  %v898_v3 = vpop.f32.mrf.mxu2  ;;  %v1659_v56 = vpop.permute.xlu0 %1658 }
 0x175   :  { %v899_v45 = vadd.f32 %v2941_v34, %v898_v3  ;;  %vm1833_vm8 = vcmp.gt.f32.partialorder %v1659_v56, 0.5 }
 0x176   :  { %v820_v6 = vpop.f32.mrf.mxu0  ;;  %v1310_v15 = vpop.f32.mrf.mxu3 }
 0x177   :  { %v821_v9 = vadd.f32 %v2941_v34, %v820_v6  ;;  %v2022_v21 = vsel %vm1830_vm2, %v1310_v15, -1e+30  ;;  %v1099_v44 = vmax.f32 %v899_v45, 0.0  ;;  %vm1838_vm2 = vcmp.gt.f32.partialorder %v2859_v24, 0.5 }
 0x178   :  { %v2054_v36 = vmax.f32 %v2022_v21, %v2053_v52 }
 0x179   :  { %v1068_v10 = vmax.f32 %v821_v9, 0.0 }
 0x17a   :  { %v1235_v41 = vpop.f32.mrf.mxu1 }
 0x17b   :  { %v1118_v57 = vpack.c.bf16 %v1068_v10, %v1067_v20  ;;  %v1992_v17 = vsel %vm1800_vm3, %v1235_v41, -1e+30  ;;  %vm1808_vm3 = vcmp.gt.f32.partialorder %v2814_v32, 0.5 }
 0x17c   :  { %v2055_v47 = vmax.f32 %v1992_v17, %v2054_v36  ;;  %v900_v22 = vpop.f32.mrf.mxu2  ;;  %v1666_v17 = vpop.permute.xlu1 %1665 }
 0x17d   :  { %v901_v46 = vadd.f32 %v2941_v34, %v900_v22  ;;  %1274 = vmatmul.bf16.gmra.mxu1 %v1118_v57  ;;  %vm1834_vm10 = vcmp.gt.f32.partialorder %v1666_v17, 0.5 }
 0x17e   :  { %v823_v27 = vpop.f32.mrf.mxu0  ;;  %v1312_v43 = vpop.f32.mrf.mxu3 }
 0x17f   :  { %v1100_v49 = vmax.f32 %v901_v46, 0.0  ;;  %v2023_v28 = vsel %vm1831_vm4, %v1312_v43, -1e+30  ;;  %v824_v14 = vadd.f32 %v2941_v34, %v823_v27 }
 0x180   :  { %v2085_v23 = vmax.f32 %v2023_v28, %v2084_v2  ;;  %v1764_v2 = vperm.slane %v2908_v35, 6 }
 0x181   :  { %v1134_v52 = vpack.c.bf16 %v1100_v49, %v1099_v44  ;;  %v1069_v13 = vmax.f32 %v824_v14, 0.0 }
 0x182   :  { %v1237_v29 = vpop.f32.mrf.mxu1  ;;  %1775 = vperm.xlu1 %2424, %v1764_v2   ;;  %1769 = vperm.xlu2 %2425, %v1764_v2  }
 0x183   :  { %v1993_v63 = vsel %vm1801_vm5, %v1237_v29, -1e+30  ;;  %1354 = vmatmul.bf16.gmra.mxu3 %v1134_v52  ;;  %v1672_v29 = vpop.permute.xlu2 %1671  ;;  %vm1809_vm5 = vcmp.gt.f32.partialorder %v2856_v1, 0.5 }
 0x184   :  { %v2086_v12 = vmax.f32 %v1993_v63, %v2085_v23  ;;  %v903_v62 = vpop.f32.mrf.mxu2  ;;  %vm1835_vm12 = vcmp.gt.f32.partialorder %v1672_v29, 0.5  ;;  %v1679_v56 = vpop.permute.xlu1 %1678 }
 0x185   :  { %v904_v3 = vadd.f32 %v2941_v34, %v903_v62  ;;  %vm1836_vm14 = vcmp.gt.f32.partialorder %v1679_v56, 0.5 }
 0x186   :  { %v825_v11 = vpop.f32.mrf.mxu0  ;;  %v1315_v42 = vpop.f32.mrf.mxu3 }
 0x187   :  { %v826_v5 = vadd.f32 %v2941_v34, %v825_v11  ;;  %v2024_v7 = vsel %vm1832_vm6, %v1315_v42, -1e+30  ;;  %v1101_v50 = vmax.f32 %v904_v3, 0.0 }
 0x188   :  { %v2056_v59 = vmax.f32 %v2024_v7, %v2055_v47 }
 0x189   :  { %v1070_v26 = vmax.f32 %v826_v5, 0.0 }
 0x18a   :  { %v1240_v19 = vpop.f32.mrf.mxu1  ;;  %1782 = vperm.xlu2 %2425, %v1777_v18  }
 0x18b   :  { %v1119_v6 = vpack.c.bf16 %v1070_v26, %v1069_v13  ;;  %v1994_v15 = vsel %vm1802_vm7, %v1240_v19, -1e+30  ;;  %vm1810_vm7 = vcmp.gt.f32.partialorder %v2851_v53, 0.5 }
 0x18c   :  { %v2057_v20 = vmax.f32 %v1994_v15, %v2056_v59  ;;  %v905_v9 = vpop.f32.mrf.mxu2 }
 0x18d   :  { %v906_v21 = vadd.f32 %v2941_v34, %v905_v9  ;;  %1279 = vmatmul.bf16.gmra.mxu1 %v1119_v6 }
 0x18e   :  { %v828_v36 = vpop.f32.mrf.mxu0  ;;  %v1317_v10 = vpop.f32.mrf.mxu3 }
 0x18f   :  { %v1102_v41 = vmax.f32 %v906_v21, 0.0  ;;  %v2025_v45 = vsel %vm1833_vm8, %v1317_v10, -1e+30  ;;  %v829_v22 = vadd.f32 %v2941_v34, %v828_v36 }
 0x190   :  { %v2087_v16 = vmax.f32 %v2025_v45, %v2086_v12 }
 0x191   :  { %v1135_v57 = vpack.c.bf16 %v1102_v41, %v1101_v50  ;;  %v1071_v28 = vmax.f32 %v829_v22, 0.0 }
 0x192   :  { %v1242_v47 = vpop.f32.mrf.mxu1 }
 0x193   :  { %v1995_v46 = vsel %vm1803_vm9, %v1242_v47, -1e+30  ;;  %1359 = vmatmul.bf16.gmra.mxu3 %v1135_v57  ;;  %v1698_v47 = vpop.permute.xlu1 %1697  ;;  %vm1811_vm9 = vcmp.gt.f32.partialorder %v2865_v48, 0.5 }
 0x194   :  { %v2088_v27 = vmax.f32 %v1995_v46, %v2087_v16  ;;  %v908_v43 = vpop.f32.mrf.mxu2  ;;  %vm1839_vm4 = vcmp.gt.f32.partialorder %v1698_v47, 0.5 }
 0x195   :  { %v909_v63 = vadd.f32 %v2941_v34, %v908_v43 }
 0x196   :  { %v830_v44 = vpop.f32.mrf.mxu0  ;;  %v1320_v49 = vpop.f32.mrf.mxu3 }
 0x197   :  { %v831_v23 = vadd.f32 %v2941_v34, %v830_v44  ;;  %v2026_v31 = vsel %vm1834_vm10, %v1320_v49, -1e+30  ;;  %v1103_v13 = vmax.f32 %v909_v63, 0.0 }
 0x198   :  { %v2058_v52 = vmax.f32 %v2026_v31, %v2057_v20  ;;  %v1685_v20 = vpop.permute.xlu2 %1684 }
 0x199   :  { %v1072_v58 = vmax.f32 %v831_v23, 0.0  ;;  %vm1837_vm0 = vcmp.gt.f32.partialorder %v1685_v20, 0.5 }
 0x19a   :  { %v1245_v14 = vpop.f32.mrf.mxu1 }
 0x19b   :  { %v1120_v12 = vpack.c.bf16 %v1072_v58, %v1071_v28  ;;  %v1996_v35 = vsel %vm1804_vm11, %v1245_v14, -1e+30  ;;  %vm1812_vm11 = vcmp.gt.f32.partialorder %v2861_v33, 0.5 }
 0x19c   :  { %v2060_v18 = vmax.f32 %v2058_v52, %v1996_v35  ;;  %v910_v62 = vpop.f32.mrf.mxu2 }
 0x19d   :  { %v911_v11 = vadd.f32 %v2941_v34, %v910_v62  ;;  %1284 = vmatmul.bf16.gmra.mxu1 %v1120_v12 }
 0x19e   :  { %v1322_v42 = vpop.f32.mrf.mxu3 }
 0x19f   :  { %v1104_v5 = vmax.f32 %v911_v11, 0.0  ;;  %v2027_v7 = vsel %vm1835_vm12, %v1322_v42, -1e+30 }
 0x1a0   :  { %v2089_v59 = vmax.f32 %v2027_v7, %v2088_v27  ;;  %v1705_v49 = vpop.permute.xlu2 %1704  ;;  %v1711_v58 = vpop.permute.xlu1 %1710 }
 0x1a1   :  { %v1136_v26 = vpack.c.bf16 %v1104_v5, %v1103_v13  ;;  %vm1840_vm6 = vcmp.gt.f32.partialorder %v1705_v49, 0.5  ;;  %vm1841_vm8 = vcmp.gt.f32.partialorder %v1711_v58, 0.5 }
 0x1a2   :  { %v1247_v55 = vpop.f32.mrf.mxu1 }
 0x1a3   :  { %v1997_v2 = vsel %vm1805_vm13, %v1247_v55, -1e+30  ;;  %1364 = vmatmul.bf16.gmra.mxu3 %v1136_v26  ;;  %vm1814_vm13 = vcmp.gt.f32.partialorder %v2874_v0, 0.5 }
 0x1a4   :  { %v2091_v19 = vmax.f32 %v2089_v59, %v1997_v2 }
 0x1a6   :  { %v1325_v3 = vpop.f32.mrf.mxu3 }
 0x1a7   :  { %v2028_v6 = vsel %vm1836_vm14, %v1325_v3, -1e+30  ;;  %v1724_v3 = vpop.permute.xlu0 %1723 }
 0x1a8   :  { %v2062_v15 = vmax.f32 %v2060_v18, %v2028_v6  ;;  %v1718_v18 = vpop.permute.xlu2 %1717  ;;  %vm1843_vm14 = vcmp.gt.f32.partialorder %v1724_v3, 0.5 }
 0x1a9   :  { %vm1842_vm10 = vcmp.gt.f32.partialorder %v1718_v18, 0.5 }
 0x1aa   :  { %v1250_v34 = vpop.f32.mrf.mxu1 }
 0x1ab   :  { %v1998_v9 = vsel %vm1806_vm15, %v1250_v34, -1e+30  ;;  %vm1813_vm15 = vcmp.gt.f32.partialorder %v2899_v60, 0.5 }
 0x1ac   :  { %v2064_v21 = vmax.f32 %v2062_v15, %v1998_v9 }
 0x1ae   :  { %v1327_v36 = vpop.f32.mrf.mxu3 }
 0x1af   :  { %v2029_v10 = vsel %vm1837_vm0, %v1327_v36, -1e+30 }
 0x1b0   :  { %v2093_v50 = vmax.f32 %v2091_v19, %v2029_v10  ;;  %v1737_v48 = vpop.permute.xlu2 %1736 }
 0x1b1   :  { %vm1845_vm0 = vcmp.gt.f32.partialorder %v1737_v48, 0.5 }
 0x1b2   :  { %v1252_v38 = vpop.f32.mrf.mxu1 }
 0x1b3   :  { %v1999_v41 = vsel %vm1807_vm1, %v1252_v38, -1e+30  ;;  %vm1815_vm1 = vcmp.gt.f32.partialorder %v2871_v54, 0.5 }
 0x1b4   :  { %v2095_v45 = vmax.f32 %v2093_v50, %v1999_v41 }
 0x1b5   :  { %v1731_v56 = vpop.permute.xlu1 %1730 }
 0x1b6   :  { %v1330_v16 = vpop.f32.mrf.mxu3  ;;  %vm1844_vm12 = vcmp.gt.f32.partialorder %v1731_v56, 0.5 }
 0x1b7   :  { %v2030_v57 = vsel %vm1838_vm2, %v1330_v16, -1e+30 }
 0x1b8   :  { %v2066_v17 = vmax.f32 %v2064_v21, %v2030_v57  ;;  %v1750_v47 = vpop.permute.xlu2 %1749 }
 0x1ba   :  { %v1255_v39 = vpop.f32.mrf.mxu1 }
 0x1bb   :  { %v2000_v22 = vsel %vm1808_vm3, %v1255_v39, -1e+30  ;;  %vm1816_vm3 = vcmp.gt.f32.partialorder %v2885_v30, 0.5 }
 0x1bc   :  { %v2068_v46 = vmax.f32 %v2066_v17, %v2000_v22 }
 0x1bd   :  { %v1744_v38 = vpop.permute.xlu1 %1743 }
 0x1be   :  { %v1332_v27 = vpop.f32.mrf.mxu3  ;;  %vm1846_vm2 = vcmp.gt.f32.partialorder %v1744_v38, 0.5 }
 0x1bf   :  { %v2031_v43 = vsel %vm1839_vm4, %v1332_v27, -1e+30  ;;  %vm1847_vm4 = vcmp.gt.f32.partialorder %v1750_v47, 0.5 }
 0x1c0   :  { %v2097_v44 = vmax.f32 %v2095_v45, %v2031_v43 }
 0x1c2   :  { %v1257_v37 = vpop.f32.mrf.mxu1 }
 0x1c3   :  { %v2001_v28 = vsel %vm1809_vm5, %v1257_v37, -1e+30  ;;  %vm1817_vm5 = vcmp.gt.f32.partialorder %v2882_v8, 0.5 }
 0x1c4   :  { %v2099_v23 = vmax.f32 %v2097_v44, %v2001_v28 }
 0x1c6   :  { %v1335_v24 = vpop.f32.mrf.mxu3 }
 0x1c7   :  { %v2032_v31 = vsel %vm1840_vm6, %v1335_v24, -1e+30  ;;  %vm1848_vm6 = vcmp.gt.f32.partialorder %v2867_v51, 0.5 }
 0x1c8   :  { %v2070_v52 = vmax.f32 %v2068_v46, %v2032_v31 }
 0x1ca   :  { %v1260_v32 = vpop.f32.mrf.mxu1 }
 0x1cb   :  { %v2002_v29 = vsel %vm1810_vm7, %v1260_v32, -1e+30  ;;  %vm1818_vm7 = vcmp.gt.f32.partialorder %v2828_v61, 0.5 }
 0x1cc   :  { %v2072_v14 = vmax.f32 %v2070_v52, %v2002_v29 }
 0x1cd   :  { %v1763_v31 = vpop.permute.xlu1 %1762 }
 0x1ce   :  { %v1337_v63 = vpop.f32.mrf.mxu3 }
 0x1cf   :  { %v2033_v12 = vsel %vm1841_vm8, %v1337_v63, -1e+30  ;;  %vm1849_vm8 = vcmp.gt.f32.partialorder %v1763_v31, 0.5 }
 0x1d0   :  { %v2101_v35 = vmax.f32 %v2099_v23, %v2033_v12 }
 0x1d2   :  { %v1262_v1 = vpop.f32.mrf.mxu1 }
 0x1d3   :  { %v2003_v62 = vsel %vm1811_vm9, %v1262_v1, -1e+30  ;;  %vm1819_vm9 = vcmp.gt.f32.partialorder %v2897_v4, 0.5 }
 0x1d4   :  { %v2103_v11 = vmax.f32 %v2101_v35, %v2003_v62 }
 0x1d6   :  { %v1340_v42 = vpop.f32.mrf.mxu3 }
 0x1d7   :  { %v2034_v13 = vsel %vm1842_vm10, %v1340_v42, -1e+30 }
 0x1d8   :  { %v2074_v5 = vmax.f32 %v2072_v14, %v2034_v13 }
 0x1da   :  { %v1265_v53 = vpop.f32.mrf.mxu1 }
 0x1db   :  { %v2004_v7 = vsel %vm1812_vm11, %v1265_v53, -1e+30  ;;  %vm1820_vm11 = vcmp.gt.f32.partialorder %v2892_v40, 0.5 }
 0x1dc   :  { %v2059_v59 = vmax.f32 %v2004_v7, %v2074_v5  ;;  %v1770_v14 = vpop.permute.xlu2 %1769 }
 0x1dd   :  { %vm1850_vm10 = vcmp.gt.f32.partialorder %v1770_v14, 0.5 }
 0x1de   :  { %v1342_v26 = vpop.f32.mrf.mxu3 }
 0x1df   :  { %v2035_v20 = vsel %vm1843_vm14, %v1342_v26, -1e+30 }
 0x1e0   :  { %v2105_v21 = vmax.f32 %v2103_v11, %v2035_v20 }
 0x1e2   :  { %v1267_v55 = vpop.f32.mrf.mxu1 }
 0x1e3   :  { %v2005_v9 = vsel %vm1813_vm15, %v1267_v55, -1e+30 }
 0x1e4   :  { %v2090_v50 = vmax.f32 %v2005_v9, %v2105_v21 }
 0x1e6   :  { %v1345_v2 = vpop.f32.mrf.mxu3 }
 0x1e7   :  { %v2036_v19 = vsel %vm1844_vm12, %v1345_v2, -1e+30  ;;  %v1789_v2 = vpop.permute.xlu0 %1788 }
 0x1e8   :  { %v2061_v6 = vmax.f32 %v2059_v59, %v2036_v19  ;;  %v1783_v59 = vpop.permute.xlu2 %1782  ;;  %vm1853_vm15 = vcmp.gt.f32.partialorder %v1789_v2, 0.5 }
 0x1e9   :  { %vm1852_vm14 = vcmp.gt.f32.partialorder %v1783_v59, 0.5 }
 0x1ea   :  { %v1270_v15 = vpop.f32.mrf.mxu1 }
 0x1eb   :  { %v2006_v34 = vsel %vm1814_vm13, %v1270_v15, -1e+30  ;;  %vm1821_vm13 = vcmp.gt.f32.partialorder %v2903_v25, 0.5 }
 0x1ec   :  { %v2063_v33 = vmax.f32 %v2061_v6, %v2006_v34  ;;  %v2427_v6 = vld [vmem:[%s3003_s6] ss:$0 sm:$0xff] }
 0x1ee   :  { %v1347_v36 = vpop.f32.mrf.mxu3 }
 0x1ef   :  { %v2037_v10 = vsel %vm1845_vm0, %v1347_v36, -1e+30 }
 0x1f0   :  { %v2092_v41 = vmax.f32 %v2090_v50, %v2037_v10 }
 0x1f2   :  { %v1272_v45 = vpop.f32.mrf.mxu1 }
 0x1f3   :  { %v2007_v0 = vsel %vm1815_vm1, %v1272_v45, -1e+30 }
 0x1f4   :  { %v2094_v16 = vmax.f32 %v2092_v41, %v2007_v0  ;;  %v1776_v1 = vpop.permute.xlu1 %1775 }
 0x1f5   :  { %vm1851_vm12 = vcmp.gt.f32.partialorder %v1776_v1, 0.5 }
 0x1f6   :  { %v1350_v57 = vpop.f32.mrf.mxu3 }
 0x1f7   :  { %v2038_v17 = vsel %vm1846_vm2, %v1350_v57, -1e+30 }
 0x1f8   :  { %v2065_v60 = vmax.f32 %v2063_v33, %v2038_v17 }
 0x1fa   :  { %v1275_v39 = vpop.f32.mrf.mxu1 }
 0x1fb   :  { %v2008_v22 = vsel %vm1816_vm3, %v1275_v39, -1e+30 }
 0x1fc   :  { %v2067_v46 = vmax.f32 %v2065_v60, %v2008_v22 }
 0x1fe   :  { %v1352_v27 = vpop.f32.mrf.mxu3 }
 0x1ff   :  { %v2039_v43 = vsel %vm1847_vm4, %v1352_v27, -1e+30 }
 0x200   :  { %v2096_v54 = vmax.f32 %v2094_v16, %v2039_v43 }
 0x202   :  { %v1277_v44 = vpop.f32.mrf.mxu1 }
 0x203   :  { %v2009_v49 = vsel %vm1817_vm5, %v1277_v44, -1e+30 }
 0x204   :  { %v2098_v37 = vmax.f32 %v2096_v54, %v2009_v49 }
 0x206   :  { %v1355_v28 = vpop.f32.mrf.mxu3 }
 0x207   :  { %v2040_v23 = vsel %vm1848_vm6, %v1355_v28, -1e+30 }
 0x208   :  { %v2069_v24 = vmax.f32 %v2067_v46, %v2040_v23 }
 0x20a   :  { %v1280_v30 = vpop.f32.mrf.mxu1 }
 0x20b   :  { %v2010_v52 = vsel %vm1818_vm7, %v1280_v30, -1e+30 }
 0x20c   :  { %v2071_v58 = vmax.f32 %v2069_v24, %v2010_v52 }
 0x20e   :  { %v1357_v32 = vpop.f32.mrf.mxu3 }
 0x20f   :  { %v2041_v29 = vsel %vm1849_vm8, %v1357_v32, -1e+30 }
 0x210   :  { %v2100_v8 = vmax.f32 %v2098_v37, %v2041_v29 }
 0x212   :  { %v1282_v63 = vpop.f32.mrf.mxu1 }
 0x213   :  { %v2011_v12 = vsel %vm1819_vm9, %v1282_v63, -1e+30 }
 0x214   :  { %v2102_v35 = vmax.f32 %v2100_v8, %v2011_v12 }
 0x216   :  { %v1360_v51 = vpop.f32.mrf.mxu3 }
 0x217   :  { %v2042_v18 = vsel %vm1850_vm10, %v1360_v51, -1e+30 }
 0x218   :  { %v2073_v61 = vmax.f32 %v2071_v58, %v2042_v18 }
 0x21a   :  { %v1285_v62 = vpop.f32.mrf.mxu1 }
 0x21b   :  { %v2012_v11 = vsel %vm1820_vm11, %v1285_v62, -1e+30 }
 0x21c   :  { %v2075_v42 = vmax.f32 %v2073_v61, %v2012_v11 }
 0x21e   :  { %v1362_v13 = vpop.f32.mrf.mxu3 }
 0x21f   :  { %v2043_v5 = vsel %vm1851_vm12, %v1362_v13, -1e+30 }
 0x220   :  { %v2104_v4 = vmax.f32 %v2102_v35, %v2043_v5 }
 0x222   :  { %v1287_v53 = vpop.f32.mrf.mxu1 }
 0x223   :  { %v2013_v7 = vsel %vm1821_vm13, %v1287_v53, -1e+30 }
 0x224   :  { %v2106_v26 = vmax.f32 %v2104_v4, %v2013_v7 }
 0x226   :  { %v1365_v56 = vpop.f32.mrf.mxu3 }
 0x227   :  { %v2044_v55 = vsel %vm1852_vm14, %v1365_v56, -1e+30 }
 0x228   :  { %v2076_v19 = vmax.f32 %v2044_v55, %v2075_v42 }
 0x22a   :  { %v2110_v48 = vmax.f32 %v2076_v19, -1e+30 }
 0x22c   :  { %v2123_v20 = vadd.f32 %v2427_v6, %v2110_v48 }
 0x22e   :  { %v1367_v40 = vpop.f32.mrf.mxu3 }
 0x22f   :  { %v2045_v3 = vsel %vm1853_vm15, %v1367_v40, -1e+30 }
 0x230   :  { %v2107_v15 = vmax.f32 %v2045_v3, %v2106_v26 }
 0x232   :  { %v2111_v25 = vmax.f32 %v2107_v15, -1e+30 }
 0x234   :  { %v2124_v34 = vadd.f32 %v2427_v6, %v2111_v25 }
 0x236   :  { %v2348_v33 = vpack.c.bf16 %v2124_v34, %v2123_v20 }
 0x238   :  { %2349 = vst [vmem:[%s3004_s7] sm:$0xff] %v2348_v33  }

// kernel: net_forward.7
= control target key start
LH: loop header
LB: loop body
LE: loop exit
PB: predicated region body
PF: predicated region fallthrough
CT: control target
= control target key end

     0   :  { %s6539_s0 = inlined_call_operand.vmem [shape: bf16[2,1024], index: 0, kind: input, shape index: {}]   ;;  %s6540_s1 = inlined_call_operand.vmem [shape: bf16[1024,512], index: 1, kind: input, shape index: {}]   ;;  %s6541_s2 = inlined_call_operand.vmem [shape: f32[1,512], index: 2, kind: input, shape index: {}]   ;;  %s6542_s3 = inlined_call_operand.vmem [shape: bf16[512,256], index: 3, kind: input, shape index: {}]   ;;  %s6543_s4 = inlined_call_operand.vmem [shape: f32[1,256], index: 4, kind: input, shape index: {}]   ;;  %s6544_s5 = inlined_call_operand.vmem [shape: bf16[256,10], index: 5, kind: input, shape index: {}]   ;;  %s6545_s6 = inlined_call_operand.vmem [shape: f32[1,10], index: 6, kind: input, shape index: {}]   ;;  %s6546_s7 = inlined_call_operand.hbm [shape: f32[2,10], index: 7, kind: output, shape index: {}]  }
   0x1   :  { %v2816_v0 = vld [vmem:[%s6540_s1 + $0xe0] sm:$0xf]  ;;  %v4076_v1 = vld [vmem:[%s6540_s1 + $0xec] sm:$0xf0] }
   0x2   :  { %v2944_v2 = vld [vmem:[%s6540_s1 + $0x1e0] sm:$0xf]  ;;  %v2817_v3 = vor.u32 %v4076_v1, %v2816_v0  ;;  %v4108_v4 = vld [vmem:[%s6540_s1 + $0x1ec] sm:$0xf0] }
   0x3   :  { %v3072_v5 = vld [vmem:[%s6540_s1 + $0x2e0] sm:$0xf]  ;;  %v4140_v6 = vld [vmem:[%s6540_s1 + $0x2ec] sm:$0xf0]  ;;  %v2945_v7 = vor.u32 %v4108_v4, %v2944_v2 }
   0x4   :  { %v3073_v8 = vor.u32 %v4140_v6, %v3072_v5  ;;  %v3200_v9 = vld [vmem:[%s6540_s1 + $0x3e0] sm:$0xf]  ;;  %v4172_v10 = vld [vmem:[%s6540_s1 + $0x3ec] sm:$0xf0]  ;;  %1592 = vmatpush.bf16.msra.mxu0 %v2817_v3 }
   0x5   :  { %v2800_v11 = vld [vmem:[%s6540_s1 + $0xc0] sm:$0xf]  ;;  %v3201_v12 = vor.u32 %v4172_v10, %v3200_v9  ;;  %v4072_v13 = vld [vmem:[%s6540_s1 + $0xcc] sm:$0xf0]  ;;  %1605 = vmatpush.bf16.msra.mxu1 %v2945_v7 }
   0x6   :  { %v2928_v14 = vld [vmem:[%s6540_s1 + $0x1c0] sm:$0xf]  ;;  %v4104_v15 = vld [vmem:[%s6540_s1 + $0x1cc] sm:$0xf0]  ;;  %1618 = vmatpush.bf16.msra.mxu2 %v3073_v8  ;;  %v2801_v16 = vor.u32 %v4072_v13, %v2800_v11 }
   0x7   :  { %v2929_v17 = vor.u32 %v4104_v15, %v2928_v14  ;;  %v3056_v18 = vld [vmem:[%s6540_s1 + $0x2c0] sm:$0xf]  ;;  %v4136_v19 = vld [vmem:[%s6540_s1 + $0x2cc] sm:$0xf0]  ;;  %1631 = vmatpush.bf16.msra.mxu3 %v3201_v12 }
   0x8   :  { %v3184_v20 = vld [vmem:[%s6540_s1 + $0x3c0] sm:$0xf]  ;;  %v3057_v21 = vor.u32 %v4136_v19, %v3056_v18  ;;  %v4168_v22 = vld [vmem:[%s6540_s1 + $0x3cc] sm:$0xf0]  ;;  %1593 = vmatpush.bf16.msra.mxu0 %v2801_v16 }
   0x9   :  { %v2784_v23 = vld [vmem:[%s6540_s1 + $0xa0] sm:$0xf]  ;;  %v4068_v24 = vld [vmem:[%s6540_s1 + $0xac] sm:$0xf0]  ;;  %v3185_v25 = vor.u32 %v4168_v22, %v3184_v20  ;;  %1606 = vmatpush.bf16.msra.mxu1 %v2929_v17 }
   0xa   :  { %v2912_v26 = vld [vmem:[%s6540_s1 + $0x1a0] sm:$0xf]  ;;  %v4100_v27 = vld [vmem:[%s6540_s1 + $0x1ac] sm:$0xf0]  ;;  %v2785_v29 = vor.u32 %v4068_v24, %v2784_v23  ;;  %1619 = vmatpush.bf16.msra.mxu2 %v3057_v21 }
   0xb   :  { %v3040_v28 = vld [vmem:[%s6540_s1 + $0x2a0] sm:$0xf]  ;;  %v4132_v30 = vld [vmem:[%s6540_s1 + $0x2ac] sm:$0xf0]  ;;  %v2913_v33 = vor.u32 %v4100_v27, %v2912_v26  ;;  %1632 = vmatpush.bf16.msra.mxu3 %v3185_v25 }
   0xc   :  { %v3168_v31 = vld [vmem:[%s6540_s1 + $0x3a0] sm:$0xf]  ;;  %v4164_v32 = vld [vmem:[%s6540_s1 + $0x3ac] sm:$0xf0]  ;;  %v3041_v34 = vor.u32 %v4132_v30, %v3040_v28  ;;  %1594 = vmatpush.bf16.msra.mxu0 %v2785_v29 }
   0xd   :  { %v2768_v35 = vld [vmem:[%s6540_s1 + $0x80] sm:$0xf]  ;;  %v4064_v36 = vld [vmem:[%s6540_s1 + $0x8c] sm:$0xf0]  ;;  %v3169_v38 = vor.u32 %v4164_v32, %v3168_v31  ;;  %1607 = vmatpush.bf16.msra.mxu1 %v2913_v33 }
   0xe   :  { %v2896_v37 = vld [vmem:[%s6540_s1 + $0x180] sm:$0xf]  ;;  %v4096_v39 = vld [vmem:[%s6540_s1 + $0x18c] sm:$0xf0]  ;;  %v2769_v44 = vor.u32 %v4064_v36, %v2768_v35  ;;  %1620 = vmatpush.bf16.msra.mxu2 %v3041_v34 }
   0xf   :  { %v3024_v40 = vld [vmem:[%s6540_s1 + $0x280] sm:$0xf]  ;;  %v4128_v41 = vld [vmem:[%s6540_s1 + $0x28c] sm:$0xf0]  ;;  %v2897_v45 = vor.u32 %v4096_v39, %v2896_v37  ;;  %1633 = vmatpush.bf16.msra.mxu3 %v3169_v38 }
  0x10   :  { %v3152_v42 = vld [vmem:[%s6540_s1 + $0x380] sm:$0xf]  ;;  %v4160_v43 = vld [vmem:[%s6540_s1 + $0x38c] sm:$0xf0]  ;;  %v3025_v46 = vor.u32 %v4128_v41, %v3024_v40  ;;  %1595 = vmatpush.bf16.msra.mxu0 %v2769_v44 }
  0x11   :  { %v2752_v47 = vld [vmem:[%s6540_s1 + $0x60] sm:$0xf]  ;;  %v4060_v48 = vld [vmem:[%s6540_s1 + $0x6c] sm:$0xf0]  ;;  %v3153_v50 = vor.u32 %v4160_v43, %v3152_v42  ;;  %1608 = vmatpush.bf16.msra.mxu1 %v2897_v45 }
  0x12   :  { %v2880_v49 = vld [vmem:[%s6540_s1 + $0x160] sm:$0xf]  ;;  %v4092_v51 = vld [vmem:[%s6540_s1 + $0x16c] sm:$0xf0]  ;;  %v2753_v56 = vor.u32 %v4060_v48, %v2752_v47  ;;  %1621 = vmatpush.bf16.msra.mxu2 %v3025_v46 }
  0x13   :  { %v3008_v52 = vld [vmem:[%s6540_s1 + $0x260] sm:$0xf]  ;;  %v4124_v53 = vld [vmem:[%s6540_s1 + $0x26c] sm:$0xf0]  ;;  %v2881_v57 = vor.u32 %v4092_v51, %v2880_v49  ;;  %1634 = vmatpush.bf16.msra.mxu3 %v3153_v50 }
  0x14   :  { %v3136_v54 = vld [vmem:[%s6540_s1 + $0x360] sm:$0xf]  ;;  %v4156_v55 = vld [vmem:[%s6540_s1 + $0x36c] sm:$0xf0]  ;;  %v3009_v58 = vor.u32 %v4124_v53, %v3008_v52  ;;  %1596 = vmatpush.bf16.msra.mxu0 %v2753_v56 }
  0x15   :  { %v2736_v59 = vld [vmem:[%s6540_s1 + $0x40] sm:$0xf]  ;;  %v4056_v60 = vld [vmem:[%s6540_s1 + $0x4c] sm:$0xf0]  ;;  %v3137_v62 = vor.u32 %v4156_v55, %v3136_v54  ;;  %1609 = vmatpush.bf16.msra.mxu1 %v2881_v57 }
  0x16   :  { %v2864_v61 = vld [vmem:[%s6540_s1 + $0x140] sm:$0xf]  ;;  %v4088_v63 = vld [vmem:[%s6540_s1 + $0x14c] sm:$0xf0]  ;;  %v2737_v4 = vor.u32 %v4056_v60, %v2736_v59  ;;  %1622 = vmatpush.bf16.msra.mxu2 %v3009_v58 }
  0x17   :  { %v2992_v0 = vld [vmem:[%s6540_s1 + $0x240] sm:$0xf]  ;;  %v4120_v1 = vld [vmem:[%s6540_s1 + $0x24c] sm:$0xf0]  ;;  %v2865_v5 = vor.u32 %v4088_v63, %v2864_v61  ;;  %1635 = vmatpush.bf16.msra.mxu3 %v3137_v62 }
  0x18   :  { %v3120_v2 = vld [vmem:[%s6540_s1 + $0x340] sm:$0xf]  ;;  %v4152_v3 = vld [vmem:[%s6540_s1 + $0x34c] sm:$0xf0]  ;;  %v2993_v6 = vor.u32 %v4120_v1, %v2992_v0  ;;  %1597 = vmatpush.bf16.msra.mxu0 %v2737_v4 }
  0x19   :  { %v2720_v7 = vld [vmem:[%s6540_s1 + $0x20] sm:$0xf]  ;;  %v4052_v8 = vld [vmem:[%s6540_s1 + $0x2c] sm:$0xf0]  ;;  %v3121_v10 = vor.u32 %v4152_v3, %v3120_v2  ;;  %1610 = vmatpush.bf16.msra.mxu1 %v2865_v5 }
  0x1a   :  { %v2848_v9 = vld [vmem:[%s6540_s1 + $0x120] sm:$0xf]  ;;  %v4084_v11 = vld [vmem:[%s6540_s1 + $0x12c] sm:$0xf0]  ;;  %v2721_v16 = vor.u32 %v4052_v8, %v2720_v7  ;;  %1623 = vmatpush.bf16.msra.mxu2 %v2993_v6 }
  0x1b   :  { %v2976_v12 = vld [vmem:[%s6540_s1 + $0x220] sm:$0xf]  ;;  %v4116_v13 = vld [vmem:[%s6540_s1 + $0x22c] sm:$0xf0]  ;;  %v2849_v19 = vor.u32 %v4084_v11, %v2848_v9  ;;  %1636 = vmatpush.bf16.msra.mxu3 %v3121_v10 }
  0x1c   :  { %v3104_v14 = vld [vmem:[%s6540_s1 + $0x320] sm:$0xf]  ;;  %v4148_v15 = vld [vmem:[%s6540_s1 + $0x32c] sm:$0xf0]  ;;  %v2977_v20 = vor.u32 %v4116_v13, %v2976_v12  ;;  %1598 = vmatpush.bf16.msra.mxu0 %v2721_v16 }
  0x1d   :  { %v2704_v17 = vld [vmem:[%s6540_s1] sm:$0xf]  ;;  %v4048_v18 = vld [vmem:[%s6540_s1 + $0xc] sm:$0xf0]  ;;  %v3105_v24 = vor.u32 %v4148_v15, %v3104_v14  ;;  %1611 = vmatpush.bf16.msra.mxu1 %v2849_v19 }
  0x1e   :  { %v2832_v21 = vld [vmem:[%s6540_s1 + $0x100] sm:$0xf]  ;;  %v4080_v22 = vld [vmem:[%s6540_s1 + $0x10c] sm:$0xf0]  ;;  %v2705_v31 = vor.u32 %v4048_v18, %v2704_v17  ;;  %1624 = vmatpush.bf16.msra.mxu2 %v2977_v20 }
  0x1f   :  { %v2960_v23 = vld [vmem:[%s6540_s1 + $0x200] sm:$0xf]  ;;  %v4112_v25 = vld [vmem:[%s6540_s1 + $0x20c] sm:$0xf0]  ;;  %v2833_v35 = vor.u32 %v4080_v22, %v2832_v21  ;;  %1637 = vmatpush.bf16.msra.mxu3 %v3105_v24 }
  0x20   :  { %v3088_v26 = vld [vmem:[%s6540_s1 + $0x300] sm:$0xf]  ;;  %v4144_v27 = vld [vmem:[%s6540_s1 + $0x30c] sm:$0xf0]  ;;  %v2961_v36 = vor.u32 %v4112_v25, %v2960_v23  ;;  %1599 = vmatpush.bf16.msra.mxu0 %v2705_v31 }
  0x21   :  { %v3328_v28 = vld [vmem:[%s6540_s1 + $0x4e0] sm:$0xf]  ;;  %v4204_v29 = vld [vmem:[%s6540_s1 + $0x4ec] sm:$0xf0]  ;;  %v3089_v39 = vor.u32 %v4144_v27, %v3088_v26  ;;  %1612 = vmatpush.bf16.msra.mxu1 %v2833_v35 }
  0x22   :  { %v3456_v30 = vld [vmem:[%s6540_s1 + $0x5e0] sm:$0xf]  ;;  %v4236_v32 = vld [vmem:[%s6540_s1 + $0x5ec] sm:$0xf0]  ;;  %v3329_v40 = vor.u32 %v4204_v29, %v3328_v28  ;;  %1625 = vmatpush.bf16.msra.mxu2 %v2961_v36 }
  0x23   :  { %v3584_v33 = vld [vmem:[%s6540_s1 + $0x6e0] sm:$0xf]  ;;  %v4268_v34 = vld [vmem:[%s6540_s1 + $0x6ec] sm:$0xf0]  ;;  %v3457_v41 = vor.u32 %v4236_v32, %v3456_v30  ;;  %1638 = vmatpush.bf16.msra.mxu3 %v3089_v39 }
  0x24   :  { %v3712_v37 = vld [vmem:[%s6540_s1 + $0x7e0] sm:$0xf]  ;;  %v4300_v38 = vld [vmem:[%s6540_s1 + $0x7ec] sm:$0xf0]  ;;  %v3585_v42 = vor.u32 %v4268_v34, %v3584_v33  ;;  %1644 = vmatpush.bf16.msrb.mxu0 %v3329_v40 }
  0x25   :  { %v3312_v43 = vld [vmem:[%s6540_s1 + $0x4c0] sm:$0xf]  ;;  %v4200_v44 = vld [vmem:[%s6540_s1 + $0x4cc] sm:$0xf0]  ;;  %v3713_v46 = vor.u32 %v4300_v38, %v3712_v37  ;;  %1657 = vmatpush.bf16.msrb.mxu1 %v3457_v41 }
  0x26   :  { %v3440_v45 = vld [vmem:[%s6540_s1 + $0x5c0] sm:$0xf]  ;;  %v4232_v47 = vld [vmem:[%s6540_s1 + $0x5cc] sm:$0xf0]  ;;  %v3313_v52 = vor.u32 %v4200_v44, %v3312_v43  ;;  %1670 = vmatpush.bf16.msrb.mxu2 %v3585_v42 }
  0x27   :  { %v3568_v48 = vld [vmem:[%s6540_s1 + $0x6c0] sm:$0xf]  ;;  %v4264_v49 = vld [vmem:[%s6540_s1 + $0x6cc] sm:$0xf0]  ;;  %v3441_v53 = vor.u32 %v4232_v47, %v3440_v45  ;;  %1683 = vmatpush.bf16.msrb.mxu3 %v3713_v46 }
  0x28   :  { %v3696_v50 = vld [vmem:[%s6540_s1 + $0x7c0] sm:$0xf]  ;;  %v4296_v51 = vld [vmem:[%s6540_s1 + $0x7cc] sm:$0xf0]  ;;  %v3569_v54 = vor.u32 %v4264_v49, %v3568_v48  ;;  %1645 = vmatpush.bf16.msrb.mxu0 %v3313_v52 }
  0x29   :  { %v3296_v55 = vld [vmem:[%s6540_s1 + $0x4a0] sm:$0xf]  ;;  %v4196_v56 = vld [vmem:[%s6540_s1 + $0x4ac] sm:$0xf0]  ;;  %v3697_v58 = vor.u32 %v4296_v51, %v3696_v50  ;;  %1658 = vmatpush.bf16.msrb.mxu1 %v3441_v53 }
  0x2a   :  { %v3424_v57 = vld [vmem:[%s6540_s1 + $0x5a0] sm:$0xf]  ;;  %v4228_v59 = vld [vmem:[%s6540_s1 + $0x5ac] sm:$0xf0]  ;;  %v3297_v0 = vor.u32 %v4196_v56, %v3296_v55  ;;  %1671 = vmatpush.bf16.msrb.mxu2 %v3569_v54 }
  0x2b   :  { %v3552_v60 = vld [vmem:[%s6540_s1 + $0x6a0] sm:$0xf]  ;;  %v4260_v61 = vld [vmem:[%s6540_s1 + $0x6ac] sm:$0xf0]  ;;  %v3425_v3 = vor.u32 %v4228_v59, %v3424_v57  ;;  %1684 = vmatpush.bf16.msrb.mxu3 %v3697_v58 }
  0x2c   :  { %v3680_v62 = vld [vmem:[%s6540_s1 + $0x7a0] sm:$0xf]  ;;  %v4292_v63 = vld [vmem:[%s6540_s1 + $0x7ac] sm:$0xf0]  ;;  %v3553_v4 = vor.u32 %v4260_v61, %v3552_v60  ;;  %1646 = vmatpush.bf16.msrb.mxu0 %v3297_v0 }
  0x2d   :  { %v3280_v1 = vld [vmem:[%s6540_s1 + $0x480] sm:$0xf]  ;;  %v4192_v5 = vld [vmem:[%s6540_s1 + $0x48c] sm:$0xf0]  ;;  %v3681_v7 = vor.u32 %v4292_v63, %v3680_v62  ;;  %1659 = vmatpush.bf16.msrb.mxu1 %v3425_v3  ;;  %v4106_v3 = vld [vmem:[%s6540_s1 + $0x1e4] sm:$0xf] }
  0x2e   :  { %v27_v2 = vld [vmem:[%s6539_s0] sm:$0xff]  ;;  %v4224_v8 = vld [vmem:[%s6540_s1 + $0x58c] sm:$0xf0]  ;;  %v3281_v13 = vor.u32 %v4192_v5, %v3280_v1  ;;  %1672 = vmatpush.bf16.msrb.mxu2 %v3553_v4  ;;  %v2946_v5 = vld [vmem:[%s6540_s1 + $0x1f0] sm:$0xf0] }
  0x2f   :  { %v3408_v6 = vld [vmem:[%s6540_s1 + $0x580] sm:$0xf]  ;;  %295 = vst [vmem:[#allocation1] ss:$9 sm:$0xff] %v27_v2  ;;  %v4256_v10 = vld [vmem:[%s6540_s1 + $0x68c] sm:$0xf0]  ;;  %1685 = vmatpush.bf16.msrb.mxu3 %v3681_v7 }
  0x30   :  { %v3536_v9 = vld [vmem:[%s6540_s1 + $0x680] sm:$0xf]  ;;  %v4288_v12 = vld [vmem:[%s6540_s1 + $0x78c] sm:$0xf0]  ;;  %v3409_v14 = vor.u32 %v4224_v8, %v3408_v6  ;;  %1647 = vmatpush.bf16.msrb.mxu0 %v3281_v13  ;;  %v4074_v1 = vld [vmem:[%s6540_s1 + $0xe4] sm:$0xf] }
  0x31   :  { %v3664_v11 = vld [vmem:[%s6540_s1 + $0x780] sm:$0xf]  ;;  %v3537_v15 = vor.u32 %v4256_v10, %v3536_v9  ;;  %v4188_v17 = vld [vmem:[%s6540_s1 + $0x46c] sm:$0xf0]  ;;  %v2818_v2 = vld [vmem:[%s6540_s1 + $0xf0] sm:$0xf0] }
  0x32   :  { %v3264_v16 = vld [vmem:[%s6540_s1 + $0x460] sm:$0xf]  ;;  %v3665_v19 = vor.u32 %v4288_v12, %v3664_v11  ;;  %v4220_v20 = vld [vmem:[%s6540_s1 + $0x56c] sm:$0xf0]  ;;  %1660 = vmatpush.bf16.msrb.mxu1 %v3409_v14  ;;  %v4138_v6 = vld [vmem:[%s6540_s1 + $0x2e4] sm:$0xf]  ;;  %v2821_v13 = vor.u32 %v4074_v1, %v2818_v2  ;;  %v2949_v14 = vor.u32 %v4106_v3, %v2946_v5 }
  0x33   :  { %v3392_v18 = vld [vmem:[%s6540_s1 + $0x560] sm:$0xf]  ;;  %v4252_v22 = vld [vmem:[%s6540_s1 + $0x66c] sm:$0xf0]  ;;  %v3265_v26 = vor.u32 %v4188_v17, %v3264_v16  ;;  %1673 = vmatpush.bf16.msrb.mxu2 %v3537_v15  ;;  %v3074_v7 = vld [vmem:[%s6540_s1 + $0x2f0] sm:$0xf0] }
  0x34   :  { %v3520_v21 = vld [vmem:[%s6540_s1 + $0x660] sm:$0xf]  ;;  %v4284_v24 = vld [vmem:[%s6540_s1 + $0x76c] sm:$0xf0]  ;;  %v3393_v30 = vor.u32 %v4220_v20, %v3392_v18  ;;  %1686 = vmatpush.bf16.msrb.mxu3 %v3665_v19  ;;  %v4170_v10 = vld [vmem:[%s6540_s1 + $0x3e4] sm:$0xf]  ;;  %v3077_v15 = vor.u32 %v4138_v6, %v3074_v7 }
  0x35   :  { %v3648_v23 = vld [vmem:[%s6540_s1 + $0x760] sm:$0xf]  ;;  %v3521_v31 = vor.u32 %v4252_v22, %v3520_v21  ;;  %v4184_v32 = vld [vmem:[%s6540_s1 + $0x44c] sm:$0xf0]  ;;  %1648 = vmatpush.bf16.msrb.mxu0 %v3265_v26  ;;  %v3202_v11 = vld [vmem:[%s6540_s1 + $0x3f0] sm:$0xf0] }
  0x36   :  { %v3248_v25 = vld [vmem:[%s6540_s1 + $0x440] sm:$0xf]  ;;  %v4782_v27 = vld [vmem:[#allocation1 + $0x12] sm:$0xff]  ;;  %v4794_v34 = vld [vmem:[#allocation1 + $0x9] sm:$0xff]  ;;  %v3649_v35 = vor.u32 %v4284_v24, %v3648_v23  ;;  %1661 = vmatpush.bf16.msrb.mxu1 %v3393_v30  ;;  %v3205_v19 = vor.u32 %v4170_v10, %v3202_v11 }
  0x37   :  { %v4784_v28 = vld [vmem:[#allocation1] sm:$0xff]  ;;  %v4216_v36 = vld [vmem:[%s6540_s1 + $0x54c] sm:$0xf0]  ;;  %1626 = vmatmul.bf16.vlgmr.msra.gmra.mxu2 %v4782_v27  ;;  %v3249_v41 = vor.u32 %v4184_v32, %v3248_v25  ;;  %1613 = vmatmul.bf16.vlgmr.msra.gmra.mxu1 %v4794_v34  ;;  %v2802_v17 = vld [vmem:[%s6540_s1 + $0xd0] sm:$0xf0] }
  0x38   :  { %v4786_v29 = vld [vmem:[#allocation1 + $0x1b] sm:$0xff]  ;;  %v4248_v38 = vld [vmem:[%s6540_s1 + $0x64c] sm:$0xf0]  ;;  %1600 = vmatmul.bf16.vlgmr.msra.gmra.mxu0 %v4784_v28  ;;  %1674 = vmatpush.bf16.msrb.mxu2 %v3521_v31  ;;  %v4070_v16 = vld [vmem:[%s6540_s1 + $0xc4] sm:$0xf] }
  0x39   :  { %v3376_v33 = vld [vmem:[%s6540_s1 + $0x540] sm:$0xf]  ;;  %v4280_v40 = vld [vmem:[%s6540_s1 + $0x74c] sm:$0xf0]  ;;  %1639 = vmatmul.bf16.vlgmr.msra.gmra.mxu3 %v4786_v29  ;;  %1649 = vmatpush.bf16.msrb.mxu0 %v3249_v41  ;;  %v4102_v18 = vld [vmem:[%s6540_s1 + $0x1c4] sm:$0xf]  ;;  %v2805_v26 = vor.u32 %v4070_v16, %v2802_v17 }
  0x3a   :  { %v3504_v37 = vld [vmem:[%s6540_s1 + $0x640] sm:$0xf]  ;;  %v3377_v42 = vor.u32 %v4216_v36, %v3376_v33  ;;  %v4180_v45 = vld [vmem:[%s6540_s1 + $0x42c] sm:$0xf0]  ;;  %1687 = vmatpush.bf16.msrb.mxu3 %v3649_v35  ;;  %v2930_v20 = vld [vmem:[%s6540_s1 + $0x1d0] sm:$0xf0] }
  0x3b   :  { %v3632_v39 = vld [vmem:[%s6540_s1 + $0x740] sm:$0xf]  ;;  %v3505_v43 = vor.u32 %v4248_v38, %v3504_v37  ;;  %v4212_v48 = vld [vmem:[%s6540_s1 + $0x52c] sm:$0xf0]  ;;  %v4134_v21 = vld [vmem:[%s6540_s1 + $0x2c4] sm:$0xf]  ;;  %v2933_v33 = vor.u32 %v4102_v18, %v2930_v20 }
  0x3c   :  { %v3232_v44 = vld [vmem:[%s6540_s1 + $0x420] sm:$0xf]  ;;  %v3633_v47 = vor.u32 %v4280_v40, %v3632_v39  ;;  %v4244_v50 = vld [vmem:[%s6540_s1 + $0x62c] sm:$0xf0]  ;;  %1662 = vmatpush.bf16.msrb.mxu1 %v3377_v42  ;;  %v3058_v22 = vld [vmem:[%s6540_s1 + $0x2d0] sm:$0xf0] }
  0x3d   :  { %v3360_v46 = vld [vmem:[%s6540_s1 + $0x520] sm:$0xf]  ;;  %v4276_v52 = vld [vmem:[%s6540_s1 + $0x72c] sm:$0xf0]  ;;  %v3233_v53 = vor.u32 %v4180_v45, %v3232_v44  ;;  %1675 = vmatpush.bf16.msrb.mxu2 %v3505_v43  ;;  %v4166_v23 = vld [vmem:[%s6540_s1 + $0x3c4] sm:$0xf]  ;;  %v3061_v35 = vor.u32 %v4134_v21, %v3058_v22 }
  0x3e   :  { %v3488_v49 = vld [vmem:[%s6540_s1 + $0x620] sm:$0xf]  ;;  %v4176_v55 = vld [vmem:[%s6540_s1 + $0x40c] sm:$0xf0]  ;;  %v3361_v56 = vor.u32 %v4212_v48, %v3360_v46  ;;  %1688 = vmatpush.bf16.msrb.mxu3 %v3633_v47  ;;  %v3186_v24 = vld [vmem:[%s6540_s1 + $0x3d0] sm:$0xf0] }
  0x3f   :  { %v3616_v51 = vld [vmem:[%s6540_s1 + $0x720] sm:$0xf]  ;;  %v3489_v57 = vor.u32 %v4244_v50, %v3488_v49  ;;  %v4208_v59 = vld [vmem:[%s6540_s1 + $0x50c] sm:$0xf0]  ;;  %1650 = vmatpush.bf16.msrb.mxu0 %v3233_v53  ;;  %v4911_v25 = vld [vmem:[#allocation1 + $0x36] sm:$0xff]  ;;  %v3189_v39 = vor.u32 %v4166_v23, %v3186_v24 }
  0x40   :  { %v3216_v54 = vld [vmem:[%s6540_s1 + $0x400] sm:$0xf]  ;;  %v3617_v61 = vor.u32 %v4276_v52, %v3616_v51  ;;  %v4240_v62 = vld [vmem:[%s6540_s1 + $0x60c] sm:$0xf0]  ;;  %1663 = vmatpush.bf16.msrb.mxu1 %v3361_v56  ;;  %v4066_v30 = vld [vmem:[%s6540_s1 + $0xa4] sm:$0xf] }
  0x41   :  { %v3344_v58 = vld [vmem:[%s6540_s1 + $0x500] sm:$0xf]  ;;  %v4272_v0 = vld [vmem:[%s6540_s1 + $0x70c] sm:$0xf0]  ;;  %v3217_v4 = vor.u32 %v4176_v55, %v3216_v54  ;;  %1676 = vmatpush.bf16.msrb.mxu2 %v3489_v57  ;;  %v4916_v31 = vld [vmem:[#allocation1 + $0x24] sm:$0xff] }
  0x42   :  { %v3472_v60 = vld [vmem:[%s6540_s1 + $0x600] sm:$0xf]  ;;  %v3345_v8 = vor.u32 %v4208_v59, %v3344_v58  ;;  %1689 = vmatpush.bf16.msrb.mxu3 %v3617_v61  ;;  %v2786_v36 = vld [vmem:[%s6540_s1 + $0xb0] sm:$0xf0]  ;;  %v4098_v37 = vld [vmem:[%s6540_s1 + $0x1a4] sm:$0xf] }
  0x43   :  { %v3600_v63 = vld [vmem:[%s6540_s1 + $0x700] sm:$0xf]  ;;  %v3473_v9 = vor.u32 %v4240_v62, %v3472_v60  ;;  %1651 = vmatpush.bf16.msrb.mxu0 %v3217_v4  ;;  %v4926_v38 = vld [vmem:[#allocation1 + $0x2d] sm:$0xff]  ;;  %v4130_v41 = vld [vmem:[%s6540_s1 + $0x2a4] sm:$0xf]  ;;  %v2789_v45 = vor.u32 %v4066_v30, %v2786_v36 }
  0x44   :  { %v3601_v12 = vor.u32 %v4272_v0, %v3600_v63  ;;  %1664 = vmatpush.bf16.msrb.mxu1 %v3345_v8  ;;  %v4918_v32 = vld [vmem:[#allocation1 + $0x3f] sm:$0xff]  ;;  %v2914_v40 = vld [vmem:[%s6540_s1 + $0x1b0] sm:$0xf0] }
  0x45   :  { %1677 = vmatpush.bf16.msrb.mxu2 %v3473_v9  ;;  %v3042_v42 = vld [vmem:[%s6540_s1 + $0x2b0] sm:$0xf0]  ;;  %v4162_v43 = vld [vmem:[%s6540_s1 + $0x3a4] sm:$0xf]  ;;  %v2917_v46 = vor.u32 %v4098_v37, %v2914_v40 }
  0x46   :  { %1690 = vmatpush.bf16.msrb.mxu3 %v3601_v12  ;;  %v3170_v44 = vld [vmem:[%s6540_s1 + $0x3b0] sm:$0xf0]  ;;  %v3045_v47 = vor.u32 %v4130_v41, %v3042_v42  ;;  %v4062_v48 = vld [vmem:[%s6540_s1 + $0x84] sm:$0xf] }
  0x47   :  { %1696 = vmatpush.bf16.msra.mxu0 %v2821_v13  ;;  %1665 = vmatmul.bf16.vlgmr.msrb.gmra.mxu1 %v4926_v38  ;;  %v2770_v49 = vld [vmem:[%s6540_s1 + $0x90] sm:$0xf0]  ;;  %v4094_v50 = vld [vmem:[%s6540_s1 + $0x184] sm:$0xf]  ;;  %v3173_v51 = vor.u32 %v4162_v43, %v3170_v44 }
  0x48   :  { %1709 = vmatpush.bf16.msra.mxu1 %v2949_v14  ;;  %1678 = vmatmul.bf16.vlgmr.msrb.gmra.mxu2 %v4911_v25  ;;  %v2898_v52 = vld [vmem:[%s6540_s1 + $0x190] sm:$0xf0]  ;;  %v4126_v53 = vld [vmem:[%s6540_s1 + $0x284] sm:$0xf]  ;;  %v2773_v57 = vor.u32 %v4062_v48, %v2770_v49 }
  0x49   :  { %1722 = vmatpush.bf16.msra.mxu2 %v3077_v15  ;;  %1652 = vmatmul.bf16.vlgmr.msrb.gmra.mxu0 %v4916_v31  ;;  %v3026_v54 = vld [vmem:[%s6540_s1 + $0x290] sm:$0xf0]  ;;  %v4158_v55 = vld [vmem:[%s6540_s1 + $0x384] sm:$0xf]  ;;  %v2901_v58 = vor.u32 %v4094_v50, %v2898_v52 }
  0x4a   :  { %1735 = vmatpush.bf16.msra.mxu3 %v3205_v19  ;;  %v3154_v56 = vld [vmem:[%s6540_s1 + $0x390] sm:$0xf0]  ;;  %v3029_v59 = vor.u32 %v4126_v53, %v3026_v54  ;;  %v4058_v60 = vld [vmem:[%s6540_s1 + $0x64] sm:$0xf] }
  0x4b   :  { %1691 = vmatmul.bf16.vlgmr.msrb.gmra.mxu3 %v4918_v32  ;;  %1697 = vmatpush.bf16.msra.mxu0 %v2805_v26  ;;  %v2754_v61 = vld [vmem:[%s6540_s1 + $0x70] sm:$0xf0]  ;;  %v4090_v62 = vld [vmem:[%s6540_s1 + $0x164] sm:$0xf]  ;;  %v3157_v63 = vor.u32 %v4158_v55, %v3154_v56 }
  0x4c   :  { %1710 = vmatpush.bf16.msra.mxu1 %v2933_v33  ;;  %v2882_v0 = vld [vmem:[%s6540_s1 + $0x170] sm:$0xf0]  ;;  %v4122_v1 = vld [vmem:[%s6540_s1 + $0x264] sm:$0xf]  ;;  %v2757_v5 = vor.u32 %v4058_v60, %v2754_v61 }
  0x4d   :  { %1723 = vmatpush.bf16.msra.mxu2 %v3061_v35  ;;  %v3010_v2 = vld [vmem:[%s6540_s1 + $0x270] sm:$0xf0]  ;;  %v4154_v3 = vld [vmem:[%s6540_s1 + $0x364] sm:$0xf]  ;;  %v2885_v6 = vor.u32 %v4090_v62, %v2882_v0 }
  0x4e   :  { %1736 = vmatpush.bf16.msra.mxu3 %v3189_v39  ;;  %v3138_v4 = vld [vmem:[%s6540_s1 + $0x370] sm:$0xf0]  ;;  %v3013_v7 = vor.u32 %v4122_v1, %v3010_v2  ;;  %v4054_v8 = vld [vmem:[%s6540_s1 + $0x44] sm:$0xf] }
  0x4f   :  { %1698 = vmatpush.bf16.msra.mxu0 %v2789_v45  ;;  %v2738_v9 = vld [vmem:[%s6540_s1 + $0x50] sm:$0xf0]  ;;  %v4086_v10 = vld [vmem:[%s6540_s1 + $0x144] sm:$0xf]  ;;  %v3141_v11 = vor.u32 %v4154_v3, %v3138_v4 }
  0x50   :  { %1711 = vmatpush.bf16.msra.mxu1 %v2917_v46  ;;  %v2866_v12 = vld [vmem:[%s6540_s1 + $0x150] sm:$0xf0]  ;;  %v4118_v13 = vld [vmem:[%s6540_s1 + $0x244] sm:$0xf]  ;;  %v2741_v17 = vor.u32 %v4054_v8, %v2738_v9 }
  0x51   :  { %1724 = vmatpush.bf16.msra.mxu2 %v3045_v47  ;;  %v2994_v14 = vld [vmem:[%s6540_s1 + $0x250] sm:$0xf0]  ;;  %v4150_v15 = vld [vmem:[%s6540_s1 + $0x344] sm:$0xf]  ;;  %v2869_v18 = vor.u32 %v4086_v10, %v2866_v12 }
  0x52   :  { %1737 = vmatpush.bf16.msra.mxu3 %v3173_v51  ;;  %v3122_v16 = vld [vmem:[%s6540_s1 + $0x350] sm:$0xf0]  ;;  %v2997_v19 = vor.u32 %v4118_v13, %v2994_v14  ;;  %v4050_v20 = vld [vmem:[%s6540_s1 + $0x24] sm:$0xf] }
  0x53   :  { %1699 = vmatpush.bf16.msra.mxu0 %v2773_v57  ;;  %v2722_v21 = vld [vmem:[%s6540_s1 + $0x30] sm:$0xf0]  ;;  %v4082_v22 = vld [vmem:[%s6540_s1 + $0x124] sm:$0xf]  ;;  %v3125_v23 = vor.u32 %v4150_v15, %v3122_v16 }
  0x54   :  { %1712 = vmatpush.bf16.msra.mxu1 %v2901_v58  ;;  %v2850_v24 = vld [vmem:[%s6540_s1 + $0x130] sm:$0xf0]  ;;  %v4114_v26 = vld [vmem:[%s6540_s1 + $0x224] sm:$0xf]  ;;  %v2725_v37 = vor.u32 %v4050_v20, %v2722_v21 }
  0x55   :  { %1725 = vmatpush.bf16.msra.mxu2 %v3029_v59  ;;  %v2978_v30 = vld [vmem:[%s6540_s1 + $0x230] sm:$0xf0]  ;;  %v4146_v33 = vld [vmem:[%s6540_s1 + $0x324] sm:$0xf]  ;;  %v2853_v42 = vor.u32 %v4082_v22, %v2850_v24 }
  0x56   :  { %1738 = vmatpush.bf16.msra.mxu3 %v3157_v63  ;;  %v3106_v35 = vld [vmem:[%s6540_s1 + $0x330] sm:$0xf0]  ;;  %v4046_v36 = vld [vmem:[%s6540_s1 + $0x4] sm:$0xf]  ;;  %v2981_v43 = vor.u32 %v4114_v26, %v2978_v30 }
  0x57   :  { %1700 = vmatpush.bf16.msra.mxu0 %v2757_v5  ;;  %v2706_v39 = vld [vmem:[%s6540_s1 + $0x10] sm:$0xf0]  ;;  %v4078_v40 = vld [vmem:[%s6540_s1 + $0x104] sm:$0xf]  ;;  %v3109_v47 = vor.u32 %v4146_v33, %v3106_v35 }
  0x58   :  { %1713 = vmatpush.bf16.msra.mxu1 %v2885_v6  ;;  %v2834_v41 = vld [vmem:[%s6540_s1 + $0x110] sm:$0xf0]  ;;  %v4110_v44 = vld [vmem:[%s6540_s1 + $0x204] sm:$0xf] }
  0x59   :  { %1726 = vmatpush.bf16.msra.mxu2 %v3013_v7  ;;  %v2962_v45 = vld [vmem:[%s6540_s1 + $0x210] sm:$0xf0]  ;;  %v4142_v46 = vld [vmem:[%s6540_s1 + $0x304] sm:$0xf] }
  0x5a   :  { %1739 = vmatpush.bf16.msra.mxu3 %v3141_v11  ;;  %v3090_v48 = vld [vmem:[%s6540_s1 + $0x310] sm:$0xf0]  ;;  %v4202_v49 = vld [vmem:[%s6540_s1 + $0x4e4] sm:$0xf] }
  0x5b   :  { %1701 = vmatpush.bf16.msra.mxu0 %v2741_v17  ;;  %v3330_v50 = vld [vmem:[%s6540_s1 + $0x4f0] sm:$0xf0]  ;;  %v4234_v51 = vld [vmem:[%s6540_s1 + $0x5e4] sm:$0xf] }
  0x5c   :  { %1714 = vmatpush.bf16.msra.mxu1 %v2869_v18 }
  0x5d   :  { %1727 = vmatpush.bf16.msra.mxu2 %v2997_v19 }
  0x5e   :  { %1740 = vmatpush.bf16.msra.mxu3 %v3125_v23 }
  0x5f   :  { %12 = vsyncpa [#allocation3], 0  ;;  %1702 = vmatpush.bf16.msra.mxu0 %v2725_v37  ;;  %v2709_v52 = vor.u32 %v4046_v36, %v2706_v39  ;;  %v3458_v53 = vld [vmem:[%s6540_s1 + $0x5f0] sm:$0xf0]  ;;  %v4266_v54 = vld [vmem:[%s6540_s1 + $0x6e4] sm:$0xf]  ;;  %v2837_v56 = vor.u32 %v4078_v40, %v2834_v41  ;;  %v2965_v57 = vor.u32 %v4110_v44, %v2962_v45  ;;  %v3093_v60 = vor.u32 %v4142_v46, %v3090_v48 }
  0x60   :  { %v3586_v55 = vld [vmem:[%s6540_s1 + $0x6f0] sm:$0xf0]  ;;  %1715 = vmatpush.bf16.msra.mxu1 %v2853_v42  ;;  %v4298_v58 = vld [vmem:[%s6540_s1 + $0x7e4] sm:$0xf]  ;;  %v3333_v61 = vor.u32 %v4202_v49, %v3330_v50  ;;  %v3461_v62 = vor.u32 %v4234_v51, %v3458_v53  ;;  %vm2672_vm0 = vcmask 74752   ;;  %s2693_s15 = sshll.u32 %s6546_s7, 4  ;;  %s2694_s15 = int_to_ptr.hbm [resolvable:$true] %s2693_s15 }
  0x61   :  { %1728 = vmatpush.bf16.msra.mxu2 %v2981_v43  ;;  %v3714_v59 = vld [vmem:[%s6540_s1 + $0x7f0] sm:$0xf0]  ;;  %v3589_v63 = vor.u32 %v4266_v54, %v3586_v55  ;;  %v4198_v0 = vld [vmem:[%s6540_s1 + $0x4c4] sm:$0xf] }
  0x62   :  { %1741 = vmatpush.bf16.msra.mxu3 %v3109_v47  ;;  %v3314_v1 = vld [vmem:[%s6540_s1 + $0x4d0] sm:$0xf0]  ;;  %v4230_v2 = vld [vmem:[%s6540_s1 + $0x5c4] sm:$0xf]  ;;  %v3717_v3 = vor.u32 %v4298_v58, %v3714_v59 }
  0x63   :  { %1703 = vmatpush.bf16.msra.mxu0 %v2709_v52  ;;  %v3442_v4 = vld [vmem:[%s6540_s1 + $0x5d0] sm:$0xf0]  ;;  %v4262_v5 = vld [vmem:[%s6540_s1 + $0x6c4] sm:$0xf]  ;;  %v3317_v9 = vor.u32 %v4198_v0, %v3314_v1 }
  0x64   :  { %v3570_v6 = vld [vmem:[%s6540_s1 + $0x6d0] sm:$0xf0]  ;;  %1716 = vmatpush.bf16.msra.mxu1 %v2837_v56  ;;  %v4294_v7 = vld [vmem:[%s6540_s1 + $0x7c4] sm:$0xf]  ;;  %v3445_v10 = vor.u32 %v4230_v2, %v3442_v4 }
  0x65   :  { %1729 = vmatpush.bf16.msra.mxu2 %v2965_v57  ;;  %v3698_v8 = vld [vmem:[%s6540_s1 + $0x7d0] sm:$0xf0]  ;;  %v3573_v11 = vor.u32 %v4262_v5, %v3570_v6  ;;  %v4194_v12 = vld [vmem:[%s6540_s1 + $0x4a4] sm:$0xf] }
  0x66   :  { %1742 = vmatpush.bf16.msra.mxu3 %v3093_v60  ;;  %v3298_v13 = vld [vmem:[%s6540_s1 + $0x4b0] sm:$0xf0]  ;;  %v4226_v14 = vld [vmem:[%s6540_s1 + $0x5a4] sm:$0xf]  ;;  %v3701_v15 = vor.u32 %v4294_v7, %v3698_v8  ;;  %1704 = vmatmul.bf16.vlgmr.msra.gmra.mxu0 %v4784_v28 }
  0x67   :  { %1748 = vmatpush.bf16.msrb.mxu0 %v3333_v61  ;;  %v3426_v16 = vld [vmem:[%s6540_s1 + $0x5b0] sm:$0xf0]  ;;  %v4258_v17 = vld [vmem:[%s6540_s1 + $0x6a4] sm:$0xf]  ;;  %v3301_v21 = vor.u32 %v4194_v12, %v3298_v13  ;;  %1717 = vmatmul.bf16.vlgmr.msra.gmra.mxu1 %v4794_v34 }
  0x68   :  { %1761 = vmatpush.bf16.msrb.mxu1 %v3461_v62  ;;  %v3554_v18 = vld [vmem:[%s6540_s1 + $0x6b0] sm:$0xf0]  ;;  %1730 = vmatmul.bf16.vlgmr.msra.gmra.mxu2 %v4782_v27  ;;  %v4290_v19 = vld [vmem:[%s6540_s1 + $0x7a4] sm:$0xf]  ;;  %v3429_v22 = vor.u32 %v4226_v14, %v3426_v16 }
  0x69   :  { %1774 = vmatpush.bf16.msrb.mxu2 %v3589_v63  ;;  %v3682_v20 = vld [vmem:[%s6540_s1 + $0x7b0] sm:$0xf0]  ;;  %1743 = vmatmul.bf16.vlgmr.msra.gmra.mxu3 %v4786_v29  ;;  %v3557_v23 = vor.u32 %v4258_v17, %v3554_v18  ;;  %v4190_v24 = vld [vmem:[%s6540_s1 + $0x484] sm:$0xf] }
  0x6a   :  { %1787 = vmatpush.bf16.msrb.mxu3 %v3717_v3  ;;  %v3282_v26 = vld [vmem:[%s6540_s1 + $0x490] sm:$0xf0]  ;;  %v4222_v30 = vld [vmem:[%s6540_s1 + $0x584] sm:$0xf]  ;;  %v3685_v33 = vor.u32 %v4290_v19, %v3682_v20 }
  0x6b   :  { %1749 = vmatpush.bf16.msrb.mxu0 %v3317_v9  ;;  %v3410_v35 = vld [vmem:[%s6540_s1 + $0x590] sm:$0xf0]  ;;  %v4254_v36 = vld [vmem:[%s6540_s1 + $0x684] sm:$0xf]  ;;  %v3285_v41 = vor.u32 %v4190_v24, %v3282_v26  ;;  %v2824_v26 = vld [vmem:[%s6540_s1 + $0xe8] sm:$0xf] }
  0x6c   :  { %1762 = vmatpush.bf16.msrb.mxu1 %v3445_v10  ;;  %v3538_v37 = vld [vmem:[%s6540_s1 + $0x690] sm:$0xf0]  ;;  %v4286_v39 = vld [vmem:[%s6540_s1 + $0x784] sm:$0xf]  ;;  %v3413_v42 = vor.u32 %v4222_v30, %v3410_v35  ;;  %v4077_v30 = vld [vmem:[%s6540_s1 + $0xf4] sm:$0xf0] }
  0x6d   :  { %1775 = vmatpush.bf16.msrb.mxu2 %v3573_v11  ;;  %v3666_v40 = vld [vmem:[%s6540_s1 + $0x790] sm:$0xf0]  ;;  %v3541_v43 = vor.u32 %v4254_v36, %v3538_v37  ;;  %v4186_v44 = vld [vmem:[%s6540_s1 + $0x464] sm:$0xf]  ;;  %v4109_v36 = vld [vmem:[%s6540_s1 + $0x1f4] sm:$0xf0] }
  0x6e   :  { %1788 = vmatpush.bf16.msrb.mxu3 %v3701_v15  ;;  %v3266_v45 = vld [vmem:[%s6540_s1 + $0x470] sm:$0xf0]  ;;  %v4218_v46 = vld [vmem:[%s6540_s1 + $0x564] sm:$0xf]  ;;  %v3669_v47 = vor.u32 %v4286_v39, %v3666_v40  ;;  %v3080_v37 = vld [vmem:[%s6540_s1 + $0x2e8] sm:$0xf] }
  0x6f   :  { %1750 = vmatpush.bf16.msrb.mxu0 %v3301_v21  ;;  %v3394_v48 = vld [vmem:[%s6540_s1 + $0x570] sm:$0xf0]  ;;  %v4250_v49 = vld [vmem:[%s6540_s1 + $0x664] sm:$0xf]  ;;  %v3269_v53 = vor.u32 %v4186_v44, %v3266_v45  ;;  %v4141_v39 = vld [vmem:[%s6540_s1 + $0x2f4] sm:$0xf0]  ;;  %v2825_v45 = vor.u32 %v4077_v30, %v2824_v26 }
  0x70   :  { %1763 = vmatpush.bf16.msrb.mxu1 %v3429_v22  ;;  %v3522_v50 = vld [vmem:[%s6540_s1 + $0x670] sm:$0xf0]  ;;  %v4282_v51 = vld [vmem:[%s6540_s1 + $0x764] sm:$0xf]  ;;  %v3397_v54 = vor.u32 %v4218_v46, %v3394_v48  ;;  %v2808_v48 = vld [vmem:[%s6540_s1 + $0xc8] sm:$0xf] }
  0x71   :  { %1776 = vmatpush.bf16.msrb.mxu2 %v3557_v23  ;;  %v3650_v52 = vld [vmem:[%s6540_s1 + $0x770] sm:$0xf0]  ;;  %v3525_v55 = vor.u32 %v4250_v49, %v3522_v50  ;;  %v4182_v56 = vld [vmem:[%s6540_s1 + $0x444] sm:$0xf]  ;;  %v4073_v49 = vld [vmem:[%s6540_s1 + $0xd4] sm:$0xf0] }
  0x72   :  { %1789 = vmatpush.bf16.msrb.mxu3 %v3685_v33  ;;  %v3250_v57 = vld [vmem:[%s6540_s1 + $0x450] sm:$0xf0]  ;;  %v4214_v58 = vld [vmem:[%s6540_s1 + $0x544] sm:$0xf]  ;;  %v3653_v59 = vor.u32 %v4282_v51, %v3650_v52  ;;  %v2952_v33 = vld [vmem:[%s6540_s1 + $0x1e8] sm:$0xf] }
  0x73   :  { %1751 = vmatpush.bf16.msrb.mxu0 %v3285_v41  ;;  %v3378_v60 = vld [vmem:[%s6540_s1 + $0x550] sm:$0xf0]  ;;  %v4246_v61 = vld [vmem:[%s6540_s1 + $0x644] sm:$0xf]  ;;  %v3253_v1 = vor.u32 %v4182_v56, %v3250_v57  ;;  %v2953_v46 = vor.u32 %v4109_v36, %v2952_v33  ;;  %v2936_v50 = vld [vmem:[%s6540_s1 + $0x1c8] sm:$0xf]  ;;  %v2809_v57 = vor.u32 %v4073_v49, %v2808_v48 }
  0x74   :  { %1764 = vmatpush.bf16.msrb.mxu1 %v3413_v42  ;;  %v3506_v62 = vld [vmem:[%s6540_s1 + $0x650] sm:$0xf0]  ;;  %v4278_v63 = vld [vmem:[%s6540_s1 + $0x744] sm:$0xf]  ;;  %v3381_v2 = vor.u32 %v4214_v58, %v3378_v60  ;;  %v3208_v42 = vld [vmem:[%s6540_s1 + $0x3e8] sm:$0xf] }
  0x75   :  { %1777 = vmatpush.bf16.msrb.mxu2 %v3541_v43  ;;  %v3634_v0 = vld [vmem:[%s6540_s1 + $0x750] sm:$0xf0]  ;;  %v3509_v3 = vor.u32 %v4246_v61, %v3506_v62  ;;  %v4178_v4 = vld [vmem:[%s6540_s1 + $0x424] sm:$0xf]  ;;  %v4173_v43 = vld [vmem:[%s6540_s1 + $0x3f4] sm:$0xf0] }
  0x76   :  { %1790 = vmatpush.bf16.msrb.mxu3 %v3669_v47  ;;  %v3234_v5 = vld [vmem:[%s6540_s1 + $0x430] sm:$0xf0]  ;;  %v4210_v6 = vld [vmem:[%s6540_s1 + $0x524] sm:$0xf]  ;;  %v3637_v7 = vor.u32 %v4278_v63, %v3634_v0  ;;  %v3081_v47 = vor.u32 %v4141_v39, %v3080_v37  ;;  %v3209_v51 = vor.u32 %v4173_v43, %v3208_v42  ;;  %v4105_v52 = vld [vmem:[%s6540_s1 + $0x1d4] sm:$0xf0] }
  0x77   :  { %1752 = vmatpush.bf16.msrb.mxu0 %v3269_v53  ;;  %v3362_v8 = vld [vmem:[%s6540_s1 + $0x530] sm:$0xf0]  ;;  %v4242_v9 = vld [vmem:[%s6540_s1 + $0x624] sm:$0xf]  ;;  %v3237_v13 = vor.u32 %v4178_v4, %v3234_v5  ;;  %v3064_v53 = vld [vmem:[%s6540_s1 + $0x2c8] sm:$0xf]  ;;  %v2937_v58 = vor.u32 %v4105_v52, %v2936_v50 }
  0x78   :  { %1765 = vmatpush.bf16.msrb.mxu1 %v3397_v54  ;;  %v3490_v10 = vld [vmem:[%s6540_s1 + $0x630] sm:$0xf0]  ;;  %v4274_v11 = vld [vmem:[%s6540_s1 + $0x724] sm:$0xf]  ;;  %v3365_v16 = vor.u32 %v4210_v6, %v3362_v8  ;;  %v4137_v54 = vld [vmem:[%s6540_s1 + $0x2d4] sm:$0xf0] }
  0x79   :  { %1778 = vmatpush.bf16.msrb.mxu2 %v3525_v55  ;;  %v3618_v12 = vld [vmem:[%s6540_s1 + $0x730] sm:$0xf0]  ;;  %v4174_v14 = vld [vmem:[%s6540_s1 + $0x404] sm:$0xf]  ;;  %v3493_v17 = vor.u32 %v4242_v9, %v3490_v10  ;;  %v3192_v55 = vld [vmem:[%s6540_s1 + $0x3c8] sm:$0xf] }
  0x7a   :  { %1791 = vmatpush.bf16.msrb.mxu3 %v3653_v59  ;;  %v3218_v15 = vld [vmem:[%s6540_s1 + $0x410] sm:$0xf0]  ;;  %v4206_v18 = vld [vmem:[%s6540_s1 + $0x504] sm:$0xf]  ;;  %v3621_v21 = vor.u32 %v4274_v11, %v3618_v12  ;;  %v4169_v56 = vld [vmem:[%s6540_s1 + $0x3d4] sm:$0xf0]  ;;  %v3065_v59 = vor.u32 %v4137_v54, %v3064_v53 }
  0x7b   :  { %1753 = vmatpush.bf16.msrb.mxu0 %v3253_v1  ;;  %v3346_v19 = vld [vmem:[%s6540_s1 + $0x510] sm:$0xf0]  ;;  %v4238_v20 = vld [vmem:[%s6540_s1 + $0x604] sm:$0xf]  ;;  %v3221_v35 = vor.u32 %v4174_v14, %v3218_v15  ;;  %v2792_v60 = vld [vmem:[%s6540_s1 + $0xa8] sm:$0xf]  ;;  %v3193_v63 = vor.u32 %v4169_v56, %v3192_v55 }
  0x7c   :  { %1766 = vmatpush.bf16.msrb.mxu1 %v3381_v2  ;;  %v3474_v22 = vld [vmem:[%s6540_s1 + $0x610] sm:$0xf0]  ;;  %v4270_v23 = vld [vmem:[%s6540_s1 + $0x704] sm:$0xf]  ;;  %v3349_v40 = vor.u32 %v4206_v18, %v3346_v19  ;;  %v4069_v61 = vld [vmem:[%s6540_s1 + $0xb4] sm:$0xf0] }
  0x7d   :  { %1779 = vmatpush.bf16.msrb.mxu2 %v3509_v3  ;;  %v3602_v24 = vld [vmem:[%s6540_s1 + $0x710] sm:$0xf0]  ;;  %v3477_v41 = vor.u32 %v4238_v20, %v3474_v22  ;;  %v2920_v62 = vld [vmem:[%s6540_s1 + $0x1a8] sm:$0xf]  ;;  %v4101_v0 = vld [vmem:[%s6540_s1 + $0x1b4] sm:$0xf0]  ;;  %v2793_v4 = vor.u32 %v4069_v61, %v2792_v60 }
  0x7e   :  { %1792 = vmatpush.bf16.msrb.mxu3 %v3637_v7  ;;  %v3605_v44 = vor.u32 %v4270_v23, %v3602_v24  ;;  %v3048_v1 = vld [vmem:[%s6540_s1 + $0x2a8] sm:$0xf]  ;;  %v4133_v2 = vld [vmem:[%s6540_s1 + $0x2b4] sm:$0xf0]  ;;  %v2921_v5 = vor.u32 %v4101_v0, %v2920_v62 }
  0x7f   :  { %1754 = vmatpush.bf16.msrb.mxu0 %v3237_v13  ;;  %v3176_v3 = vld [vmem:[%s6540_s1 + $0x3a8] sm:$0xf]  ;;  %v3049_v6 = vor.u32 %v4133_v2, %v3048_v1  ;;  %v4065_v8 = vld [vmem:[%s6540_s1 + $0x94] sm:$0xf0] }
  0x80   :  { %1767 = vmatpush.bf16.msrb.mxu1 %v3365_v16  ;;  %v2776_v7 = vld [vmem:[%s6540_s1 + $0x88] sm:$0xf]  ;;  %v4129_v10 = vld [vmem:[%s6540_s1 + $0x294] sm:$0xf0] }
  0x81   :  { %1780 = vmatpush.bf16.msrb.mxu2 %v3493_v17  ;;  %v3032_v9 = vld [vmem:[%s6540_s1 + $0x288] sm:$0xf]  ;;  %v4161_v12 = vld [vmem:[%s6540_s1 + $0x394] sm:$0xf0]  ;;  %v2777_v13 = vor.u32 %v4065_v8, %v2776_v7 }
  0x82   :  { %1793 = vmatpush.bf16.msrb.mxu3 %v3621_v21  ;;  %v3160_v11 = vld [vmem:[%s6540_s1 + $0x388] sm:$0xf]  ;;  %v3033_v15 = vor.u32 %v4129_v10, %v3032_v9  ;;  %v4061_v17 = vld [vmem:[%s6540_s1 + $0x74] sm:$0xf0] }
  0x83   :  { %1755 = vmatpush.bf16.msrb.mxu0 %v3221_v35  ;;  %v2760_v16 = vld [vmem:[%s6540_s1 + $0x68] sm:$0xf]  ;;  %v3161_v19 = vor.u32 %v4161_v12, %v3160_v11  ;;  %v4093_v20 = vld [vmem:[%s6540_s1 + $0x174] sm:$0xf0] }
  0x84   :  { %1768 = vmatpush.bf16.msrb.mxu1 %v3349_v40  ;;  %v2888_v18 = vld [vmem:[%s6540_s1 + $0x168] sm:$0xf]  ;;  %v4125_v22 = vld [vmem:[%s6540_s1 + $0x274] sm:$0xf0]  ;;  %v2761_v26 = vor.u32 %v4061_v17, %v2760_v16 }
  0x85   :  { %1781 = vmatpush.bf16.msrb.mxu2 %v3477_v41  ;;  %v3016_v21 = vld [vmem:[%s6540_s1 + $0x268] sm:$0xf]  ;;  %v4157_v24 = vld [vmem:[%s6540_s1 + $0x374] sm:$0xf0]  ;;  %v2889_v30 = vor.u32 %v4093_v20, %v2888_v18 }
  0x86   :  { %1794 = vmatpush.bf16.msrb.mxu3 %v3605_v44  ;;  %1756 = vmatmul.bf16.vlgmr.msrb.gmra.mxu0 %v4916_v31  ;;  %v2904_v31 = vld [vmem:[%s6540_s1 + $0x188] sm:$0xf]  ;;  %v3017_v33 = vor.u32 %v4125_v22, %v3016_v21  ;;  %v4057_v36 = vld [vmem:[%s6540_s1 + $0x54] sm:$0xf0] }
  0x87   :  { %1800 = vmatpush.bf16.msra.mxu0 %v2825_v45  ;;  %1769 = vmatmul.bf16.vlgmr.msrb.gmra.mxu1 %v4926_v38  ;;  %v4097_v38 = vld [vmem:[%s6540_s1 + $0x194] sm:$0xf0]  ;;  %v3144_v23 = vld [vmem:[%s6540_s1 + $0x368] sm:$0xf] }
  0x88   :  { %1813 = vmatpush.bf16.msra.mxu1 %v2953_v46  ;;  %1782 = vmatmul.bf16.vlgmr.msrb.gmra.mxu2 %v4911_v25  ;;  %v4165_v25 = vld [vmem:[%s6540_s1 + $0x3b4] sm:$0xf0]  ;;  %v2905_v14 = vor.u32 %v4097_v38, %v2904_v31  ;;  %v2744_v35 = vld [vmem:[%s6540_s1 + $0x48] sm:$0xf]  ;;  %v3145_v39 = vor.u32 %v4157_v24, %v3144_v23 }
  0x89   :  { %1826 = vmatpush.bf16.msra.mxu2 %v3081_v47  ;;  %1795 = vmatmul.bf16.vlgmr.msrb.gmra.mxu3 %v4918_v32  ;;  %v3177_v32 = vor.u32 %v4165_v25, %v3176_v3  ;;  %v2872_v37 = vld [vmem:[%s6540_s1 + $0x148] sm:$0xf]  ;;  %v4089_v40 = vld [vmem:[%s6540_s1 + $0x154] sm:$0xf0]  ;;  %v2745_v45 = vor.u32 %v4057_v36, %v2744_v35 }
  0x8a   :  { %1839 = vmatpush.bf16.msra.mxu3 %v3209_v51  ;;  %v3000_v41 = vld [vmem:[%s6540_s1 + $0x248] sm:$0xf]  ;;  %v4121_v42 = vld [vmem:[%s6540_s1 + $0x254] sm:$0xf0]  ;;  %v2873_v46 = vor.u32 %v4089_v40, %v2872_v37 }
  0x8b   :  { %1801 = vmatpush.bf16.msra.mxu0 %v2809_v57  ;;  %v3128_v43 = vld [vmem:[%s6540_s1 + $0x348] sm:$0xf]  ;;  %v4153_v44 = vld [vmem:[%s6540_s1 + $0x354] sm:$0xf0]  ;;  %v3001_v47 = vor.u32 %v4121_v42, %v3000_v41 }
  0x8c   :  { %1814 = vmatpush.bf16.msra.mxu1 %v2937_v58  ;;  %v2728_v48 = vld [vmem:[%s6540_s1 + $0x28] sm:$0xf]  ;;  %v4053_v49 = vld [vmem:[%s6540_s1 + $0x34] sm:$0xf0]  ;;  %v3129_v51 = vor.u32 %v4153_v44, %v3128_v43 }
  0x8d   :  { %1827 = vmatpush.bf16.msra.mxu2 %v3065_v59  ;;  %v2856_v50 = vld [vmem:[%s6540_s1 + $0x128] sm:$0xf]  ;;  %v4085_v52 = vld [vmem:[%s6540_s1 + $0x134] sm:$0xf0]  ;;  %v2729_v57 = vor.u32 %v4053_v49, %v2728_v48 }
  0x8e   :  { %1840 = vmatpush.bf16.msra.mxu3 %v3193_v63  ;;  %v2984_v53 = vld [vmem:[%s6540_s1 + $0x228] sm:$0xf]  ;;  %v4117_v54 = vld [vmem:[%s6540_s1 + $0x234] sm:$0xf0]  ;;  %v2857_v60 = vor.u32 %v4085_v52, %v2856_v50 }
  0x8f   :  { %1802 = vmatpush.bf16.msra.mxu0 %v2793_v4  ;;  %v3112_v55 = vld [vmem:[%s6540_s1 + $0x328] sm:$0xf]  ;;  %v4149_v56 = vld [vmem:[%s6540_s1 + $0x334] sm:$0xf0]  ;;  %v2985_v61 = vor.u32 %v4117_v54, %v2984_v53 }
  0x90   :  { %1815 = vmatpush.bf16.msra.mxu1 %v2921_v5  ;;  %v2712_v58 = vld [vmem:[%s6540_s1 + $0x8] sm:$0xf]  ;;  %v4049_v59 = vld [vmem:[%s6540_s1 + $0x14] sm:$0xf0]  ;;  %v3113_v1 = vor.u32 %v4149_v56, %v3112_v55 }
  0x91   :  { %1828 = vmatpush.bf16.msra.mxu2 %v3049_v6  ;;  %v2840_v62 = vld [vmem:[%s6540_s1 + $0x108] sm:$0xf]  ;;  %v4081_v63 = vld [vmem:[%s6540_s1 + $0x114] sm:$0xf0]  ;;  %v2713_v7 = vor.u32 %v4049_v59, %v2712_v58 }
  0x92   :  { %1841 = vmatpush.bf16.msra.mxu3 %v3177_v32  ;;  %v2968_v0 = vld [vmem:[%s6540_s1 + $0x208] sm:$0xf]  ;;  %v4113_v2 = vld [vmem:[%s6540_s1 + $0x214] sm:$0xf0]  ;;  %v2841_v38 = vor.u32 %v4081_v63, %v2840_v62 }
  0x93   :  { %1803 = vmatpush.bf16.msra.mxu0 %v2777_v13  ;;  %v3096_v3 = vld [vmem:[%s6540_s1 + $0x308] sm:$0xf]  ;;  %v4145_v25 = vld [vmem:[%s6540_s1 + $0x314] sm:$0xf0]  ;;  %v2969_v9 = vor.u32 %v4113_v2, %v2968_v0 }
  0x94   :  { %1816 = vmatpush.bf16.msra.mxu1 %v2905_v14  ;;  %v3336_v4 = vld [vmem:[%s6540_s1 + $0x4e8] sm:$0xf]  ;;  %v4205_v5 = vld [vmem:[%s6540_s1 + $0x4f4] sm:$0xf0]  ;;  %v3097_v12 = vor.u32 %v4145_v25, %v3096_v3 }
  0x95   :  { %1829 = vmatpush.bf16.msra.mxu2 %v3033_v15  ;;  %v3464_v6 = vld [vmem:[%s6540_s1 + $0x5e8] sm:$0xf]  ;;  %v4237_v8 = vld [vmem:[%s6540_s1 + $0x5f4] sm:$0xf0]  ;;  %v3337_v13 = vor.u32 %v4205_v5, %v3336_v4 }
  0x96   :  { %1842 = vmatpush.bf16.msra.mxu3 %v3161_v19  ;;  %v3592_v31 = vld [vmem:[%s6540_s1 + $0x6e8] sm:$0xf]  ;;  %v4269_v32 = vld [vmem:[%s6540_s1 + $0x6f4] sm:$0xf0]  ;;  %v3465_v14 = vor.u32 %v4237_v8, %v3464_v6 }
  0x97   :  { %1804 = vmatpush.bf16.msra.mxu0 %v2761_v26  ;;  %v3720_v10 = vld [vmem:[%s6540_s1 + $0x7e8] sm:$0xf]  ;;  %v4301_v11 = vld [vmem:[%s6540_s1 + $0x7f4] sm:$0xf0]  ;;  %v3593_v15 = vor.u32 %v4269_v32, %v3592_v31  ;;  %v5604_v32 = vld [vmem:[%s6541_s2] sm:$0xf] }
  0x98   :  { %1817 = vmatpush.bf16.msra.mxu1 %v2889_v30  ;;  %v3320_v16 = vld [vmem:[%s6540_s1 + $0x4c8] sm:$0xf]  ;;  %v4201_v17 = vld [vmem:[%s6540_s1 + $0x4d4] sm:$0xf0]  ;;  %v3721_v19 = vor.u32 %v4301_v11, %v3720_v10 }
  0x99   :  { %1830 = vmatpush.bf16.msra.mxu2 %v3017_v33  ;;  %v3448_v18 = vld [vmem:[%s6540_s1 + $0x5c8] sm:$0xf]  ;;  %v4233_v20 = vld [vmem:[%s6540_s1 + $0x5d4] sm:$0xf0]  ;;  %v3321_v26 = vor.u32 %v4201_v17, %v3320_v16  ;;  %v286_v16 = vperm.slane %v5604_v32, 0 }
  0x9a   :  { %1843 = vmatpush.bf16.msra.mxu3 %v3145_v39  ;;  %v3576_v21 = vld [vmem:[%s6540_s1 + $0x6c8] sm:$0xf]  ;;  %v4265_v22 = vld [vmem:[%s6540_s1 + $0x6d4] sm:$0xf0]  ;;  %v3449_v30 = vor.u32 %v4233_v20, %v3448_v18 }
  0x9b   :  { %1805 = vmatpush.bf16.msra.mxu0 %v2745_v45  ;;  %v3704_v23 = vld [vmem:[%s6540_s1 + $0x7c8] sm:$0xf]  ;;  %v4297_v24 = vld [vmem:[%s6540_s1 + $0x7d4] sm:$0xf0]  ;;  %v3577_v33 = vor.u32 %v4265_v22, %v3576_v21 }
  0x9c   :  { %1818 = vmatpush.bf16.msra.mxu1 %v2873_v46  ;;  %v3304_v35 = vld [vmem:[%s6540_s1 + $0x4a8] sm:$0xf]  ;;  %v4197_v36 = vld [vmem:[%s6540_s1 + $0x4b4] sm:$0xf0]  ;;  %v3705_v39 = vor.u32 %v4297_v24, %v3704_v23 }
  0x9d   :  { %1831 = vmatpush.bf16.msra.mxu2 %v3001_v47  ;;  %v3432_v37 = vld [vmem:[%s6540_s1 + $0x5a8] sm:$0xf]  ;;  %v4229_v40 = vld [vmem:[%s6540_s1 + $0x5b4] sm:$0xf0]  ;;  %v3305_v45 = vor.u32 %v4197_v36, %v3304_v35 }
  0x9e   :  { %1844 = vmatpush.bf16.msra.mxu3 %v3129_v51  ;;  %v3560_v41 = vld [vmem:[%s6540_s1 + $0x6a8] sm:$0xf]  ;;  %v4261_v42 = vld [vmem:[%s6540_s1 + $0x6b4] sm:$0xf0]  ;;  %v3433_v46 = vor.u32 %v4229_v40, %v3432_v37 }
  0x9f   :  { %1806 = vmatpush.bf16.msra.mxu0 %v2729_v57  ;;  %v3688_v43 = vld [vmem:[%s6540_s1 + $0x7a8] sm:$0xf]  ;;  %v4293_v44 = vld [vmem:[%s6540_s1 + $0x7b4] sm:$0xf0] }
  0xa0   :  { %1819 = vmatpush.bf16.msra.mxu1 %v2857_v60  ;;  %v3288_v47 = vld [vmem:[%s6540_s1 + $0x488] sm:$0xf]  ;;  %v4193_v48 = vld [vmem:[%s6540_s1 + $0x494] sm:$0xf0] }
  0xa1   :  { %1832 = vmatpush.bf16.msra.mxu2 %v2985_v61  ;;  %v3544_v49 = vld [vmem:[%s6540_s1 + $0x688] sm:$0xf]  ;;  %v4257_v50 = vld [vmem:[%s6540_s1 + $0x694] sm:$0xf0]  ;;  %v3289_v53 = vor.u32 %v4193_v48, %v3288_v47  ;;  %v4107_v47 = vld [vmem:[%s6540_s1 + $0x1ec] sm:$0xf] }
  0xa2   :  { %1845 = vmatpush.bf16.msra.mxu3 %v3113_v1  ;;  %v3672_v51 = vld [vmem:[%s6540_s1 + $0x788] sm:$0xf]  ;;  %v4289_v52 = vld [vmem:[%s6540_s1 + $0x794] sm:$0xf0]  ;;  %v3545_v55 = vor.u32 %v4257_v50, %v3544_v49  ;;  %v3082_v49 = vld [vmem:[%s6540_s1 + $0x2f8] sm:$0xf0] }
  0xa3   :  { %1807 = vmatpush.bf16.msra.mxu0 %v2713_v7  ;;  %v3272_v56 = vld [vmem:[%s6540_s1 + $0x468] sm:$0xf]  ;;  %v4189_v57 = vld [vmem:[%s6540_s1 + $0x474] sm:$0xf0]  ;;  %v3673_v59 = vor.u32 %v4289_v52, %v3672_v51  ;;  %v4171_v52 = vld [vmem:[%s6540_s1 + $0x3ec] sm:$0xf] }
  0xa4   :  { %1820 = vmatpush.bf16.msra.mxu1 %v2841_v38  ;;  %v3400_v58 = vld [vmem:[%s6540_s1 + $0x568] sm:$0xf]  ;;  %v4221_v60 = vld [vmem:[%s6540_s1 + $0x574] sm:$0xf0]  ;;  %v3273_v1 = vor.u32 %v4189_v57, %v3272_v56 }
  0xa5   :  { %1833 = vmatpush.bf16.msra.mxu2 %v2969_v9  ;;  %v3528_v61 = vld [vmem:[%s6540_s1 + $0x668] sm:$0xf]  ;;  %v4253_v62 = vld [vmem:[%s6540_s1 + $0x674] sm:$0xf0]  ;;  %v3401_v3 = vor.u32 %v4221_v60, %v3400_v58 }
  0xa6   :  { %1846 = vmatpush.bf16.msra.mxu3 %v3097_v12  ;;  %1808 = vmatmul.bf16.vlgmr.msra.gmra.mxu0 %v4784_v28  ;;  %v3416_v28 = vld [vmem:[%s6540_s1 + $0x588] sm:$0xf]  ;;  %v4285_v0 = vld [vmem:[%s6540_s1 + $0x774] sm:$0xf0]  ;;  %v3529_v25 = vor.u32 %v4253_v62, %v3528_v61  ;;  %v4071_v61 = vld [vmem:[%s6540_s1 + $0xcc] sm:$0xf] }
  0xa7   :  { %1852 = vmatpush.bf16.msrb.mxu0 %v3337_v13  ;;  %1821 = vmatmul.bf16.vlgmr.msra.gmra.mxu1 %v4794_v34  ;;  %v4225_v34 = vld [vmem:[%s6540_s1 + $0x594] sm:$0xf0]  ;;  %v3656_v63 = vld [vmem:[%s6540_s1 + $0x768] sm:$0xf]  ;;  %v2810_v62 = vld [vmem:[%s6540_s1 + $0xd8] sm:$0xf0] }
  0xa8   :  { %1865 = vmatpush.bf16.msrb.mxu1 %v3465_v14  ;;  %1834 = vmatmul.bf16.vlgmr.msra.gmra.mxu2 %v4782_v27  ;;  %v3561_v27 = vor.u32 %v4261_v42, %v3560_v41  ;;  %v3417_v54 = vor.u32 %v4225_v34, %v3416_v28  ;;  %v3256_v2 = vld [vmem:[%s6540_s1 + $0x448] sm:$0xf]  ;;  %v4185_v4 = vld [vmem:[%s6540_s1 + $0x454] sm:$0xf0]  ;;  %v3657_v7 = vor.u32 %v4285_v0, %v3656_v63  ;;  %v4139_v34 = vld [vmem:[%s6540_s1 + $0x2ec] sm:$0xf] }
  0xa9   :  { %1878 = vmatpush.bf16.msrb.mxu2 %v3593_v15  ;;  %1847 = vmatmul.bf16.vlgmr.msra.gmra.mxu3 %v4786_v29  ;;  %v3689_v29 = vor.u32 %v4293_v44, %v3688_v43  ;;  %v3384_v5 = vld [vmem:[%s6540_s1 + $0x548] sm:$0xf]  ;;  %v4217_v6 = vld [vmem:[%s6540_s1 + $0x554] sm:$0xf0]  ;;  %v3257_v10 = vor.u32 %v4185_v4, %v3256_v2  ;;  %v3085_v60 = vor.u32 %v4139_v34, %v3082_v49  ;;  %v4103_v63 = vld [vmem:[%s6540_s1 + $0x1cc] sm:$0xf] }
  0xaa   :  { %1891 = vmatpush.bf16.msrb.mxu3 %v3721_v19  ;;  %v3512_v8 = vld [vmem:[%s6540_s1 + $0x648] sm:$0xf]  ;;  %v4249_v31 = vld [vmem:[%s6540_s1 + $0x654] sm:$0xf0]  ;;  %v3385_v12 = vor.u32 %v4217_v6, %v3384_v5  ;;  %v4135_v2 = vld [vmem:[%s6540_s1 + $0x2cc] sm:$0xf] }
  0xab   :  { %1853 = vmatpush.bf16.msrb.mxu0 %v3321_v26  ;;  %v3640_v38 = vld [vmem:[%s6540_s1 + $0x748] sm:$0xf]  ;;  %v4281_v9 = vld [vmem:[%s6540_s1 + $0x754] sm:$0xf0]  ;;  %v3513_v13 = vor.u32 %v4249_v31, %v3512_v8  ;;  %v4167_v5 = vld [vmem:[%s6540_s1 + $0x3cc] sm:$0xf]  ;;  %v2813_v8 = vor.u32 %v4071_v61, %v2810_v62 }
  0xac   :  { %1866 = vmatpush.bf16.msrb.mxu1 %v3449_v30  ;;  %v3240_v11 = vld [vmem:[%s6540_s1 + $0x428] sm:$0xf]  ;;  %v4181_v14 = vld [vmem:[%s6540_s1 + $0x434] sm:$0xf0]  ;;  %v3641_v17 = vor.u32 %v4281_v9, %v3640_v38  ;;  %v3194_v6 = vld [vmem:[%s6540_s1 + $0x3d8] sm:$0xf0] }
  0xad   :  { %1879 = vmatpush.bf16.msrb.mxu2 %v3577_v33  ;;  %v3368_v15 = vld [vmem:[%s6540_s1 + $0x528] sm:$0xf]  ;;  %v4213_v18 = vld [vmem:[%s6540_s1 + $0x534] sm:$0xf0]  ;;  %v3241_v23 = vor.u32 %v4181_v14, %v3240_v11  ;;  %v4067_v9 = vld [vmem:[%s6540_s1 + $0xac] sm:$0xf] }
  0xae   :  { %1892 = vmatpush.bf16.msrb.mxu3 %v3705_v39  ;;  %v3496_v19 = vld [vmem:[%s6540_s1 + $0x628] sm:$0xf]  ;;  %v4245_v20 = vld [vmem:[%s6540_s1 + $0x634] sm:$0xf0]  ;;  %v3369_v33 = vor.u32 %v4213_v18, %v3368_v15  ;;  %v4099_v11 = vld [vmem:[%s6540_s1 + $0x1ac] sm:$0xf] }
  0xaf   :  { %1854 = vmatpush.bf16.msrb.mxu0 %v3305_v45  ;;  %v3624_v21 = vld [vmem:[%s6540_s1 + $0x728] sm:$0xf]  ;;  %v4277_v22 = vld [vmem:[%s6540_s1 + $0x734] sm:$0xf0]  ;;  %v3497_v35 = vor.u32 %v4245_v20, %v3496_v19  ;;  %v2922_v14 = vld [vmem:[%s6540_s1 + $0x1b8] sm:$0xf0] }
  0xb0   :  { %1867 = vmatpush.bf16.msrb.mxu1 %v3433_v46  ;;  %v3224_v24 = vld [vmem:[%s6540_s1 + $0x408] sm:$0xf]  ;;  %v4177_v26 = vld [vmem:[%s6540_s1 + $0x414] sm:$0xf0]  ;;  %v3625_v42 = vor.u32 %v4277_v22, %v3624_v21  ;;  %v4075_v46 = vld [vmem:[%s6540_s1 + $0xec] sm:$0xf] }
  0xb1   :  { %1880 = vmatpush.bf16.msrb.mxu2 %v3561_v27  ;;  %v3352_v36 = vld [vmem:[%s6540_s1 + $0x508] sm:$0xf]  ;;  %v4209_v37 = vld [vmem:[%s6540_s1 + $0x514] sm:$0xf0]  ;;  %v2826_v27 = vld [vmem:[%s6540_s1 + $0xf8] sm:$0xf0]  ;;  %v3225_v28 = vor.u32 %v4177_v26, %v3224_v24  ;;  %v2925_v26 = vor.u32 %v4099_v11, %v2922_v14 }
  0xb2   :  { %1893 = vmatpush.bf16.msrb.mxu3 %v3689_v29  ;;  %v3480_v39 = vld [vmem:[%s6540_s1 + $0x608] sm:$0xf]  ;;  %v4241_v43 = vld [vmem:[%s6540_s1 + $0x614] sm:$0xf0]  ;;  %v2954_v29 = vld [vmem:[%s6540_s1 + $0x1f8] sm:$0xf0]  ;;  %v3353_v50 = vor.u32 %v4209_v37, %v3352_v36  ;;  %v2829_v56 = vor.u32 %v4075_v46, %v2826_v27 }
  0xb3   :  { %1855 = vmatpush.bf16.msrb.mxu0 %v3289_v53  ;;  %v3608_v44 = vld [vmem:[%s6540_s1 + $0x708] sm:$0xf]  ;;  %v4273_v45 = vld [vmem:[%s6540_s1 + $0x714] sm:$0xf0]  ;;  %v3481_v51 = vor.u32 %v4241_v43, %v3480_v39  ;;  %v3210_v53 = vld [vmem:[%s6540_s1 + $0x3f8] sm:$0xf0] }
  0xb4   :  { %1868 = vmatpush.bf16.msrb.mxu1 %v3417_v54  ;;  %v1614_v41 = vpop.f32.mrf.mxu1  ;;  %v3213_v0 = vor.u32 %v4171_v52, %v3210_v53  ;;  %v4131_v15 = vld [vmem:[%s6540_s1 + $0x2ac] sm:$0xf]  ;;  %v5733_v18 = vld [vmem:[#allocation1 + $0x3f] sm:$0xff] }
  0xb5   :  { %1881 = vmatpush.bf16.msrb.mxu2 %v3545_v55  ;;  %v1601_v30 = vpop.f32.mrf.mxu0  ;;  %v3609_v55 = vor.u32 %v4273_v45, %v3608_v44  ;;  %v4163_v19 = vld [vmem:[%s6540_s1 + $0x3ac] sm:$0xf]  ;;  %v3178_v20 = vld [vmem:[%s6540_s1 + $0x3b8] sm:$0xf0] }
  0xb6   :  { %1894 = vmatpush.bf16.msrb.mxu3 %v3673_v59  ;;  %v1602_v40 = vadd.f32 %v1601_v30, %v286_v16  ;;  %v2957_v59 = vor.u32 %v4107_v47, %v2954_v29  ;;  %v3050_v16 = vld [vmem:[%s6540_s1 + $0x2b8] sm:$0xf0]  ;;  %v5742_v22 = vld [vmem:[#allocation1 + $0x2d] sm:$0xff]  ;;  %v3181_v37 = vor.u32 %v4163_v19, %v3178_v20 }
  0xb7   :  { %1856 = vmatpush.bf16.msrb.mxu0 %v3273_v1  ;;  %v2938_v1 = vld [vmem:[%s6540_s1 + $0x1d8] sm:$0xf0]  ;;  %v3053_v30 = vor.u32 %v4131_v15, %v3050_v16  ;;  %v4095_v36 = vld [vmem:[%s6540_s1 + $0x18c] sm:$0xf] }
  0xb8   :  { %1869 = vmatpush.bf16.msrb.mxu1 %v3401_v3  ;;  %v1615_v48 = vadd.f32 %v1614_v41, %v1602_v40  ;;  %v3066_v3 = vld [vmem:[%s6540_s1 + $0x2d8] sm:$0xf0]  ;;  %v2941_v31 = vor.u32 %v4103_v63, %v2938_v1  ;;  %v4127_v40 = vld [vmem:[%s6540_s1 + $0x28c] sm:$0xf] }
  0xb9   :  { %1882 = vmatpush.bf16.msrb.mxu2 %v3529_v25  ;;  %v3069_v38 = vor.u32 %v4135_v2, %v3066_v3  ;;  %v2906_v39 = vld [vmem:[%s6540_s1 + $0x198] sm:$0xf0]  ;;  %v4059_v47 = vld [vmem:[%s6540_s1 + $0x6c] sm:$0xf] }
  0xba   :  { %1895 = vmatpush.bf16.msrb.mxu3 %v3657_v7  ;;  %v1627_v54 = vpop.f32.mrf.mxu2  ;;  %v3034_v41 = vld [vmem:[%s6540_s1 + $0x298] sm:$0xf0]  ;;  %v2909_v46 = vor.u32 %v4095_v36, %v2906_v39  ;;  %v4155_v53 = vld [vmem:[%s6540_s1 + $0x36c] sm:$0xf] }
  0xbb   :  { %1857 = vmatpush.bf16.msrb.mxu0 %v3257_v10  ;;  %v1628_v57 = vadd.f32 %v1627_v54, %v1615_v48  ;;  %v2794_v10 = vld [vmem:[%s6540_s1 + $0xb8] sm:$0xf0]  ;;  %v3037_v27 = vor.u32 %v4127_v40, %v3034_v41  ;;  %v4087_v61 = vld [vmem:[%s6540_s1 + $0x14c] sm:$0xf] }
  0xbc   :  { %1870 = vmatpush.bf16.msrb.mxu1 %v3385_v12  ;;  %v1640_v58 = vpop.f32.mrf.mxu3  ;;  %v1616_v7 = vpop.f32.mrf.mxu1  ;;  %v5718_v12 = vld [vmem:[#allocation1 + $0x36] sm:$0xff]  ;;  %v4119_v1 = vld [vmem:[%s6540_s1 + $0x24c] sm:$0xf] }
  0xbd   :  { %1883 = vmatpush.bf16.msrb.mxu2 %v3513_v13  ;;  %v1641_v25 = vadd.f32 %v1640_v58, %v1628_v57  ;;  %v1603_v4 = vpop.f32.mrf.mxu0  ;;  %v3197_v13 = vor.u32 %v4167_v5, %v3194_v6  ;;  %v3162_v43 = vld [vmem:[%s6540_s1 + $0x398] sm:$0xf0]  ;;  %v4083_v11 = vld [vmem:[%s6540_s1 + $0x12c] sm:$0xf] }
  0xbe   :  { %1896 = vmatpush.bf16.msrb.mxu3 %v3641_v17  ;;  %v5730_v17 = vld [vmem:[#allocation1 + $0x24] sm:$0xff]  ;;  %v2762_v48 = vld [vmem:[%s6540_s1 + $0x78] sm:$0xf0]  ;;  %v4151_v4 = vld [vmem:[%s6540_s1 + $0x34c] sm:$0xf] }
  0xbf   :  { %1858 = vmatpush.bf16.msrb.mxu0 %v3241_v23  ;;  %v2797_v23 = vor.u32 %v4067_v9, %v2794_v10  ;;  %v3018_v52 = vld [vmem:[%s6540_s1 + $0x278] sm:$0xf0]  ;;  %v4051_v9 = vld [vmem:[%s6540_s1 + $0x2c] sm:$0xf] }
  0xc0   :  { %1871 = vmatpush.bf16.msrb.mxu1 %v3369_v33  ;;  %v4063_v33 = vld [vmem:[%s6540_s1 + $0x8c] sm:$0xf]  ;;  %v3146_v54 = vld [vmem:[%s6540_s1 + $0x378] sm:$0xf0] }
  0xc1   :  { %1884 = vmatpush.bf16.msrb.mxu2 %v3497_v35  ;;  %v2778_v35 = vld [vmem:[%s6540_s1 + $0x98] sm:$0xf0]  ;;  %v3149_v63 = vor.u32 %v4155_v53, %v3146_v54  ;;  %v4115_v16 = vld [vmem:[%s6540_s1 + $0x22c] sm:$0xf] }
  0xc2   :  { %1897 = vmatpush.bf16.msrb.mxu3 %v3625_v42  ;;  %v1629_v21 = vpop.f32.mrf.mxu2  ;;  %v4159_v42 = vld [vmem:[%s6540_s1 + $0x38c] sm:$0xf]  ;;  %v2781_v44 = vor.u32 %v4063_v33, %v2778_v35  ;;  %v3002_v2 = vld [vmem:[%s6540_s1 + $0x258] sm:$0xf0] }
  0xc3   :  { %1859 = vmatpush.bf16.msrb.mxu0 %v3225_v28  ;;  %v4091_v28 = vld [vmem:[%s6540_s1 + $0x16c] sm:$0xf]  ;;  %v3165_v49 = vor.u32 %v4159_v42, %v3162_v43  ;;  %v3130_v5 = vld [vmem:[%s6540_s1 + $0x358] sm:$0xf0] }
  0xc4   :  { %1872 = vmatpush.bf16.msrb.mxu1 %v3353_v50  ;;  %v1642_v24 = vpop.f32.mrf.mxu3  ;;  %v1666_v34 = vpop.f32.mrf.mxu1  ;;  %v2890_v50 = vld [vmem:[%s6540_s1 + $0x178] sm:$0xf0]  ;;  %v3133_v14 = vor.u32 %v4151_v4, %v3130_v5  ;;  %v4147_v20 = vld [vmem:[%s6540_s1 + $0x32c] sm:$0xf] }
  0xc5   :  { %1885 = vmatpush.bf16.msrb.mxu2 %v3481_v51  ;;  %v4123_v51 = vld [vmem:[%s6540_s1 + $0x26c] sm:$0xf]  ;;  %v2893_v57 = vor.u32 %v4091_v28, %v2890_v50  ;;  %v2730_v10 = vld [vmem:[%s6540_s1 + $0x38] sm:$0xf0] }
  0xc6   :  { %1898 = vmatpush.bf16.msrb.mxu3 %v3609_v55  ;;  %1860 = vmatmul.bf16.vlgmr.msrb.gmra.mxu0 %v5730_v17  ;;  %v1653_v45 = vpop.f32.mrf.mxu0  ;;  %v3021_v58 = vor.u32 %v4123_v51, %v3018_v52  ;;  %v2858_v15 = vld [vmem:[%s6540_s1 + $0x138] sm:$0xf0]  ;;  %v4047_v24 = vld [vmem:[%s6540_s1 + $0xc] sm:$0xf] }
  0xc7   :  { %1904 = vmatpush.bf16.msra.mxu0 %v2829_v56  ;;  %1873 = vmatmul.bf16.vlgmr.msrb.gmra.mxu1 %v5742_v22  ;;  %v1654_v29 = vadd.f32 %v1653_v45, %v1641_v25  ;;  %v2765_v56 = vor.u32 %v4059_v47, %v2762_v48  ;;  %v2986_v19 = vld [vmem:[%s6540_s1 + $0x238] sm:$0xf0]  ;;  %v4079_v35 = vld [vmem:[%s6540_s1 + $0x10c] sm:$0xf] }
  0xc8   :  { %1917 = vmatpush.bf16.msra.mxu1 %v2957_v59  ;;  %1886 = vmatmul.bf16.vlgmr.msrb.gmra.mxu2 %v5718_v12  ;;  %v4055_v59 = vld [vmem:[%s6540_s1 + $0x4c] sm:$0xf]  ;;  %v3114_v21 = vld [vmem:[%s6540_s1 + $0x338] sm:$0xf0]  ;;  %v2989_v33 = vor.u32 %v4115_v16, %v2986_v19 }
  0xc9   :  { %1930 = vmatpush.bf16.msra.mxu2 %v3085_v60  ;;  %1899 = vmatmul.bf16.vlgmr.msrb.gmra.mxu3 %v5733_v18  ;;  %v1667_v55 = vadd.f32 %v1666_v34, %v1654_v29  ;;  %v2746_v60 = vld [vmem:[%s6540_s1 + $0x58] sm:$0xf0]  ;;  %v3117_v40 = vor.u32 %v4147_v20, %v3114_v21  ;;  %v4143_v42 = vld [vmem:[%s6540_s1 + $0x30c] sm:$0xf] }
  0xca   :  { %1943 = vmatpush.bf16.msra.mxu3 %v3213_v0  ;;  %v2874_v0 = vld [vmem:[%s6540_s1 + $0x158] sm:$0xf0]  ;;  %v2749_v6 = vor.u32 %v4055_v59, %v2746_v60  ;;  %v4203_v45 = vld [vmem:[%s6540_s1 + $0x4ec] sm:$0xf] }
  0xcb   :  { %1905 = vmatpush.bf16.msra.mxu0 %v2813_v8  ;;  %v1679_v62 = vpop.f32.mrf.mxu2  ;;  %v2842_v36 = vld [vmem:[%s6540_s1 + $0x118] sm:$0xf0]  ;;  %v4267_v28 = vld [vmem:[%s6540_s1 + $0x6ec] sm:$0xf] }
  0xcc   :  { %1918 = vmatpush.bf16.msra.mxu1 %v2941_v31  ;;  %v1680_v3 = vadd.f32 %v1679_v62, %v1667_v55  ;;  %v2877_v31 = vor.u32 %v4087_v61, %v2874_v0  ;;  %v2970_v41 = vld [vmem:[%s6540_s1 + $0x218] sm:$0xf0]  ;;  %v2845_v34 = vor.u32 %v4079_v35, %v2842_v36  ;;  %v4299_v50 = vld [vmem:[%s6540_s1 + $0x7ec] sm:$0xf] }
  0xcd   :  { %1931 = vmatpush.bf16.msra.mxu2 %v3069_v38  ;;  %v3005_v38 = vor.u32 %v4119_v1, %v3002_v2  ;;  %v3098_v43 = vld [vmem:[%s6540_s1 + $0x318] sm:$0xf0]  ;;  %v4263_v61 = vld [vmem:[%s6540_s1 + $0x6cc] sm:$0xf] }
  0xce   :  { %1944 = vmatpush.bf16.msra.mxu3 %v3197_v13  ;;  %v1692_v25 = vpop.f32.mrf.mxu3  ;;  %v1655_v8 = vpop.f32.mrf.mxu0  ;;  %v3466_v48 = vld [vmem:[%s6540_s1 + $0x5f8] sm:$0xf0]  ;;  %v3101_v52 = vor.u32 %v4143_v42, %v3098_v43  ;;  %v4227_v5 = vld [vmem:[%s6540_s1 + $0x5ac] sm:$0xf] }
  0xcf   :  { %1906 = vmatpush.bf16.msra.mxu0 %v2797_v23  ;;  %v5817_v7 = vadd.f32 %v1692_v25, %v1680_v3  ;;  %v1668_v13 = vpop.f32.mrf.mxu1  ;;  %v2733_v23 = vor.u32 %v4051_v9, %v2730_v10  ;;  %v3594_v29 = vld [vmem:[%s6540_s1 + $0x6f8] sm:$0xf0]  ;;  %v4195_v25 = vld [vmem:[%s6540_s1 + $0x4ac] sm:$0xf]  ;;  %v4392_v8 = vld [vmem:[#allocation1 + $0x12] sm:$0xff] }
  0xd0   :  { %1919 = vmatpush.bf16.msra.mxu1 %v2925_v26  ;;  %v2714_v26 = vld [vmem:[%s6540_s1 + $0x18] sm:$0xf0]  ;;  %v3597_v55 = vor.u32 %v4267_v28, %v3594_v29  ;;  %v4291_v10 = vld [vmem:[%s6540_s1 + $0x7ac] sm:$0xf]  ;;  %v4393_v13 = vld [vmem:[#allocation1] sm:$0xff] }
  0xd1   :  { %1932 = vmatpush.bf16.msra.mxu2 %v3053_v30  ;;  %v2861_v30 = vor.u32 %v4083_v11, %v2858_v15  ;;  %v2717_v47 = vor.u32 %v4047_v24, %v2714_v26  ;;  %v3722_v51 = vld [vmem:[%s6540_s1 + $0x7f8] sm:$0xf0]  ;;  %v4395_v16 = vld [vmem:[#allocation1 + $0x9] sm:$0xff] }
  0xd2   :  { %1945 = vmatpush.bf16.msra.mxu3 %v3181_v37  ;;  %v4111_v37 = vld [vmem:[%s6540_s1 + $0x20c] sm:$0xf]  ;;  %v3725_v59 = vor.u32 %v4299_v50, %v3722_v51  ;;  %v3450_v60 = vld [vmem:[%s6540_s1 + $0x5d8] sm:$0xf0] }
  0xd3   :  { %1907 = vmatpush.bf16.msra.mxu0 %v2781_v44  ;;  %v1681_v39 = vpop.f32.mrf.mxu2  ;;  %v3578_v62 = vld [vmem:[%s6540_s1 + $0x6d8] sm:$0xf0]  ;;  %v4191_v21 = vld [vmem:[%s6540_s1 + $0x48c] sm:$0xf] }
  0xd4   :  { %1920 = vmatpush.bf16.msra.mxu1 %v2909_v46  ;;  %v3338_v46 = vld [vmem:[%s6540_s1 + $0x4f8] sm:$0xf0]  ;;  %v3581_v3 = vor.u32 %v4263_v61, %v3578_v62  ;;  %v4223_v24 = vld [vmem:[%s6540_s1 + $0x58c] sm:$0xf] }
  0xd5   :  { %1933 = vmatpush.bf16.msra.mxu2 %v3037_v27  ;;  %v4235_v27 = vld [vmem:[%s6540_s1 + $0x5ec] sm:$0xf]  ;;  %v3341_v53 = vor.u32 %v4203_v45, %v3338_v46  ;;  %v3706_v0 = vld [vmem:[%s6540_s1 + $0x7d8] sm:$0xf0] }
  0xd6   :  { %1946 = vmatpush.bf16.msra.mxu3 %v3165_v49  ;;  %v1694_v44 = vpop.f32.mrf.mxu3  ;;  %v2973_v49 = vor.u32 %v4111_v37, %v2970_v41  ;;  %v3469_v54 = vor.u32 %v4235_v27, %v3466_v48  ;;  %v3306_v4 = vld [vmem:[%s6540_s1 + $0x4b8] sm:$0xf0]  ;;  %v4287_v36 = vld [vmem:[%s6540_s1 + $0x78c] sm:$0xf] }
  0xd7   :  { %1908 = vmatpush.bf16.msra.mxu0 %v2765_v56  ;;  %v4199_v56 = vld [vmem:[%s6540_s1 + $0x4cc] sm:$0xf]  ;;  %v3562_v9 = vld [vmem:[%s6540_s1 + $0x6b8] sm:$0xf0]  ;;  %v3309_v15 = vor.u32 %v4195_v25, %v3306_v4 }
  0xd8   :  { %1921 = vmatpush.bf16.msra.mxu1 %v2893_v57  ;;  %v3322_v57 = vld [vmem:[%s6540_s1 + $0x4d8] sm:$0xf0]  ;;  %v4187_v43 = vld [vmem:[%s6540_s1 + $0x46c] sm:$0xf] }
  0xd9   :  { %1934 = vmatpush.bf16.msra.mxu2 %v3021_v58  ;;  %v4231_v58 = vld [vmem:[%s6540_s1 + $0x5cc] sm:$0xf]  ;;  %v3325_v1 = vor.u32 %v4199_v56, %v3322_v57  ;;  %v3690_v11 = vld [vmem:[%s6540_s1 + $0x7b8] sm:$0xf0] }
  0xda   :  { %1947 = vmatpush.bf16.msra.mxu3 %v3149_v63  ;;  %v4295_v63 = vld [vmem:[%s6540_s1 + $0x7cc] sm:$0xf]  ;;  %v3453_v2 = vor.u32 %v4231_v58, %v3450_v60  ;;  %v3693_v26 = vor.u32 %v4291_v10, %v3690_v11  ;;  %v3546_v35 = vld [vmem:[%s6540_s1 + $0x698] sm:$0xf0]  ;;  %v287_v11 = vperm.slane %v5604_v32, 1 }
  0xdb   :  { %1909 = vmatpush.bf16.msra.mxu0 %v2749_v6  ;;  %v3709_v6 = vor.u32 %v4295_v63, %v3706_v0  ;;  %v3674_v37 = vld [vmem:[%s6540_s1 + $0x798] sm:$0xf0]  ;;  %v4219_v45 = vld [vmem:[%s6540_s1 + $0x56c] sm:$0xf] }
  0xdc   :  { %1922 = vmatpush.bf16.msra.mxu1 %v2877_v31  ;;  %v3434_v31 = vld [vmem:[%s6540_s1 + $0x5b8] sm:$0xf0]  ;;  %v3677_v27 = vor.u32 %v4287_v36, %v3674_v37  ;;  %v4251_v48 = vld [vmem:[%s6540_s1 + $0x66c] sm:$0xf]  ;;  %v3784_v36 = vld [vmem:[%s6542_s3 + $0x70] sm:$0xf] }
  0xdd   :  { %1935 = vmatpush.bf16.msra.mxu2 %v3005_v38  ;;  %v4259_v38 = vld [vmem:[%s6540_s1 + $0x6ac] sm:$0xf]  ;;  %v3437_v19 = vor.u32 %v4227_v5, %v3434_v31  ;;  %v3274_v44 = vld [vmem:[%s6540_s1 + $0x478] sm:$0xf0]  ;;  %v4317_v37 = vld [vmem:[%s6542_s3 + $0x74] sm:$0xf0] }
  0xde   :  { %1948 = vmatpush.bf16.msra.mxu3 %v3133_v14  ;;  %v4394_v14 = vld [vmem:[#allocation1 + $0x1b] sm:$0xff]  ;;  %v3565_v20 = vor.u32 %v4259_v38, %v3562_v9  ;;  %v4283_v29 = vld [vmem:[%s6540_s1 + $0x76c] sm:$0xf] }
  0xdf   :  { %1910 = vmatpush.bf16.msra.mxu0 %v2733_v23  ;;  %v3290_v23 = vld [vmem:[%s6540_s1 + $0x498] sm:$0xf0]  ;;  %v4247_v58 = vld [vmem:[%s6540_s1 + $0x64c] sm:$0xf] }
  0xe0   :  { %1923 = vmatpush.bf16.msra.mxu1 %v2861_v30  ;;  %v3418_v30 = vld [vmem:[%s6540_s1 + $0x598] sm:$0xf0]  ;;  %v3293_v39 = vor.u32 %v4191_v21, %v3290_v23  ;;  %v4279_v61 = vld [vmem:[%s6540_s1 + $0x74c] sm:$0xf] }
  0xe1   :  { %1936 = vmatpush.bf16.msra.mxu2 %v2989_v33  ;;  %v4255_v33 = vld [vmem:[%s6540_s1 + $0x68c] sm:$0xf]  ;;  %v3421_v41 = vor.u32 %v4223_v24, %v3418_v30  ;;  %v3530_v28 = vld [vmem:[%s6540_s1 + $0x678] sm:$0xf0] }
  0xe2   :  { %1949 = vmatpush.bf16.msra.mxu3 %v3117_v40  ;;  %v3549_v42 = vor.u32 %v4255_v33, %v3546_v35  ;;  %v3533_v51 = vor.u32 %v4251_v48, %v3530_v28  ;;  %v3386_v57 = vld [vmem:[%s6540_s1 + $0x558] sm:$0xf0]  ;;  %v4211_v4 = vld [vmem:[%s6540_s1 + $0x52c] sm:$0xf]  ;;  %v3776_v28 = vld [vmem:[%s6542_s3 + $0x60] sm:$0xf] }
  0xe3   :  { %1911 = vmatpush.bf16.msra.mxu0 %v2717_v47  ;;  %v5963_v40 = vpop.f32.mrf.mxu0  ;;  %v3402_v47 = vld [vmem:[%s6540_s1 + $0x578] sm:$0xf0]  ;;  %v4243_v31 = vld [vmem:[%s6540_s1 + $0x62c] sm:$0xf] }
  0xe4   :  { %1924 = vmatpush.bf16.msra.mxu1 %v2845_v34  ;;  %v5974_v46 = vpop.f32.mrf.mxu1  ;;  %v3658_v34 = vld [vmem:[%s6540_s1 + $0x778] sm:$0xf0]  ;;  %v3405_v50 = vor.u32 %v4219_v45, %v3402_v47  ;;  %v4275_v9 = vld [vmem:[%s6540_s1 + $0x72c] sm:$0xf]  ;;  %v3785_v47 = vor.u32 %v4317_v37, %v3784_v36  ;;  %v3800_v36 = vld [vmem:[%s6542_s3 + $0x90] sm:$0xf] }
  0xe5   :  { %1937 = vmatpush.bf16.msra.mxu2 %v2973_v49  ;;  %v3277_v49 = vor.u32 %v4187_v43, %v3274_v44  ;;  %v3661_v56 = vor.u32 %v4283_v29, %v3658_v34  ;;  %v3642_v62 = vld [vmem:[%s6540_s1 + $0x758] sm:$0xf0]  ;;  %v4239_v24 = vld [vmem:[%s6540_s1 + $0x60c] sm:$0xf]  ;;  %v4333_v43 = vld [vmem:[%s6542_s3 + $0xf4] sm:$0xf0] }
  0xe6   :  { %1950 = vmatpush.bf16.msra.mxu3 %v3101_v52  ;;  %1912 = vmatmul.bf16.vlgmr.msra.gmra.mxu0 %v4393_v13  ;;  %v4183_v52 = vld [vmem:[%s6540_s1 + $0x44c] sm:$0xf]  ;;  %v3242_v25 = vld [vmem:[%s6540_s1 + $0x438] sm:$0xf0]  ;;  %v4315_v29 = vld [vmem:[%s6542_s3 + $0x64] sm:$0xf0] }
  0xe7   :  { %1956 = vmatpush.bf16.msrb.mxu0 %v3341_v53  ;;  %1925 = vmatmul.bf16.vlgmr.msra.gmra.mxu1 %v4395_v16  ;;  %v3258_v53 = vld [vmem:[%s6540_s1 + $0x458] sm:$0xf0]  ;;  %v4271_v30 = vld [vmem:[%s6540_s1 + $0x70c] sm:$0xf]  ;;  %v3840_v34 = vld [vmem:[%s6542_s3 + $0xe0] sm:$0xf] }
  0xe8   :  { %1969 = vmatpush.bf16.msrb.mxu1 %v3469_v54  ;;  %1938 = vmatmul.bf16.vlgmr.msra.gmra.mxu2 %v4392_v8  ;;  %v4215_v54 = vld [vmem:[%s6540_s1 + $0x54c] sm:$0xf]  ;;  %v3261_v63 = vor.u32 %v4183_v52, %v3258_v53  ;;  %v3370_v8 = vld [vmem:[%s6540_s1 + $0x538] sm:$0xf0]  ;;  %v3768_v52 = vld [vmem:[%s6542_s3 + $0x50] sm:$0xf] }
  0xe9   :  { %1982 = vmatpush.bf16.msrb.mxu2 %v3597_v55  ;;  %1951 = vmatmul.bf16.vlgmr.msra.gmra.mxu3 %v4394_v14  ;;  %v3498_v38 = vld [vmem:[%s6540_s1 + $0x638] sm:$0xf0]  ;;  %v4175_v14 = vld [vmem:[%s6540_s1 + $0x40c] sm:$0xf]  ;;  %v4313_v53 = vld [vmem:[%s6542_s3 + $0x54] sm:$0xf0] }
  0xea   :  { %1995 = vmatpush.bf16.msrb.mxu3 %v3725_v59  ;;  %v3514_v59 = vld [vmem:[%s6540_s1 + $0x658] sm:$0xf0]  ;;  %v3501_v16 = vor.u32 %v4243_v31, %v3498_v38 }
  0xeb   :  { %1957 = vmatpush.bf16.msrb.mxu0 %v3325_v1  ;;  %v6000_v55 = vpop.f32.mrf.mxu2  ;;  %v1707_v0 = vpop.f32.mrf.mxu0  ;;  %v3389_v1 = vor.u32 %v4215_v54, %v3386_v57  ;;  %v3626_v10 = vld [vmem:[%s6540_s1 + $0x738] sm:$0xf0]  ;;  %v3832_v54 = vld [vmem:[%s6542_s3 + $0xd0] sm:$0xf] }
  0xec   :  { %1970 = vmatpush.bf16.msrb.mxu1 %v3453_v2  ;;  %v6011_v60 = vpop.f32.mrf.mxu3  ;;  %v3517_v2 = vor.u32 %v4247_v58, %v3514_v59  ;;  %v1720_v5 = vpop.f32.mrf.mxu1  ;;  %v3354_v32 = vld [vmem:[%s6540_s1 + $0x518] sm:$0xf0]  ;;  %v3629_v23 = vor.u32 %v4275_v9, %v3626_v10  ;;  %v3824_v58 = vld [vmem:[%s6542_s3 + $0xc0] sm:$0xf]  ;;  %v3912_v59 = vld [vmem:[%s6542_s3 + $0x170] sm:$0xf] }
  0xed   :  { %1983 = vmatpush.bf16.msrb.mxu2 %v3581_v3  ;;  %v4179_v3 = vld [vmem:[%s6540_s1 + $0x42c] sm:$0xf]  ;;  %v3610_v35 = vld [vmem:[%s6540_s1 + $0x718] sm:$0xf0]  ;;  %v4325_v5 = vld [vmem:[%s6542_s3 + $0xb4] sm:$0xf0] }
  0xee   :  { %1996 = vmatpush.bf16.msrb.mxu3 %v3709_v6  ;;  %v3645_v6 = vor.u32 %v4279_v61, %v3642_v62  ;;  %v3245_v13 = vor.u32 %v4179_v3, %v3242_v25  ;;  %v3816_v3 = vld [vmem:[%s6542_s3 + $0xb0] sm:$0xf] }
  0xef   :  { %1958 = vmatpush.bf16.msrb.mxu0 %v3309_v15  ;;  %v3373_v15 = vor.u32 %v4211_v4, %v3370_v8  ;;  %v4347_v8 = vld [vmem:[%s6542_s3 + $0x164] sm:$0xf0]  ;;  %v3817_v10 = vor.u32 %v4325_v5, %v3816_v3  ;;  %v4337_v3 = vld [vmem:[%s6542_s3 + $0x114] sm:$0xf0]  ;;  %v3770_v5 = vld [vmem:[%s6542_s3 + $0x58] sm:$0xf0] }
  0xf0   :  { %1971 = vmatpush.bf16.msrb.mxu1 %v3437_v19  ;;  %v3226_v19 = vld [vmem:[%s6540_s1 + $0x418] sm:$0xf0] }
  0xf1   :  { %1984 = vmatpush.bf16.msrb.mxu2 %v3565_v20  ;;  %v4207_v20 = vld [vmem:[%s6540_s1 + $0x50c] sm:$0xf] }
  0xf2   :  { %1997 = vmatpush.bf16.msrb.mxu3 %v3693_v26  ;;  %v3482_v26 = vld [vmem:[%s6540_s1 + $0x618] sm:$0xf0]  ;;  %v3357_v44 = vor.u32 %v4207_v20, %v3354_v32  ;;  %v3896_v20 = vld [vmem:[%s6542_s3 + $0x150] sm:$0xf]  ;;  %v4345_v32 = vld [vmem:[%s6542_s3 + $0x154] sm:$0xf0] }
  0xf3   :  { %1959 = vmatpush.bf16.msrb.mxu0 %v3293_v39  ;;  %v1733_v21 = vpop.f32.mrf.mxu2  ;;  %v1706_v39 = vadd.f32 %v5963_v40, %v287_v11  ;;  %v3485_v45 = vor.u32 %v4239_v24, %v3482_v26  ;;  %v3744_v11 = vld [vmem:[%s6542_s3 + $0x20] sm:$0xf] }
  0xf4   :  { %1972 = vmatpush.bf16.msrb.mxu1 %v3421_v41  ;;  %v1746_v33 = vpop.f32.mrf.mxu3  ;;  %v3229_v41 = vor.u32 %v4175_v14, %v3226_v19  ;;  %v3808_v14 = vld [vmem:[%s6542_s3 + $0xa0] sm:$0xf]  ;;  %v3897_v21 = vor.u32 %v4345_v32, %v3896_v20  ;;  %v4326_v20 = vld [vmem:[%s6542_s3 + $0xc4] sm:$0xf]  ;;  %v3826_v32 = vld [vmem:[%s6542_s3 + $0xc8] sm:$0xf0] }
  0xf5   :  { %1985 = vmatpush.bf16.msrb.mxu2 %v3549_v42  ;;  %v3848_v42 = vld [vmem:[%s6542_s3 + $0xf0] sm:$0xf]  ;;  %v1719_v40 = vadd.f32 %v5974_v46, %v1706_v39  ;;  %v3777_v46 = vor.u32 %v4315_v29, %v3776_v28  ;;  %v4321_v39 = vld [vmem:[%s6542_s3 + $0x94] sm:$0xf0]  ;;  %v4319_v28 = vld [vmem:[%s6542_s3 + $0x84] sm:$0xf0] }
  0xf6   :  { %1998 = vmatpush.bf16.msrb.mxu3 %v3677_v27  ;;  %v3613_v27 = vor.u32 %v4271_v30, %v3610_v35  ;;  %v3849_v48 = vor.u32 %v4333_v43, %v3848_v42  ;;  %v3736_v33 = vld [vmem:[%s6542_s3 + $0x10] sm:$0xf]  ;;  %v4305_v35 = vld [vmem:[%s6542_s3 + $0x14] sm:$0xf0]  ;;  %v4343_v42 = vld [vmem:[%s6542_s3 + $0x144] sm:$0xf0] }
  0xf7   :  { %1960 = vmatpush.bf16.msrb.mxu0 %v3277_v49  ;;  %v4331_v49 = vld [vmem:[%s6542_s3 + $0xe4] sm:$0xf0]  ;;  %v4316_v29 = vld [vmem:[%s6542_s3 + $0x74] sm:$0xf] }
  0xf8   :  { %1973 = vmatpush.bf16.msrb.mxu1 %v3405_v50  ;;  %v3841_v50 = vor.u32 %v4331_v49, %v3840_v34  ;;  %v3786_v49 = vld [vmem:[%s6542_s3 + $0x78] sm:$0xf0] }
  0xf9   :  { %1986 = vmatpush.bf16.msrb.mxu2 %v3533_v51  ;;  %v1732_v51 = vadd.f32 %v6000_v55, %v1719_v40  ;;  %v3769_v55 = vor.u32 %v4313_v53, %v3768_v52  ;;  %v3792_v40 = vld [vmem:[%s6542_s3 + $0x80] sm:$0xf]  ;;  %v4332_v52 = vld [vmem:[%s6542_s3 + $0xf4] sm:$0xf]  ;;  %v3850_v53 = vld [vmem:[%s6542_s3 + $0xf8] sm:$0xf0] }
  0xfa   :  { %1999 = vmatpush.bf16.msrb.mxu3 %v3661_v56 }
  0xfb   :  { %1961 = vmatpush.bf16.msrb.mxu0 %v3261_v63  ;;  %v1745_v56 = vadd.f32 %v6011_v60, %v1732_v51  ;;  %v4349_v60 = vld [vmem:[%s6542_s3 + $0x174] sm:$0xf0] }
  0xfc   :  { %1974 = vmatpush.bf16.msrb.mxu1 %v3389_v1  ;;  %v3913_v61 = vor.u32 %v4349_v60, %v3912_v59  ;;  %v3752_v1 = vld [vmem:[%s6542_s3 + $0x30] sm:$0xf]  ;;  %v4341_v51 = vld [vmem:[%s6542_s3 + $0x134] sm:$0xf0]  ;;  %v3872_v59 = vld [vmem:[%s6542_s3 + $0x120] sm:$0xf] }
  0xfd   :  { %1987 = vmatpush.bf16.msrb.mxu2 %v3517_v2  ;;  %v4309_v2 = vld [vmem:[%s6542_s3 + $0x34] sm:$0xf0]  ;;  %v4330_v60 = vld [vmem:[%s6542_s3 + $0xe4] sm:$0xf] }
  0xfe   :  { %2000 = vmatpush.bf16.msrb.mxu3 %v3645_v6  ;;  %v3904_v6 = vld [vmem:[%s6542_s3 + $0x160] sm:$0xf]  ;;  %v3753_v38 = vor.u32 %v4309_v2, %v3752_v1  ;;  %v3864_v2 = vld [vmem:[%s6542_s3 + $0x110] sm:$0xf] }
  0xff   :  { %1962 = vmatpush.bf16.msrb.mxu0 %v3245_v13  ;;  %v3905_v31 = vor.u32 %v4347_v8, %v3904_v6  ;;  %v4307_v13 = vld [vmem:[%s6542_s3 + $0x24] sm:$0xf0]  ;;  %v4328_v6 = vld [vmem:[%s6542_s3 + $0xd4] sm:$0xf]  ;;  %v3865_v8 = vor.u32 %v4337_v3, %v3864_v2  ;;  %v3794_v2 = vld [vmem:[%s6542_s3 + $0x88] sm:$0xf0] }
 0x100   :  { %1975 = vmatpush.bf16.msrb.mxu1 %v3373_v15 }
 0x101   :  { %1988 = vmatpush.bf16.msrb.mxu2 %v3501_v16  ;;  %v4323_v16 = vld [vmem:[%s6542_s3 + $0xa4] sm:$0xf0] }
 0x102   :  { %2001 = vmatpush.bf16.msrb.mxu3 %v3629_v23  ;;  %v3745_v23 = vor.u32 %v4307_v13, %v3744_v11  ;;  %v3809_v30 = vor.u32 %v4323_v16, %v3808_v14  ;;  %v3914_v11 = vld [vmem:[%s6542_s3 + $0x178] sm:$0xf0]  ;;  %v3762_v16 = vld [vmem:[%s6542_s3 + $0x48] sm:$0xf0] }
 0x103   :  { %1963 = vmatpush.bf16.msrb.mxu0 %v3229_v41  ;;  %v1757_v63 = vpop.f32.mrf.mxu0  ;;  %v3888_v41 = vld [vmem:[%s6542_s3 + $0x140] sm:$0xf] }
 0x104   :  { %1976 = vmatpush.bf16.msrb.mxu1 %v3357_v44  ;;  %v1758_v25 = vadd.f32 %v1757_v63, %v1745_v56  ;;  %v1770_v4 = vpop.f32.mrf.mxu1  ;;  %v3889_v43 = vor.u32 %v4343_v42, %v3888_v41  ;;  %v2008_v56 = vmax.f32 %v5817_v7, 0.0  ;;  %v4339_v7 = vld [vmem:[%s6542_s3 + $0x124] sm:$0xf0]  ;;  %v3906_v41 = vld [vmem:[%s6542_s3 + $0x168] sm:$0xf0] }
 0x105   :  { %1989 = vmatpush.bf16.msrb.mxu2 %v3485_v45  ;;  %v3737_v45 = vor.u32 %v4305_v35, %v3736_v33  ;;  %v4324_v33 = vld [vmem:[%s6542_s3 + $0xb4] sm:$0xf] }
 0x106   :  { %2002 = vmatpush.bf16.msrb.mxu3 %v3613_v27  ;;  %1964 = vmatmul.bf16.vlgmr.msrb.gmra.mxu0 %v5730_v17  ;;  %v4329_v17 = vld [vmem:[%s6542_s3 + $0xd4] sm:$0xf0]  ;;  %v1771_v9 = vadd.f32 %v1770_v4, %v1758_v25  ;;  %v3728_v27 = vld [vmem:[%s6542_s3] sm:$0xf]  ;;  %v4312_v4 = vld [vmem:[%s6542_s3 + $0x54] sm:$0xf] }
 0x107   :  { %2406 = vmatpush.bf16.msra.mxu0 %v3785_v47  ;;  %1977 = vmatmul.bf16.vlgmr.msrb.gmra.mxu1 %v5742_v22  ;;  %v3833_v57 = vor.u32 %v4329_v17, %v3832_v54  ;;  %v4311_v22 = vld [vmem:[%s6542_s3 + $0x44] sm:$0xf0]  ;;  %v3773_v13 = vor.u32 %v4312_v4, %v3770_v5  ;;  %v4338_v5 = vld [vmem:[%s6542_s3 + $0x124] sm:$0xf] }
 0x108   :  { %2419 = vmatpush.bf16.msra.mxu1 %v3849_v48  ;;  %1990 = vmatmul.bf16.vlgmr.msrb.gmra.mxu2 %v5718_v12  ;;  %v3760_v12 = vld [vmem:[%s6542_s3 + $0x40] sm:$0xf]  ;;  %v4303_v47 = vld [vmem:[%s6542_s3 + $0x4] sm:$0xf0]  ;;  %v3801_v48 = vor.u32 %v4321_v39, %v3800_v36  ;;  %v3818_v36 = vld [vmem:[%s6542_s3 + $0xb8] sm:$0xf0] }
 0x109   :  { %2003 = vmatmul.bf16.vlgmr.msrb.gmra.mxu3 %v5733_v18  ;;  %v4327_v18 = vld [vmem:[%s6542_s3 + $0xc4] sm:$0xf0]  ;;  %v3761_v62 = vor.u32 %v4311_v22, %v3760_v12  ;;  %2432 = vmatpush.bf16.msra.mxu2 %v3913_v61  ;;  %v3789_v12 = vor.u32 %v4316_v29, %v3786_v49  ;;  %v4314_v22 = vld [vmem:[%s6542_s3 + $0x64] sm:$0xf]  ;;  %v3842_v61 = vld [vmem:[%s6542_s3 + $0xe8] sm:$0xf0] }
 0x10a   :  { %v3825_v0 = vor.u32 %v4327_v18, %v3824_v58  ;;  %v3853_v58 = vor.u32 %v4332_v52, %v3850_v53  ;;  %v3778_v18 = vld [vmem:[%s6542_s3 + $0x68] sm:$0xf0]  ;;  %v3845_v25 = vor.u32 %v4330_v60, %v3842_v61  ;;  %v4346_v39 = vld [vmem:[%s6542_s3 + $0x164] sm:$0xf]  ;;  %v3898_v29 = vld [vmem:[%s6542_s3 + $0x158] sm:$0xf0] }
 0x10b   :  { %2407 = vmatpush.bf16.msra.mxu0 %v3777_v46  ;;  %v1783_v15 = vpop.f32.mrf.mxu2  ;;  %v1759_v26 = vpop.f32.mrf.mxu0  ;;  %v3781_v1 = vor.u32 %v4314_v22, %v3778_v18  ;;  %v3909_v42 = vor.u32 %v4346_v39, %v3906_v41  ;;  %v3738_v52 = vld [vmem:[%s6542_s3 + $0x18] sm:$0xf0]  ;;  %v4320_v53 = vld [vmem:[%s6542_s3 + $0x94] sm:$0xf]  ;;  %v3730_v60 = vld [vmem:[%s6542_s3 + $0x8] sm:$0xf0] }
 0x10c   :  { %2420 = vmatpush.bf16.msra.mxu1 %v3841_v50  ;;  %v1796_v19 = vpop.f32.mrf.mxu3  ;;  %v1784_v24 = vadd.f32 %v1783_v15, %v1771_v9  ;;  %v1772_v37 = vpop.f32.mrf.mxu1  ;;  %v3880_v50 = vld [vmem:[%s6542_s3 + $0x130] sm:$0xf]  ;;  %v4335_v9 = vld [vmem:[%s6542_s3 + $0x104] sm:$0xf0]  ;;  %v4310_v15 = vld [vmem:[%s6542_s3 + $0x44] sm:$0xf] }
 0x10d   :  { %2433 = vmatpush.bf16.msra.mxu2 %v3905_v31  ;;  %v3881_v54 = vor.u32 %v4341_v51, %v3880_v50  ;;  %v3834_v31 = vld [vmem:[%s6542_s3 + $0xd8] sm:$0xf0]  ;;  %v4308_v26 = vld [vmem:[%s6542_s3 + $0x34] sm:$0xf] }
 0x10e   :  { %v1797_v44 = vadd.f32 %v1796_v19, %v1784_v24  ;;  %v3837_v14 = vor.u32 %v4328_v6, %v3834_v31  ;;  %v3829_v24 = vor.u32 %v4326_v20, %v3826_v32  ;;  %v4304_v51 = vld [vmem:[%s6542_s3 + $0x14] sm:$0xf]  ;;  %v3874_v6 = vld [vmem:[%s6542_s3 + $0x128] sm:$0xf0]  ;;  %v4334_v20 = vld [vmem:[%s6542_s3 + $0x104] sm:$0xf] }
 0x10f   :  { %2408 = vmatpush.bf16.msra.mxu0 %v3769_v55  ;;  %v3729_v55 = vor.u32 %v4303_v47, %v3728_v27  ;;  %v3746_v27 = vld [vmem:[%s6542_s3 + $0x28] sm:$0xf0]  ;;  %v4322_v47 = vld [vmem:[%s6542_s3 + $0xa4] sm:$0xf]  ;;  %v3741_v22 = vor.u32 %v4304_v51, %v3738_v52  ;;  %v4340_v61 = vld [vmem:[%s6542_s3 + $0x134] sm:$0xf] }
 0x110   :  { %2421 = vmatpush.bf16.msra.mxu1 %v3833_v57  ;;  %v2009_v17 = vmax.f32 %v1797_v44, 0.0  ;;  %v3793_v57 = vor.u32 %v4319_v28, %v3792_v40  ;;  %v3821_v44 = vor.u32 %v4324_v33, %v3818_v36  ;;  %v4344_v28 = vld [vmem:[%s6542_s3 + $0x154] sm:$0xf]  ;;  %v3858_v32 = vld [vmem:[%s6542_s3 + $0x108] sm:$0xf0] }
 0x111   :  { %2434 = vmatpush.bf16.msra.mxu2 %v3897_v21  ;;  %v3901_v49 = vor.u32 %v4344_v28, %v3898_v29  ;;  %v3960_v33 = vld [vmem:[%s6542_s3 + $0x1d0] sm:$0xf]  ;;  %v4355_v51 = vld [vmem:[%s6542_s3 + $0x1a4] sm:$0xf0] }
 0x112   :  { %v6233_v63 = vpack.c.bf16 %v2009_v17, %v2009_v17  ;;  %v3802_v17 = vld [vmem:[%s6542_s3 + $0x98] sm:$0xf0] }
 0x113   :  { %2409 = vmatpush.bf16.msra.mxu0 %v3761_v62  ;;  %v1785_v34 = vpop.f32.mrf.mxu2  ;;  %v3873_v62 = vor.u32 %v4339_v7, %v3872_v59  ;;  %v4302_v59 = vld [vmem:[%s6542_s3 + $0x4] sm:$0xf]  ;;  %v3805_v7 = vor.u32 %v4320_v53, %v3802_v17 }
 0x114   :  { %2422 = vmatpush.bf16.msra.mxu1 %v3825_v0  ;;  %v1798_v46 = vpop.f32.mrf.mxu3  ;;  %v6235_v0 = vpack.c.bf16 %v2008_v56, %v2008_v56  ;;  %v4342_v56 = vld [vmem:[%s6542_s3 + $0x144] sm:$0xf] }
 0x115   :  { %2435 = vmatpush.bf16.msra.mxu2 %v3889_v43 }
 0x117   :  { %2410 = vmatpush.bf16.msra.mxu0 %v3753_v38  ;;  %v3856_v38 = vld [vmem:[%s6542_s3 + $0x100] sm:$0xf] }
 0x118   :  { %2423 = vmatpush.bf16.msra.mxu1 %v3817_v10  ;;  %v4348_v10 = vld [vmem:[%s6542_s3 + $0x174] sm:$0xf]  ;;  %v3857_v19 = vor.u32 %v4335_v9, %v3856_v38  ;;  %v3733_v38 = vor.u32 %v4302_v59, %v3730_v60  ;;  %v4365_v9 = vld [vmem:[%s6542_s3 + $0x1f4] sm:$0xf0] }
 0x119   :  { %2436 = vmatpush.bf16.msra.mxu2 %v3881_v54  ;;  %v3917_v21 = vor.u32 %v4348_v10, %v3914_v11  ;;  %v4364_v59 = vld [vmem:[%s6542_s3 + $0x1f4] sm:$0xf] }
 0x11b   :  { %2411 = vmatpush.bf16.msra.mxu0 %v3745_v23  ;;  %v3765_v23 = vor.u32 %v4310_v15, %v3762_v16  ;;  %v3866_v15 = vld [vmem:[%s6542_s3 + $0x118] sm:$0xf0] }
 0x11c   :  { %2424 = vmatpush.bf16.msra.mxu1 %v3809_v30  ;;  %v3754_v30 = vld [vmem:[%s6542_s3 + $0x38] sm:$0xf0] }
 0x11d   :  { %2437 = vmatpush.bf16.msra.mxu2 %v3873_v62  ;;  %v3757_v43 = vor.u32 %v4308_v26, %v3754_v30  ;;  %v3882_v62 = vld [vmem:[%s6542_s3 + $0x138] sm:$0xf0]  ;;  %v3968_v26 = vld [vmem:[%s6542_s3 + $0x1e0] sm:$0xf] }
 0x11f   :  { %2412 = vmatpush.bf16.msra.mxu0 %v3737_v45  ;;  %v4306_v45 = vld [vmem:[%s6542_s3 + $0x24] sm:$0xf] }
 0x120   :  { %2425 = vmatpush.bf16.msra.mxu1 %v3801_v48  ;;  %v3810_v48 = vld [vmem:[%s6542_s3 + $0xa8] sm:$0xf0]  ;;  %v3749_v46 = vor.u32 %v4306_v45, %v3746_v27 }
 0x121   :  { %2438 = vmatpush.bf16.msra.mxu2 %v3865_v8  ;;  %v3813_v50 = vor.u32 %v4322_v47, %v3810_v48  ;;  %v3976_v8 = vld [vmem:[%s6542_s3 + $0x1f0] sm:$0xf] }
 0x122   :  { %v3977_v11 = vor.u32 %v4365_v9, %v3976_v8  ;;  %v3944_v48 = vld [vmem:[%s6542_s3 + $0x1b0] sm:$0xf] }
 0x123   :  { %2413 = vmatpush.bf16.msra.mxu0 %v3729_v55  ;;  %v1809_v35 = vpop.f32.mrf.mxu0 }
 0x124   :  { %2426 = vmatpush.bf16.msra.mxu1 %v3793_v57  ;;  %v6293_v37 = vpop.f32.mrf.mxu1  ;;  %v3890_v57 = vld [vmem:[%s6542_s3 + $0x148] sm:$0xf0]  ;;  %2445 = vmatpush.bf16.msra.mxu3 %v3977_v11 }
 0x125   :  { %2439 = vmatpush.bf16.msra.mxu2 %v3857_v19 }
 0x126   :  { %2414 = vmatmul.bf16.vlgmr.msra.gmra.mxu0 %v6235_v0 }
 0x127   :  { %2458 = vmatpush.bf16.msrb.mxu0 %v3789_v12  ;;  %2427 = vmatmul.bf16.vlgmr.msra.gmra.mxu1 %v6233_v63  ;;  %v3893_v12 = vor.u32 %v4342_v56, %v3890_v57  ;;  %v4353_v56 = vld [vmem:[%s6542_s3 + $0x194] sm:$0xf0] }
 0x128   :  { %2471 = vmatpush.bf16.msrb.mxu1 %v3853_v58  ;;  %v6340_v58 = vld [vmem:[%s6541_s2] sm:$0xf] }
 0x129   :  { %2484 = vmatpush.bf16.msrb.mxu2 %v3917_v21  ;;  %v288_v18 = vperm.slane %v6340_v58, 2 }
 0x12b   :  { %2459 = vmatpush.bf16.msrb.mxu0 %v3781_v1  ;;  %v1835_v40 = vpop.f32.mrf.mxu2  ;;  %v1811_v54 = vpop.f32.mrf.mxu0  ;;  %v4318_v1 = vld [vmem:[%s6542_s3 + $0x84] sm:$0xf]  ;;  %v1810_v31 = vadd.f32 %v1809_v35, %v288_v18 }
 0x12c   :  { %2472 = vmatpush.bf16.msrb.mxu1 %v3845_v25  ;;  %v1848_v34 = vpop.f32.mrf.mxu3  ;;  %v1824_v55 = vpop.f32.mrf.mxu1  ;;  %v3885_v25 = vor.u32 %v4340_v61, %v3882_v62  ;;  %v3797_v10 = vor.u32 %v4318_v1, %v3794_v2  ;;  %v4362_v61 = vld [vmem:[%s6542_s3 + $0x1e4] sm:$0xf]  ;;  %v3970_v62 = vld [vmem:[%s6542_s3 + $0x1e8] sm:$0xf0] }
 0x12d   :  { %2485 = vmatpush.bf16.msrb.mxu2 %v3909_v42  ;;  %v1823_v16 = vadd.f32 %v6293_v37, %v1810_v31  ;;  %v3952_v42 = vld [vmem:[%s6542_s3 + $0x1c0] sm:$0xf]  ;;  %v3928_v55 = vld [vmem:[%s6542_s3 + $0x190] sm:$0xf]  ;;  %v3973_v2 = vor.u32 %v4362_v61, %v3970_v62  ;;  %v4358_v31 = vld [vmem:[%s6542_s3 + $0x1c4] sm:$0xf] }
 0x12e   :  { %v3929_v57 = vor.u32 %v4353_v56, %v3928_v55  ;;  %v4381_v61 = vld [vmem:[%s6544_s5 + $0x78] sm:$0xff]  ;;  %v4372_v62 = vld [vmem:[%s6544_s5 + $0x30] sm:$0xff] }
 0x12f   :  { %2460 = vmatpush.bf16.msrb.mxu0 %v3773_v13  ;;  %v3877_v13 = vor.u32 %v4338_v5, %v3874_v6  ;;  %v1836_v21 = vadd.f32 %v1835_v40, %v1823_v16  ;;  %v4357_v40 = vld [vmem:[%s6542_s3 + $0x1b4] sm:$0xf0] }
 0x130   :  { %2473 = vmatpush.bf16.msrb.mxu1 %v3837_v14  ;;  %v4336_v14 = vld [vmem:[%s6542_s3 + $0x114] sm:$0xf] }
 0x131   :  { %2486 = vmatpush.bf16.msrb.mxu2 %v3901_v49  ;;  %v3869_v19 = vor.u32 %v4336_v14, %v3866_v15  ;;  %v3945_v49 = vor.u32 %v4357_v40, %v3944_v48  ;;  %v3946_v14 = vld [vmem:[%s6542_s3 + $0x1b8] sm:$0xf0]  ;;  %v289_v15 = vperm.slane %v6340_v58, 3 }
 0x132   :  { %v3930_v58 = vld [vmem:[%s6542_s3 + $0x198] sm:$0xf0] }
 0x133   :  { %2461 = vmatpush.bf16.msrb.mxu0 %v3765_v23  ;;  %v1837_v3 = vpop.f32.mrf.mxu2  ;;  %v3861_v23 = vor.u32 %v4334_v20, %v3858_v32  ;;  %v3938_v20 = vld [vmem:[%s6542_s3 + $0x1a8] sm:$0xf0] }
 0x134   :  { %2474 = vmatpush.bf16.msrb.mxu1 %v3829_v24  ;;  %v1850_v4 = vpop.f32.mrf.mxu3  ;;  %v1849_v24 = vadd.f32 %v1848_v34, %v1836_v21 }
 0x135   :  { %2487 = vmatpush.bf16.msrb.mxu2 %v3893_v12  ;;  %v3920_v12 = vld [vmem:[%s6542_s3 + $0x180] sm:$0xf]  ;;  %v3962_v4 = vld [vmem:[%s6542_s3 + $0x1d8] sm:$0xf0] }
 0x137   :  { %2462 = vmatpush.bf16.msrb.mxu0 %v3757_v43  ;;  %v4359_v43 = vld [vmem:[%s6542_s3 + $0x1c4] sm:$0xf0] }
 0x138   :  { %2475 = vmatpush.bf16.msrb.mxu1 %v3821_v44  ;;  %v3953_v45 = vor.u32 %v4359_v43, %v3952_v42 }
 0x139   :  { %2488 = vmatpush.bf16.msrb.mxu2 %v3885_v25  ;;  %v4360_v25 = vld [vmem:[%s6542_s3 + $0x1d4] sm:$0xf] }
 0x13a   :  { %v3965_v5 = vor.u32 %v4360_v25, %v3962_v4  ;;  %v4370_v25 = vld [vmem:[%s6544_s5 + $0x20] sm:$0xff]  ;;  %v4369_v4 = vld [vmem:[%s6544_s5 + $0x18] sm:$0xff] }
 0x13b   :  { %2463 = vmatpush.bf16.msrb.mxu0 %v3749_v46 }
 0x13c   :  { %2476 = vmatpush.bf16.msrb.mxu1 %v3813_v50  ;;  %v3936_v50 = vld [vmem:[%s6542_s3 + $0x1a0] sm:$0xf] }
 0x13d   :  { %2489 = vmatpush.bf16.msrb.mxu2 %v3877_v13  ;;  %v3937_v54 = vor.u32 %v4355_v51, %v3936_v50  ;;  %v4356_v13 = vld [vmem:[%s6542_s3 + $0x1b4] sm:$0xf] }
 0x13e   :  { %v3949_v16 = vor.u32 %v4356_v13, %v3946_v14  ;;  %v4377_v13 = vld [vmem:[%s6544_s5 + $0x58] sm:$0xff]  ;;  %v4376_v14 = vld [vmem:[%s6544_s5 + $0x50] sm:$0xff] }
 0x13f   :  { %2464 = vmatpush.bf16.msrb.mxu0 %v3741_v22  ;;  %v4351_v22 = vld [vmem:[%s6542_s3 + $0x184] sm:$0xf0] }
 0x140   :  { %2477 = vmatpush.bf16.msrb.mxu1 %v3805_v7  ;;  %v3921_v18 = vor.u32 %v4351_v22, %v3920_v12  ;;  %v3978_v7 = vld [vmem:[%s6542_s3 + $0x1f8] sm:$0xf0] }
 0x141   :  { %2490 = vmatpush.bf16.msrb.mxu2 %v3869_v19  ;;  %v3981_v60 = vor.u32 %v4364_v59, %v3978_v7  ;;  %v4354_v19 = vld [vmem:[%s6542_s3 + $0x1a4] sm:$0xf] }
 0x143   :  { %2465 = vmatpush.bf16.msrb.mxu0 %v3733_v38  ;;  %v1861_v35 = vpop.f32.mrf.mxu0  ;;  %v3954_v38 = vld [vmem:[%s6542_s3 + $0x1c8] sm:$0xf0] }
 0x144   :  { %2478 = vmatpush.bf16.msrb.mxu1 %v3797_v10  ;;  %v1862_v36 = vadd.f32 %v1861_v35, %v1849_v24  ;;  %v1874_v37 = vpop.f32.mrf.mxu1  ;;  %v3957_v10 = vor.u32 %v4358_v31, %v3954_v38  ;;  %v4352_v24 = vld [vmem:[%s6542_s3 + $0x194] sm:$0xf]  ;;  %v4367_v38 = vld [vmem:[%s6544_s5 + $0x8] sm:$0xff] }
 0x145   :  { %2491 = vmatpush.bf16.msrb.mxu2 %v3861_v23  ;;  %v3941_v23 = vor.u32 %v4354_v19, %v3938_v20 }
 0x146   :  { %2466 = vmatmul.bf16.vlgmr.msrb.gmra.mxu0 %v6235_v0  ;;  %v4363_v0 = vld [vmem:[%s6542_s3 + $0x1e4] sm:$0xf0]  ;;  %v1875_v41 = vadd.f32 %v1874_v37, %v1862_v36 }
 0x147   :  { %2479 = vmatmul.bf16.vlgmr.msrb.gmra.mxu1 %v6233_v63  ;;  %v3969_v30 = vor.u32 %v4363_v0, %v3968_v26  ;;  %v4361_v63 = vld [vmem:[%s6542_s3 + $0x1d4] sm:$0xf0]  ;;  %v3933_v0 = vor.u32 %v4352_v24, %v3930_v58 }
 0x148   :  { %v3961_v39 = vor.u32 %v4361_v63, %v3960_v33  ;;  %v3922_v33 = vld [vmem:[%s6542_s3 + $0x188] sm:$0xf0]  ;;  %2659 = vmatpush.bf16.msra.mxu1 %v4381_v61 }
 0x149   :  { %2446 = vmatpush.bf16.msra.mxu3 %v3969_v30  ;;  %v4350_v30 = vld [vmem:[%s6542_s3 + $0x184] sm:$0xf] }
 0x14a   :  { %v3925_v35 = vor.u32 %v4350_v30, %v3922_v33 }
 0x14b   :  { %v1887_v44 = vpop.f32.mrf.mxu2  ;;  %v1863_v29 = vpop.f32.mrf.mxu0 }
 0x14c   :  { %v1888_v27 = vadd.f32 %v1887_v44, %v1875_v41  ;;  %v1900_v47 = vpop.f32.mrf.mxu3  ;;  %v1876_v34 = vpop.f32.mrf.mxu1 }
 0x14d   :  { %2447 = vmatpush.bf16.msra.mxu3 %v3961_v39 }
 0x14e   :  { %v1901_v28 = vadd.f32 %v1900_v47, %v1888_v27 }
 0x150   :  { %v2010_v46 = vmax.f32 %v1901_v28, 0.0 }
 0x151   :  { %2448 = vmatpush.bf16.msra.mxu3 %v3953_v45 }
 0x152   :  { %v2014_v52 = vpack.c.bf16 %v2010_v46, %v2010_v46  ;;  %v2080_v46 = vld [vmem:[%s6543_s4] sm:$0x3] }
 0x153   :  { %v1889_v53 = vpop.f32.mrf.mxu2  ;;  %v2082_v50 = vperm.slane %v2080_v46, 0  ;;  %v2083_v56 = vperm.slane %v2080_v46, 1 }
 0x154   :  { %2440 = vmatmul.bf16.vlgmr.msra.gmra.mxu2 %v2014_v52  ;;  %v1902_v17 = vpop.f32.mrf.mxu3 }
 0x155   :  { %2449 = vmatpush.bf16.msra.mxu3 %v3945_v49 }
 0x159   :  { %2450 = vmatpush.bf16.msra.mxu3 %v3937_v54 }
 0x15d   :  { %2451 = vmatpush.bf16.msra.mxu3 %v3929_v57 }
 0x161   :  { %2452 = vmatpush.bf16.msra.mxu3 %v3921_v18 }
 0x163   :  { %v1913_v1 = vpop.f32.mrf.mxu0 }
 0x164   :  { %2492 = vmatmul.bf16.vlgmr.msrb.gmra.mxu2 %v2014_v52  ;;  %v1926_v3 = vpop.f32.mrf.mxu1  ;;  %v1914_v26 = vadd.f32 %v1913_v1, %v289_v15  ;;  %v4380_v1 = vld [vmem:[%s6544_s5 + $0x70] sm:$0xff]  ;;  %v4375_v15 = vld [vmem:[%s6544_s5 + $0x48] sm:$0xff] }
 0x165   :  { %2497 = vmatpush.bf16.msrb.mxu3 %v3981_v60  ;;  %v4373_v60 = vld [vmem:[%s6544_s5 + $0x38] sm:$0xff]  ;;  %2660 = vmatpush.bf16.msra.mxu1 %v4380_v1 }
 0x166   :  { %v1927_v63 = vadd.f32 %v1926_v3, %v1914_v26  ;;  %2646 = vmatpush.bf16.msra.mxu0 %v4373_v60 }
 0x169   :  { %2498 = vmatpush.bf16.msrb.mxu3 %v3973_v2  ;;  %v4371_v2 = vld [vmem:[%s6544_s5 + $0x28] sm:$0xff] }
 0x16a   :  { %2647 = vmatpush.bf16.msra.mxu0 %v4372_v62 }
 0x16b   :  { %v1939_v6 = vpop.f32.mrf.mxu2  ;;  %v1915_v9 = vpop.f32.mrf.mxu0 }
 0x16c   :  { %v1952_v8 = vpop.f32.mrf.mxu3  ;;  %v1928_v11 = vpop.f32.mrf.mxu1  ;;  %v1940_v36 = vadd.f32 %v1939_v6, %v1927_v63  ;;  %v4368_v6 = vld [vmem:[%s6544_s5 + $0x10] sm:$0xff]  ;;  %v4379_v9 = vld [vmem:[%s6544_s5 + $0x68] sm:$0xff] }
 0x16d   :  { %2499 = vmatpush.bf16.msrb.mxu3 %v3965_v5  ;;  %2661 = vmatpush.bf16.msra.mxu1 %v4379_v9  ;;  %v4378_v11 = vld [vmem:[%s6544_s5 + $0x60] sm:$0xff] }
 0x16e   :  { %v1953_v37 = vadd.f32 %v1952_v8, %v1940_v36  ;;  %2648 = vmatpush.bf16.msra.mxu0 %v4371_v2 }
 0x171   :  { %2500 = vmatpush.bf16.msrb.mxu3 %v3957_v10  ;;  %v4366_v10 = vld [vmem:[%s6544_s5] sm:$0xff]  ;;  %2662 = vmatpush.bf16.msra.mxu1 %v4378_v11 }
 0x172   :  { %2649 = vmatpush.bf16.msra.mxu0 %v4370_v25 }
 0x173   :  { %v1941_v32 = vpop.f32.mrf.mxu2 }
 0x174   :  { %v1954_v21 = vpop.f32.mrf.mxu3 }
 0x175   :  { %2501 = vmatpush.bf16.msrb.mxu3 %v3949_v16  ;;  %2663 = vmatpush.bf16.msra.mxu1 %v4377_v13  ;;  %v4374_v16 = vld [vmem:[%s6544_s5 + $0x40] sm:$0xff]  ;;  %s4423_s5 = smov [#allocation2]  }
 0x176   :  { %2650 = vmatpush.bf16.msra.mxu0 %v4369_v4 }
 0x179   :  { %2502 = vmatpush.bf16.msrb.mxu3 %v3941_v23  ;;  %2664 = vmatpush.bf16.msra.mxu1 %v4376_v14 }
 0x17a   :  { %2651 = vmatpush.bf16.msra.mxu0 %v4368_v6 }
 0x17d   :  { %2503 = vmatpush.bf16.msrb.mxu3 %v3933_v0  ;;  %2665 = vmatpush.bf16.msra.mxu1 %v4375_v15 }
 0x17e   :  { %2652 = vmatpush.bf16.msra.mxu0 %v4367_v38 }
 0x181   :  { %2504 = vmatpush.bf16.msrb.mxu3 %v3925_v35  ;;  %2666 = vmatpush.bf16.msra.mxu1 %v4374_v16 }
 0x182   :  { %2653 = vmatpush.bf16.msra.mxu0 %v4366_v10 }
 0x183   :  { %v1965_v39 = vpop.f32.mrf.mxu0 }
 0x184   :  { %v1978_v41 = vpop.f32.mrf.mxu1  ;;  %v1966_v42 = vadd.f32 %v1965_v39, %v1953_v37  ;;  %v4383_v37 = vld [vmem:[%s6545_s6] ss:$0 sm:$0xff]  ;;  %s2691_s6 = sshll.u32 %s4423_s5, 4  ;;  %s2692_s6 = int_to_ptr.vmem [resolvable:$true] %s2691_s6 }
 0x186   :  { %v1979_v43 = vadd.f32 %v1978_v41, %v1966_v42 }
 0x18b   :  { %v1991_v44 = vpop.f32.mrf.mxu2  ;;  %v1967_v47 = vpop.f32.mrf.mxu0 }
 0x18c   :  { %v1992_v45 = vadd.f32 %v1991_v44, %v1979_v43  ;;  %v2004_v27 = vpop.f32.mrf.mxu3  ;;  %v1980_v48 = vpop.f32.mrf.mxu1 }
 0x18e   :  { %v2005_v40 = vadd.f32 %v2004_v27, %v1992_v45 }
 0x190   :  { %v2011_v28 = vmax.f32 %v2005_v40, 0.0 }
 0x192   :  { %v2015_v29 = vpack.c.bf16 %v2011_v28, %v2011_v28 }
 0x193   :  { %v1993_v34 = vpop.f32.mrf.mxu2 }
 0x194   :  { %v2006_v49 = vpop.f32.mrf.mxu3  ;;  %2453 = vmatmul.bf16.vlgmr.msra.gmra.mxu3 %v2015_v29 }
 0x1a3   :  { %v2415_v51 = vpop.f32.mrf.mxu0 }
 0x1a4   :  { %v2416_v52 = vadd.f32 %v2415_v51, %v2082_v50  ;;  %v2428_v53 = vpop.f32.mrf.mxu1  ;;  %2505 = vmatmul.bf16.vlgmr.msrb.gmra.mxu3 %v2015_v29 }
 0x1a6   :  { %v2429_v54 = vadd.f32 %v2428_v53, %v2416_v52 }
 0x1ab   :  { %v2417_v17 = vpop.f32.mrf.mxu0 }
 0x1ac   :  { %v2430_v55 = vpop.f32.mrf.mxu1 }
 0x1c3   :  { %v2467_v57 = vpop.f32.mrf.mxu0 }
 0x1c4   :  { %v2468_v12 = vadd.f32 %v2467_v57, %v2083_v56  ;;  %v2480_v22 = vpop.f32.mrf.mxu1 }
 0x1c6   :  { %v2481_v18 = vadd.f32 %v2480_v22, %v2468_v12 }
 0x1cb   :  { %v2469_v59 = vpop.f32.mrf.mxu0 }
 0x1cc   :  { %v2482_v7 = vpop.f32.mrf.mxu1 }
 0x1d7   :  { %v2441_v3 = vpop.f32.mrf.mxu2 }
 0x1d8   :  { %v2442_v19 = vadd.f32 %v2441_v3, %v2429_v54 }
 0x1df   :  { %v2443_v5 = vpop.f32.mrf.mxu2 }
 0x1e7   :  { %v2493_v8 = vpop.f32.mrf.mxu2 }
 0x1e8   :  { %v2494_v58 = vadd.f32 %v2493_v8, %v2481_v18 }
 0x1ef   :  { %v2495_v31 = vpop.f32.mrf.mxu2 }
 0x217   :  { %v2454_v20 = vpop.f32.mrf.mxu3 }
 0x218   :  { %v2455_v32 = vadd.f32 %v2454_v20, %v2442_v19 }
 0x21a   :  { %v2510_v21 = vmax.f32 %v2455_v32, 0.0 }
 0x21c   :  { %v2512_v23 = vpack.c.bf16 %v2510_v21, %v2510_v21 }
 0x21e   :  { %2654 = vmatmul.bf16.vlgmr.msra.gmra.mxu0 %v2512_v23 }
 0x21f   :  { %v2456_v24 = vpop.f32.mrf.mxu3 }
 0x227   :  { %v2506_v26 = vpop.f32.mrf.mxu3 }
 0x228   :  { %v2507_v0 = vadd.f32 %v2506_v26, %v2494_v58 }
 0x22a   :  { %v2511_v30 = vmax.f32 %v2507_v0, 0.0 }
 0x22c   :  { %v2513_v33 = vpack.c.bf16 %v2511_v30, %v2511_v30 }
 0x22e   :  { %2667 = vmatmul.bf16.vlgmr.msra.gmra.mxu1 %v2513_v33 }
 0x22f   :  { %v2508_v63 = vpop.f32.mrf.mxu3 }
 0x29b   :  { %v2655_v35 = vpop.f32.mrf.mxu0 }
 0x29c   :  { %v2656_v39 = vadd.f32 %v4383_v37, %v2655_v35 }
 0x2a3   :  { %v2657_v36 = vpop.f32.mrf.mxu0 }
 0x2ab   :  { %v2668_v41 = vpop.f32.mrf.mxu1 }
 0x2ac   :  { %v2669_v42 = vadd.f32 %v2668_v41, %v2656_v39 }
 0x2ae   :  { %v2673_v43 = vsel %vm2672_vm0, %v2669_v42, -inf }
 0x2af   :  { %2674 = vmax.xlane.f32.xlu0 %v2673_v43 }
 0x2b3   :  { %v2670_v44 = vpop.f32.mrf.mxu1 }
 0x322   :  { %v2675_v45 = vpop.xlane.xlu0 %2674 }
 0x323   :  { %v2676_v27 = vsub.f32 %v2669_v42, %v2675_v45 }
 0x325   :  { %v2677_v47 = vmul.f32 1.442695, %v2676_v27 }
 0x327   :  { %4384 = vpow2.f32 %v2677_v47 }
 0x32d   :  { %v4385_v48 = vpop.eup %4384 }
 0x32e   :  { %v2679_v40 = vsel %vm2672_vm0, %v4385_v48, 0.0 }
 0x32f   :  { %2680 = vadd.xlane.f32.xlu0 %v2679_v40 }
 0x3a2   :  { %v2681_v28 = vpop.xlane.xlu0 %2680 }
 0x3a3   :  { %4386 = vlog2.f32 %v2681_v28 }
 0x3a9   :  { %v4387_v29 = vpop.eup %4386 }
 0x3aa   :  { %v2683_v34 = vmul.f32 0.6931472, %v4387_v29 }
 0x3ac   :  { %v2684_v49 = vsub.f32 %v2676_v27, %v2683_v34 }
 0x3ae   :  { %2685 = vst.msk [vmem:[#allocation2] sm:$0x3] %vm2672_vm0, %v2684_v49 }
 0x3af   :  { %2696 = dma.vmem_to_hbm [thread:$0]  %s2692_s6, 32, %s2694_s15, [#allocation3]  }
 0x3b0   :  { %4421 = dma.done.wait [#allocation3], 32  }
 0x3b1   :  { %4422 = vsyncadd [#allocation3], 4294967264 }
 0x3b2   :  { %2701 = vsyncpa [#allocation3], 1 }

// kernel: net_forward.6
= control target key start
LH: loop header
LB: loop body
LE: loop exit
PB: predicated region body
PF: predicated region fallthrough
CT: control target
= control target key end

     0   :  { %vm77_vm0 = vcmask 1043456   ;;  %vm73_vm1 = vcmask 64512   ;;  %vm2825_vm2 = vcmask 1041408   ;;  %vm2897_vm3 = vcmask 1040384   ;;  %s14031_s2 = inlined_call_operand.vmem [shape: bf16[256,256], index: 2, kind: input, shape index: {}]   ;;  %s14032_s3 = inlined_call_operand.vmem [shape: bf16[8,256], index: 3, kind: input, shape index: {}]   ;;  %s14033_s1 = inlined_call_operand.vmem [shape: bf16[2,2,8], index: 1, kind: input, shape index: {}]   ;;  %s14034_s0 = inlined_call_operand.vmem [shape: bf16[2,2,256], index: 0, kind: input, shape index: {}]   ;;  %s14035_s5 = inlined_call_operand.vmem [shape: bf16[256,512], index: 5, kind: input, shape index: {}]   ;;  %s14036_s4 = inlined_call_operand.vmem [shape: f32[1,256], index: 4, kind: input, shape index: {}]   ;;  %s14037_s7 = inlined_call_operand.vmem [shape: bf16[512,1024], index: 7, kind: input, shape index: {}]   ;;  %s14038_s6 = inlined_call_operand.vmem [shape: f32[1,512], index: 6, kind: input, shape index: {}]   ;;  %s14039_s8 = inlined_call_operand.vmem [shape: f32[1,1024], index: 8, kind: input, shape index: {}]   ;;  %s14040_s9 = inlined_call_operand.vmem [shape: bf16[2,1,1024], index: 9, kind: output, shape index: {}]  }
   0x1   :  { %v5899_v0 = vld [vmem:[%s14031_s2 + $0x70] sm:$0xf]  ;;  %v8678_v1 = vld [vmem:[%s14031_s2 + $0x74] sm:$0xf0]  ;;  %v67_v5 = vld [vmem:[%s14032_s3] sm:$0xff]  ;;  %vm2901_vm4 = vcmask 1042434  }
   0x2   :  { %v5963_v2 = vld [vmem:[%s14031_s2 + $0xf0] sm:$0xf]  ;;  %v5900_v3 = vor.u32 %v8678_v1, %v5899_v0  ;;  %v8694_v4 = vld [vmem:[%s14031_s2 + $0xf4] sm:$0xf0]  ;;  %v5891_v6 = vld [vmem:[%s14031_s2 + $0x60] sm:$0xf]  ;;  %v69_v8 = vunpack.c.l.b16 %v67_v5  ;;  %v70_v9 = vunpack.c.h.b16 %v67_v5 }
   0x3   :  { %v5964_v7 = vor.u32 %v8694_v4, %v5963_v2  ;;  %v8676_v10 = vld [vmem:[%s14031_s2 + $0x64] sm:$0xf0]  ;;  %v5955_v11 = vld [vmem:[%s14031_s2 + $0xe0] sm:$0xf]  ;;  %v8677_v13 = vld [vmem:[%s14031_s2 + $0x74] sm:$0xf] }
   0x4   :  { %v8692_v12 = vld [vmem:[%s14031_s2 + $0xe4] sm:$0xf0]  ;;  %276 = vmatpush.bf16.msra.mxu2 %v5900_v3  ;;  %v5901_v14 = vld [vmem:[%s14031_s2 + $0x78] sm:$0xf0]  ;;  %v8693_v15 = vld [vmem:[%s14031_s2 + $0xf4] sm:$0xf]  ;;  %v71_v16 = vpack.c.b16 %v69_v8, %v69_v8  ;;  %v72_v17 = vpack.c.b16 %v70_v9, %v70_v9  ;;  %v5892_v18 = vor.u32 %v8676_v10, %v5891_v6 }
   0x5   :  { %289 = vmatpush.bf16.msra.mxu3 %v5964_v7  ;;  %v5956_v19 = vor.u32 %v8692_v12, %v5955_v11  ;;  %v5965_v20 = vld [vmem:[%s14031_s2 + $0xf8] sm:$0xf0]  ;;  %v5883_v21 = vld [vmem:[%s14031_s2 + $0x50] sm:$0xf]  ;;  %v8674_v22 = vld [vmem:[%s14031_s2 + $0x54] sm:$0xf0]  ;;  %v5904_v23 = vor.u32 %v8677_v13, %v5901_v14 }
   0x6   :  { %v5968_v24 = vor.u32 %v8693_v15, %v5965_v20  ;;  %v5947_v25 = vld [vmem:[%s14031_s2 + $0xd0] sm:$0xf]  ;;  %v8690_v26 = vld [vmem:[%s14031_s2 + $0xd4] sm:$0xf0]  ;;  %v8675_v27 = vld [vmem:[%s14031_s2 + $0x64] sm:$0xf]  ;;  %v5884_v33 = vor.u32 %v8674_v22, %v5883_v21 }
   0x7   :  { %v79_v28 = vsel %vm77_vm0, %v71_v16, 0  ;;  %v82_v29 = vsel %vm77_vm0, %v72_v17, 0  ;;  %v5893_v30 = vld [vmem:[%s14031_s2 + $0x68] sm:$0xf0]  ;;  %v8691_v31 = vld [vmem:[%s14031_s2 + $0xe4] sm:$0xf]  ;;  %v5948_v34 = vor.u32 %v8690_v26, %v5947_v25 }
   0x8   :  { %91 = vmatpush.bf16.msra.mxu0 %v79_v28  ;;  %104 = vmatpush.bf16.msra.mxu1 %v82_v29  ;;  %v5957_v32 = vld [vmem:[%s14031_s2 + $0xe8] sm:$0xf0]  ;;  %v5875_v35 = vld [vmem:[%s14031_s2 + $0x40] sm:$0xf]  ;;  %v8672_v36 = vld [vmem:[%s14031_s2 + $0x44] sm:$0xf0]  ;;  %v5896_v38 = vor.u32 %v8675_v27, %v5893_v30 }
   0x9   :  { %277 = vmatpush.bf16.msra.mxu2 %v5892_v18  ;;  %290 = vmatpush.bf16.msra.mxu3 %v5956_v19  ;;  %v5939_v37 = vld [vmem:[%s14031_s2 + $0xc0] sm:$0xf]  ;;  %v5960_v39 = vor.u32 %v8691_v31, %v5957_v32  ;;  %v8688_v40 = vld [vmem:[%s14031_s2 + $0xc4] sm:$0xf0]  ;;  %v8673_v41 = vld [vmem:[%s14031_s2 + $0x54] sm:$0xf]  ;;  %v5876_v46 = vor.u32 %v8672_v36, %v5875_v35 }
   0xa   :  { %v5885_v42 = vld [vmem:[%s14031_s2 + $0x58] sm:$0xf0]  ;;  %v8689_v43 = vld [vmem:[%s14031_s2 + $0xd4] sm:$0xf]  ;;  %v34_v45 = vld [vmem:[%s14033_s1] sm:$0x1]  ;;  %v5940_v47 = vor.u32 %v8688_v40, %v5939_v37 }
   0xb   :  { %v5949_v44 = vld [vmem:[%s14031_s2 + $0xd8] sm:$0xf0]  ;;  %5839 = vmatmul.msk.bf16.vlgmr.msra.gmra.mxu0 %vm73_vm1, %v34_v45  ;;  %5840 = vmatmul.msk.bf16.vlgmr.msra.gmra.mxu1 %vm73_vm1, %v34_v45  ;;  %v5867_v48 = vld [vmem:[%s14031_s2 + $0x30] sm:$0xf]  ;;  %v8670_v49 = vld [vmem:[%s14031_s2 + $0x34] sm:$0xf0]  ;;  %v5888_v50 = vor.u32 %v8673_v41, %v5885_v42 }
   0xc   :  { %302 = vmatpush.bf16.msrb.mxu0 %v5904_v23  ;;  %315 = vmatpush.bf16.msrb.mxu1 %v5968_v24  ;;  %v5952_v51 = vor.u32 %v8689_v43, %v5949_v44  ;;  %v5931_v52 = vld [vmem:[%s14031_s2 + $0xb0] sm:$0xf]  ;;  %v8686_v53 = vld [vmem:[%s14031_s2 + $0xb4] sm:$0xf0]  ;;  %v8671_v54 = vld [vmem:[%s14031_s2 + $0x44] sm:$0xf]  ;;  %v5868_v58 = vor.u32 %v8670_v49, %v5867_v48 }
   0xd   :  { %278 = vmatpush.bf16.msra.mxu2 %v5884_v33  ;;  %291 = vmatpush.bf16.msra.mxu3 %v5948_v34  ;;  %v5877_v55 = vld [vmem:[%s14031_s2 + $0x48] sm:$0xf0]  ;;  %v8687_v56 = vld [vmem:[%s14031_s2 + $0xc4] sm:$0xf]  ;;  %v5932_v59 = vor.u32 %v8686_v53, %v5931_v52  ;;  %v5859_v60 = vld [vmem:[%s14031_s2 + $0x20] sm:$0xf] }
   0xe   :  { %v5941_v57 = vld [vmem:[%s14031_s2 + $0xc8] sm:$0xf0]  ;;  %v8668_v61 = vld [vmem:[%s14031_s2 + $0x24] sm:$0xf0]  ;;  %v5880_v62 = vor.u32 %v8671_v54, %v5877_v55  ;;  %v5923_v0 = vld [vmem:[%s14031_s2 + $0xa0] sm:$0xf] }
   0xf   :  { %v5944_v63 = vor.u32 %v8687_v56, %v5941_v57  ;;  %v8684_v1 = vld [vmem:[%s14031_s2 + $0xa4] sm:$0xf0]  ;;  %v8669_v2 = vld [vmem:[%s14031_s2 + $0x34] sm:$0xf]  ;;  %v5869_v3 = vld [vmem:[%s14031_s2 + $0x38] sm:$0xf0]  ;;  %v5860_v7 = vor.u32 %v8668_v61, %v5859_v60 }
  0x10   :  { %303 = vmatpush.bf16.msrb.mxu0 %v5896_v38  ;;  %316 = vmatpush.bf16.msrb.mxu1 %v5960_v39  ;;  %v8685_v4 = vld [vmem:[%s14031_s2 + $0xb4] sm:$0xf]  ;;  %v5933_v5 = vld [vmem:[%s14031_s2 + $0xb8] sm:$0xf0]  ;;  %v5851_v6 = vld [vmem:[%s14031_s2 + $0x10] sm:$0xf]  ;;  %v5924_v8 = vor.u32 %v8684_v1, %v5923_v0  ;;  %v5872_v12 = vor.u32 %v8669_v2, %v5869_v3 }
  0x11   :  { %279 = vmatpush.bf16.msra.mxu2 %v5876_v46  ;;  %292 = vmatpush.bf16.msra.mxu3 %v5940_v47  ;;  %v8666_v9 = vld [vmem:[%s14031_s2 + $0x14] sm:$0xf0]  ;;  %v5915_v10 = vld [vmem:[%s14031_s2 + $0x90] sm:$0xf]  ;;  %v5936_v13 = vor.u32 %v8685_v4, %v5933_v5  ;;  %v8667_v14 = vld [vmem:[%s14031_s2 + $0x24] sm:$0xf] }
  0x12   :  { %v8682_v11 = vld [vmem:[%s14031_s2 + $0x94] sm:$0xf0]  ;;  %v5861_v15 = vld [vmem:[%s14031_s2 + $0x28] sm:$0xf0]  ;;  %v33_v16 = vld [vmem:[%s14034_s0] sm:$0x3]  ;;  %v5852_v20 = vor.u32 %v8666_v9, %v5851_v6 }
  0x13   :  { %v8683_v17 = vld [vmem:[%s14031_s2 + $0xa4] sm:$0xf]  ;;  %v5925_v18 = vld [vmem:[%s14031_s2 + $0xa8] sm:$0xf0]  ;;  %111 = vst [vmem:[#allocation1] ss:$9 sm:$0xff] %v33_v16  ;;  %v5916_v21 = vor.u32 %v8682_v11, %v5915_v10  ;;  %v5864_v25 = vor.u32 %v8667_v14, %v5861_v15 }
  0x14   :  { %304 = vmatpush.bf16.msrb.mxu0 %v5888_v50  ;;  %317 = vmatpush.bf16.msrb.mxu1 %v5952_v51  ;;  %v5843_v19 = vld [vmem:[%s14031_s2] sm:$0xf]  ;;  %v8664_v22 = vld [vmem:[%s14031_s2 + $0x4] sm:$0xf0]  ;;  %v5928_v26 = vor.u32 %v8683_v17, %v5925_v18  ;;  %v8665_v27 = vld [vmem:[%s14031_s2 + $0x14] sm:$0xf] }
  0x15   :  { %280 = vmatpush.bf16.msra.mxu2 %v5868_v58  ;;  %293 = vmatpush.bf16.msra.mxu3 %v5932_v59  ;;  %v5907_v23 = vld [vmem:[%s14031_s2 + $0x80] sm:$0xf]  ;;  %v8680_v24 = vld [vmem:[%s14031_s2 + $0x84] sm:$0xf0]  ;;  %v5853_v28 = vld [vmem:[%s14031_s2 + $0x18] sm:$0xf0]  ;;  %v5844_v36 = vor.u32 %v8664_v22, %v5843_v19 }
  0x16   :  { %v8681_v29 = vld [vmem:[%s14031_s2 + $0x94] sm:$0xf]  ;;  %v5917_v30 = vld [vmem:[%s14031_s2 + $0x98] sm:$0xf0]  ;;  %v7249_v31 = vld [vmem:[%s14034_s0 + $0x2] sm:$0x3]  ;;  %v5908_v37 = vor.u32 %v8680_v24, %v5907_v23  ;;  %v5856_v41 = vor.u32 %v8665_v27, %v5853_v28 }
  0x17   :  { %v6211_v32 = vld [vmem:[%s14035_s5 + $0x1e0] sm:$0xf]  ;;  %v8757_v33 = vld [vmem:[%s14035_s5 + $0x1ec] sm:$0xf0]  ;;  %v8663_v38 = vld [vmem:[%s14031_s2 + $0x4] sm:$0xf]  ;;  %v5920_v42 = vor.u32 %v8681_v29, %v5917_v30 }
  0x18   :  { %305 = vmatpush.bf16.msrb.mxu0 %v5880_v62  ;;  %318 = vmatpush.bf16.msrb.mxu1 %v5944_v63  ;;  %v6083_v34 = vld [vmem:[%s14035_s5 + $0xe0] sm:$0xf]  ;;  %v8725_v35 = vld [vmem:[%s14035_s5 + $0xec] sm:$0xf0]  ;;  %v5845_v39 = vld [vmem:[%s14031_s2 + $0x8] sm:$0xf0]  ;;  %v6212_v46 = vor.u32 %v8757_v33, %v6211_v32 }
  0x19   :  { %281 = vmatpush.bf16.msra.mxu2 %v5860_v7  ;;  %294 = vmatpush.bf16.msra.mxu3 %v5924_v8  ;;  %v8679_v40 = vld [vmem:[%s14031_s2 + $0x84] sm:$0xf]  ;;  %v5909_v45 = vld [vmem:[%s14031_s2 + $0x88] sm:$0xf0]  ;;  %v6213_v48 = vld [vmem:[%s14035_s5 + $0x1f0] sm:$0xf0]  ;;  %v6084_v49 = vor.u32 %v8725_v35, %v6083_v34  ;;  %v5848_v56 = vor.u32 %v8663_v38, %v5845_v39 }
  0x1a   :  { %v112_v43 = vld [vmem:[#allocation1] sm:$0xff]  ;;  %v113_v44 = vld [vmem:[#allocation1 + $0x9] sm:$0xff]  ;;  %v6085_v51 = vld [vmem:[%s14035_s5 + $0xf0] sm:$0xf0]  ;;  %v5912_v57 = vor.u32 %v8679_v40, %v5909_v45  ;;  %vm2919_vm5 = vsmask.f32 256 }
  0x1b   :  { %3030 = vst [vmem:[#allocation1] ss:$9 sm:$0xff] %v7249_v31  ;;  %v8755_v47 = vld [vmem:[%s14035_s5 + $0x1e4] sm:$0xf]  ;;  %v6195_v52 = vld [vmem:[%s14035_s5 + $0x1c0] sm:$0xf]  ;;  %vm12058_vm8 = vmand %vm2897_vm3, %vm2919_vm5 }
  0x1c   :  { %306 = vmatpush.bf16.msrb.mxu0 %v5872_v12  ;;  %319 = vmatpush.bf16.msrb.mxu1 %v5936_v13  ;;  %v8723_v50 = vld [vmem:[%s14035_s5 + $0xe4] sm:$0xf]  ;;  %v8753_v53 = vld [vmem:[%s14035_s5 + $0x1cc] sm:$0xf0]  ;;  %v6067_v54 = vld [vmem:[%s14035_s5 + $0xc0] sm:$0xf]  ;;  %v6216_v58 = vor.u32 %v8755_v47, %v6213_v48 }
  0x1d   :  { %282 = vmatpush.bf16.msra.mxu2 %v5852_v20  ;;  %295 = vmatpush.bf16.msra.mxu3 %v5916_v21  ;;  %v8721_v55 = vld [vmem:[%s14035_s5 + $0xcc] sm:$0xf0]  ;;  %v6088_v59 = vor.u32 %v8723_v50, %v6085_v51  ;;  %v8751_v60 = vld [vmem:[%s14035_s5 + $0x1c4] sm:$0xf]  ;;  %v6197_v61 = vld [vmem:[%s14035_s5 + $0x1d0] sm:$0xf0]  ;;  %v6196_v62 = vor.u32 %v8753_v53, %v6195_v52 }
  0x1e   :  { %v6068_v63 = vor.u32 %v8721_v55, %v6067_v54  ;;  %v8719_v0 = vld [vmem:[%s14035_s5 + $0xc4] sm:$0xf]  ;;  %v6069_v1 = vld [vmem:[%s14035_s5 + $0xd0] sm:$0xf0]  ;;  %v6179_v2 = vld [vmem:[%s14035_s5 + $0x1a0] sm:$0xf]  ;;  %v6200_v6 = vor.u32 %v8751_v60, %v6197_v61 }
  0x1f   :  { %v8749_v3 = vld [vmem:[%s14035_s5 + $0x1ac] sm:$0xf0]  ;;  %v6051_v4 = vld [vmem:[%s14035_s5 + $0xa0] sm:$0xf]  ;;  %v6072_v7 = vor.u32 %v8719_v0, %v6069_v1  ;;  %v8747_v8 = vld [vmem:[%s14035_s5 + $0x1a4] sm:$0xf] }
  0x20   :  { %307 = vmatpush.bf16.msrb.mxu0 %v5864_v25  ;;  %320 = vmatpush.bf16.msrb.mxu1 %v5928_v26  ;;  %v8717_v5 = vld [vmem:[%s14035_s5 + $0xac] sm:$0xf0]  ;;  %v6180_v9 = vor.u32 %v8749_v3, %v6179_v2  ;;  %v6181_v10 = vld [vmem:[%s14035_s5 + $0x1b0] sm:$0xf0]  ;;  %v8715_v12 = vld [vmem:[%s14035_s5 + $0xa4] sm:$0xf] }
  0x21   :  { %283 = vmatpush.bf16.msra.mxu2 %v5844_v36  ;;  %296 = vmatpush.bf16.msra.mxu3 %v5908_v37  ;;  %v6052_v11 = vor.u32 %v8717_v5, %v6051_v4  ;;  %v6053_v13 = vld [vmem:[%s14035_s5 + $0xb0] sm:$0xf0]  ;;  %v6163_v14 = vld [vmem:[%s14035_s5 + $0x180] sm:$0xf]  ;;  %v8745_v15 = vld [vmem:[%s14035_s5 + $0x18c] sm:$0xf0]  ;;  %v6184_v16 = vor.u32 %v8747_v8, %v6181_v10 }
  0x22   :  { %v6056_v17 = vor.u32 %v8715_v12, %v6053_v13  ;;  %v6164_v18 = vor.u32 %v8745_v15, %v6163_v14  ;;  %v8743_v19 = vld [vmem:[%s14035_s5 + $0x184] sm:$0xf]  ;;  %v6165_v20 = vld [vmem:[%s14035_s5 + $0x190] sm:$0xf0]  ;;  %v6035_v22 = vld [vmem:[%s14035_s5 + $0x80] sm:$0xf] }
  0x23   :  { %v6168_v21 = vor.u32 %v8743_v19, %v6165_v20  ;;  %v8713_v23 = vld [vmem:[%s14035_s5 + $0x8c] sm:$0xf0]  ;;  %v8711_v24 = vld [vmem:[%s14035_s5 + $0x84] sm:$0xf]  ;;  %v6037_v26 = vld [vmem:[%s14035_s5 + $0x90] sm:$0xf0] }
  0x24   :  { %308 = vmatpush.bf16.msrb.mxu0 %v5856_v41  ;;  %321 = vmatpush.bf16.msrb.mxu1 %v5920_v42  ;;  %v6036_v25 = vor.u32 %v8713_v23, %v6035_v22  ;;  %v6147_v27 = vld [vmem:[%s14035_s5 + $0x160] sm:$0xf]  ;;  %v8741_v28 = vld [vmem:[%s14035_s5 + $0x16c] sm:$0xf0]  ;;  %v6040_v29 = vor.u32 %v8711_v24, %v6037_v26  ;;  %v8739_v31 = vld [vmem:[%s14035_s5 + $0x164] sm:$0xf] }
  0x25   :  { %750 = vmatpush.bf16.msrb.mxu3 %v6212_v46  ;;  %737 = vmatpush.bf16.msrb.mxu2 %v6084_v49  ;;  %v6148_v30 = vor.u32 %v8741_v28, %v6147_v27  ;;  %v6149_v32 = vld [vmem:[%s14035_s5 + $0x170] sm:$0xf0]  ;;  %v6019_v33 = vld [vmem:[%s14035_s5 + $0x60] sm:$0xf]  ;;  %v8709_v35 = vld [vmem:[%s14035_s5 + $0x6c] sm:$0xf0] }
  0x26   :  { %284 = vmatmul.bf16.vlgmr.msra.gmra.mxu2 %v112_v43  ;;  %297 = vmatmul.bf16.vlgmr.msra.gmra.mxu3 %v113_v44  ;;  %v6152_v34 = vor.u32 %v8739_v31, %v6149_v32  ;;  %v8707_v36 = vld [vmem:[%s14035_s5 + $0x64] sm:$0xf]  ;;  %v6021_v37 = vld [vmem:[%s14035_s5 + $0x70] sm:$0xf0]  ;;  %v6020_v38 = vor.u32 %v8709_v35, %v6019_v33  ;;  %v6131_v40 = vld [vmem:[%s14035_s5 + $0x140] sm:$0xf] }
  0x27   :  { %v6024_v39 = vor.u32 %v8707_v36, %v6021_v37  ;;  %v8737_v41 = vld [vmem:[%s14035_s5 + $0x14c] sm:$0xf0]  ;;  %v8735_v42 = vld [vmem:[%s14035_s5 + $0x144] sm:$0xf]  ;;  %v6003_v46 = vld [vmem:[%s14035_s5 + $0x40] sm:$0xf] }
  0x28   :  { %309 = vmatpush.bf16.msrb.mxu0 %v5848_v56  ;;  %322 = vmatpush.bf16.msrb.mxu1 %v5912_v57  ;;  %v8705_v47 = vld [vmem:[%s14035_s5 + $0x4c] sm:$0xf0]  ;;  %v8703_v48 = vld [vmem:[%s14035_s5 + $0x44] sm:$0xf]  ;;  %v6005_v50 = vld [vmem:[%s14035_s5 + $0x50] sm:$0xf0] }
  0x29   :  { %751 = vmatpush.bf16.msrb.mxu3 %v6196_v62  ;;  %738 = vmatpush.bf16.msrb.mxu2 %v6068_v63  ;;  %v6004_v49 = vor.u32 %v8705_v47, %v6003_v46  ;;  %v6115_v51 = vld [vmem:[%s14035_s5 + $0x120] sm:$0xf]  ;;  %v8733_v52 = vld [vmem:[%s14035_s5 + $0x12c] sm:$0xf0]  ;;  %v6008_v53 = vor.u32 %v8703_v48, %v6005_v50  ;;  %v8731_v55 = vld [vmem:[%s14035_s5 + $0x124] sm:$0xf] }
  0x2a   :  { %v6116_v54 = vor.u32 %v8733_v52, %v6115_v51  ;;  %v6117_v56 = vld [vmem:[%s14035_s5 + $0x130] sm:$0xf0]  ;;  %v5987_v57 = vld [vmem:[%s14035_s5 + $0x20] sm:$0xf]  ;;  %v8699_v60 = vld [vmem:[%s14035_s5 + $0x24] sm:$0xf] }
  0x2b   :  { %310 = vmatmul.bf16.vlgmr.msrb.gmra.mxu0 %v112_v43  ;;  %323 = vmatmul.bf16.vlgmr.msrb.gmra.mxu1 %v113_v44  ;;  %v6132_v43 = vor.u32 %v8737_v41, %v6131_v40  ;;  %v6133_v44 = vld [vmem:[%s14035_s5 + $0x150] sm:$0xf0]  ;;  %v6099_v0 = vld [vmem:[%s14035_s5 + $0x100] sm:$0xf]  ;;  %v8729_v1 = vld [vmem:[%s14035_s5 + $0x10c] sm:$0xf0] }
  0x2c   :  { %776 = vmatpush.bf16.msra.mxu1 %v6216_v58  ;;  %763 = vmatpush.bf16.msra.mxu0 %v6088_v59  ;;  %v6136_v45 = vor.u32 %v8735_v42, %v6133_v44  ;;  %v6120_v58 = vor.u32 %v8731_v55, %v6117_v56  ;;  %v8701_v59 = vld [vmem:[%s14035_s5 + $0x2c] sm:$0xf0]  ;;  %v5989_v61 = vld [vmem:[%s14035_s5 + $0x30] sm:$0xf0]  ;;  %v8727_v2 = vld [vmem:[%s14035_s5 + $0x104] sm:$0xf]  ;;  %v6100_v3 = vor.u32 %v8729_v1, %v6099_v0 }
  0x2d   :  { %752 = vmatpush.bf16.msrb.mxu3 %v6180_v9  ;;  %739 = vmatpush.bf16.msrb.mxu2 %v6052_v11  ;;  %v5988_v62 = vor.u32 %v8701_v59, %v5987_v57  ;;  %v5992_v63 = vor.u32 %v8699_v60, %v5989_v61  ;;  %v6101_v4 = vld [vmem:[%s14035_s5 + $0x110] sm:$0xf0]  ;;  %v6219_v5 = vld [vmem:[%s14035_s5 + $0x1e8] sm:$0xf]  ;;  %v8756_v9 = vld [vmem:[%s14035_s5 + $0x1ec] sm:$0xf] }
  0x2e   :  { %v6221_v10 = vld [vmem:[%s14035_s5 + $0x1f8] sm:$0xf0]  ;;  %v5971_v11 = vld [vmem:[%s14035_s5] sm:$0xf]  ;;  %v8697_v13 = vld [vmem:[%s14035_s5 + $0xc] sm:$0xf0] }
  0x2f   :  { %v6224_v12 = vor.u32 %v8756_v9, %v6221_v10  ;;  %v8695_v14 = vld [vmem:[%s14035_s5 + $0x4] sm:$0xf]  ;;  %v5973_v15 = vld [vmem:[%s14035_s5 + $0x10] sm:$0xf0]  ;;  %v8726_v19 = vld [vmem:[%s14035_s5 + $0xf4] sm:$0xf0] }
  0x30   :  { %777 = vmatpush.bf16.msra.mxu1 %v6200_v6  ;;  %764 = vmatpush.bf16.msra.mxu0 %v6072_v7  ;;  %v8758_v6 = vld [vmem:[%s14035_s5 + $0x1f4] sm:$0xf0]  ;;  %v6104_v7 = vor.u32 %v8727_v2, %v6101_v4  ;;  %v8724_v20 = vld [vmem:[%s14035_s5 + $0xec] sm:$0xf]  ;;  %v6093_v22 = vld [vmem:[%s14035_s5 + $0xf8] sm:$0xf0] }
  0x31   :  { %753 = vmatpush.bf16.msrb.mxu3 %v6164_v18  ;;  %740 = vmatpush.bf16.msrb.mxu2 %v6036_v25  ;;  %v6220_v8 = vor.u32 %v8758_v6, %v6219_v5  ;;  %v6091_v18 = vld [vmem:[%s14035_s5 + $0xe8] sm:$0xf]  ;;  %v6096_v23 = vor.u32 %v8724_v20, %v6093_v22  ;;  %v8754_v25 = vld [vmem:[%s14035_s5 + $0x1d4] sm:$0xf0]  ;;  %v8752_v26 = vld [vmem:[%s14035_s5 + $0x1cc] sm:$0xf] }
  0x32   :  { %v6203_v24 = vld [vmem:[%s14035_s5 + $0x1c8] sm:$0xf]  ;;  %v6205_v28 = vld [vmem:[%s14035_s5 + $0x1d8] sm:$0xf0]  ;;  %v8722_v31 = vld [vmem:[%s14035_s5 + $0xd4] sm:$0xf0] }
  0x33   :  { %v6204_v27 = vor.u32 %v8754_v25, %v6203_v24  ;;  %v8720_v32 = vld [vmem:[%s14035_s5 + $0xcc] sm:$0xf]  ;;  %v6187_v36 = vld [vmem:[%s14035_s5 + $0x1a8] sm:$0xf]  ;;  %v8750_v37 = vld [vmem:[%s14035_s5 + $0x1b4] sm:$0xf0] }
  0x34   :  { %778 = vmatpush.bf16.msra.mxu1 %v6184_v16  ;;  %765 = vmatpush.bf16.msra.mxu0 %v6056_v17  ;;  %v5972_v16 = vor.u32 %v8697_v13, %v5971_v11  ;;  %v5976_v17 = vor.u32 %v8695_v14, %v5973_v15  ;;  %v6189_v40 = vld [vmem:[%s14035_s5 + $0x1b8] sm:$0xf0]  ;;  %v6059_v44 = vld [vmem:[%s14035_s5 + $0xa8] sm:$0xf]  ;;  %v8716_v47 = vld [vmem:[%s14035_s5 + $0xac] sm:$0xf] }
  0x35   :  { %754 = vmatpush.bf16.msrb.mxu3 %v6148_v30  ;;  %741 = vmatpush.bf16.msrb.mxu2 %v6020_v38  ;;  %v6075_v30 = vld [vmem:[%s14035_s5 + $0xc8] sm:$0xf]  ;;  %v8748_v38 = vld [vmem:[%s14035_s5 + $0x1ac] sm:$0xf]  ;;  %v6061_v48 = vld [vmem:[%s14035_s5 + $0xb8] sm:$0xf0] }
  0x36   :  { %v6076_v33 = vor.u32 %v8722_v31, %v6075_v30  ;;  %v6171_v50 = vld [vmem:[%s14035_s5 + $0x188] sm:$0xf]  ;;  %v8746_v51 = vld [vmem:[%s14035_s5 + $0x194] sm:$0xf0]  ;;  %v6045_v60 = vld [vmem:[%s14035_s5 + $0x98] sm:$0xf0] }
  0x37   :  { %v6172_v52 = vor.u32 %v8746_v51, %v6171_v50  ;;  %v6043_v56 = vld [vmem:[%s14035_s5 + $0x88] sm:$0xf]  ;;  %v8714_v57 = vld [vmem:[%s14035_s5 + $0x94] sm:$0xf0]  ;;  %v8740_v0 = vld [vmem:[%s14035_s5 + $0x16c] sm:$0xf] }
  0x38   :  { %779 = vmatpush.bf16.msra.mxu1 %v6168_v21  ;;  %766 = vmatpush.bf16.msra.mxu0 %v6040_v29  ;;  %v6092_v21 = vor.u32 %v8726_v19, %v6091_v18  ;;  %v6208_v29 = vor.u32 %v8752_v26, %v6205_v28  ;;  %v6044_v59 = vor.u32 %v8714_v57, %v6043_v56  ;;  %v6157_v2 = vld [vmem:[%s14035_s5 + $0x178] sm:$0xf0]  ;;  %v6027_v6 = vld [vmem:[%s14035_s5 + $0x68] sm:$0xf]  ;;  %v8736_v15 = vld [vmem:[%s14035_s5 + $0x14c] sm:$0xf] }
  0x39   :  { %755 = vmatpush.bf16.msrb.mxu3 %v6132_v43  ;;  %742 = vmatpush.bf16.msrb.mxu2 %v6004_v49  ;;  %v6192_v43 = vor.u32 %v8748_v38, %v6189_v40  ;;  %v6064_v49 = vor.u32 %v8716_v47, %v6061_v48  ;;  %v6160_v5 = vor.u32 %v8740_v0, %v6157_v2  ;;  %v6029_v10 = vld [vmem:[%s14035_s5 + $0x78] sm:$0xf0]  ;;  %v6139_v11 = vld [vmem:[%s14035_s5 + $0x148] sm:$0xf]  ;;  %v8706_v19 = vld [vmem:[%s14035_s5 + $0x54] sm:$0xf0] }
  0x3a   :  { %v8704_v20 = vld [vmem:[%s14035_s5 + $0x4c] sm:$0xf]  ;;  %v6123_v24 = vld [vmem:[%s14035_s5 + $0x128] sm:$0xf]  ;;  %v8734_v25 = vld [vmem:[%s14035_s5 + $0x134] sm:$0xf0] }
  0x3b   :  { %v8732_v26 = vld [vmem:[%s14035_s5 + $0x12c] sm:$0xf]  ;;  %v6125_v28 = vld [vmem:[%s14035_s5 + $0x138] sm:$0xf0]  ;;  %v8702_v30 = vld [vmem:[%s14035_s5 + $0x34] sm:$0xf0] }
  0x3c   :  { %780 = vmatpush.bf16.msra.mxu1 %v6152_v34  ;;  %767 = vmatpush.bf16.msra.mxu0 %v6024_v39  ;;  %v6077_v34 = vld [vmem:[%s14035_s5 + $0xd8] sm:$0xf0]  ;;  %v6188_v39 = vor.u32 %v8750_v37, %v6187_v36  ;;  %v6128_v31 = vor.u32 %v8732_v26, %v6125_v28  ;;  %v8730_v36 = vld [vmem:[%s14035_s5 + $0x114] sm:$0xf0]  ;;  %v8728_v37 = vld [vmem:[%s14035_s5 + $0x10c] sm:$0xf] }
  0x3d   :  { %756 = vmatpush.bf16.msrb.mxu3 %v6116_v54  ;;  %743 = vmatpush.bf16.msrb.mxu2 %v5988_v62  ;;  %v6080_v35 = vor.u32 %v8720_v32, %v6077_v34  ;;  %v6173_v54 = vld [vmem:[%s14035_s5 + $0x198] sm:$0xf0]  ;;  %v6155_v62 = vld [vmem:[%s14035_s5 + $0x168] sm:$0xf]  ;;  %v8700_v32 = vld [vmem:[%s14035_s5 + $0x2c] sm:$0xf] }
  0x3e   :  { %v6107_v34 = vld [vmem:[%s14035_s5 + $0x108] sm:$0xf]  ;;  %v6109_v38 = vld [vmem:[%s14035_s5 + $0x118] sm:$0xf0]  ;;  %v328_v50 = vld [vmem:[%s14036_s4] sm:$0x3] }
  0x3f   :  { %v5979_v40 = vld [vmem:[%s14035_s5 + $0x8] sm:$0xf]  ;;  %v6112_v47 = vor.u32 %v8728_v37, %v6109_v38  ;;  %v9011_v2 = vld [vmem:[%s14037_s7 + $0x7dc] sm:$0xf0]  ;;  %vm2921_vm6 = vcmask 1041409   ;;  %vm2929_vm13 = vcmask 1043459  }
  0x40   :  { %781 = vmatpush.bf16.msra.mxu1 %v6136_v45  ;;  %768 = vmatpush.bf16.msra.mxu0 %v6008_v53  ;;  %v8718_v45 = vld [vmem:[%s14035_s5 + $0xb4] sm:$0xf0]  ;;  %v8744_v53 = vld [vmem:[%s14035_s5 + $0x18c] sm:$0xf]  ;;  %v6643_v26 = vld [vmem:[%s14037_s7 + $0x340] sm:$0xf] }
  0x41   :  { %757 = vmatpush.bf16.msrb.mxu3 %v6100_v3  ;;  %744 = vmatpush.bf16.msrb.mxu2 %v5972_v16  ;;  %v6060_v46 = vor.u32 %v8718_v45, %v6059_v44  ;;  %v6176_v55 = vor.u32 %v8744_v53, %v6173_v54  ;;  %v6141_v16 = vld [vmem:[%s14035_s5 + $0x158] sm:$0xf0]  ;;  %v6108_v44 = vor.u32 %v8730_v36, %v6107_v34  ;;  %v8696_v45 = vld [vmem:[%s14035_s5 + $0xc] sm:$0xf]  ;;  %v331_v54 = vperm.slane %v328_v50, 1 }
  0x42   :  { %v6144_v18 = vor.u32 %v8736_v15, %v6141_v16  ;;  %v8995_v34 = vld [vmem:[%s14037_s7 + $0x75c] sm:$0xf0]  ;;  %vm2922_vm7 = vsmask.f32 1280  ;;  %vm2926_vm10 = vsmask.f32 2304 }
  0x43   :  { %v8931_v36 = vld [vmem:[%s14037_s7 + $0x55c] sm:$0xf0]  ;;  %vm12070_vm9 = vmand %vm2921_vm6, %vm2922_vm7  ;;  %vm2930_vm14 = vsmask.f32 3328  ;;  %vm2906_vm6 = vcmask 1044484  }
  0x44   :  { %782 = vmatpush.bf16.msra.mxu1 %v6120_v58  ;;  %769 = vmatpush.bf16.msra.mxu0 %v5992_v63  ;;  %v8712_v58 = vld [vmem:[%s14035_s5 + $0x8c] sm:$0xf]  ;;  %v8742_v63 = vld [vmem:[%s14035_s5 + $0x174] sm:$0xf0]  ;;  %v6611_v38 = vld [vmem:[%s14037_s7 + $0x300] sm:$0xf] }
  0x45   :  { %802 = vmatpush.bf16.msra.mxu3 %v6220_v8  ;;  %789 = vmatpush.bf16.msra.mxu2 %v6092_v21  ;;  %v6048_v61 = vor.u32 %v8712_v58, %v6045_v60  ;;  %v6156_v1 = vor.u32 %v8742_v63, %v6155_v62  ;;  %v8708_v8 = vld [vmem:[%s14035_s5 + $0x6c] sm:$0xf]  ;;  %v6013_v21 = vld [vmem:[%s14035_s5 + $0x58] sm:$0xf0]  ;;  %v330_v58 = vperm.slane %v328_v50, 0  ;;  %vm2924_vm11 = vmor %vm12070_vm9, %vm12058_vm8  ;;  %vm2937_vm9 = vcmask 1045509  }
  0x46   :  { %v6032_v13 = vor.u32 %v8708_v8, %v6029_v10  ;;  %v6707_v62 = vld [vmem:[%s14037_s7 + $0x3c0] sm:$0xf]  ;;  %vm2927_vm12 = vmand %vm2901_vm4, %vm2926_vm10  ;;  %vm2938_vm10 = vsmask.f32 5376 }
  0x47   :  { %v8883_v63 = vld [vmem:[%s14037_s7 + $0x3dc] sm:$0xf0]  ;;  %vm12113_vm15 = vmor %vm2927_vm12, %vm2924_vm11  ;;  %vm2910_vm12 = vcmask 1046534  }
  0x48   :  { %783 = vmatpush.bf16.msra.mxu1 %v6104_v7  ;;  %770 = vmatpush.bf16.msra.mxu0 %v5976_v17  ;;  %v8710_v7 = vld [vmem:[%s14035_s5 + $0x74] sm:$0xf0]  ;;  %v6011_v17 = vld [vmem:[%s14035_s5 + $0x48] sm:$0xf]  ;;  %v8923_v50 = vld [vmem:[%s14037_s7 + $0x51c] sm:$0xf0] }
  0x49   :  { %803 = vmatpush.bf16.msra.mxu3 %v6204_v27  ;;  %790 = vmatpush.bf16.msra.mxu2 %v6076_v33  ;;  %v6028_v9 = vor.u32 %v8710_v7, %v6027_v6  ;;  %v6012_v22 = vor.u32 %v8706_v19, %v6011_v17  ;;  %v6124_v27 = vor.u32 %v8734_v25, %v6123_v24  ;;  %v5997_v33 = vld [vmem:[%s14035_s5 + $0x38] sm:$0xf0]  ;;  %v6419_v17 = vld [vmem:[%s14037_s7 + $0x180] sm:$0xf]  ;;  %vm12162_vm5 = vmand %vm2929_vm13, %vm2930_vm14  ;;  %vm2942_vm14 = vsmask.f32 6400 }
  0x4a   :  { %v8939_v24 = vld [vmem:[%s14037_s7 + $0x59c] sm:$0xf0]  ;;  %vm2932_vm7 = vmor %vm12162_vm5, %vm12113_vm15  ;;  %vm2945_vm5 = vcmask 1047559  }
  0x4b   :  { %vm12272_vm13 = vmand %vm2937_vm9, %vm2938_vm10  ;;  %vm2914_vm9 = vcmask 1045508  }
  0x4c   :  { %828 = vmatpush.bf16.msrb.mxu1 %v6224_v12  ;;  %815 = vmatpush.bf16.msrb.mxu0 %v6096_v23  ;;  %v8738_v12 = vld [vmem:[%s14035_s5 + $0x154] sm:$0xf0]  ;;  %v6016_v23 = vor.u32 %v8704_v20, %v6013_v21  ;;  %v7187_v20 = vld [vmem:[%s14037_s7 + $0x780] sm:$0xf] }
  0x4d   :  { %804 = vmatpush.bf16.msra.mxu3 %v6188_v39  ;;  %791 = vmatpush.bf16.msra.mxu2 %v6060_v46  ;;  %v6140_v14 = vor.u32 %v8738_v12, %v6139_v11  ;;  %v6000_v39 = vor.u32 %v8700_v32, %v5997_v33  ;;  %v5981_v46 = vld [vmem:[%s14035_s5 + $0x18] sm:$0xf0]  ;;  %v6708_v12 = vor.u32 %v8883_v63, %v6707_v62  ;;  %v7155_v32 = vld [vmem:[%s14037_s7 + $0x740] sm:$0xf] }
  0x4e   :  { %v8915_v62 = vld [vmem:[%s14037_s7 + $0x4dc] sm:$0xf0] }
  0x50   :  { %829 = vmatpush.bf16.msrb.mxu1 %v6208_v29  ;;  %816 = vmatpush.bf16.msrb.mxu0 %v6080_v35  ;;  %v5995_v29 = vld [vmem:[%s14035_s5 + $0x28] sm:$0xf] }
  0x51   :  { %805 = vmatpush.bf16.msra.mxu3 %v6172_v52  ;;  %792 = vmatpush.bf16.msra.mxu2 %v6044_v59  ;;  %v5996_v35 = vor.u32 %v8702_v30, %v5995_v29  ;;  %v6387_v29 = vld [vmem:[%s14037_s7 + $0x140] sm:$0xf] }
  0x52   :  { %v8803_v30 = vld [vmem:[%s14037_s7 + $0x15c] sm:$0xf0] }
  0x54   :  { %830 = vmatpush.bf16.msrb.mxu1 %v6192_v43  ;;  %817 = vmatpush.bf16.msrb.mxu0 %v6064_v49  ;;  %v8698_v43 = vld [vmem:[%s14035_s5 + $0x14] sm:$0xf0]  ;;  %v5984_v49 = vor.u32 %v8696_v45, %v5981_v46  ;;  %v7156_v45 = vor.u32 %v8995_v34, %v7155_v32  ;;  %v7123_v46 = vld [vmem:[%s14037_s7 + $0x700] sm:$0xf]  ;;  %v6453_v32 = vld [vmem:[%s14037_s7 + $0x1e0] sm:$0xf0] }
  0x55   :  { %806 = vmatpush.bf16.msra.mxu3 %v6156_v1  ;;  %793 = vmatpush.bf16.msra.mxu2 %v6028_v9  ;;  %v5980_v48 = vor.u32 %v8698_v43, %v5979_v40  ;;  %v7219_v1 = vld [vmem:[%s14037_s7 + $0x7c0] sm:$0xf]  ;;  %v6388_v40 = vor.u32 %v8803_v30, %v6387_v29  ;;  %v6709_v30 = vld [vmem:[%s14037_s7 + $0x3e0] sm:$0xf0] }
  0x56   :  { %v7220_v19 = vor.u32 %v9011_v2, %v7219_v1  ;;  %v6355_v43 = vld [vmem:[%s14037_s7 + $0x100] sm:$0xf] }
  0x57   :  { %v6291_v1 = vld [vmem:[%s14037_s7 + $0x80] sm:$0xf] }
  0x58   :  { %831 = vmatpush.bf16.msrb.mxu1 %v6176_v55  ;;  %818 = vmatpush.bf16.msrb.mxu0 %v6048_v61  ;;  %v8779_v2 = vld [vmem:[%s14037_s7 + $0x9c] sm:$0xf0] }
  0x59   :  { %807 = vmatpush.bf16.msra.mxu3 %v6140_v14  ;;  %794 = vmatpush.bf16.msra.mxu2 %v6012_v22  ;;  %v8875_v14 = vld [vmem:[%s14037_s7 + $0x39c] sm:$0xf0] }
  0x5a   :  { %v9003_v22 = vld [vmem:[%s14037_s7 + $0x79c] sm:$0xf0] }
  0x5b   :  { %v8955_v34 = vld [vmem:[%s14037_s7 + $0x61c] sm:$0xf0] }
  0x5c   :  { %832 = vmatpush.bf16.msrb.mxu1 %v6160_v5  ;;  %819 = vmatpush.bf16.msrb.mxu0 %v6032_v13  ;;  %v8947_v5 = vld [vmem:[%s14037_s7 + $0x5dc] sm:$0xf0] }
  0x5d   :  { %808 = vmatpush.bf16.msra.mxu3 %v6124_v27  ;;  %795 = vmatpush.bf16.msra.mxu2 %v5996_v35  ;;  %v6675_v13 = vld [vmem:[%s14037_s7 + $0x380] sm:$0xf] }
  0x5e   :  { %v6676_v25 = vor.u32 %v8875_v14, %v6675_v13  ;;  %v8867_v27 = vld [vmem:[%s14037_s7 + $0x35c] sm:$0xf0] }
  0x5f   :  { %v6899_v35 = vld [vmem:[%s14037_s7 + $0x540] sm:$0xf]  ;;  %v6644_v37 = vor.u32 %v8867_v27, %v6643_v26 }
  0x60   :  { %833 = vmatpush.bf16.msrb.mxu1 %v6144_v18  ;;  %820 = vmatpush.bf16.msrb.mxu0 %v6016_v23  ;;  %v8811_v18 = vld [vmem:[%s14037_s7 + $0x19c] sm:$0xf0] }
  0x61   :  { %809 = vmatpush.bf16.msra.mxu3 %v6108_v44  ;;  %796 = vmatpush.bf16.msra.mxu2 %v5980_v48  ;;  %v6931_v23 = vld [vmem:[%s14037_s7 + $0x580] sm:$0xf]  ;;  %v6420_v28 = vor.u32 %v8811_v18, %v6419_v17 }
  0x62   :  { %v6932_v33 = vor.u32 %v8939_v24, %v6931_v23  ;;  %v8795_v44 = vld [vmem:[%s14037_s7 + $0x11c] sm:$0xf0] }
  0x63   :  { %v8987_v48 = vld [vmem:[%s14037_s7 + $0x71c] sm:$0xf0] }
  0x64   :  { %834 = vmatpush.bf16.msrb.mxu1 %v6128_v31  ;;  %821 = vmatpush.bf16.msrb.mxu0 %v6000_v39  ;;  %v7188_v31 = vor.u32 %v9003_v22, %v7187_v20  ;;  %v8859_v39 = vld [vmem:[%s14037_s7 + $0x31c] sm:$0xf0] }
  0x65   :  { %v6259_v13 = vld [vmem:[%s14037_s7 + $0x40] sm:$0xf] }
  0x66   :  { %v8771_v14 = vld [vmem:[%s14037_s7 + $0x5c] sm:$0xf0] }
  0x67   :  { %v8963_v18 = vld [vmem:[%s14037_s7 + $0x65c] sm:$0xf0]  ;;  %v6260_v24 = vor.u32 %v8771_v14, %v6259_v13 }
  0x68   :  { %835 = vmatpush.bf16.msrb.mxu1 %v6112_v47  ;;  %822 = vmatpush.bf16.msrb.mxu0 %v5984_v49  ;;  %v6900_v47 = vor.u32 %v8931_v36, %v6899_v35  ;;  %v6867_v49 = vld [vmem:[%s14037_s7 + $0x500] sm:$0xf] }
  0x69   :  { %v8899_v20 = vld [vmem:[%s14037_s7 + $0x45c] sm:$0xf0] }
  0x6a   :  { %v6483_v22 = vld [vmem:[%s14037_s7 + $0x200] sm:$0xf] }
  0x6b   :  { %v8827_v23 = vld [vmem:[%s14037_s7 + $0x21c] sm:$0xf0] }
  0x6c   :  { %v6227_v26 = vld [vmem:[%s14037_s7] sm:$0xf]  ;;  %v6484_v35 = vor.u32 %v8827_v23, %v6483_v22  ;;  %v6293_v22 = vld [vmem:[%s14037_s7 + $0xa0] sm:$0xf0] }
  0x6d   :  { %v8763_v27 = vld [vmem:[%s14037_s7 + $0x1c] sm:$0xf0]  ;;  %v8935_v23 = vld [vmem:[%s14037_s7 + $0x584] sm:$0xf] }
  0x6e   :  { %v6228_v36 = vor.u32 %v8763_v27, %v6227_v26  ;;  %v8823_v27 = vld [vmem:[%s14037_s7 + $0x204] sm:$0xf] }
  0x88   :  { %v9879_v41 = vpop.f32.mrf.mxu0  ;;  %v9881_v42 = vpop.f32.mrf.mxu1 }
  0x90   :  { %v95_v3 = vpop.f32.mrf.mxu0  ;;  %v108_v4 = vpop.f32.mrf.mxu1 }
  0x91   :  { %v6963_v4 = vld [vmem:[%s14037_s7 + $0x5c0] sm:$0xf] }
  0x92   :  { %v6964_v21 = vor.u32 %v8947_v5, %v6963_v4  ;;  %v7059_v4 = vld [vmem:[%s14037_s7 + $0x680] sm:$0xf] }
  0xa8   :  { %v311_v51 = vpop.f32.mrf.mxu0  ;;  %v324_v52 = vpop.f32.mrf.mxu1 }
  0xa9   :  { %v312_v53 = vadd.f32 %v311_v51, %v9881_v42  ;;  %v285_v55 = vpop.f32.mrf.mxu2  ;;  %v298_v56 = vpop.f32.mrf.mxu3  ;;  %v6451_v42 = vld [vmem:[%s14037_s7 + $0x1c0] sm:$0xf]  ;;  %v6612_v51 = vor.u32 %v8859_v39, %v6611_v38  ;;  %v7221_v38 = vld [vmem:[%s14037_s7 + $0x7e0] sm:$0xf0] }
  0xaa   :  { %v286_v57 = vadd.f32 %v285_v55, %v9879_v41  ;;  %v8819_v41 = vld [vmem:[%s14037_s7 + $0x1dc] sm:$0xf0] }
  0xab   :  { %v325_v59 = vadd.f32 %v324_v52, %v312_v53  ;;  %v6452_v15 = vor.u32 %v8819_v41, %v6451_v42  ;;  %v6579_v52 = vld [vmem:[%s14037_s7 + $0x2c0] sm:$0xf] }
  0xac   :  { %v299_v60 = vadd.f32 %v298_v56, %v286_v57  ;;  %v8851_v53 = vld [vmem:[%s14037_s7 + $0x2dc] sm:$0xf0]  ;;  %v7124_v57 = vor.u32 %v8987_v48, %v7123_v46  ;;  %v6421_v46 = vld [vmem:[%s14037_s7 + $0x1a0] sm:$0xf0] }
  0xad   :  { %v335_v61 = vadd.f32 %v331_v54, %v325_v59  ;;  %v6356_v54 = vor.u32 %v8795_v44, %v6355_v43  ;;  %v6323_v55 = vld [vmem:[%s14037_s7 + $0xc0] sm:$0xf]  ;;  %v6868_v59 = vor.u32 %v8923_v50, %v6867_v49  ;;  %v6580_v63 = vor.u32 %v8851_v53, %v6579_v52  ;;  %v6677_v44 = vld [vmem:[%s14037_s7 + $0x3a0] sm:$0xf0] }
  0xae   :  { %v334_v0 = vadd.f32 %v330_v58, %v299_v60  ;;  %v8787_v56 = vld [vmem:[%s14037_s7 + $0xdc] sm:$0xf0]  ;;  %v8863_v50 = vld [vmem:[%s14037_s7 + $0x344] sm:$0xf] }
  0xaf   :  { %v340_v3 = vmax.f32 %v335_v61, 0.0  ;;  %v7091_v58 = vld [vmem:[%s14037_s7 + $0x6c0] sm:$0xf]  ;;  %v6324_v41 = vor.u32 %v8787_v56, %v6323_v55  ;;  %v6645_v52 = vld [vmem:[%s14037_s7 + $0x360] sm:$0xf0] }
  0xb0   :  { %v339_v6 = vmax.f32 %v334_v0, 0.0  ;;  %v313_v7 = vpop.f32.mrf.mxu0  ;;  %v326_v8 = vpop.f32.mrf.mxu1  ;;  %v8979_v60 = vld [vmem:[%s14037_s7 + $0x6dc] sm:$0xf0]  ;;  %v8799_v53 = vld [vmem:[%s14037_s7 + $0x144] sm:$0xf]  ;;  %v6648_v55 = vor.u32 %v8863_v50, %v6645_v52 }
  0xb1   :  { %v10044_v9 = vpack.c.bf16 %v340_v3, %v340_v3  ;;  %v287_v10 = vpop.f32.mrf.mxu2  ;;  %v300_v11 = vpop.f32.mrf.mxu3  ;;  %v6835_v61 = vld [vmem:[%s14037_s7 + $0x4c0] sm:$0xf]  ;;  %v7092_v3 = vor.u32 %v8979_v60, %v7091_v58  ;;  %v6613_v58 = vld [vmem:[%s14037_s7 + $0x320] sm:$0xf0] }
  0xb2   :  { %v10052_v16 = vpack.c.bf16 %v339_v6, %v339_v6  ;;  %v6547_v42 = vld [vmem:[%s14037_s7 + $0x280] sm:$0xf]  ;;  %v6836_v5 = vor.u32 %v8915_v62, %v6835_v61  ;;  %v8847_v60 = vld [vmem:[%s14037_s7 + $0x2c4] sm:$0xf] }
  0xb3   :  { %758 = vmatmul.bf16.vlgmr.msrb.gmra.mxu3 %v10044_v9  ;;  %784 = vmatmul.bf16.vlgmr.msra.gmra.mxu1 %v10044_v9  ;;  %v8843_v0 = vld [vmem:[%s14037_s7 + $0x29c] sm:$0xf0]  ;;  %v6581_v61 = vld [vmem:[%s14037_s7 + $0x2e0] sm:$0xf0] }
  0xb4   :  { %745 = vmatmul.bf16.vlgmr.msrb.gmra.mxu2 %v10052_v16  ;;  %771 = vmatmul.bf16.vlgmr.msra.gmra.mxu0 %v10052_v16  ;;  %v8971_v6 = vld [vmem:[%s14037_s7 + $0x69c] sm:$0xf0]  ;;  %v6548_v10 = vor.u32 %v8843_v0, %v6547_v42  ;;  %v6584_v62 = vor.u32 %v8847_v60, %v6581_v61  ;;  %v6357_v42 = vld [vmem:[%s14037_s7 + $0x120] sm:$0xf0] }
  0xb5   :  { %2422 = vmatpush.bf16.msrb.mxu3 %v6708_v12  ;;  %2409 = vmatpush.bf16.msrb.mxu2 %v6452_v15  ;;  %v6803_v7 = vld [vmem:[%s14037_s7 + $0x480] sm:$0xf]  ;;  %v6292_v12 = vor.u32 %v8779_v2, %v6291_v1  ;;  %v7060_v15 = vor.u32 %v8971_v6, %v7059_v4  ;;  %v6549_v1 = vld [vmem:[%s14037_s7 + $0x2a0] sm:$0xf0] }
  0xb6   :  { %2448 = vmatpush.bf16.msra.mxu1 %v7220_v19  ;;  %2435 = vmatpush.bf16.msra.mxu0 %v6964_v21  ;;  %v8907_v8 = vld [vmem:[%s14037_s7 + $0x49c] sm:$0xf0]  ;;  %v8999_v2 = vld [vmem:[%s14037_s7 + $0x784] sm:$0xf] }
  0xb7   :  { %v8835_v11 = vld [vmem:[%s14037_s7 + $0x25c] sm:$0xf0]  ;;  %v6804_v17 = vor.u32 %v8907_v8, %v6803_v7  ;;  %v7189_v4 = vld [vmem:[%s14037_s7 + $0x7a0] sm:$0xf0] }
  0xb8   :  { %v6771_v19 = vld [vmem:[%s14037_s7 + $0x440] sm:$0xf]  ;;  %v7192_v6 = vor.u32 %v8999_v2, %v7189_v4  ;;  %v8783_v8 = vld [vmem:[%s14037_s7 + $0xc4] sm:$0xf] }
  0xb9   :  { %2423 = vmatpush.bf16.msrb.mxu3 %v6676_v25  ;;  %2410 = vmatpush.bf16.msrb.mxu2 %v6420_v28  ;;  %v8879_v25 = vld [vmem:[%s14037_s7 + $0x3c4] sm:$0xf]  ;;  %v6772_v29 = vor.u32 %v8899_v20, %v6771_v19  ;;  %v8891_v7 = vld [vmem:[%s14037_s7 + $0x41c] sm:$0xf0] }
  0xba   :  { %2449 = vmatpush.bf16.msra.mxu1 %v7188_v31  ;;  %2436 = vmatpush.bf16.msra.mxu0 %v6932_v33  ;;  %v8815_v31 = vld [vmem:[%s14037_s7 + $0x1c4] sm:$0xf]  ;;  %v6995_v33 = vld [vmem:[%s14037_s7 + $0x600] sm:$0xf]  ;;  %v6712_v39 = vor.u32 %v8879_v25, %v6709_v30 }
  0xbb   :  { %v6456_v43 = vor.u32 %v8815_v31, %v6453_v32  ;;  %v7157_v19 = vld [vmem:[%s14037_s7 + $0x760] sm:$0xf0]  ;;  %v10413_v2 = vld [vmem:[%s14038_s6] sm:$0xf] }
  0xbc   :  { %v6933_v25 = vld [vmem:[%s14037_s7 + $0x5a0] sm:$0xf0] }
  0xbd   :  { %2424 = vmatpush.bf16.msrb.mxu3 %v6644_v37  ;;  %2411 = vmatpush.bf16.msrb.mxu2 %v6388_v40  ;;  %v9007_v37 = vld [vmem:[%s14037_s7 + $0x7c4] sm:$0xf]  ;;  %v6936_v26 = vor.u32 %v8935_v23, %v6933_v25  ;;  %v6459_v25 = vld [vmem:[%s14037_s7 + $0x1c8] sm:$0xf] }
  0xbe   :  { %2450 = vmatpush.bf16.msra.mxu1 %v7156_v45  ;;  %2437 = vmatpush.bf16.msra.mxu0 %v6900_v47  ;;  %v8871_v40 = vld [vmem:[%s14037_s7 + $0x384] sm:$0xf]  ;;  %v6996_v47 = vor.u32 %v8955_v34, %v6995_v33  ;;  %v7224_v48 = vor.u32 %v9007_v37, %v7221_v38 }
  0xbf   :  { %v8807_v45 = vld [vmem:[%s14037_s7 + $0x184] sm:$0xf]  ;;  %v6680_v49 = vor.u32 %v8871_v40, %v6677_v44 }
  0xc0   :  { %v8983_v30 = vld [vmem:[%s14037_s7 + $0x704] sm:$0xf] }
  0xc1   :  { %2425 = vmatpush.bf16.msrb.mxu3 %v6612_v51  ;;  %2412 = vmatpush.bf16.msrb.mxu2 %v6356_v54  ;;  %v6424_v51 = vor.u32 %v8807_v45, %v6421_v46  ;;  %v6389_v54 = vld [vmem:[%s14037_s7 + $0x160] sm:$0xf0] }
  0xc2   :  { %2451 = vmatpush.bf16.msra.mxu1 %v7124_v57  ;;  %2438 = vmatpush.bf16.msra.mxu0 %v6868_v59  ;;  %v6392_v56 = vor.u32 %v8799_v53, %v6389_v54  ;;  %v8855_v57 = vld [vmem:[%s14037_s7 + $0x304] sm:$0xf] }
  0xc3   :  { %810 = vmatmul.bf16.vlgmr.msra.gmra.mxu3 %v10044_v9  ;;  %836 = vmatmul.bf16.vlgmr.msrb.gmra.mxu1 %v10044_v9  ;;  %v6515_v9 = vld [vmem:[%s14037_s7 + $0x240] sm:$0xf]  ;;  %v6616_v59 = vor.u32 %v8855_v57, %v6613_v58  ;;  %v7125_v31 = vld [vmem:[%s14037_s7 + $0x720] sm:$0xf0] }
  0xc4   :  { %797 = vmatmul.bf16.vlgmr.msra.gmra.mxu2 %v10052_v16  ;;  %823 = vmatmul.bf16.vlgmr.msrb.gmra.mxu0 %v10052_v16  ;;  %v7027_v16 = vld [vmem:[%s14037_s7 + $0x640] sm:$0xf]  ;;  %v6516_v21 = vor.u32 %v8835_v11, %v6515_v9  ;;  %v6325_v9 = vld [vmem:[%s14037_s7 + $0xe0] sm:$0xf0]  ;;  %v7128_v32 = vor.u32 %v8983_v30, %v7125_v31  ;;  %v8868_v30 = vld [vmem:[%s14037_s7 + $0x364] sm:$0xf0] }
  0xc5   :  { %2426 = vmatpush.bf16.msrb.mxu3 %v6580_v63  ;;  %2413 = vmatpush.bf16.msrb.mxu2 %v6324_v41  ;;  %v7028_v28 = vor.u32 %v8963_v18, %v7027_v16  ;;  %v8791_v63 = vld [vmem:[%s14037_s7 + $0x104] sm:$0xf]  ;;  %v6328_v13 = vor.u32 %v8783_v8, %v6325_v9 }
  0xc6   :  { %2452 = vmatpush.bf16.msra.mxu1 %v7092_v3  ;;  %2439 = vmatpush.bf16.msra.mxu0 %v6836_v5  ;;  %v6360_v0 = vor.u32 %v8791_v63, %v6357_v42  ;;  %v8839_v41 = vld [vmem:[%s14037_s7 + $0x284] sm:$0xf]  ;;  %v6739_v5 = vld [vmem:[%s14037_s7 + $0x400] sm:$0xf] }
  0xc7   :  { %v6552_v3 = vor.u32 %v8839_v41, %v6549_v1  ;;  %v8943_v11 = vld [vmem:[%s14037_s7 + $0x5c4] sm:$0xf] }
  0xc8   :  { %v6517_v16 = vld [vmem:[%s14037_s7 + $0x260] sm:$0xf0] }
  0xc9   :  { %2427 = vmatpush.bf16.msrb.mxu3 %v6548_v10  ;;  %2414 = vmatpush.bf16.msrb.mxu2 %v6292_v12  ;;  %v6740_v10 = vor.u32 %v8891_v7, %v6739_v5  ;;  %v6965_v12 = vld [vmem:[%s14037_s7 + $0x5e0] sm:$0xf0]  ;;  %v410_v5 = vperm.slane %v10413_v2, 1 }
  0xca   :  { %2453 = vmatpush.bf16.msra.mxu1 %v7060_v15  ;;  %2440 = vmatpush.bf16.msra.mxu0 %v6804_v17  ;;  %v6968_v14 = vor.u32 %v8943_v11, %v6965_v12  ;;  %v8831_v15 = vld [vmem:[%s14037_s7 + $0x244] sm:$0xf]  ;;  %v409_v11 = vperm.slane %v10413_v2, 0  ;;  %v6715_v12 = vld [vmem:[%s14037_s7 + $0x3c8] sm:$0xf] }
  0xcb   :  { %v8991_v17 = vld [vmem:[%s14037_s7 + $0x744] sm:$0xf]  ;;  %v6520_v18 = vor.u32 %v8831_v15, %v6517_v16 }
  0xcc   :  { %v7160_v20 = vor.u32 %v8991_v17, %v7157_v19  ;;  %v8767_v33 = vld [vmem:[%s14037_s7 + $0x44] sm:$0xf] }
  0xcd   :  { %2428 = vmatpush.bf16.msrb.mxu3 %v6516_v21  ;;  %2415 = vmatpush.bf16.msrb.mxu2 %v6260_v24  ;;  %v8775_v21 = vld [vmem:[%s14037_s7 + $0x84] sm:$0xf] }
  0xce   :  { %2454 = vmatpush.bf16.msra.mxu1 %v7028_v28  ;;  %2441 = vmatpush.bf16.msra.mxu0 %v6772_v29  ;;  %v6296_v24 = vor.u32 %v8775_v21, %v6293_v22  ;;  %v6485_v28 = vld [vmem:[%s14037_s7 + $0x220] sm:$0xf0]  ;;  %v6683_v21 = vld [vmem:[%s14037_s7 + $0x388] sm:$0xf] }
  0xcf   :  { %v6488_v29 = vor.u32 %v8823_v27, %v6485_v28  ;;  %v6261_v34 = vld [vmem:[%s14037_s7 + $0x60] sm:$0xf0]  ;;  %v8876_v22 = vld [vmem:[%s14037_s7 + $0x3a4] sm:$0xf0] }
  0xd0   :  { %v6901_v37 = vld [vmem:[%s14037_s7 + $0x560] sm:$0xf0]  ;;  %v6684_v27 = vor.u32 %v8876_v22, %v6683_v21  ;;  %v6299_v22 = vld [vmem:[%s14037_s7 + $0x88] sm:$0xf] }
  0xd1   :  { %2429 = vmatpush.bf16.msrb.mxu3 %v6484_v35  ;;  %2416 = vmatpush.bf16.msrb.mxu2 %v6228_v36  ;;  %v6264_v35 = vor.u32 %v8767_v33, %v6261_v34  ;;  %v8927_v36 = vld [vmem:[%s14037_s7 + $0x544] sm:$0xf]  ;;  %v412_v34 = vperm.slane %v10413_v2, 3 }
  0xd2   :  { %2455 = vmatpush.bf16.msra.mxu1 %v6996_v47  ;;  %2442 = vmatpush.bf16.msra.mxu0 %v6740_v10  ;;  %v6904_v38 = vor.u32 %v8927_v36, %v6901_v37  ;;  %v7093_v40 = vld [vmem:[%s14037_s7 + $0x6e0] sm:$0xf0]  ;;  %v8812_v36 = vld [vmem:[%s14037_s7 + $0x1a4] sm:$0xf0] }
  0xd3   :  { %v8759_v44 = vld [vmem:[%s14037_s7 + $0x4] sm:$0xf] }
  0xd4   :  { %v6229_v45 = vld [vmem:[%s14037_s7 + $0x20] sm:$0xf0] }
  0xd5   :  { %2474 = vmatpush.bf16.msra.mxu3 %v6712_v39  ;;  %2461 = vmatpush.bf16.msra.mxu2 %v6456_v43  ;;  %v8975_v39 = vld [vmem:[%s14037_s7 + $0x6c4] sm:$0xf]  ;;  %v6232_v47 = vor.u32 %v8759_v44, %v6229_v45 }
  0xd6   :  { %2500 = vmatpush.bf16.msrb.mxu1 %v7224_v48  ;;  %2487 = vmatpush.bf16.msrb.mxu0 %v6968_v14  ;;  %v7096_v43 = vor.u32 %v8975_v39, %v7093_v40  ;;  %v8919_v46 = vld [vmem:[%s14037_s7 + $0x504] sm:$0xf]  ;;  %v6619_v40 = vld [vmem:[%s14037_s7 + $0x308] sm:$0xf] }
  0xd7   :  { %v6869_v48 = vld [vmem:[%s14037_s7 + $0x520] sm:$0xf0] }
  0xd8   :  { %v8967_v50 = vld [vmem:[%s14037_s7 + $0x684] sm:$0xf] }
  0xd9   :  { %2475 = vmatpush.bf16.msra.mxu3 %v6680_v49  ;;  %2462 = vmatpush.bf16.msra.mxu2 %v6424_v51  ;;  %v6872_v49 = vor.u32 %v8919_v46, %v6869_v48  ;;  %v7061_v51 = vld [vmem:[%s14037_s7 + $0x6a0] sm:$0xf0]  ;;  %v8804_v48 = vld [vmem:[%s14037_s7 + $0x164] sm:$0xf0] }
  0xda   :  { %2501 = vmatpush.bf16.msrb.mxu1 %v7192_v6  ;;  %2488 = vmatpush.bf16.msrb.mxu0 %v6936_v26  ;;  %v7064_v52 = vor.u32 %v8967_v50, %v7061_v51  ;;  %v8911_v53 = vld [vmem:[%s14037_s7 + $0x4c4] sm:$0xf]  ;;  %v8820_v26 = vld [vmem:[%s14037_s7 + $0x1e4] sm:$0xf0]  ;;  %v411_v50 = vperm.slane %v10413_v2, 2 }
  0xdb   :  { %v6837_v54 = vld [vmem:[%s14037_s7 + $0x4e0] sm:$0xf0]  ;;  %v6460_v31 = vor.u32 %v8820_v26, %v6459_v25  ;;  %v6587_v51 = vld [vmem:[%s14037_s7 + $0x2c8] sm:$0xf] }
  0xdc   :  { %v7029_v57 = vld [vmem:[%s14037_s7 + $0x660] sm:$0xf0]  ;;  %v8844_v2 = vld [vmem:[%s14037_s7 + $0x2a4] sm:$0xf0] }
  0xdd   :  { %2476 = vmatpush.bf16.msra.mxu3 %v6648_v55  ;;  %2463 = vmatpush.bf16.msra.mxu2 %v6392_v56  ;;  %v6840_v55 = vor.u32 %v8911_v53, %v6837_v54  ;;  %v8959_v56 = vld [vmem:[%s14037_s7 + $0x644] sm:$0xf]  ;;  %v8852_v53 = vld [vmem:[%s14037_s7 + $0x2e4] sm:$0xf0] }
  0xde   :  { %2502 = vmatpush.bf16.msrb.mxu1 %v7160_v20  ;;  %2489 = vmatpush.bf16.msrb.mxu0 %v6904_v38  ;;  %v7032_v58 = vor.u32 %v8959_v56, %v7029_v57  ;;  %v6805_v60 = vld [vmem:[%s14037_s7 + $0x4a0] sm:$0xf0]  ;;  %v7227_v54 = vld [vmem:[%s14037_s7 + $0x7c8] sm:$0xf] }
  0xdf   :  { %v6997_v63 = vld [vmem:[%s14037_s7 + $0x620] sm:$0xf0]  ;;  %v8780_v25 = vld [vmem:[%s14037_s7 + $0xa4] sm:$0xf0] }
  0xe0   :  { %v6773_v41 = vld [vmem:[%s14037_s7 + $0x460] sm:$0xf0]  ;;  %v6939_v26 = vld [vmem:[%s14037_s7 + $0x588] sm:$0xf] }
  0xe1   :  { %2477 = vmatpush.bf16.msra.mxu3 %v6616_v59  ;;  %2464 = vmatpush.bf16.msra.mxu2 %v6360_v0  ;;  %v8903_v59 = vld [vmem:[%s14037_s7 + $0x484] sm:$0xf] }
  0xe2   :  { %2503 = vmatpush.bf16.msrb.mxu1 %v7128_v32  ;;  %2490 = vmatpush.bf16.msrb.mxu0 %v6872_v49  ;;  %v6808_v61 = vor.u32 %v8903_v59, %v6805_v60  ;;  %v8895_v0 = vld [vmem:[%s14037_s7 + $0x444] sm:$0xf]  ;;  %v6363_v59 = vld [vmem:[%s14037_s7 + $0x108] sm:$0xf] }
  0xe3   :  { %v6776_v1 = vor.u32 %v8895_v0, %v6773_v41  ;;  %v6741_v4 = vld [vmem:[%s14037_s7 + $0x420] sm:$0xf0]  ;;  %v8796_v60 = vld [vmem:[%s14037_s7 + $0x124] sm:$0xf0] }
  0xe5   :  { %2478 = vmatpush.bf16.msra.mxu3 %v6584_v62  ;;  %2465 = vmatpush.bf16.msra.mxu2 %v6328_v13  ;;  %v8951_v62 = vld [vmem:[%s14037_s7 + $0x604] sm:$0xf]  ;;  %v8884_v13 = vld [vmem:[%s14037_s7 + $0x3e4] sm:$0xf0] }
  0xe6   :  { %2504 = vmatpush.bf16.msrb.mxu1 %v7096_v43  ;;  %2491 = vmatpush.bf16.msrb.mxu0 %v6840_v55  ;;  %v7000_v42 = vor.u32 %v8951_v62, %v6997_v63  ;;  %v6716_v17 = vor.u32 %v8884_v13, %v6715_v12  ;;  %v8860_v43 = vld [vmem:[%s14037_s7 + $0x324] sm:$0xf0]  ;;  %v6588_v62 = vor.u32 %v8852_v53, %v6587_v51  ;;  %v8872_v53 = vld [vmem:[%s14037_s7 + $0x38c] sm:$0xf] }
  0xe7   :  { %v6620_v49 = vor.u32 %v8860_v43, %v6619_v40  ;;  %v9012_v55 = vld [vmem:[%s14037_s7 + $0x7e4] sm:$0xf0] }
  0xe8   :  { %v7228_v63 = vor.u32 %v9012_v55, %v7227_v54  ;;  %v6267_v40 = vld [vmem:[%s14037_s7 + $0x48] sm:$0xf]  ;;  %v6685_v54 = vld [vmem:[%s14037_s7 + $0x3a8] sm:$0xf0] }
  0xe9   :  { %2479 = vmatpush.bf16.msra.mxu3 %v6552_v3  ;;  %2466 = vmatpush.bf16.msra.mxu2 %v6296_v24  ;;  %v8887_v3 = vld [vmem:[%s14037_s7 + $0x404] sm:$0xf]  ;;  %v8772_v43 = vld [vmem:[%s14037_s7 + $0x64] sm:$0xf0] }
  0xea   :  { %2505 = vmatpush.bf16.msrb.mxu1 %v7064_v52  ;;  %2492 = vmatpush.bf16.msrb.mxu0 %v6808_v61  ;;  %v6744_v6 = vor.u32 %v8887_v3, %v6741_v4  ;;  %v7195_v3 = vld [vmem:[%s14037_s7 + $0x788] sm:$0xf]  ;;  %v6268_v51 = vor.u32 %v8772_v43, %v6267_v40  ;;  %v8840_v43 = vld [vmem:[%s14037_s7 + $0x28c] sm:$0xf] }
  0xeb   :  { %v9004_v4 = vld [vmem:[%s14037_s7 + $0x7a4] sm:$0xf0] }
  0xec   :  { %v7196_v13 = vor.u32 %v9004_v4, %v7195_v3  ;;  %v6235_v55 = vld [vmem:[%s14037_s7 + $0x8] sm:$0xf]  ;;  %v6653_v3 = vld [vmem:[%s14037_s7 + $0x368] sm:$0xf0] }
  0xed   :  { %2480 = vmatpush.bf16.msra.mxu3 %v6520_v18  ;;  %2467 = vmatpush.bf16.msra.mxu2 %v6264_v35  ;;  %v6427_v35 = vld [vmem:[%s14037_s7 + $0x188] sm:$0xf] }
  0xee   :  { %2506 = vmatpush.bf16.msrb.mxu1 %v7032_v58  ;;  %2493 = vmatpush.bf16.msrb.mxu0 %v6776_v1  ;;  %v6428_v45 = vor.u32 %v8812_v36, %v6427_v35  ;;  %v8988_v35 = vld [vmem:[%s14037_s7 + $0x724] sm:$0xf0]  ;;  %v6300_v36 = vor.u32 %v8780_v25, %v6299_v22  ;;  %v6397_v22 = vld [vmem:[%s14037_s7 + $0x168] sm:$0xf0] }
  0xef   :  { %v7003_v25 = vld [vmem:[%s14037_s7 + $0x608] sm:$0xf] }
  0xf1   :  { %2481 = vmatpush.bf16.msra.mxu3 %v6488_v29  ;;  %2468 = vmatpush.bf16.msra.mxu2 %v6232_v47  ;;  %v6651_v29 = vld [vmem:[%s14037_s7 + $0x348] sm:$0xf] }
  0xf2   :  { %2507 = vmatpush.bf16.msrb.mxu1 %v7000_v42  ;;  %2494 = vmatpush.bf16.msrb.mxu0 %v6744_v6  ;;  %v6652_v38 = vor.u32 %v8868_v30, %v6651_v29  ;;  %v6395_v47 = vld [vmem:[%s14037_s7 + $0x148] sm:$0xf]  ;;  %v6364_v6 = vor.u32 %v8796_v60, %v6363_v59  ;;  %v8816_v60 = vld [vmem:[%s14037_s7 + $0x1cc] sm:$0xf] }
  0xf3   :  { %v6396_v56 = vor.u32 %v8804_v48, %v6395_v47  ;;  %v6555_v42 = vld [vmem:[%s14037_s7 + $0x288] sm:$0xf] }
  0xf4   :  { %v6556_v12 = vor.u32 %v8844_v2, %v6555_v42  ;;  %v8972_v42 = vld [vmem:[%s14037_s7 + $0x6a4] sm:$0xf0]  ;;  %v8864_v2 = vld [vmem:[%s14037_s7 + $0x34c] sm:$0xf] }
 0x130   :  { %v785_v7 = vpop.f32.mrf.mxu1 }
 0x131   :  { %v772_v8 = vpop.f32.mrf.mxu0 }
 0x132   :  { %v773_v10 = vadd.f32 %v772_v8, %v410_v5 }
 0x134   :  { %v786_v9 = vadd.f32 %v785_v7, %v773_v10  ;;  %v6331_v7 = vld [vmem:[%s14037_s7 + $0xc8] sm:$0xf] }
 0x135   :  { %v8788_v10 = vld [vmem:[%s14037_s7 + $0xe4] sm:$0xf0] }
 0x136   :  { %v848_v14 = vmax.f32 %v786_v9, 0.0  ;;  %v759_v15 = vpop.f32.mrf.mxu3  ;;  %v6971_v9 = vld [vmem:[%s14037_s7 + $0x5c8] sm:$0xf] }
 0x137   :  { %v746_v16 = vpop.f32.mrf.mxu2 }
 0x138   :  { %v10429_v18 = vpack.c.bf16 %v848_v14, %v848_v14  ;;  %v747_v19 = vadd.f32 %v746_v16, %v409_v11  ;;  %v787_v20 = vpop.f32.mrf.mxu1  ;;  %v8948_v11 = vld [vmem:[%s14037_s7 + $0x5e4] sm:$0xf0] }
 0x139   :  { %v774_v23 = vpop.f32.mrf.mxu0  ;;  %v6523_v14 = vld [vmem:[%s14037_s7 + $0x248] sm:$0xf]  ;;  %v6332_v20 = vor.u32 %v8788_v10, %v6331_v7  ;;  %v6972_v21 = vor.u32 %v8948_v11, %v6971_v9  ;;  %v6429_v10 = vld [vmem:[%s14037_s7 + $0x1a8] sm:$0xf0]  ;;  %v6656_v9 = vor.u32 %v8864_v2, %v6653_v3 }
 0x13a   :  { %v760_v24 = vadd.f32 %v759_v15, %v747_v19  ;;  %2430 = vmatmul.bf16.vlgmr.msrb.gmra.mxu3 %v10429_v18  ;;  %v8836_v15 = vld [vmem:[%s14037_s7 + $0x264] sm:$0xf0]  ;;  %v6941_v2 = vld [vmem:[%s14037_s7 + $0x5a8] sm:$0xf0] }
 0x13b   :  { %2526 = vmatpush.bf16.msrb.mxu3 %v6716_v17  ;;  %v7163_v17 = vld [vmem:[%s14037_s7 + $0x748] sm:$0xf]  ;;  %v6524_v29 = vor.u32 %v8836_v15, %v6523_v14  ;;  %v8856_v14 = vld [vmem:[%s14037_s7 + $0x30c] sm:$0xf] }
 0x13c   :  { %v847_v28 = vmax.f32 %v760_v24, 0.0  ;;  %v8996_v19 = vld [vmem:[%s14037_s7 + $0x764] sm:$0xf0]  ;;  %v6621_v15 = vld [vmem:[%s14037_s7 + $0x328] sm:$0xf0] }
 0x13d   :  { %v7164_v30 = vor.u32 %v8996_v19, %v7163_v17  ;;  %v7035_v11 = vld [vmem:[%s14037_s7 + $0x648] sm:$0xf] }
 0x13e   :  { %v10450_v32 = vpack.c.bf16 %v847_v28, %v847_v28  ;;  %v761_v33 = vpop.f32.mrf.mxu3  ;;  %v6811_v17 = vld [vmem:[%s14037_s7 + $0x488] sm:$0xf] }
 0x13f   :  { %2527 = vmatpush.bf16.msrb.mxu3 %v6684_v27  ;;  %v748_v37 = vpop.f32.mrf.mxu2  ;;  %v8940_v27 = vld [vmem:[%s14037_s7 + $0x5a4] sm:$0xf0] }
 0x140   :  { %v837_v39 = vpop.f32.mrf.mxu1  ;;  %2417 = vmatmul.bf16.vlgmr.msrb.gmra.mxu2 %v10450_v32  ;;  %v8828_v33 = vld [vmem:[%s14037_s7 + $0x224] sm:$0xf0]  ;;  %v6940_v37 = vor.u32 %v8940_v27, %v6939_v26  ;;  %v8848_v27 = vld [vmem:[%s14037_s7 + $0x2cc] sm:$0xf] }
 0x141   :  { %2513 = vmatpush.bf16.msrb.mxu2 %v6460_v31  ;;  %v824_v44 = vpop.f32.mrf.mxu0  ;;  %v6491_v31 = vld [vmem:[%s14037_s7 + $0x208] sm:$0xf] }
 0x142   :  { %v825_v46 = vadd.f32 %v824_v44, %v412_v34  ;;  %v7131_v34 = vld [vmem:[%s14037_s7 + $0x708] sm:$0xf] }
 0x143   :  { %2528 = vmatpush.bf16.msrb.mxu3 %v6652_v38  ;;  %v8880_v38 = vld [vmem:[%s14037_s7 + $0x3cc] sm:$0xf]  ;;  %v6907_v44 = vld [vmem:[%s14037_s7 + $0x548] sm:$0xf]  ;;  %v7132_v47 = vor.u32 %v8988_v35, %v7131_v34 }
 0x144   :  { %v838_v52 = vadd.f32 %v837_v39, %v825_v46  ;;  %v6717_v39 = vld [vmem:[%s14037_s7 + $0x3e8] sm:$0xf0]  ;;  %v6492_v46 = vor.u32 %v8828_v33, %v6491_v31  ;;  %v8908_v19 = vld [vmem:[%s14037_s7 + $0x4a4] sm:$0xf0] }
 0x145   :  { %2514 = vmatpush.bf16.msrb.mxu2 %v6428_v45  ;;  %v8932_v45 = vld [vmem:[%s14037_s7 + $0x564] sm:$0xf0]  ;;  %v6720_v48 = vor.u32 %v8880_v38, %v6717_v39  ;;  %v7229_v31 = vld [vmem:[%s14037_s7 + $0x7e8] sm:$0xf0] }
 0x146   :  { %v850_v57 = vmax.f32 %v838_v52, 0.0  ;;  %v811_v58 = vpop.f32.mrf.mxu3  ;;  %v6908_v52 = vor.u32 %v8932_v45, %v6907_v44  ;;  %v8956_v26 = vld [vmem:[%s14037_s7 + $0x624] sm:$0xf0]  ;;  %v6365_v38 = vld [vmem:[%s14037_s7 + $0x128] sm:$0xf0] }
 0x147   :  { %2529 = vmatpush.bf16.msrb.mxu3 %v6620_v49  ;;  %v798_v61 = vpop.f32.mrf.mxu2  ;;  %v7099_v49 = vld [vmem:[%s14037_s7 + $0x6c8] sm:$0xf]  ;;  %v6557_v45 = vld [vmem:[%s14037_s7 + $0x2a8] sm:$0xf0] }
 0x148   :  { %v10494_v0 = vpack.c.bf16 %v850_v57, %v850_v57  ;;  %v799_v41 = vadd.f32 %v798_v61, %v411_v50  ;;  %v839_v1 = vpop.f32.mrf.mxu1  ;;  %v8980_v50 = vld [vmem:[%s14037_s7 + $0x6e4] sm:$0xf0]  ;;  %v6461_v61 = vld [vmem:[%s14037_s7 + $0x1e8] sm:$0xf0] }
 0x149   :  { %2515 = vmatpush.bf16.msrb.mxu2 %v6396_v56  ;;  %v826_v5 = vpop.f32.mrf.mxu0  ;;  %v8764_v56 = vld [vmem:[%s14037_s7 + $0x24] sm:$0xf0]  ;;  %v7100_v59 = vor.u32 %v8980_v50, %v7099_v49  ;;  %v6464_v4 = vor.u32 %v8816_v60, %v6461_v61  ;;  %v8992_v60 = vld [vmem:[%s14037_s7 + $0x74c] sm:$0xf] }
 0x14a   :  { %v812_v8 = vadd.f32 %v811_v58, %v799_v41  ;;  %2456 = vmatmul.bf16.vlgmr.msra.gmra.mxu1 %v10494_v0  ;;  %2482 = vmatmul.bf16.vlgmr.msra.gmra.mxu3 %v10429_v18  ;;  %v6875_v57 = vld [vmem:[%s14037_s7 + $0x508] sm:$0xf]  ;;  %v6236_v41 = vor.u32 %v8764_v56, %v6235_v55  ;;  %v6560_v55 = vor.u32 %v8840_v43, %v6557_v45  ;;  %v7165_v61 = vld [vmem:[%s14037_s7 + $0x768] sm:$0xf0]  ;;  %v6659_v43 = vld [vmem:[%s14037_s7 + $0x350] sm:$0xf] }
 0x14b   :  { %2530 = vmatpush.bf16.msrb.mxu3 %v6588_v62  ;;  %2552 = vmatpush.bf16.msra.mxu1 %v7228_v63  ;;  %v8924_v58 = vld [vmem:[%s14037_s7 + $0x524] sm:$0xf0]  ;;  %v6688_v62 = vor.u32 %v8872_v53, %v6685_v54  ;;  %v8944_v53 = vld [vmem:[%s14037_s7 + $0x5cc] sm:$0xf] }
 0x14c   :  { %v849_v16 = vmax.f32 %v812_v8, 0.0  ;;  %v7067_v63 = vld [vmem:[%s14037_s7 + $0x688] sm:$0xf]  ;;  %v6876_v1 = vor.u32 %v8924_v58, %v6875_v57  ;;  %v8808_v8 = vld [vmem:[%s14037_s7 + $0x18c] sm:$0xf] }
 0x14d   :  { %2516 = vmatpush.bf16.msrb.mxu2 %v6364_v6  ;;  %v6843_v5 = vld [vmem:[%s14037_s7 + $0x4c8] sm:$0xf]  ;;  %v7068_v7 = vor.u32 %v8972_v42, %v7067_v63  ;;  %v6973_v54 = vld [vmem:[%s14037_s7 + $0x5e8] sm:$0xf0] }
 0x14e   :  { %v10534_v23 = vpack.c.bf16 %v849_v16, %v849_v16  ;;  %v813_v24 = vpop.f32.mrf.mxu3  ;;  %v8916_v6 = vld [vmem:[%s14037_s7 + $0x4e4] sm:$0xf0]  ;;  %v6432_v16 = vor.u32 %v8808_v8, %v6429_v10  ;;  %v8832_v57 = vld [vmem:[%s14037_s7 + $0x24c] sm:$0xf]  ;;  %v6976_v63 = vor.u32 %v8944_v53, %v6973_v54 }
 0x14f   :  { %2531 = vmatpush.bf16.msrb.mxu3 %v6556_v12  ;;  %2553 = vmatpush.bf16.msra.mxu1 %v7196_v13  ;;  %v800_v28 = vpop.f32.mrf.mxu2  ;;  %v8964_v12 = vld [vmem:[%s14037_s7 + $0x664] sm:$0xf0]  ;;  %v6844_v13 = vor.u32 %v8916_v6, %v6843_v5  ;;  %v6624_v24 = vor.u32 %v8856_v14, %v6621_v15  ;;  %v8776_v42 = vld [vmem:[%s14037_s7 + $0x8c] sm:$0xf] }
 0x150   :  { %2443 = vmatmul.bf16.vlgmr.msra.gmra.mxu0 %v10534_v23  ;;  %2469 = vmatmul.bf16.vlgmr.msra.gmra.mxu2 %v10450_v32  ;;  %v6812_v28 = vor.u32 %v8908_v19, %v6811_v17  ;;  %v6779_v34 = vld [vmem:[%s14037_s7 + $0x448] sm:$0xf]  ;;  %v8824_v5 = vld [vmem:[%s14037_s7 + $0x20c] sm:$0xf] }
 0x151   :  { %2517 = vmatpush.bf16.msrb.mxu2 %v6332_v20  ;;  %2539 = vmatpush.bf16.msra.mxu0 %v6972_v21  ;;  %v7036_v20 = vor.u32 %v8964_v12, %v7035_v11  ;;  %v8800_v21 = vld [vmem:[%s14037_s7 + $0x14c] sm:$0xf]  ;;  %v8900_v35 = vld [vmem:[%s14037_s7 + $0x464] sm:$0xf0]  ;;  %v6723_v11 = vld [vmem:[%s14037_s7 + $0x3d0] sm:$0xf] }
 0x152   :  { %v6400_v33 = vor.u32 %v8800_v21, %v6397_v22  ;;  %v6780_v44 = vor.u32 %v8900_v35, %v6779_v34  ;;  %v6747_v49 = vld [vmem:[%s14037_s7 + $0x408] sm:$0xf]  ;;  %v6493_v6 = vld [vmem:[%s14037_s7 + $0x228] sm:$0xf0]  ;;  %v8885_v12 = vld [vmem:[%s14037_s7 + $0x3ec] sm:$0xf0] }
 0x153   :  { %2532 = vmatpush.bf16.msrb.mxu3 %v6524_v29  ;;  %2554 = vmatpush.bf16.msra.mxu1 %v7164_v30  ;;  %v6589_v29 = vld [vmem:[%s14037_s7 + $0x2e8] sm:$0xf0]  ;;  %v8892_v50 = vld [vmem:[%s14037_s7 + $0x424] sm:$0xf0]  ;;  %v6496_v17 = vor.u32 %v8824_v5, %v6493_v6  ;;  %v6467_v34 = vld [vmem:[%s14037_s7 + $0x1d0] sm:$0xf] }
 0x154   :  { %v9008_v30 = vld [vmem:[%s14037_s7 + $0x7cc] sm:$0xf]  ;;  %v6592_v39 = vor.u32 %v8848_v27, %v6589_v29  ;;  %v6748_v58 = vor.u32 %v8892_v50, %v6747_v49  ;;  %v8877_v27 = vld [vmem:[%s14037_s7 + $0x3ac] sm:$0xf0] }
 0x155   :  { %2518 = vmatpush.bf16.msrb.mxu2 %v6300_v36  ;;  %2540 = vmatpush.bf16.msra.mxu0 %v6940_v37  ;;  %v7004_v36 = vor.u32 %v8956_v26, %v7003_v25  ;;  %v8792_v37 = vld [vmem:[%s14037_s7 + $0x10c] sm:$0xf]  ;;  %v7232_v40 = vor.u32 %v9008_v30, %v7229_v31  ;;  %v6691_v26 = vld [vmem:[%s14037_s7 + $0x390] sm:$0xf] }
 0x156   :  { %v7133_v8 = vld [vmem:[%s14037_s7 + $0x728] sm:$0xf0]  ;;  %v8821_v35 = vld [vmem:[%s14037_s7 + $0x1ec] sm:$0xf0] }
 0x157   :  { %2533 = vmatpush.bf16.msrb.mxu3 %v6492_v46  ;;  %2555 = vmatpush.bf16.msra.mxu1 %v7132_v47  ;;  %v9000_v46 = vld [vmem:[%s14037_s7 + $0x78c] sm:$0xf]  ;;  %v6468_v45 = vor.u32 %v8821_v35, %v6467_v34  ;;  %v6435_v49 = vld [vmem:[%s14037_s7 + $0x190] sm:$0xf] }
 0x158   :  { %v7197_v47 = vld [vmem:[%s14037_s7 + $0x7a8] sm:$0xf0]  ;;  %v8813_v50 = vld [vmem:[%s14037_s7 + $0x1ac] sm:$0xf0] }
 0x159   :  { %2519 = vmatpush.bf16.msrb.mxu2 %v6268_v51  ;;  %2541 = vmatpush.bf16.msra.mxu0 %v6908_v52  ;;  %v8784_v51 = vld [vmem:[%s14037_s7 + $0xcc] sm:$0xf]  ;;  %v7200_v56 = vor.u32 %v9000_v46, %v7197_v47  ;;  %v9013_v5 = vld [vmem:[%s14037_s7 + $0x7ec] sm:$0xf0] }
 0x15a   :  { %2508 = vmatmul.bf16.vlgmr.msrb.gmra.mxu1 %v10494_v0  ;;  %2534 = vmatmul.bf16.vlgmr.msrb.gmra.mxu3 %v10429_v18  ;;  %v6333_v52 = vld [vmem:[%s14037_s7 + $0xe8] sm:$0xf0] }
 0x15b   :  { %2578 = vmatpush.bf16.msra.mxu3 %v6720_v48  ;;  %2556 = vmatpush.bf16.msra.mxu1 %v7100_v59  ;;  %v6368_v48 = vor.u32 %v8792_v37, %v6365_v38  ;;  %v6525_v59 = vld [vmem:[%s14037_s7 + $0x268] sm:$0xf0] }
 0x15c   :  { %v6528_v3 = vor.u32 %v8832_v57, %v6525_v59  ;;  %v6269_v14 = vld [vmem:[%s14037_s7 + $0x68] sm:$0xf0]  ;;  %v6436_v57 = vor.u32 %v8813_v50, %v6435_v49  ;;  %v8989_v49 = vld [vmem:[%s14037_s7 + $0x72c] sm:$0xf0] }
 0x15d   :  { %2520 = vmatpush.bf16.msrb.mxu2 %v6236_v41  ;;  %2542 = vmatpush.bf16.msra.mxu0 %v6876_v1  ;;  %v6301_v41 = vld [vmem:[%s14037_s7 + $0xa8] sm:$0xf0] }
 0x15e   :  { %v8936_v1 = vld [vmem:[%s14037_s7 + $0x58c] sm:$0xf]  ;;  %v6304_v10 = vor.u32 %v8776_v42, %v6301_v41 }
 0x15f   :  { %2579 = vmatpush.bf16.msra.mxu3 %v6688_v62  ;;  %2557 = vmatpush.bf16.msra.mxu1 %v7068_v7  ;;  %v6336_v62 = vor.u32 %v8784_v51, %v6333_v52  ;;  %v8984_v7 = vld [vmem:[%s14037_s7 + $0x70c] sm:$0xf] }
 0x160   :  { %2495 = vmatmul.bf16.vlgmr.msrb.gmra.mxu0 %v10534_v23  ;;  %2521 = vmatmul.bf16.vlgmr.msrb.gmra.mxu2 %v10450_v32  ;;  %v8928_v15 = vld [vmem:[%s14037_s7 + $0x54c] sm:$0xf]  ;;  %v7136_v19 = vor.u32 %v8984_v7, %v7133_v8 }
 0x161   :  { %2565 = vmatpush.bf16.msra.mxu2 %v6464_v4  ;;  %2543 = vmatpush.bf16.msra.mxu0 %v6844_v13  ;;  %v7168_v4 = vor.u32 %v8992_v60, %v7165_v61  ;;  %v8768_v13 = vld [vmem:[%s14037_s7 + $0x4c] sm:$0xf]  ;;  %v6403_v61 = vld [vmem:[%s14037_s7 + $0x150] sm:$0xf] }
 0x162   :  { %v8976_v21 = vld [vmem:[%s14037_s7 + $0x6cc] sm:$0xf] }
 0x163   :  { %2580 = vmatpush.bf16.msra.mxu3 %v6656_v9  ;;  %2558 = vmatpush.bf16.msra.mxu1 %v7036_v20  ;;  %v6944_v9 = vor.u32 %v8936_v1, %v6941_v2  ;;  %v6724_v20 = vor.u32 %v8885_v12, %v6723_v11  ;;  %v7101_v22 = vld [vmem:[%s14037_s7 + $0x6e8] sm:$0xf0]  ;;  %v6595_v1 = vld [vmem:[%s14037_s7 + $0x2d0] sm:$0xf] }
 0x164   :  { %v6237_v29 = vld [vmem:[%s14037_s7 + $0x28] sm:$0xf0]  ;;  %v8797_v11 = vld [vmem:[%s14037_s7 + $0x12c] sm:$0xf0] }
 0x165   :  { %2566 = vmatpush.bf16.msra.mxu2 %v6432_v16  ;;  %2544 = vmatpush.bf16.msra.mxu0 %v6812_v28  ;;  %v6909_v16 = vld [vmem:[%s14037_s7 + $0x568] sm:$0xf0] }
 0x166   :  { %v6912_v25 = vor.u32 %v8928_v15, %v6909_v16  ;;  %v8760_v28 = vld [vmem:[%s14037_s7 + $0xc] sm:$0xf]  ;;  %v8845_v16 = vld [vmem:[%s14037_s7 + $0x2ac] sm:$0xf0] }
 0x167   :  { %2581 = vmatpush.bf16.msra.mxu3 %v6624_v24  ;;  %2559 = vmatpush.bf16.msra.mxu1 %v7004_v36  ;;  %v6272_v24 = vor.u32 %v8768_v13, %v6269_v14  ;;  %v8920_v30 = vld [vmem:[%s14037_s7 + $0x50c] sm:$0xf]  ;;  %v6692_v36 = vor.u32 %v8877_v27, %v6691_v26  ;;  %v6563_v14 = vld [vmem:[%s14037_s7 + $0x290] sm:$0xf] }
 0x168   :  { %v6877_v31 = vld [vmem:[%s14037_s7 + $0x528] sm:$0xf0]  ;;  %v6979_v26 = vld [vmem:[%s14037_s7 + $0x5d0] sm:$0xf] }
 0x169   :  { %2567 = vmatpush.bf16.msra.mxu2 %v6400_v33  ;;  %2545 = vmatpush.bf16.msra.mxu0 %v6780_v44  ;;  %v7104_v33 = vor.u32 %v8976_v21, %v7101_v22  ;;  %v8968_v37 = vld [vmem:[%s14037_s7 + $0x68c] sm:$0xf]  ;;  %v8869_v44 = vld [vmem:[%s14037_s7 + $0x36c] sm:$0xf0] }
 0x16a   :  { %2560 = vmatmul.bf16.vlgmr.msra.gmra.mxu1 %v10494_v0  ;;  %v7069_v38 = vld [vmem:[%s14037_s7 + $0x6a8] sm:$0xf0]  ;;  %v6660_v51 = vor.u32 %v8869_v44, %v6659_v43  ;;  %v8949_v27 = vld [vmem:[%s14037_s7 + $0x5ec] sm:$0xf0] }
 0x16b   :  { %2582 = vmatpush.bf16.msra.mxu3 %v6592_v39  ;;  %2604 = vmatpush.bf16.msrb.mxu1 %v7232_v40  ;;  %v6240_v39 = vor.u32 %v8760_v28, %v6237_v29  ;;  %v6880_v40 = vor.u32 %v8920_v30, %v6877_v31  ;;  %v8912_v46 = vld [vmem:[%s14037_s7 + $0x4cc] sm:$0xf]  ;;  %v6564_v28 = vor.u32 %v8845_v16, %v6563_v14  ;;  %v6531_v31 = vld [vmem:[%s14037_s7 + $0x250] sm:$0xf]  ;;  %v8865_v14 = vld [vmem:[%s14037_s7 + $0x354] sm:$0xf] }
 0x16c   :  { %v6845_v47 = vld [vmem:[%s14037_s7 + $0x4e8] sm:$0xf0]  ;;  %v6980_v35 = vor.u32 %v8949_v27, %v6979_v26  ;;  %v8941_v43 = vld [vmem:[%s14037_s7 + $0x5ac] sm:$0xf0]  ;;  %v6661_v16 = vld [vmem:[%s14037_s7 + $0x370] sm:$0xf0] }
 0x16d   :  { %2568 = vmatpush.bf16.msra.mxu2 %v6368_v48  ;;  %2546 = vmatpush.bf16.msra.mxu0 %v6748_v58  ;;  %v7072_v48 = vor.u32 %v8968_v37, %v7069_v38  ;;  %v8960_v52 = vld [vmem:[%s14037_s7 + $0x64c] sm:$0xf]  ;;  %v6848_v54 = vor.u32 %v8912_v46, %v6845_v47  ;;  %v8997_v37 = vld [vmem:[%s14037_s7 + $0x76c] sm:$0xf0] }
 0x16e   :  { %v7037_v53 = vld [vmem:[%s14037_s7 + $0x668] sm:$0xf0]  ;;  %v6307_v38 = vld [vmem:[%s14037_s7 + $0x90] sm:$0xf] }
 0x16f   :  { %2583 = vmatpush.bf16.msra.mxu3 %v6560_v55  ;;  %2605 = vmatpush.bf16.msrb.mxu1 %v7200_v56  ;;  %v6627_v55 = vld [vmem:[%s14037_s7 + $0x310] sm:$0xf]  ;;  %v8904_v58 = vld [vmem:[%s14037_s7 + $0x48c] sm:$0xf]  ;;  %v7040_v60 = vor.u32 %v8960_v52, %v7037_v53  ;;  %v8881_v52 = vld [vmem:[%s14037_s7 + $0x3d4] sm:$0xf] }
 0x170   :  { %2547 = vmatmul.bf16.vlgmr.msra.gmra.mxu0 %v10534_v23  ;;  %v8861_v56 = vld [vmem:[%s14037_s7 + $0x32c] sm:$0xf0]  ;;  %v6813_v59 = vld [vmem:[%s14037_s7 + $0x4a8] sm:$0xf0]  ;;  %v6725_v53 = vld [vmem:[%s14037_s7 + $0x3f0] sm:$0xf0] }
 0x171   :  { %2569 = vmatpush.bf16.msra.mxu2 %v6336_v62  ;;  %2591 = vmatpush.bf16.msrb.mxu0 %v6976_v63  ;;  %v8805_v62 = vld [vmem:[%s14037_s7 + $0x16c] sm:$0xf0]  ;;  %v6628_v63 = vor.u32 %v8861_v56, %v6627_v55  ;;  %v8952_v42 = vld [vmem:[%s14037_s7 + $0x60c] sm:$0xf]  ;;  %v6816_v2 = vor.u32 %v8904_v58, %v6813_v59 }
 0x172   :  { %v7005_v41 = vld [vmem:[%s14037_s7 + $0x628] sm:$0xf0]  ;;  %v6404_v6 = vor.u32 %v8805_v62, %v6403_v61  ;;  %v8829_v47 = vld [vmem:[%s14037_s7 + $0x22c] sm:$0xf0] }
 0x173   :  { %2584 = vmatpush.bf16.msra.mxu3 %v6528_v3  ;;  %2606 = vmatpush.bf16.msrb.mxu1 %v7168_v4  ;;  %v8853_v3 = vld [vmem:[%s14037_s7 + $0x2ec] sm:$0xf0]  ;;  %v8896_v7 = vld [vmem:[%s14037_s7 + $0x44c] sm:$0xf] }
 0x174   :  { %v7235_v4 = vld [vmem:[%s14037_s7 + $0x7d0] sm:$0xf]  ;;  %v6781_v8 = vld [vmem:[%s14037_s7 + $0x468] sm:$0xf0]  ;;  %v6596_v12 = vor.u32 %v8853_v3, %v6595_v1  ;;  %v6693_v1 = vld [vmem:[%s14037_s7 + $0x3b0] sm:$0xf0] }
 0x175   :  { %2570 = vmatpush.bf16.msra.mxu2 %v6304_v10  ;;  %2592 = vmatpush.bf16.msrb.mxu0 %v6944_v9  ;;  %v7008_v10 = vor.u32 %v8952_v42, %v7005_v41  ;;  %v6371_v9 = vld [vmem:[%s14037_s7 + $0x110] sm:$0xf]  ;;  %v7236_v13 = vor.u32 %v9013_v5, %v7235_v4  ;;  %v6784_v15 = vor.u32 %v8896_v7, %v6781_v8  ;;  %v8888_v21 = vld [vmem:[%s14037_s7 + $0x40c] sm:$0xf]  ;;  %v8873_v41 = vld [vmem:[%s14037_s7 + $0x394] sm:$0xf] }
 0x176   :  { %v6749_v22 = vld [vmem:[%s14037_s7 + $0x428] sm:$0xf0]  ;;  %v8773_v55 = vld [vmem:[%s14037_s7 + $0x6c] sm:$0xf0]  ;;  %v6469_v7 = vld [vmem:[%s14037_s7 + $0x1f0] sm:$0xf0] }
 0x177   :  { %2585 = vmatpush.bf16.msra.mxu3 %v6496_v17  ;;  %2607 = vmatpush.bf16.msrb.mxu1 %v7136_v19  ;;  %v7203_v17 = vld [vmem:[%s14037_s7 + $0x790] sm:$0xf]  ;;  %v6752_v30 = vor.u32 %v8888_v21, %v6749_v22  ;;  %v6437_v21 = vld [vmem:[%s14037_s7 + $0x1b0] sm:$0xf0] }
 0x178   :  { %v9005_v19 = vld [vmem:[%s14037_s7 + $0x7ac] sm:$0xf0] }
 0x179   :  { %2571 = vmatpush.bf16.msra.mxu2 %v6272_v24  ;;  %2593 = vmatpush.bf16.msrb.mxu0 %v6912_v25  ;;  %v6339_v24 = vld [vmem:[%s14037_s7 + $0xd0] sm:$0xf]  ;;  %v7204_v29 = vor.u32 %v9005_v19, %v7203_v17 }
 0x17a   :  { %2586 = vmatmul.bf16.vlgmr.msra.gmra.mxu3 %v10429_v18  ;;  %v8789_v25 = vld [vmem:[%s14037_s7 + $0xec] sm:$0xf0] }
 0x17b   :  { %2630 = vmatpush.bf16.msrb.mxu3 %v6724_v20  ;;  %2608 = vmatpush.bf16.msrb.mxu1 %v7104_v33  ;;  %v6372_v20 = vor.u32 %v8797_v11, %v6371_v9  ;;  %v8837_v33 = vld [vmem:[%s14037_s7 + $0x26c] sm:$0xf0]  ;;  %v6340_v34 = vor.u32 %v8789_v25, %v6339_v24  ;;  %v6664_v24 = vor.u32 %v8865_v14, %v6661_v16  ;;  %v6949_v14 = vld [vmem:[%s14037_s7 + $0x5b0] sm:$0xf0] }
 0x17c   :  { %v6532_v44 = vor.u32 %v8837_v33, %v6531_v31  ;;  %v6915_v56 = vld [vmem:[%s14037_s7 + $0x550] sm:$0xf]  ;;  %v8825_v16 = vld [vmem:[%s14037_s7 + $0x214] sm:$0xf] }
 0x17d   :  { %2572 = vmatpush.bf16.msra.mxu2 %v6240_v39  ;;  %2594 = vmatpush.bf16.msrb.mxu0 %v6880_v40  ;;  %v8781_v39 = vld [vmem:[%s14037_s7 + $0xac] sm:$0xf0] }
 0x17e   :  { %v6947_v40 = vld [vmem:[%s14037_s7 + $0x590] sm:$0xf]  ;;  %v6308_v50 = vor.u32 %v8781_v39, %v6307_v38 }
 0x17f   :  { %2631 = vmatpush.bf16.msrb.mxu3 %v6692_v36  ;;  %2609 = vmatpush.bf16.msrb.mxu1 %v7072_v48  ;;  %v7171_v36 = vld [vmem:[%s14037_s7 + $0x750] sm:$0xf] }
 0x180   :  { %2573 = vmatmul.bf16.vlgmr.msra.gmra.mxu2 %v10450_v32  ;;  %v7172_v46 = vor.u32 %v8997_v37, %v7171_v36  ;;  %v7139_v48 = vld [vmem:[%s14037_s7 + $0x710] sm:$0xf] }
 0x181   :  { %2617 = vmatpush.bf16.msrb.mxu2 %v6468_v45  ;;  %2595 = vmatpush.bf16.msrb.mxu0 %v6848_v54  ;;  %v6499_v45 = vld [vmem:[%s14037_s7 + $0x210] sm:$0xf]  ;;  %v7140_v59 = vor.u32 %v8989_v49, %v7139_v48 }
 0x182   :  { %v6275_v54 = vld [vmem:[%s14037_s7 + $0x50] sm:$0xf]  ;;  %v6500_v58 = vor.u32 %v8829_v47, %v6499_v45  ;;  %v7237_v47 = vld [vmem:[%s14037_s7 + $0x7f0] sm:$0xf0] }
 0x183   :  { %2632 = vmatpush.bf16.msrb.mxu3 %v6660_v51  ;;  %2610 = vmatpush.bf16.msrb.mxu1 %v7040_v60  ;;  %v6948_v51 = vor.u32 %v8941_v43, %v6947_v40  ;;  %v6728_v60 = vor.u32 %v8881_v52, %v6725_v53  ;;  %v7107_v61 = vld [vmem:[%s14037_s7 + $0x6d0] sm:$0xf]  ;;  %v8849_v43 = vld [vmem:[%s14037_s7 + $0x2d4] sm:$0xf] }
 0x184   :  { %v8981_v62 = vld [vmem:[%s14037_s7 + $0x6ec] sm:$0xf0] }
 0x185   :  { %2618 = vmatpush.bf16.msrb.mxu2 %v6436_v57  ;;  %2596 = vmatpush.bf16.msrb.mxu0 %v6816_v2  ;;  %v8933_v57 = vld [vmem:[%s14037_s7 + $0x56c] sm:$0xf0]  ;;  %v7108_v8 = vor.u32 %v8981_v62, %v7107_v61 }
 0x186   :  { %v6916_v42 = vor.u32 %v8933_v57, %v6915_v56  ;;  %v6243_v2 = vld [vmem:[%s14037_s7 + $0x10] sm:$0xf]  ;;  %v6565_v56 = vld [vmem:[%s14037_s7 + $0x2b0] sm:$0xf0] }
 0x187   :  { %2633 = vmatpush.bf16.msrb.mxu3 %v6628_v63  ;;  %2611 = vmatpush.bf16.msrb.mxu1 %v7008_v10  ;;  %v6276_v63 = vor.u32 %v8773_v55, %v6275_v54  ;;  %v8765_v3 = vld [vmem:[%s14037_s7 + $0x2c] sm:$0xf0]  ;;  %v6696_v10 = vor.u32 %v8873_v41, %v6693_v1  ;;  %v8841_v55 = vld [vmem:[%s14037_s7 + $0x294] sm:$0xf] }
 0x188   :  { %v6883_v4 = vld [vmem:[%s14037_s7 + $0x510] sm:$0xf]  ;;  %v6244_v9 = vor.u32 %v8765_v3, %v6243_v2  ;;  %v8945_v41 = vld [vmem:[%s14037_s7 + $0x5d4] sm:$0xf]  ;;  %v6568_v2 = vor.u32 %v8841_v55, %v6565_v56  ;;  %v6667_v55 = vld [vmem:[%s14037_s7 + $0x358] sm:$0xf] }
 0x189   :  { %2619 = vmatpush.bf16.msrb.mxu2 %v6404_v6  ;;  %2597 = vmatpush.bf16.msrb.mxu0 %v6784_v15  ;;  %v8925_v5 = vld [vmem:[%s14037_s7 + $0x52c] sm:$0xf0]  ;;  %v8817_v6 = vld [vmem:[%s14037_s7 + $0x1d4] sm:$0xf] }
 0x18a   :  { %2612 = vmatmul.bf16.vlgmr.msrb.gmra.mxu1 %v10494_v0  ;;  %v6884_v11 = vor.u32 %v8925_v5, %v6883_v4  ;;  %v6472_v15 = vor.u32 %v8817_v6, %v6469_v7  ;;  %v6851_v17 = vld [vmem:[%s14037_s7 + $0x4d0] sm:$0xf]  ;;  %v6981_v1 = vld [vmem:[%s14037_s7 + $0x5f0] sm:$0xf0] }
 0x18b   :  { %2634 = vmatpush.bf16.msrb.mxu3 %v6596_v12  ;;  %2656 = vmatpush.bf16.msra.mxu1 %v7236_v13  ;;  %v7075_v12 = vld [vmem:[%s14037_s7 + $0x690] sm:$0xf]  ;;  %v8833_v6 = vld [vmem:[%s14037_s7 + $0x254] sm:$0xf] }
 0x18c   :  { %v8973_v13 = vld [vmem:[%s14037_s7 + $0x6ac] sm:$0xf0]  ;;  %v6533_v7 = vld [vmem:[%s14037_s7 + $0x270] sm:$0xf0] }
 0x18d   :  { %2620 = vmatpush.bf16.msrb.mxu2 %v6372_v20  ;;  %2598 = vmatpush.bf16.msrb.mxu0 %v6752_v30  ;;  %v8917_v19 = vld [vmem:[%s14037_s7 + $0x4ec] sm:$0xf0]  ;;  %v8809_v20 = vld [vmem:[%s14037_s7 + $0x194] sm:$0xf]  ;;  %v7076_v22 = vor.u32 %v8973_v13, %v7075_v12 }
 0x18e   :  { %v6852_v25 = vor.u32 %v8917_v19, %v6851_v17  ;;  %v7043_v26 = vld [vmem:[%s14037_s7 + $0x650] sm:$0xf]  ;;  %v6629_v30 = vld [vmem:[%s14037_s7 + $0x330] sm:$0xf0] }
 0x18f   :  { %2635 = vmatpush.bf16.msrb.mxu3 %v6564_v28  ;;  %2657 = vmatpush.bf16.msra.mxu1 %v7204_v29  ;;  %v8965_v27 = vld [vmem:[%s14037_s7 + $0x66c] sm:$0xf0]  ;;  %v8857_v28 = vld [vmem:[%s14037_s7 + $0x314] sm:$0xf]  ;;  %v6440_v29 = vor.u32 %v8809_v20, %v6437_v21 }
 0x190   :  { %2599 = vmatmul.bf16.vlgmr.msrb.gmra.mxu0 %v10534_v23  ;;  %v6819_v31 = vld [vmem:[%s14037_s7 + $0x490] sm:$0xf]  ;;  %v7044_v36 = vor.u32 %v8965_v27, %v7043_v26  ;;  %v6632_v38 = vor.u32 %v8857_v28, %v6629_v30  ;;  %v6309_v12 = vld [vmem:[%s14037_s7 + $0xb0] sm:$0xf0]  ;;  %v8886_v26 = vld [vmem:[%s14037_s7 + $0x3f4] sm:$0xf0] }
 0x191   :  { %2621 = vmatpush.bf16.msrb.mxu2 %v6340_v34  ;;  %2643 = vmatpush.bf16.msra.mxu0 %v6980_v35  ;;  %v8909_v33 = vld [vmem:[%s14037_s7 + $0x4ac] sm:$0xf0]  ;;  %v8801_v34 = vld [vmem:[%s14037_s7 + $0x154] sm:$0xf] }
 0x192   :  { %v6405_v35 = vld [vmem:[%s14037_s7 + $0x170] sm:$0xf0]  ;;  %v7011_v37 = vld [vmem:[%s14037_s7 + $0x610] sm:$0xf]  ;;  %v6820_v39 = vor.u32 %v8909_v33, %v6819_v31 }
 0x193   :  { %2636 = vmatpush.bf16.msrb.mxu3 %v6532_v44  ;;  %2658 = vmatpush.bf16.msra.mxu1 %v7172_v46  ;;  %v8957_v40 = vld [vmem:[%s14037_s7 + $0x62c] sm:$0xf0]  ;;  %v6597_v44 = vld [vmem:[%s14037_s7 + $0x2f0] sm:$0xf0]  ;;  %v6408_v45 = vor.u32 %v8801_v34, %v6405_v35 }
 0x194   :  { %v9009_v46 = vld [vmem:[%s14037_s7 + $0x7d4] sm:$0xf]  ;;  %v6787_v48 = vld [vmem:[%s14037_s7 + $0x450] sm:$0xf]  ;;  %v7012_v52 = vor.u32 %v8957_v40, %v7011_v37  ;;  %v6600_v53 = vor.u32 %v8849_v43, %v6597_v44  ;;  %v8878_v40 = vld [vmem:[%s14037_s7 + $0x3b4] sm:$0xf0] }
 0x195   :  { %2622 = vmatpush.bf16.msrb.mxu2 %v6308_v50  ;;  %2644 = vmatpush.bf16.msra.mxu0 %v6948_v51  ;;  %v8901_v49 = vld [vmem:[%s14037_s7 + $0x46c] sm:$0xf0]  ;;  %v8793_v50 = vld [vmem:[%s14037_s7 + $0x114] sm:$0xf]  ;;  %v7240_v54 = vor.u32 %v9009_v46, %v7237_v47  ;;  %v6475_v47 = vld [vmem:[%s14037_s7 + $0x1d8] sm:$0xf] }
 0x196   :  { %v6373_v51 = vld [vmem:[%s14037_s7 + $0x130] sm:$0xf0]  ;;  %v6788_v57 = vor.u32 %v8901_v49, %v6787_v48  ;;  %v6755_v61 = vld [vmem:[%s14037_s7 + $0x410] sm:$0xf]  ;;  %v8822_v48 = vld [vmem:[%s14037_s7 + $0x1f4] sm:$0xf0] }
 0x197   :  { %2637 = vmatpush.bf16.msrb.mxu3 %v6500_v58  ;;  %2659 = vmatpush.bf16.msra.mxu1 %v7140_v59  ;;  %v6376_v58 = vor.u32 %v8793_v50, %v6373_v51  ;;  %v9001_v59 = vld [vmem:[%s14037_s7 + $0x794] sm:$0xf]  ;;  %v8893_v62 = vld [vmem:[%s14037_s7 + $0x42c] sm:$0xf0]  ;;  %v6476_v56 = vor.u32 %v8822_v48, %v6475_v47 }
 0x198   :  { %v6756_v4 = vor.u32 %v8893_v62, %v6755_v61  ;;  %v8937_v13 = vld [vmem:[%s14037_s7 + $0x594] sm:$0xf]  ;;  %v8814_v61 = vld [vmem:[%s14037_s7 + $0x1b4] sm:$0xf0] }
 0x199   :  { %2623 = vmatpush.bf16.msrb.mxu2 %v6276_v63  ;;  %2645 = vmatpush.bf16.msra.mxu0 %v6916_v42  ;;  %v8785_v63 = vld [vmem:[%s14037_s7 + $0xd4] sm:$0xf] }
 0x19a   :  { %2638 = vmatmul.bf16.vlgmr.msrb.gmra.mxu3 %v10429_v18  ;;  %v6341_v42 = vld [vmem:[%s14037_s7 + $0xf0] sm:$0xf0] }
 0x19b   :  { %2682 = vmatpush.bf16.msra.mxu3 %v6728_v60  ;;  %2660 = vmatpush.bf16.msra.mxu1 %v7108_v8  ;;  %v7205_v60 = vld [vmem:[%s14037_s7 + $0x7b0] sm:$0xf0]  ;;  %v6344_v5 = vor.u32 %v8785_v63, %v6341_v42 }
 0x19c   :  { %v7208_v3 = vor.u32 %v9001_v59, %v7205_v60  ;;  %v8993_v8 = vld [vmem:[%s14037_s7 + $0x754] sm:$0xf]  ;;  %v6443_v60 = vld [vmem:[%s14037_s7 + $0x198] sm:$0xf] }
 0x19d   :  { %2624 = vmatpush.bf16.msrb.mxu2 %v6244_v9  ;;  %2646 = vmatpush.bf16.msra.mxu0 %v6884_v11  ;;  %v7173_v9 = vld [vmem:[%s14037_s7 + $0x770] sm:$0xf0] }
 0x19e   :  { %v8777_v11 = vld [vmem:[%s14037_s7 + $0x94] sm:$0xf]  ;;  %v7176_v17 = vor.u32 %v8993_v8, %v7173_v9  ;;  %v8806_v8 = vld [vmem:[%s14037_s7 + $0x174] sm:$0xf0] }
 0x19f   :  { %2683 = vmatpush.bf16.msra.mxu3 %v6696_v10  ;;  %2661 = vmatpush.bf16.msra.mxu1 %v7076_v22  ;;  %v6984_v10 = vor.u32 %v8945_v41, %v6981_v1  ;;  %v6312_v19 = vor.u32 %v8777_v11, %v6309_v12  ;;  %v6501_v20 = vld [vmem:[%s14037_s7 + $0x230] sm:$0xf0] }
 0x1a0   :  { %2625 = vmatmul.bf16.vlgmr.msrb.gmra.mxu2 %v10450_v32  ;;  %v8985_v21 = vld [vmem:[%s14037_s7 + $0x714] sm:$0xf]  ;;  %v6504_v31 = vor.u32 %v8825_v16, %v6501_v20 }
 0x1a1   :  { %2669 = vmatpush.bf16.msra.mxu2 %v6472_v15  ;;  %2647 = vmatpush.bf16.msra.mxu0 %v6852_v25  ;;  %v6536_v15 = vor.u32 %v8833_v6, %v6533_v7  ;;  %v7141_v22 = vld [vmem:[%s14037_s7 + $0x730] sm:$0xf0]  ;;  %v6731_v25 = vld [vmem:[%s14037_s7 + $0x3d8] sm:$0xf] }
 0x1a2   :  { %v8769_v27 = vld [vmem:[%s14037_s7 + $0x54] sm:$0xf]  ;;  %v7144_v33 = vor.u32 %v8985_v21, %v7141_v22  ;;  %v6732_v34 = vor.u32 %v8886_v26, %v6731_v25  ;;  %v6411_v7 = vld [vmem:[%s14037_s7 + $0x158] sm:$0xf] }
 0x1a3   :  { %2684 = vmatpush.bf16.msra.mxu3 %v6664_v24  ;;  %2662 = vmatpush.bf16.msra.mxu1 %v7044_v36  ;;  %v6952_v24 = vor.u32 %v8937_v13, %v6949_v14  ;;  %v6277_v28 = vld [vmem:[%s14037_s7 + $0x70] sm:$0xf0]  ;;  %v6603_v14 = vld [vmem:[%s14037_s7 + $0x2d8] sm:$0xf]  ;;  %v6412_v16 = vor.u32 %v8806_v8, %v6411_v7  ;;  %v8882_v7 = vld [vmem:[%s14037_s7 + $0x3dc] sm:$0xf] }
 0x1a4   :  { %v6917_v30 = vld [vmem:[%s14037_s7 + $0x570] sm:$0xf0]  ;;  %v6280_v37 = vor.u32 %v8769_v27, %v6277_v28  ;;  %v6379_v22 = vld [vmem:[%s14037_s7 + $0x118] sm:$0xf]  ;;  %v6733_v8 = vld [vmem:[%s14037_s7 + $0x3f8] sm:$0xf0] }
 0x1a5   :  { %2670 = vmatpush.bf16.msra.mxu2 %v6440_v29  ;;  %2648 = vmatpush.bf16.msra.mxu0 %v6820_v39  ;;  %v8929_v29 = vld [vmem:[%s14037_s7 + $0x554] sm:$0xf]  ;;  %v6699_v39 = vld [vmem:[%s14037_s7 + $0x398] sm:$0xf] }
 0x1a6   :  { %v8977_v35 = vld [vmem:[%s14037_s7 + $0x6d4] sm:$0xf]  ;;  %v6700_v50 = vor.u32 %v8878_v40, %v6699_v39  ;;  %v6347_v39 = vld [vmem:[%s14037_s7 + $0xd8] sm:$0xf] }
 0x1a7   :  { %2685 = vmatpush.bf16.msra.mxu3 %v6632_v38  ;;  %2663 = vmatpush.bf16.msra.mxu1 %v7012_v52  ;;  %v7109_v36 = vld [vmem:[%s14037_s7 + $0x6f0] sm:$0xf0]  ;;  %v6920_v38 = vor.u32 %v8929_v29, %v6917_v30  ;;  %v6571_v29 = vld [vmem:[%s14037_s7 + $0x298] sm:$0xf] }
 0x1a8   :  { %v8761_v43 = vld [vmem:[%s14037_s7 + $0x14] sm:$0xf]  ;;  %v7112_v49 = vor.u32 %v8977_v35, %v7109_v36  ;;  %v8846_v30 = vld [vmem:[%s14037_s7 + $0x2b4] sm:$0xf0] }
 0x1a9   :  { %2671 = vmatpush.bf16.msra.mxu2 %v6408_v45  ;;  %2649 = vmatpush.bf16.msra.mxu0 %v6788_v57  ;;  %v6245_v44 = vld [vmem:[%s14037_s7 + $0x30] sm:$0xf0]  ;;  %v8870_v57 = vld [vmem:[%s14037_s7 + $0x374] sm:$0xf0] }
 0x1aa   :  { %2664 = vmatmul.bf16.vlgmr.msra.gmra.mxu1 %v10494_v0  ;;  %v8921_v45 = vld [vmem:[%s14037_s7 + $0x514] sm:$0xf]  ;;  %v6248_v51 = vor.u32 %v8761_v43, %v6245_v44  ;;  %v6668_v63 = vor.u32 %v8870_v57, %v6667_v55  ;;  %v7211_v35 = vld [vmem:[%s14037_s7 + $0x798] sm:$0xf] }
 0x1ab   :  { %2686 = vmatpush.bf16.msra.mxu3 %v6600_v53  ;;  %2708 = vmatpush.bf16.msrb.mxu1 %v7240_v54  ;;  %v6885_v46 = vld [vmem:[%s14037_s7 + $0x530] sm:$0xf0]  ;;  %v9006_v36 = vld [vmem:[%s14037_s7 + $0x7b4] sm:$0xf0] }
 0x1ac   :  { %v6888_v52 = vor.u32 %v8921_v45, %v6885_v46  ;;  %v8969_v53 = vld [vmem:[%s14037_s7 + $0x694] sm:$0xf]  ;;  %v8790_v40 = vld [vmem:[%s14037_s7 + $0xf4] sm:$0xf0]  ;;  %v6572_v46 = vor.u32 %v8846_v30, %v6571_v29  ;;  %v7212_v47 = vor.u32 %v9006_v36, %v7211_v35 }
 0x1ad   :  { %2672 = vmatpush.bf16.msra.mxu2 %v6376_v58  ;;  %2650 = vmatpush.bf16.msra.mxu0 %v6756_v4  ;;  %v7077_v54 = vld [vmem:[%s14037_s7 + $0x6b0] sm:$0xf0]  ;;  %v8862_v4 = vld [vmem:[%s14037_s7 + $0x334] sm:$0xf0] }
 0x1ae   :  { %v8913_v58 = vld [vmem:[%s14037_s7 + $0x4d4] sm:$0xf]  ;;  %v7080_v62 = vor.u32 %v8969_v53, %v7077_v54  ;;  %v6987_v44 = vld [vmem:[%s14037_s7 + $0x5d8] sm:$0xf] }
 0x1af   :  { %2687 = vmatpush.bf16.msra.mxu3 %v6568_v2  ;;  %2709 = vmatpush.bf16.msrb.mxu1 %v7208_v3  ;;  %v6853_v59 = vld [vmem:[%s14037_s7 + $0x4f0] sm:$0xf0]  ;;  %v6635_v2 = vld [vmem:[%s14037_s7 + $0x318] sm:$0xf]  ;;  %v6444_v3 = vor.u32 %v8814_v61, %v6443_v60 }
 0x1b0   :  { %2651 = vmatmul.bf16.vlgmr.msra.gmra.mxu0 %v10534_v23  ;;  %v6856_v42 = vor.u32 %v8913_v58, %v6853_v59  ;;  %v8961_v41 = vld [vmem:[%s14037_s7 + $0x654] sm:$0xf]  ;;  %v6636_v11 = vor.u32 %v8862_v4, %v6635_v2  ;;  %v8950_v45 = vld [vmem:[%s14037_s7 + $0x5f4] sm:$0xf0] }
 0x1b1   :  { %2673 = vmatpush.bf16.msra.mxu2 %v6344_v5  ;;  %2695 = vmatpush.bf16.msrb.mxu0 %v6984_v10  ;;  %v7045_v1 = vld [vmem:[%s14037_s7 + $0x670] sm:$0xf0]  ;;  %v6988_v54 = vor.u32 %v8950_v45, %v6987_v44  ;;  %v8998_v55 = vld [vmem:[%s14037_s7 + $0x774] sm:$0xf0]  ;;  %v8866_v45 = vld [vmem:[%s14037_s7 + $0x35c] sm:$0xf] }
 0x1b2   :  { %v8905_v5 = vld [vmem:[%s14037_s7 + $0x494] sm:$0xf]  ;;  %v7048_v10 = vor.u32 %v8961_v41, %v7045_v1  ;;  %v8782_v57 = vld [vmem:[%s14037_s7 + $0xb4] sm:$0xf0] }
 0x1b3   :  { %2688 = vmatpush.bf16.msra.mxu3 %v6536_v15  ;;  %2710 = vmatpush.bf16.msrb.mxu1 %v7176_v17  ;;  %v6821_v6 = vld [vmem:[%s14037_s7 + $0x4b0] sm:$0xf0]  ;;  %v8854_v15 = vld [vmem:[%s14037_s7 + $0x2f4] sm:$0xf0] }
 0x1b4   :  { %v8953_v9 = vld [vmem:[%s14037_s7 + $0x614] sm:$0xf]  ;;  %v6824_v12 = vor.u32 %v8905_v5, %v6821_v6  ;;  %v7243_v17 = vld [vmem:[%s14037_s7 + $0x7d8] sm:$0xf]  ;;  %v6604_v27 = vor.u32 %v8854_v15, %v6603_v14  ;;  %v6736_v15 = vor.u32 %v8882_v7, %v6733_v8 }
 0x1b5   :  { %2674 = vmatpush.bf16.msra.mxu2 %v6312_v19  ;;  %2696 = vmatpush.bf16.msrb.mxu0 %v6952_v24  ;;  %v7013_v13 = vld [vmem:[%s14037_s7 + $0x630] sm:$0xf0]  ;;  %v9014_v19 = vld [vmem:[%s14037_s7 + $0x7f4] sm:$0xf0] }
 0x1b6   :  { %v8897_v20 = vld [vmem:[%s14037_s7 + $0x454] sm:$0xf]  ;;  %v8798_v24 = vld [vmem:[%s14037_s7 + $0x134] sm:$0xf0]  ;;  %v7016_v25 = vor.u32 %v8953_v9, %v7013_v13  ;;  %v7244_v28 = vor.u32 %v9014_v19, %v7243_v17 }
 0x1b7   :  { %2689 = vmatpush.bf16.msra.mxu3 %v6504_v31  ;;  %2711 = vmatpush.bf16.msrb.mxu1 %v7144_v33  ;;  %v6789_v21 = vld [vmem:[%s14037_s7 + $0x470] sm:$0xf0]  ;;  %v11286_v31 = vld [vmem:[%s14039_s8] sm:$0xff]  ;;  %v6955_v59 = vld [vmem:[%s14037_s7 + $0x598] sm:$0xf] }
 0x1b8   :  { %v6792_v33 = vor.u32 %v8897_v20, %v6789_v21  ;;  %v1113_v43 = vperm.slane %v11286_v31, 0  ;;  %v8942_v60 = vld [vmem:[%s14037_s7 + $0x5b4] sm:$0xf0] }
 0x1b9   :  { %2675 = vmatpush.bf16.msra.mxu2 %v6280_v37  ;;  %2697 = vmatpush.bf16.msrb.mxu0 %v6920_v38  ;;  %v8889_v37 = vld [vmem:[%s14037_s7 + $0x414] sm:$0xf]  ;;  %v8830_v1 = vld [vmem:[%s14037_s7 + $0x234] sm:$0xf0]  ;;  %v6956_v6 = vor.u32 %v8942_v60, %v6955_v59  ;;  %v8858_v60 = vld [vmem:[%s14037_s7 + $0x31c] sm:$0xf] }
 0x1ba   :  { %2690 = vmatmul.bf16.vlgmr.msra.gmra.mxu3 %v10429_v18  ;;  %v6757_v38 = vld [vmem:[%s14037_s7 + $0x430] sm:$0xf0]  ;;  %v7147_v2 = vld [vmem:[%s14037_s7 + $0x718] sm:$0xf] }
 0x1bb   :  { %2734 = vmatpush.bf16.msrb.mxu3 %v6732_v34  ;;  %2712 = vmatpush.bf16.msrb.mxu1 %v7112_v49  ;;  %v6380_v34 = vor.u32 %v8798_v24, %v6379_v22  ;;  %v6760_v48 = vor.u32 %v8889_v37, %v6757_v38  ;;  %v6348_v49 = vor.u32 %v8790_v40, %v6347_v39  ;;  %v8774_v9 = vld [vmem:[%s14037_s7 + $0x74] sm:$0xf0]  ;;  %v8874_v22 = vld [vmem:[%s14037_s7 + $0x39c] sm:$0xf] }
 0x1bc   :  { %v8982_v17 = vld [vmem:[%s14037_s7 + $0x6f4] sm:$0xf0]  ;;  %v6701_v24 = vld [vmem:[%s14037_s7 + $0x3b8] sm:$0xf0] }
 0x1bd   :  { %2676 = vmatpush.bf16.msra.mxu2 %v6248_v51  ;;  %2698 = vmatpush.bf16.msrb.mxu0 %v6888_v52  ;;  %v2431_v26 = vpop.f32.mrf.mxu3  ;;  %v8838_v51 = vld [vmem:[%s14037_s7 + $0x274] sm:$0xf0]  ;;  %v6704_v37 = vor.u32 %v8874_v22, %v6701_v24  ;;  %v8794_v22 = vld [vmem:[%s14037_s7 + $0x11c] sm:$0xf] }
 0x1be   :  { %v7179_v52 = vld [vmem:[%s14037_s7 + $0x758] sm:$0xf]  ;;  %v6381_v24 = vld [vmem:[%s14037_s7 + $0x138] sm:$0xf0] }
 0x1bf   :  { %2735 = vmatpush.bf16.msrb.mxu3 %v6700_v50  ;;  %2713 = vmatpush.bf16.msrb.mxu1 %v7080_v62  ;;  %v6539_v50 = vld [vmem:[%s14037_s7 + $0x258] sm:$0xf] }
 0x1c0   :  { %2677 = vmatmul.bf16.vlgmr.msra.gmra.mxu2 %v10450_v32  ;;  %v6540_v62 = vor.u32 %v8838_v51, %v6539_v50  ;;  %v7083_v38 = vld [vmem:[%s14037_s7 + $0x698] sm:$0xf] }
 0x1c1   :  { %2721 = vmatpush.bf16.msrb.mxu2 %v6476_v56  ;;  %2699 = vmatpush.bf16.msrb.mxu0 %v6856_v42  ;;  %v6315_v56 = vld [vmem:[%s14037_s7 + $0x98] sm:$0xf]  ;;  %v7180_v42 = vor.u32 %v8998_v55, %v7179_v52  ;;  %v8810_v52 = vld [vmem:[%s14037_s7 + $0x19c] sm:$0xf] }
 0x1c2   :  { %v6316_v41 = vor.u32 %v8782_v57, %v6315_v56  ;;  %v8974_v44 = vld [vmem:[%s14037_s7 + $0x6b4] sm:$0xf0] }
 0x1c3   :  { %2736 = vmatpush.bf16.msrb.mxu3 %v6668_v63  ;;  %2714 = vmatpush.bf16.msrb.mxu1 %v7048_v10  ;;  %v2418_v53 = vpop.f32.mrf.mxu2  ;;  %v6507_v63 = vld [vmem:[%s14037_s7 + $0x218] sm:$0xf] }
 0x1c4   :  { %v2419_v58 = vadd.f32 %v2418_v53, %v1113_v43  ;;  %v6283_v10 = vld [vmem:[%s14037_s7 + $0x58] sm:$0xf]  ;;  %v6508_v13 = vor.u32 %v8830_v1, %v6507_v63  ;;  %v6445_v53 = vld [vmem:[%s14037_s7 + $0x1b8] sm:$0xf0] }
 0x1c5   :  { %2722 = vmatpush.bf16.msrb.mxu2 %v6444_v3  ;;  %2700 = vmatpush.bf16.msrb.mxu0 %v6824_v12  ;;  %v2433_v61 = vpop.f32.mrf.mxu3  ;;  %v8990_v3 = vld [vmem:[%s14037_s7 + $0x734] sm:$0xf0]  ;;  %v6284_v20 = vor.u32 %v8774_v9, %v6283_v10  ;;  %v6637_v63 = vld [vmem:[%s14037_s7 + $0x338] sm:$0xf0] }
 0x1c6   :  { %v2432_v4 = vadd.f32 %v2431_v26, %v2419_v58  ;;  %v8934_v12 = vld [vmem:[%s14037_s7 + $0x574] sm:$0xf0]  ;;  %v7148_v14 = vor.u32 %v8990_v3, %v7147_v2  ;;  %v8802_v3 = vld [vmem:[%s14037_s7 + $0x15c] sm:$0xf] }
 0x1c7   :  { %2737 = vmatpush.bf16.msrb.mxu3 %v6636_v11  ;;  %2715 = vmatpush.bf16.msrb.mxu1 %v7016_v25  ;;  %v2457_v5 = vpop.f32.mrf.mxu1  ;;  %v6923_v11 = vld [vmem:[%s14037_s7 + $0x558] sm:$0xf] }
 0x1c8   :  { %v6924_v21 = vor.u32 %v8934_v12, %v6923_v11  ;;  %v6251_v25 = vld [vmem:[%s14037_s7 + $0x18] sm:$0xf]  ;;  %v6640_v11 = vor.u32 %v8858_v60, %v6637_v63  ;;  %v6317_v63 = vld [vmem:[%s14037_s7 + $0xb8] sm:$0xf0] }
 0x1c9   :  { %2723 = vmatpush.bf16.msrb.mxu2 %v6412_v16  ;;  %2701 = vmatpush.bf16.msrb.mxu0 %v6792_v33  ;;  %v7115_v16 = vld [vmem:[%s14037_s7 + $0x6d8] sm:$0xf]  ;;  %v8818_v33 = vld [vmem:[%s14037_s7 + $0x1dc] sm:$0xf] }
 0x1ca   :  { %2716 = vmatmul.bf16.vlgmr.msrb.gmra.mxu1 %v10494_v0  ;;  %v8766_v26 = vld [vmem:[%s14037_s7 + $0x34] sm:$0xf0]  ;;  %v7116_v36 = vor.u32 %v8982_v17, %v7115_v16  ;;  %v7245_v17 = vld [vmem:[%s14037_s7 + $0x7f8] sm:$0xf0] }
 0x1cb   :  { %2738 = vmatpush.bf16.msrb.mxu3 %v6604_v27  ;;  %2760 = vmatpush.bf16.msra.mxu1 %v7244_v28  ;;  %v2420_v19 = vpop.f32.mrf.mxu2  ;;  %v6891_v27 = vld [vmem:[%s14037_s7 + $0x518] sm:$0xf]  ;;  %v6252_v40 = vor.u32 %v8766_v26, %v6251_v25 }
 0x1cc   :  { %v8926_v28 = vld [vmem:[%s14037_s7 + $0x534] sm:$0xf0] }
 0x1cd   :  { %2724 = vmatpush.bf16.msrb.mxu2 %v6380_v34  ;;  %2702 = vmatpush.bf16.msrb.mxu0 %v6760_v48  ;;  %v2444_v29 = vpop.f32.mrf.mxu0  ;;  %v2483_v30 = vpop.f32.mrf.mxu3  ;;  %v6477_v34 = vld [vmem:[%s14037_s7 + $0x1f8] sm:$0xf0]  ;;  %v6892_v43 = vor.u32 %v8926_v28, %v6891_v27  ;;  %v6859_v50 = vld [vmem:[%s14037_s7 + $0x4d8] sm:$0xf] }
 0x1ce   :  { %v2445_v35 = vadd.f32 %v2444_v29, %v2432_v4  ;;  %v6480_v48 = vor.u32 %v8818_v33, %v6477_v34  ;;  %v8918_v51 = vld [vmem:[%s14037_s7 + $0x4f4] sm:$0xf0]  ;;  %v6413_v4 = vld [vmem:[%s14037_s7 + $0x178] sm:$0xf0]  ;;  %v6384_v34 = vor.u32 %v8794_v22, %v6381_v24 }
 0x1cf   :  { %2739 = vmatpush.bf16.msrb.mxu3 %v6572_v46  ;;  %2761 = vmatpush.bf16.msra.mxu1 %v7212_v47  ;;  %v2459_v39 = vpop.f32.mrf.mxu1  ;;  %v6669_v46 = vld [vmem:[%s14037_s7 + $0x378] sm:$0xf0]  ;;  %v6860_v57 = vor.u32 %v8918_v51, %v6859_v50  ;;  %v7051_v58 = vld [vmem:[%s14037_s7 + $0x658] sm:$0xf]  ;;  %v6416_v16 = vor.u32 %v8802_v3, %v6413_v4 }
 0x1d0   :  { %2703 = vmatmul.bf16.vlgmr.msrb.gmra.mxu0 %v10534_v23  ;;  %v2458_v47 = vadd.f32 %v2457_v5, %v2445_v35  ;;  %v6672_v56 = vor.u32 %v8866_v45, %v6669_v46  ;;  %v8966_v59 = vld [vmem:[%s14037_s7 + $0x674] sm:$0xf0]  ;;  %v8842_v29 = vld [vmem:[%s14037_s7 + $0x29c] sm:$0xf] }
 0x1d1   :  { %2725 = vmatpush.bf16.msrb.mxu2 %v6348_v49  ;;  %2747 = vmatpush.bf16.msra.mxu0 %v6988_v54  ;;  %v1114_v49 = vperm.slane %v11286_v31, 1  ;;  %v7084_v54 = vor.u32 %v8974_v44, %v7083_v38  ;;  %v7019_v7 = vld [vmem:[%s14037_s7 + $0x618] sm:$0xf]  ;;  %v9002_v35 = vld [vmem:[%s14037_s7 + $0x79c] sm:$0xf] }
 0x1d2   :  { %v2826_v5 = vsel %vm2825_vm2, %v2458_v47, -inf  ;;  %v8958_v8 = vld [vmem:[%s14037_s7 + $0x634] sm:$0xf0]  ;;  %v8786_v44 = vld [vmem:[%s14037_s7 + $0xdc] sm:$0xf] }
 0x1d3   :  { %2740 = vmatpush.bf16.msrb.mxu3 %v6540_v62  ;;  %2762 = vmatpush.bf16.msra.mxu1 %v7180_v42  ;;  %v2470_v55 = vpop.f32.mrf.mxu2  ;;  %v6448_v62 = vor.u32 %v8810_v52, %v6445_v53  ;;  %v6827_v42 = vld [vmem:[%s14037_s7 + $0x498] sm:$0xf]  ;;  %v7020_v25 = vor.u32 %v8958_v8, %v7019_v7  ;;  %v6349_v45 = vld [vmem:[%s14037_s7 + $0xf8] sm:$0xf0] }
 0x1d4   :  { %v2471_v61 = vadd.f32 %v2470_v55, %v1114_v49  ;;  %v6795_v19 = vld [vmem:[%s14037_s7 + $0x458] sm:$0xf]  ;;  %v8946_v47 = vld [vmem:[%s14037_s7 + $0x5dc] sm:$0xf]  ;;  %v6352_v55 = vor.u32 %v8786_v44, %v6349_v45 }
 0x1d5   :  { %2726 = vmatpush.bf16.msrb.mxu2 %v6316_v41  ;;  %2748 = vmatpush.bf16.msra.mxu0 %v6956_v6  ;;  %v8910_v41 = vld [vmem:[%s14037_s7 + $0x4b4] sm:$0xf0]  ;;  %v2446_v1 = vpop.f32.mrf.mxu0  ;;  %v2485_v2 = vpop.f32.mrf.mxu3  ;;  %v7052_v6 = vor.u32 %v8966_v59, %v7051_v58  ;;  %v8834_v52 = vld [vmem:[%s14037_s7 + $0x25c] sm:$0xf] }
 0x1d6   :  { %v2484_v10 = vadd.f32 %v2483_v30, %v2471_v61  ;;  %v6828_v12 = vor.u32 %v8910_v41, %v6827_v42  ;;  %v6573_v30 = vld [vmem:[%s14037_s7 + $0x2b8] sm:$0xf0]  ;;  %v1115_v61 = vperm.slane %v11286_v31, 2  ;;  %v9367_v2 = vld [vmem:[%s14032_s3] sm:$0xff] }
 0x1d7   :  { %2741 = vmatpush.bf16.msrb.mxu3 %v6508_v13  ;;  %2763 = vmatpush.bf16.msra.mxu1 %v7148_v14  ;;  %v2509_v9 = vpop.f32.mrf.mxu1  ;;  %v8850_v13 = vld [vmem:[%s14037_s7 + $0x2dc] sm:$0xf]  ;;  %v6576_v50 = vor.u32 %v8842_v29, %v6573_v30  ;;  %v2991_v3 = vunpack.c.h.b16 %v9367_v2 }
 0x1d8   :  { %v6605_v14 = vld [vmem:[%s14037_s7 + $0x2f8] sm:$0xf0] }
 0x1d9   :  { %2727 = vmatpush.bf16.msrb.mxu2 %v6284_v20  ;;  %2749 = vmatpush.bf16.msra.mxu0 %v6924_v21  ;;  %v8902_v20 = vld [vmem:[%s14037_s7 + $0x474] sm:$0xf0]  ;;  %v2827_v21 = vrot.slane %v2826_v5, 4  ;;  %v6608_v27 = vor.u32 %v8850_v13, %v6605_v14  ;;  %v7181_v58 = vld [vmem:[%s14037_s7 + $0x778] sm:$0xf0] }
 0x1da   :  { %2742 = vmatmul.bf16.vlgmr.msrb.gmra.mxu3 %v10429_v18  ;;  %v6796_v33 = vor.u32 %v8902_v20, %v6795_v19  ;;  %v8938_v41 = vld [vmem:[%s14037_s7 + $0x59c] sm:$0xf] }
 0x1db   :  { %2786 = vmatpush.bf16.msra.mxu3 %v6736_v15  ;;  %2764 = vmatpush.bf16.msra.mxu1 %v7116_v36  ;;  %v9010_v15 = vld [vmem:[%s14037_s7 + $0x7dc] sm:$0xf]  ;;  %v2472_v26 = vpop.f32.mrf.mxu2  ;;  %v2828_v38 = vmax.f32 %v2826_v5, %v2827_v21 }
 0x1dc   :  { %v7248_v28 = vor.u32 %v9010_v15, %v7245_v17  ;;  %v7213_v36 = vld [vmem:[%s14037_s7 + $0x7b8] sm:$0xf0]  ;;  %v2993_v26 = vpack.c.b16 %v2991_v3, %v2991_v3 }
 0x1dd   :  { %2728 = vmatpush.bf16.msrb.mxu2 %v6252_v40  ;;  %2750 = vmatpush.bf16.msra.mxu0 %v6892_v43  ;;  %v2496_v39 = vpop.f32.mrf.mxu0  ;;  %v11496_v40 = vpop.f32.mrf.mxu3  ;;  %v8894_v43 = vld [vmem:[%s14037_s7 + $0x434] sm:$0xf0]  ;;  %v7216_v51 = vor.u32 %v9002_v35, %v7213_v36  ;;  %v2829_v59 = vrot.slane %v2828_v38, 2  ;;  %v6957_v1 = vld [vmem:[%s14037_s7 + $0x5b8] sm:$0xf0] }
 0x1de   :  { %v2497_v46 = vadd.f32 %v2496_v39, %v2484_v10  ;;  %v8826_v10 = vld [vmem:[%s14037_s7 + $0x21c] sm:$0xf]  ;;  %v6960_v17 = vor.u32 %v8938_v41, %v6957_v1 }
 0x1df   :  { %2787 = vmatpush.bf16.msra.mxu3 %v6704_v37  ;;  %2765 = vmatpush.bf16.msra.mxu1 %v7084_v54  ;;  %v6763_v37 = vld [vmem:[%s14037_s7 + $0x418] sm:$0xf]  ;;  %v2511_v49 = vpop.f32.mrf.mxu1  ;;  %v7149_v19 = vld [vmem:[%s14037_s7 + $0x738] sm:$0xf0] }
 0x1e0   :  { %2729 = vmatmul.bf16.vlgmr.msrb.gmra.mxu2 %v10450_v32  ;;  %v2510_v53 = vadd.f32 %v2509_v9, %v2497_v46  ;;  %v6764_v54 = vor.u32 %v8894_v43, %v6763_v37  ;;  %v6509_v9 = vld [vmem:[%s14037_s7 + $0x238] sm:$0xf0]  ;;  %v9045_v37 = vld [vmem:[%s14031_s2 + $0xf4] sm:$0xf]  ;;  %v3001_v49 = vsel %vm77_vm0, %v2993_v26, 0 }
 0x1e1   :  { %2773 = vmatpush.bf16.msra.mxu2 %v6480_v48  ;;  %2751 = vmatpush.bf16.msra.mxu0 %v6860_v57  ;;  %v6989_v48 = vld [vmem:[%s14037_s7 + $0x5f8] sm:$0xf0]  ;;  %v6512_v29 = vor.u32 %v8826_v10, %v6509_v9  ;;  %v9041_v10 = vld [vmem:[%s14031_s2 + $0xd4] sm:$0xf] }
 0x1e2   :  { %v8994_v57 = vld [vmem:[%s14037_s7 + $0x75c] sm:$0xf]  ;;  %v6992_v60 = vor.u32 %v8946_v47, %v6989_v48  ;;  %v2833_v42 = vsel %vm2825_vm2, %v2510_v53, -inf }
 0x1e3   :  { %2788 = vmatpush.bf16.msra.mxu3 %v6672_v56  ;;  %2766 = vmatpush.bf16.msra.mxu1 %v7052_v6  ;;  %v6541_v56 = vld [vmem:[%s14037_s7 + $0x278] sm:$0xf0]  ;;  %v2834_v4 = vrot.slane %v2833_v42, 4  ;;  %v2522_v6 = vpop.f32.mrf.mxu2  ;;  %v7184_v7 = vor.u32 %v8994_v57, %v7181_v58  ;;  %v7369_v57 = vld [vmem:[%s14031_s2 + $0xe8] sm:$0xf0] }
 0x1e4   :  { %v6544_v5 = vor.u32 %v8834_v52, %v6541_v56  ;;  %v2523_v14 = vadd.f32 %v2522_v6, %v1115_v61  ;;  %v8770_v20 = vld [vmem:[%s14037_s7 + $0x5c] sm:$0xf]  ;;  %v9043_v56 = vld [vmem:[%s14031_s2 + $0xe4] sm:$0xf] }
 0x1e5   :  { %2774 = vmatpush.bf16.msra.mxu2 %v6448_v62  ;;  %2752 = vmatpush.bf16.msra.mxu0 %v6828_v12  ;;  %v8778_v62 = vld [vmem:[%s14037_s7 + $0x9c] sm:$0xf]  ;;  %v2830_v12 = vmax.f32 %v2828_v38, %v2829_v59  ;;  %v2835_v13 = vmax.f32 %v2833_v42, %v2834_v4  ;;  %v2498_v15 = vpop.f32.mrf.mxu0  ;;  %v7372_v6 = vor.u32 %v9043_v56, %v7369_v57  ;;  %v9035_v57 = vld [vmem:[%s14031_s2 + $0xa4] sm:$0xf] }
 0x1e6   :  { %v6320_v8 = vor.u32 %v8778_v62, %v6317_v63  ;;  %v6285_v21 = vld [vmem:[%s14037_s7 + $0x78] sm:$0xf0]  ;;  %v9029_v62 = vld [vmem:[%s14031_s2 + $0x74] sm:$0xf]  ;;  %v7305_v15 = vld [vmem:[%s14031_s2 + $0x68] sm:$0xf0] }
 0x1e7   :  { %2789 = vmatpush.bf16.msra.mxu3 %v6640_v11  ;;  %2767 = vmatpush.bf16.msra.mxu1 %v7020_v25  ;;  %v8986_v11 = vld [vmem:[%s14037_s7 + $0x71c] sm:$0xf]  ;;  %v2990_v25 = vunpack.c.l.b16 %v9367_v2  ;;  %v6288_v35 = vor.u32 %v8770_v20, %v6285_v21  ;;  %v2831_v39 = vrot.slane %v2830_v12, 1 }
 0x1e8   :  { %v8930_v22 = vld [vmem:[%s14037_s7 + $0x55c] sm:$0xf] }
 0x1e9   :  { %2775 = vmatpush.bf16.msra.mxu2 %v6416_v16  ;;  %2753 = vmatpush.bf16.msra.mxu0 %v6796_v33  ;;  %v2537_v16 = vpop.f32.mrf.mxu3  ;;  %v6925_v24 = vld [vmem:[%s14037_s7 + $0x578] sm:$0xf0]  ;;  %v2536_v33 = vadd.f32 %v11496_v40, %v2523_v14  ;;  %v2992_v48 = vpack.c.b16 %v2990_v25, %v2990_v25  ;;  %v2832_v58 = vmax.f32 %v2830_v12, %v2831_v39  ;;  %v9027_v14 = vld [vmem:[%s14031_s2 + $0x64] sm:$0xf]  ;;  %v9037_v39 = vld [vmem:[%s14031_s2 + $0xb4] sm:$0xf] }
 0x1ea   :  { %2768 = vmatmul.bf16.vlgmr.msra.gmra.mxu1 %v10494_v0  ;;  %v8978_v30 = vld [vmem:[%s14037_s7 + $0x6dc] sm:$0xf]  ;;  %v6928_v40 = vor.u32 %v8930_v22, %v6925_v24  ;;  %v7308_v22 = vor.u32 %v9027_v14, %v7305_v15  ;;  %v9039_v25 = vld [vmem:[%s14031_s2 + $0xc4] sm:$0xf]  ;;  %v7351_v15 = vld [vmem:[%s14031_s2 + $0xc0] sm:$0xf] }
 0x1eb   :  { %2790 = vmatpush.bf16.msra.mxu3 %v6608_v27  ;;  %2812 = vmatpush.bf16.msrb.mxu1 %v7248_v28  ;;  %v2836_v27 = vrot.slane %v2835_v13, 2  ;;  %v2561_v28 = vpop.f32.mrf.mxu1  ;;  %v7117_v36 = vld [vmem:[%s14037_s7 + $0x6f8] sm:$0xf0]  ;;  %v2524_v52 = vpop.f32.mrf.mxu2  ;;  %v2998_v41 = vsel %vm77_vm0, %v2992_v48, 0 }
 0x1ec   :  { %v7377_v38 = vld [vmem:[%s14031_s2 + $0xf8] sm:$0xf0]  ;;  %v7120_v53 = vor.u32 %v8978_v30, %v7117_v36  ;;  %v7311_v52 = vld [vmem:[%s14031_s2 + $0x70] sm:$0xf] }
 0x1ed   :  { %2776 = vmatpush.bf16.msra.mxu2 %v6384_v34  ;;  %2754 = vmatpush.bf16.msra.mxu0 %v6764_v54  ;;  %v7152_v34 = vor.u32 %v8986_v11, %v7149_v19  ;;  %v2837_v43 = vmax.f32 %v2835_v13, %v2836_v27  ;;  %v8762_v44 = vld [vmem:[%s14037_s7 + $0x1c] sm:$0xf]  ;;  %v2548_v42 = vpop.f32.mrf.mxu0  ;;  %v7375_v27 = vld [vmem:[%s14031_s2 + $0xf0] sm:$0xf] }
 0x1ee   :  { %v6253_v45 = vld [vmem:[%s14037_s7 + $0x38] sm:$0xf0]  ;;  %v2549_v4 = vadd.f32 %v2548_v42, %v2536_v33  ;;  %v9046_v33 = vld [vmem:[%s14031_s2 + $0xf4] sm:$0xf0] }
 0x1ef   :  { %2791 = vmatpush.bf16.msra.mxu3 %v6576_v50  ;;  %2813 = vmatpush.bf16.msrb.mxu1 %v7216_v51  ;;  %v8922_v46 = vld [vmem:[%s14037_s7 + $0x51c] sm:$0xf]  ;;  %v2838_v50 = vrot.slane %v2837_v43, 1  ;;  %v7380_v51 = vor.u32 %v9045_v37, %v7377_v38  ;;  %v6256_v54 = vor.u32 %v8762_v44, %v6253_v45  ;;  %v7367_v45 = vld [vmem:[%s14031_s2 + $0xe0] sm:$0xf] }
 0x1f0   :  { %2755 = vmatmul.bf16.vlgmr.msra.gmra.mxu0 %v10534_v23  ;;  %v6893_v47 = vld [vmem:[%s14037_s7 + $0x538] sm:$0xf0]  ;;  %v11631_v11 = vadd.f32 %v2561_v28, %v2549_v4  ;;  %v9025_v28 = vld [vmem:[%s14031_s2 + $0x54] sm:$0xf]  ;;  %v9028_v4 = vld [vmem:[%s14031_s2 + $0x64] sm:$0xf0] }
 0x1f1   :  { %2777 = vmatpush.bf16.msra.mxu2 %v6352_v55  ;;  %2799 = vmatpush.bf16.msrb.mxu0 %v6992_v60  ;;  %v8970_v55 = vld [vmem:[%s14037_s7 + $0x69c] sm:$0xf]  ;;  %v2839_v59 = vmax.f32 %v2837_v43, %v2838_v50  ;;  %v6896_v60 = vor.u32 %v8922_v46, %v6893_v47  ;;  %v9023_v46 = vld [vmem:[%s14031_s2 + $0x44] sm:$0xf]  ;;  %v7289_v47 = vld [vmem:[%s14031_s2 + $0x48] sm:$0xf0] }
 0x1f2   :  { %v7085_v61 = vld [vmem:[%s14037_s7 + $0x6b8] sm:$0xf0]  ;;  %v7292_v56 = vor.u32 %v9023_v46, %v7289_v47  ;;  %v7335_v47 = vld [vmem:[%s14031_s2 + $0xa0] sm:$0xf] }
 0x1f3   :  { %2792 = vmatpush.bf16.msra.mxu3 %v6544_v5  ;;  %2814 = vmatpush.bf16.msrb.mxu1 %v7184_v7  ;;  %v7313_v63 = vld [vmem:[%s14031_s2 + $0x78] sm:$0xf0]  ;;  %v11620_v3 = vpack.c.bf16 %v2839_v59, %v2832_v58  ;;  %v2563_v5 = vpop.f32.mrf.mxu1  ;;  %v7337_v58 = vld [vmem:[%s14031_s2 + $0xa8] sm:$0xf0] }
 0x1f4   :  { %v8914_v1 = vld [vmem:[%s14037_s7 + $0x4dc] sm:$0xf]  ;;  %v7316_v7 = vor.u32 %v9029_v62, %v7313_v63  ;;  %v9021_v62 = vld [vmem:[%s14031_s2 + $0x34] sm:$0xf]  ;;  %v7340_v5 = vor.u32 %v9035_v57, %v7337_v58 }
 0x1f5   :  { %2778 = vmatpush.bf16.msra.mxu2 %v6320_v8  ;;  %2800 = vmatpush.bf16.msrb.mxu0 %v6960_v17  ;;  %v6861_v2 = vld [vmem:[%s14037_s7 + $0x4f8] sm:$0xf0]  ;;  %v2550_v30 = vpop.f32.mrf.mxu0 }
 0x1f6   :  { %v8962_v8 = vld [vmem:[%s14037_s7 + $0x65c] sm:$0xf]  ;;  %v6864_v12 = vor.u32 %v8914_v1, %v6861_v2  ;;  %v9042_v1 = vld [vmem:[%s14031_s2 + $0xd4] sm:$0xf0]  ;;  %v7303_v2 = vld [vmem:[%s14031_s2 + $0x60] sm:$0xf] }
 0x1f7   :  { %2793 = vmatpush.bf16.msra.mxu3 %v6512_v29  ;;  %2815 = vmatpush.bf16.msrb.mxu1 %v7152_v34  ;;  %v7361_v9 = vld [vmem:[%s14031_s2 + $0xd8] sm:$0xf0]  ;;  %v7304_v14 = vor.u32 %v9028_v4, %v7303_v2  ;;  %v7343_v30 = vld [vmem:[%s14031_s2 + $0xb0] sm:$0xf] }
 0x1f8   :  { %v7053_v13 = vld [vmem:[%s14037_s7 + $0x678] sm:$0xf0]  ;;  %v7364_v20 = vor.u32 %v9041_v10, %v7361_v9  ;;  %v9019_v9 = vld [vmem:[%s14031_s2 + $0x24] sm:$0xf] }
 0x1f9   :  { %2779 = vmatpush.bf16.msra.mxu2 %v6288_v35  ;;  %2801 = vmatpush.bf16.msrb.mxu0 %v6928_v40  ;;  %v8906_v16 = vld [vmem:[%s14037_s7 + $0x49c] sm:$0xf]  ;;  %v7056_v21 = vor.u32 %v8962_v8, %v7053_v13  ;;  %v7376_v40 = vor.u32 %v9046_v33, %v7375_v27  ;;  %v9017_v27 = vld [vmem:[%s14031_s2 + $0x14] sm:$0xf]  ;;  %v9038_v33 = vld [vmem:[%s14031_s2 + $0xb4] sm:$0xf0] }
 0x1fa   :  { %2794 = vmatmul.bf16.vlgmr.msra.gmra.mxu3 %v10429_v18  ;;  %v7088_v18 = vor.u32 %v8970_v55, %v7085_v61  ;;  %v6829_v17 = vld [vmem:[%s14037_s7 + $0x4b8] sm:$0xf0]  ;;  %v7250_v55 = vld [vmem:[%s14033_s1 + $0x1] sm:$0x1]  ;;  %v1116_v61 = vperm.slane %v11286_v31, 3 }
 0x1fb   :  { %3023 = vmatpush.bf16.msrb.mxu3 %v3001_v49  ;;  %2816 = vmatpush.bf16.msrb.mxu1 %v7120_v53  ;;  %v8954_v19 = vld [vmem:[%s14037_s7 + $0x61c] sm:$0xf]  ;;  %v6832_v26 = vor.u32 %v8906_v16, %v6829_v17  ;;  %v9044_v49 = vld [vmem:[%s14031_s2 + $0xe4] sm:$0xf0]  ;;  %v9030_v53 = vld [vmem:[%s14031_s2 + $0x74] sm:$0xf0] }
 0x1fc   :  { %v7021_v24 = vld [vmem:[%s14037_s7 + $0x638] sm:$0xf0]  ;;  %v7368_v59 = vor.u32 %v9044_v49, %v7367_v45  ;;  %v7312_v42 = vor.u32 %v9030_v53, %v7311_v52  ;;  %v9040_v16 = vld [vmem:[%s14031_s2 + $0xc4] sm:$0xf0]  ;;  %v2840_v17 = vsel %vm2825_vm2, %v11631_v11, -inf }
 0x1fd   :  { %2780 = vmatpush.bf16.msra.mxu2 %v6256_v54  ;;  %2802 = vmatpush.bf16.msrb.mxu0 %v6896_v60  ;;  %v7297_v29 = vld [vmem:[%s14031_s2 + $0x58] sm:$0xf0]  ;;  %v7024_v37 = vor.u32 %v8954_v19, %v7021_v24  ;;  %v2587_v48 = vpop.f32.mrf.mxu3  ;;  %v7295_v19 = vld [vmem:[%s14031_s2 + $0x50] sm:$0xf]  ;;  %v9031_v11 = vld [vmem:[%s14031_s2 + $0x84] sm:$0xf] }
 0x1fe   :  { %v8898_v34 = vld [vmem:[%s14037_s7 + $0x45c] sm:$0xf]  ;;  %v7300_v38 = vor.u32 %v9025_v28, %v7297_v29  ;;  %v2841_v28 = vrot.slane %v2840_v17, 4  ;;  %v3032_v52 = vld [vmem:[#allocation1 + $0x9] sm:$0xff] }
 0x1ff   :  { %3234 = vmatpush.bf16.msra.mxu3 %v7380_v51  ;;  %2817 = vmatpush.bf16.msrb.mxu1 %v7088_v18  ;;  %v6797_v35 = vld [vmem:[%s14037_s7 + $0x478] sm:$0xf0] }
 0x200   :  { %2781 = vmatmul.bf16.vlgmr.msra.gmra.mxu2 %v10450_v32  ;;  %v7353_v32 = vld [vmem:[%s14031_s2 + $0xc8] sm:$0xf0]  ;;  %v7345_v43 = vld [vmem:[%s14031_s2 + $0xb8] sm:$0xf0]  ;;  %v6800_v44 = vor.u32 %v8898_v34, %v6797_v35  ;;  %v7287_v34 = vld [vmem:[%s14031_s2 + $0x40] sm:$0xf] }
 0x201   :  { %3010 = vmatpush.bf16.msrb.mxu2 %v2998_v41  ;;  %2803 = vmatpush.bf16.msrb.mxu0 %v6864_v12  ;;  %v7356_v36 = vor.u32 %v9039_v25, %v7353_v32  ;;  %v8890_v50 = vld [vmem:[%s14037_s7 + $0x41c] sm:$0xf]  ;;  %v7348_v54 = vor.u32 %v9037_v39, %v7345_v43  ;;  %v7359_v41 = vld [vmem:[%s14031_s2 + $0xd0] sm:$0xf]  ;;  %v7273_v12 = vld [vmem:[%s14031_s2 + $0x28] sm:$0xf0]  ;;  %v7344_v39 = vor.u32 %v9038_v33, %v7343_v30 }
 0x202   :  { %v6765_v51 = vld [vmem:[%s14037_s7 + $0x438] sm:$0xf0]  ;;  %v7360_v10 = vor.u32 %v9042_v1, %v7359_v41  ;;  %v7276_v25 = vor.u32 %v9019_v9, %v7273_v12  ;;  %v7321_v32 = vld [vmem:[%s14031_s2 + $0x88] sm:$0xf0]  ;;  %v9024_v35 = vld [vmem:[%s14031_s2 + $0x44] sm:$0xf0] }
 0x203   :  { %3235 = vmatpush.bf16.msra.mxu3 %v7372_v6  ;;  %2818 = vmatpush.bf16.msrb.mxu1 %v7056_v21  ;;  %v6768_v60 = vor.u32 %v8890_v50, %v6765_v51  ;;  %v7281_v63 = vld [vmem:[%s14031_s2 + $0x38] sm:$0xf0]  ;;  %v2574_v6 = vpop.f32.mrf.mxu2  ;;  %v9015_v43 = vld [vmem:[%s14031_s2 + $0x4] sm:$0xf]  ;;  %v7288_v46 = vor.u32 %v9024_v35, %v7287_v34  ;;  %v7279_v50 = vld [vmem:[%s14031_s2 + $0x30] sm:$0xf] }
 0x204   :  { %v7284_v18 = vor.u32 %v9021_v62, %v7281_v63  ;;  %v2575_v8 = vadd.f32 %v2574_v6, %v1116_v61  ;;  %v9022_v51 = vld [vmem:[%s14031_s2 + $0x34] sm:$0xf0]  ;;  %v7271_v62 = vld [vmem:[%s14031_s2 + $0x20] sm:$0xf]  ;;  %v9020_v63 = vld [vmem:[%s14031_s2 + $0x24] sm:$0xf0] }
 0x205   :  { %3221 = vmatpush.bf16.msra.mxu2 %v7316_v7  ;;  %2804 = vmatpush.bf16.msrb.mxu0 %v6832_v26  ;;  %v9033_v7 = vld [vmem:[%s14031_s2 + $0x94] sm:$0xf]  ;;  %v2589_v13 = vpop.f32.mrf.mxu3  ;;  %v7352_v26 = vor.u32 %v9040_v16, %v7351_v15  ;;  %v7280_v58 = vor.u32 %v9022_v51, %v7279_v50  ;;  %v3031_v41 = vld [vmem:[#allocation1] sm:$0xff]  ;;  %v7272_v6 = vor.u32 %v9020_v63, %v7271_v62 }
 0x206   :  { %v2588_v21 = vadd.f32 %v2587_v48, %v2575_v8  ;;  %v9036_v48 = vld [vmem:[%s14031_s2 + $0xa4] sm:$0xf0]  ;;  %v9018_v8 = vld [vmem:[%s14031_s2 + $0x14] sm:$0xf0]  ;;  %v7255_v16 = vld [vmem:[%s14031_s2] sm:$0xf] }
 0x207   :  { %3236 = vmatpush.bf16.msra.mxu3 %v7364_v20  ;;  %2819 = vmatpush.bf16.msrb.mxu1 %v7024_v37  ;;  %v9026_v20 = vld [vmem:[%s14031_s2 + $0x54] sm:$0xf0]  ;;  %v2613_v24 = vpop.f32.mrf.mxu1 }
 0x208   :  { %v7296_v29 = vor.u32 %v9026_v20, %v7295_v19 }
 0x209   :  { %3222 = vmatpush.bf16.msra.mxu2 %v7308_v22  ;;  %2805 = vmatpush.bf16.msrb.mxu0 %v6800_v44  ;;  %v2842_v44 = vmax.f32 %v2840_v17, %v2841_v28  ;;  %v9016_v17 = vld [vmem:[%s14031_s2 + $0x4] sm:$0xf0] }
 0x20a   :  { %7252 = vmatmul.msk.bf16.vlgmr.msrb.gmra.mxu3 %vm73_vm1, %v7250_v55  ;;  %2820 = vmatmul.bf16.vlgmr.msrb.gmra.mxu1 %v10494_v0  ;;  %v7329_v0 = vld [vmem:[%s14031_s2 + $0x98] sm:$0xf0] }
 0x20b   :  { %3237 = vmatpush.bf16.msra.mxu3 %v7356_v36  ;;  %3208 = vmatpush.bf16.msra.mxu1 %v7376_v40  ;;  %v7332_v22 = vor.u32 %v9033_v7, %v7329_v0  ;;  %v7324_v36 = vor.u32 %v9031_v11, %v7321_v32  ;;  %v2576_v37 = vpop.f32.mrf.mxu2  ;;  %v7257_v40 = vld [vmem:[%s14031_s2 + $0x8] sm:$0xf0]  ;;  %v2843_v57 = vrot.slane %v2842_v44, 2  ;;  %v9032_v7 = vld [vmem:[%s14031_s2 + $0x84] sm:$0xf0] }
 0x20c   :  { %v7263_v0 = vld [vmem:[%s14031_s2 + $0x10] sm:$0xf] }
 0x20d   :  { %3223 = vmatpush.bf16.msra.mxu2 %v7300_v38  ;;  %2806 = vmatpush.bf16.msrb.mxu0 %v6768_v60  ;;  %v2600_v45 = vpop.f32.mrf.mxu0  ;;  %v9034_v60 = vld [vmem:[%s14031_s2 + $0x94] sm:$0xf0]  ;;  %v2844_v2 = vmax.f32 %v2842_v44, %v2843_v57 }
 0x20e   :  { %v2601_v49 = vadd.f32 %v2600_v45, %v2588_v21  ;;  %v1118_v45 = vperm.slane %v11286_v31, 5 }
 0x20f   :  { %3238 = vmatpush.bf16.msra.mxu3 %v7348_v54  ;;  %3209 = vmatpush.bf16.msra.mxu1 %v7368_v59  ;;  %v2615_v53 = vpop.f32.mrf.mxu1  ;;  %v7260_v54 = vor.u32 %v9015_v43, %v7257_v40  ;;  %v7327_v59 = vld [vmem:[%s14031_s2 + $0x90] sm:$0xf]  ;;  %v2845_v12 = vrot.slane %v2844_v2, 1 }
 0x210   :  { %7251 = vmatmul.msk.bf16.vlgmr.msrb.gmra.mxu2 %vm73_vm1, %v7250_v55  ;;  %2807 = vmatmul.bf16.vlgmr.msrb.gmra.mxu0 %v10534_v23  ;;  %v7265_v23 = vld [vmem:[%s14031_s2 + $0x18] sm:$0xf0]  ;;  %v2614_v55 = vadd.f32 %v2613_v24, %v2601_v49  ;;  %v7328_v1 = vor.u32 %v9034_v60, %v7327_v59  ;;  %v1117_v24 = vperm.slane %v11286_v31, 4  ;;  %vm2934_vm1 = vsmask.f32 4352 }
 0x211   :  { %3224 = vmatpush.bf16.msra.mxu2 %v7292_v56  ;;  %3195 = vmatpush.bf16.msra.mxu0 %v7312_v42  ;;  %v7268_v38 = vor.u32 %v9017_v27, %v7265_v23  ;;  %v7336_v56 = vor.u32 %v9036_v48, %v7335_v47  ;;  %v2846_v20 = vmax.f32 %v2844_v2, %v2845_v12  ;;  %v7607_v12 = vld [vmem:[%s14035_s5 + $0x1c0] sm:$0xf]  ;;  %vm12227_vm8 = vmand %vm2906_vm6, %vm2934_vm1 }
 0x212   :  { %v2847_v61 = vsel %vm2825_vm2, %v2614_v55, -inf  ;;  %vm12259_vm11 = vmor %vm12227_vm8, %vm2932_vm7  ;;  %vm2946_vm7 = vsmask.f32 7424 }
 0x213   :  { %3239 = vmatpush.bf16.msra.mxu3 %v7340_v5  ;;  %3210 = vmatpush.bf16.msra.mxu1 %v7360_v10  ;;  %v2848_v42 = vrot.slane %v2847_v61, 4  ;;  %vm2940_vm15 = vmor %vm12272_vm13, %vm12259_vm11 }
 0x214   :  { %vm12306_vm1 = vmand %vm2910_vm12, %vm2942_vm14 }
 0x215   :  { %3225 = vmatpush.bf16.msra.mxu2 %v7284_v18  ;;  %3196 = vmatpush.bf16.msra.mxu0 %v7304_v14  ;;  %v2849_v4 = vmax.f32 %v2847_v61, %v2848_v42  ;;  %v2602_v5 = vpop.f32.mrf.mxu0  ;;  %v7319_v18 = vld [vmem:[%s14031_s2 + $0x80] sm:$0xf]  ;;  %v7264_v14 = vor.u32 %v9018_v8, %v7263_v0  ;;  %vm12332_vm8 = vmor %vm12306_vm1, %vm2940_vm15 }
 0x216   :  { %v7320_v9 = vor.u32 %v9032_v7, %v7319_v18  ;;  %v9109_v5 = vld [vmem:[%s14035_s5 + $0x1ec] sm:$0xf0]  ;;  %v9107_v18 = vld [vmem:[%s14035_s5 + $0x1e4] sm:$0xf]  ;;  %v7625_v7 = vld [vmem:[%s14035_s5 + $0x1f0] sm:$0xf0] }
 0x217   :  { %3240 = vmatpush.bf16.msra.mxu3 %v7332_v22  ;;  %3211 = vmatpush.bf16.msra.mxu1 %v7352_v26  ;;  %v2850_v10 = vrot.slane %v2849_v4, 2  ;;  %v7256_v22 = vor.u32 %v9016_v17, %v7255_v16  ;;  %v7609_v17 = vld [vmem:[%s14035_s5 + $0x1d0] sm:$0xf0]  ;;  %vm12341_vm10 = vmand %vm2945_vm5, %vm2946_vm7 }
 0x218   :  { %vm2948_vm11 = vmor %vm12341_vm10, %vm12332_vm8 }
 0x219   :  { %3226 = vmatpush.bf16.msra.mxu2 %v7276_v25  ;;  %3197 = vmatpush.bf16.msra.mxu0 %v7296_v29  ;;  %v2851_v13 = vmax.f32 %v2849_v4, %v2850_v10  ;;  %v2890_v25 = vrot.slane %v11620_v3, 3  ;;  %v7623_v4 = vld [vmem:[%s14035_s5 + $0x1e0] sm:$0xf]  ;;  %v7628_v10 = vor.u32 %v9107_v18, %v7625_v7  ;;  %v9089_v7 = vld [vmem:[%s14035_s5 + $0x14c] sm:$0xf0] }
 0x21a   :  { %v7543_v18 = vld [vmem:[%s14035_s5 + $0x140] sm:$0xf] }
 0x21b   :  { %3241 = vmatpush.bf16.msra.mxu3 %v7324_v36  ;;  %3212 = vmatpush.bf16.msra.mxu1 %v7344_v39  ;;  %v2852_v19 = vrot.slane %v2851_v13, 1  ;;  %v2900_v29 = vsel %vm2897_vm3, %v11620_v3, %v2890_v25 }
 0x21d   :  { %3227 = vmatpush.bf16.msra.mxu2 %v7268_v38  ;;  %3198 = vmatpush.bf16.msra.mxu0 %v7288_v46  ;;  %v2639_v15 = vpop.f32.mrf.mxu3  ;;  %v2853_v21 = vmax.f32 %v2851_v13, %v2852_v19  ;;  %v9105_v13 = vld [vmem:[%s14035_s5 + $0x1cc] sm:$0xf0] }
 0x21e   :  { %3242 = vmatmul.bf16.vlgmr.msra.gmra.mxu3 %v3032_v52  ;;  %v7608_v16 = vor.u32 %v9105_v13, %v7607_v12  ;;  %v7545_v12 = vld [vmem:[%s14035_s5 + $0x150] sm:$0xf0] }
 0x21f   :  { %3213 = vmatpush.bf16.msra.mxu1 %v7336_v56  ;;  %v2883_v11 = vpack.c.bf16 %v2853_v21, %v2846_v20  ;;  %3695 = vmatpush.bf16.msrb.mxu3 %v7628_v10  ;;  %v7495_v21 = vld [vmem:[%s14035_s5 + $0xe0] sm:$0xf]  ;;  %v9087_v10 = vld [vmem:[%s14035_s5 + $0x144] sm:$0xf] }
 0x220   :  { %v7548_v13 = vor.u32 %v9087_v10, %v7545_v12  ;;  %v7503_v10 = vld [vmem:[%s14035_s5 + $0xe8] sm:$0xf] }
 0x221   :  { %3228 = vmatpush.bf16.msra.mxu2 %v7260_v54  ;;  %3199 = vmatpush.bf16.msra.mxu0 %v7280_v58  ;;  %v2891_v26 = vrot.slane %v2883_v11, 6  ;;  %v2892_v27 = vrot.slane %v2883_v11, 1  ;;  %v7497_v11 = vld [vmem:[%s14035_s5 + $0xf0] sm:$0xf0] }
 0x223   :  { %3214 = vmatpush.bf16.msra.mxu1 %v7328_v1  ;;  %v2626_v32 = vpop.f32.mrf.mxu2  ;;  %v2904_v30 = vsel %vm2901_vm4, %v2891_v26, %v2892_v27  ;;  %v9101_v26 = vld [vmem:[%s14035_s5 + $0x1ac] sm:$0xf0] }
 0x224   :  { %3229 = vmatmul.bf16.vlgmr.msra.gmra.mxu2 %v3031_v41  ;;  %v2627_v23 = vadd.f32 %v2626_v32, %v1117_v24  ;;  %v11846_v34 = vsel %vm2825_vm2, %v2900_v29, %v2904_v30  ;;  %v9075_v24 = vld [vmem:[%s14035_s5 + $0xe4] sm:$0xf]  ;;  %v7591_v32 = vld [vmem:[%s14035_s5 + $0x1a0] sm:$0xf]  ;;  %v7593_v29 = vld [vmem:[%s14035_s5 + $0x1b0] sm:$0xf0] }
 0x225   :  { %3200 = vmatpush.bf16.msra.mxu0 %v7272_v6  ;;  %v2641_v28 = vpop.f32.mrf.mxu3  ;;  %v7624_v6 = vor.u32 %v9109_v5, %v7623_v4  ;;  %v7500_v27 = vor.u32 %v9075_v24, %v7497_v11  ;;  %v9085_v24 = vld [vmem:[%s14035_s5 + $0x12c] sm:$0xf0] }
 0x226   :  { %v2640_v33 = vadd.f32 %v2639_v15, %v2627_v23  ;;  %v7592_v23 = vor.u32 %v9101_v26, %v7591_v32  ;;  %v9099_v28 = vld [vmem:[%s14035_s5 + $0x1a4] sm:$0xf]  ;;  %v7529_v32 = vld [vmem:[%s14035_s5 + $0x130] sm:$0xf0] }
 0x227   :  { %3215 = vmatpush.bf16.msra.mxu1 %v7320_v9  ;;  %v2665_v35 = vpop.f32.mrf.mxu1  ;;  %3682 = vmatpush.bf16.msrb.mxu2 %v7500_v27 }
 0x229   :  { %3201 = vmatpush.bf16.msra.mxu0 %v7264_v14  ;;  %v9103_v14 = vld [vmem:[%s14035_s5 + $0x1c4] sm:$0xf] }
 0x22a   :  { %3216 = vmatmul.bf16.vlgmr.msra.gmra.mxu1 %v3032_v52  ;;  %v7612_v19 = vor.u32 %v9103_v14, %v7609_v17  ;;  %v7431_v14 = vld [vmem:[%s14035_s5 + $0x60] sm:$0xf] }
 0x22b   :  { %v2628_v36 = vpop.f32.mrf.mxu2  ;;  %3669 = vmatpush.bf16.msrb.mxu1 %v7624_v6  ;;  %v7449_v6 = vld [vmem:[%s14035_s5 + $0x90] sm:$0xf0] }
 0x22c   :  { %3696 = vmatpush.bf16.msrb.mxu3 %v7612_v19  ;;  %v9073_v36 = vld [vmem:[%s14035_s5 + $0xcc] sm:$0xf0] }
 0x22d   :  { %3202 = vmatpush.bf16.msra.mxu0 %v7256_v22  ;;  %v2652_v37 = vpop.f32.mrf.mxu0  ;;  %v9077_v22 = vld [vmem:[%s14035_s5 + $0xec] sm:$0xf0] }
 0x22e   :  { %v2653_v38 = vadd.f32 %v2652_v37, %v2640_v33  ;;  %v7496_v25 = vor.u32 %v9077_v22, %v7495_v21  ;;  %v7596_v33 = vor.u32 %v9099_v28, %v7593_v29  ;;  %v9071_v37 = vld [vmem:[%s14035_s5 + $0xc4] sm:$0xf]  ;;  %v7433_v21 = vld [vmem:[%s14035_s5 + $0x70] sm:$0xf0]  ;;  %v7527_v22 = vld [vmem:[%s14035_s5 + $0x120] sm:$0xf] }
 0x22f   :  { %v2667_v39 = vpop.f32.mrf.mxu1  ;;  %3670 = vmatpush.bf16.msrb.mxu1 %v7608_v16  ;;  %v9059_v16 = vld [vmem:[%s14035_s5 + $0x64] sm:$0xf]  ;;  %v7528_v11 = vor.u32 %v9085_v24, %v7527_v22  ;;  %v9057_v28 = vld [vmem:[%s14035_s5 + $0x4c] sm:$0xf0]  ;;  %v7599_v22 = vld [vmem:[%s14035_s5 + $0x1a8] sm:$0xf] }
 0x230   :  { %3203 = vmatmul.bf16.vlgmr.msra.gmra.mxu0 %v3031_v41  ;;  %v2666_v43 = vadd.f32 %v2665_v35, %v2653_v38  ;;  %v7479_v35 = vld [vmem:[%s14035_s5 + $0xc0] sm:$0xf]  ;;  %3697 = vmatpush.bf16.msrb.mxu3 %v7596_v33  ;;  %v7481_v39 = vld [vmem:[%s14035_s5 + $0xd0] sm:$0xf0]  ;;  %v9055_v29 = vld [vmem:[%s14035_s5 + $0x44] sm:$0xf] }
 0x231   :  { %3656 = vmatpush.bf16.msrb.mxu0 %v7496_v25  ;;  %v7480_v38 = vor.u32 %v9073_v36, %v7479_v35  ;;  %v7436_v25 = vor.u32 %v9059_v16, %v7433_v21  ;;  %v7417_v35 = vld [vmem:[%s14035_s5 + $0x50] sm:$0xf0]  ;;  %v7511_v36 = vld [vmem:[%s14035_s5 + $0x100] sm:$0xf]  ;;  %v9078_v16 = vld [vmem:[%s14035_s5 + $0xf4] sm:$0xf0] }
 0x232   :  { %v2854_v49 = vsel %vm2825_vm2, %v2666_v43, -inf  ;;  %v7575_v43 = vld [vmem:[%s14035_s5 + $0x180] sm:$0xf]  ;;  %v7505_v21 = vld [vmem:[%s14035_s5 + $0xf8] sm:$0xf0] }
 0x233   :  { %v2855_v51 = vrot.slane %v2854_v49, 4  ;;  %3671 = vmatpush.bf16.msrb.mxu1 %v7592_v23  ;;  %v7415_v23 = vld [vmem:[%s14035_s5 + $0x40] sm:$0xf]  ;;  %v9102_v24 = vld [vmem:[%s14035_s5 + $0x1b4] sm:$0xf0] }
 0x234   :  { %v7416_v33 = vor.u32 %v9057_v28, %v7415_v23  ;;  %v9074_v28 = vld [vmem:[%s14035_s5 + $0xd4] sm:$0xf0] }
 0x235   :  { %v2654_v40 = vpop.f32.mrf.mxu0  ;;  %v2856_v53 = vmax.f32 %v2854_v49, %v2855_v51  ;;  %3657 = vmatpush.bf16.msrb.mxu0 %v7480_v38  ;;  %v7463_v51 = vld [vmem:[%s14035_s5 + $0xa0] sm:$0xf] }
 0x236   :  { %v9097_v40 = vld [vmem:[%s14035_s5 + $0x18c] sm:$0xf0] }
 0x237   :  { %v2857_v58 = vrot.slane %v2856_v53, 2 }
 0x239   :  { %v2858_v61 = vmax.f32 %v2856_v53, %v2857_v58  ;;  %v9067_v53 = vld [vmem:[%s14035_s5 + $0xa4] sm:$0xf]  ;;  %v9093_v58 = vld [vmem:[%s14035_s5 + $0x16c] sm:$0xf0] }
 0x23b   :  { %v2859_v42 = vrot.slane %v2858_v61, 1 }
 0x23d   :  { %v2691_v44 = vpop.f32.mrf.mxu3  ;;  %v2860_v0 = vmax.f32 %v2858_v61, %v2859_v42  ;;  %v9091_v61 = vld [vmem:[%s14035_s5 + $0x164] sm:$0xf]  ;;  %v7447_v42 = vld [vmem:[%s14035_s5 + $0x80] sm:$0xf] }
 0x243   :  { %v2678_v46 = vpop.f32.mrf.mxu2 }
 0x244   :  { %v2679_v47 = vadd.f32 %v2678_v46, %v1118_v45  ;;  %v7484_v45 = vor.u32 %v9071_v37, %v7481_v39  ;;  %v7576_v46 = vor.u32 %v9097_v40, %v7575_v43  ;;  %v9081_v37 = vld [vmem:[%s14035_s5 + $0x10c] sm:$0xf0]  ;;  %v7420_v39 = vor.u32 %v9055_v29, %v7417_v35  ;;  %v9079_v40 = vld [vmem:[%s14035_s5 + $0x104] sm:$0xf]  ;;  %v9072_v29 = vld [vmem:[%s14035_s5 + $0xcc] sm:$0xf] }
 0x245   :  { %v2693_v3 = vpop.f32.mrf.mxu3  ;;  %v7512_v43 = vor.u32 %v9081_v37, %v7511_v36 }
 0x246   :  { %v2692_v48 = vadd.f32 %v2691_v44, %v2679_v47  ;;  %v9095_v47 = vld [vmem:[%s14035_s5 + $0x184] sm:$0xf]  ;;  %v7577_v3 = vld [vmem:[%s14035_s5 + $0x190] sm:$0xf0]  ;;  %3683 = vmatpush.bf16.msrb.mxu2 %v7484_v45  ;;  %3672 = vmatpush.bf16.msrb.mxu1 %v7576_v46  ;;  %v7631_v45 = vld [vmem:[%s14035_s5 + $0x1e8] sm:$0xf] }
 0x247   :  { %v2717_v50 = vpop.f32.mrf.mxu1 }
 0x24b   :  { %v2680_v52 = vpop.f32.mrf.mxu2 }
 0x24c   :  { %v9069_v52 = vld [vmem:[%s14035_s5 + $0xac] sm:$0xf0] }
 0x24d   :  { %v2704_v54 = vpop.f32.mrf.mxu0 }
 0x24e   :  { %v2705_v55 = vadd.f32 %v2704_v54, %v2692_v48  ;;  %v11934_v48 = vld [vmem:[%s14039_s8] sm:$0xff] }
 0x24f   :  { %v2719_v56 = vpop.f32.mrf.mxu1  ;;  %v1119_v49 = vperm.slane %v11934_v48, 6 }
 0x250   :  { %v2718_v57 = vadd.f32 %v2717_v50, %v2705_v55  ;;  %v7580_v50 = vor.u32 %v9095_v47, %v7577_v3  ;;  %v7464_v55 = vor.u32 %v9069_v52, %v7463_v51  ;;  %v7465_v56 = vld [vmem:[%s14035_s5 + $0xb0] sm:$0xf0]  ;;  %v9110_v3 = vld [vmem:[%s14035_s5 + $0x1f4] sm:$0xf0]  ;;  %v7633_v51 = vld [vmem:[%s14035_s5 + $0x1f8] sm:$0xf0] }
 0x251   :  { %v9053_v52 = vld [vmem:[%s14035_s5 + $0x2c] sm:$0xf0] }
 0x252   :  { %v2861_v59 = vsel %vm2825_vm2, %v2718_v57, -inf  ;;  %3698 = vmatpush.bf16.msrb.mxu3 %v7580_v50  ;;  %v7559_v57 = vld [vmem:[%s14035_s5 + $0x160] sm:$0xf]  ;;  %3658 = vmatpush.bf16.msrb.mxu0 %v7464_v55  ;;  %v7632_v50 = vor.u32 %v9110_v3, %v7631_v45  ;;  %v7585_v3 = vld [vmem:[%s14035_s5 + $0x198] sm:$0xf0] }
 0x253   :  { %v2862_v60 = vrot.slane %v2861_v59, 4 }
 0x255   :  { %v2863_v31 = vmax.f32 %v2861_v59, %v2862_v60  ;;  %v2706_v62 = vpop.f32.mrf.mxu0  ;;  %v7468_v59 = vor.u32 %v9067_v53, %v7465_v56  ;;  %v7560_v60 = vor.u32 %v9093_v58, %v7559_v57  ;;  %v9051_v56 = vld [vmem:[%s14035_s5 + $0x24] sm:$0xf]  ;;  %v7401_v57 = vld [vmem:[%s14035_s5 + $0x30] sm:$0xf0]  ;;  %v7473_v53 = vld [vmem:[%s14035_s5 + $0xb8] sm:$0xf0] }
 0x257   :  { %v2864_v63 = vrot.slane %v2863_v31, 2  ;;  %3684 = vmatpush.bf16.msrb.mxu2 %v7468_v59  ;;  %3673 = vmatpush.bf16.msrb.mxu1 %v7560_v60  ;;  %v7404_v59 = vor.u32 %v9051_v56, %v7401_v57  ;;  %v7615_v60 = vld [vmem:[%s14035_s5 + $0x1c8] sm:$0xf]  ;;  %v9094_v56 = vld [vmem:[%s14035_s5 + $0x174] sm:$0xf0] }
 0x258   :  { %v9092_v57 = vld [vmem:[%s14035_s5 + $0x16c] sm:$0xf] }
 0x259   :  { %v2865_v41 = vmax.f32 %v2863_v31, %v2864_v63  ;;  %v7561_v31 = vld [vmem:[%s14035_s5 + $0x170] sm:$0xf0] }
 0x25a   :  { %v7564_v63 = vor.u32 %v9091_v61, %v7561_v31  ;;  %v9106_v61 = vld [vmem:[%s14035_s5 + $0x1d4] sm:$0xf0] }
 0x25b   :  { %v2866_v2 = vrot.slane %v2865_v41, 1 }
 0x25c   :  { %3699 = vmatpush.bf16.msrb.mxu3 %v7564_v63  ;;  %v7616_v63 = vor.u32 %v9106_v61, %v7615_v60 }
 0x25d   :  { %v11851_v1 = vpop.f32.mrf.mxu3  ;;  %v2867_v8 = vmax.f32 %v2865_v41, %v2866_v2  ;;  %v9065_v41 = vld [vmem:[%s14035_s5 + $0x8c] sm:$0xf0]  ;;  %v9063_v2 = vld [vmem:[%s14035_s5 + $0x84] sm:$0xf] }
 0x25e   :  { %v7448_v5 = vor.u32 %v9065_v41, %v7447_v42  ;;  %v9104_v42 = vld [vmem:[%s14035_s5 + $0x1cc] sm:$0xf]  ;;  %v7617_v41 = vld [vmem:[%s14035_s5 + $0x1d8] sm:$0xf0] }
 0x25f   :  { %v11865_v9 = vpack.c.bf16 %v2867_v8, %v2860_v0  ;;  %v7452_v0 = vor.u32 %v9063_v2, %v7449_v6  ;;  %v7544_v8 = vor.u32 %v9089_v7, %v7543_v18  ;;  %v1120_v2 = vperm.slane %v11934_v48, 7  ;;  %v9049_v7 = vld [vmem:[%s14035_s5 + $0xc] sm:$0xf0]  ;;  %v9047_v48 = vld [vmem:[%s14035_s5 + $0x4] sm:$0xf] }
 0x260   :  { %3659 = vmatpush.bf16.msrb.mxu0 %v7448_v5  ;;  %3700 = vmatpush.bf16.msrb.mxu3 %v7548_v13  ;;  %v7383_v5 = vld [vmem:[%s14035_s5] sm:$0xf] }
 0x261   :  { %3685 = vmatpush.bf16.msrb.mxu2 %v7452_v0  ;;  %3674 = vmatpush.bf16.msrb.mxu1 %v7544_v8  ;;  %v7384_v0 = vor.u32 %v9049_v7, %v7383_v5  ;;  %v7385_v8 = vld [vmem:[%s14035_s5 + $0x10] sm:$0xf0]  ;;  %v9090_v7 = vld [vmem:[%s14035_s5 + $0x154] sm:$0xf0] }
 0x263   :  { %v11876_v15 = vpop.f32.mrf.mxu2 }
 0x264   :  { %v2731_v4 = vadd.f32 %v11876_v15, %v1119_v49  ;;  %v9061_v15 = vld [vmem:[%s14035_s5 + $0x6c] sm:$0xf0]  ;;  %v9108_v49 = vld [vmem:[%s14035_s5 + $0x1ec] sm:$0xf] }
 0x265   :  { %v2745_v20 = vpop.f32.mrf.mxu3  ;;  %3686 = vmatpush.bf16.msrb.mxu2 %v7436_v25  ;;  %3675 = vmatpush.bf16.msrb.mxu1 %v7528_v11 }
 0x266   :  { %v2744_v17 = vadd.f32 %v11851_v1, %v2731_v4  ;;  %v7432_v20 = vor.u32 %v9061_v15, %v7431_v14  ;;  %v9083_v1 = vld [vmem:[%s14035_s5 + $0x124] sm:$0xf]  ;;  %v7620_v4 = vor.u32 %v9104_v42, %v7617_v41  ;;  %v7388_v15 = vor.u32 %v9047_v48, %v7385_v8  ;;  %v9064_v41 = vld [vmem:[%s14035_s5 + $0x8c] sm:$0xf] }
 0x267   :  { %v11905_v30 = vpop.f32.mrf.mxu1  ;;  %v7532_v27 = vor.u32 %v9083_v1, %v7529_v32  ;;  %v7600_v1 = vor.u32 %v9102_v24, %v7599_v22  ;;  %v9100_v32 = vld [vmem:[%s14035_s5 + $0x1ac] sm:$0xf] }
 0x268   :  { %3660 = vmatpush.bf16.msrb.mxu0 %v7432_v20  ;;  %v7504_v20 = vor.u32 %v9078_v16, %v7503_v10  ;;  %v7439_v16 = vld [vmem:[%s14035_s5 + $0x68] sm:$0xf]  ;;  %v9048_v48 = vld [vmem:[%s14035_s5 + $0xc] sm:$0xf] }
 0x269   :  { %3701 = vmatpush.bf16.msrb.mxu3 %v7532_v27  ;;  %3687 = vmatpush.bf16.msrb.mxu2 %v7420_v39  ;;  %v7487_v27 = vld [vmem:[%s14035_s5 + $0xc8] sm:$0xf] }
 0x26a   :  { %3676 = vmatpush.bf16.msrb.mxu1 %v7512_v43  ;;  %v7488_v36 = vor.u32 %v9074_v28, %v7487_v27  ;;  %v7583_v39 = vld [vmem:[%s14035_s5 + $0x188] sm:$0xf]  ;;  %v9098_v43 = vld [vmem:[%s14035_s5 + $0x194] sm:$0xf0]  ;;  %v9084_v27 = vld [vmem:[%s14035_s5 + $0x12c] sm:$0xf] }
 0x26b   :  { %v2732_v44 = vpop.f32.mrf.mxu2 }
 0x26c   :  { %v7513_v44 = vld [vmem:[%s14035_s5 + $0x110] sm:$0xf0]  ;;  %3661 = vmatpush.bf16.msrb.mxu0 %v7416_v33  ;;  %v7489_v33 = vld [vmem:[%s14035_s5 + $0xd8] sm:$0xf0] }
 0x26d   :  { %v2756_v54 = vpop.f32.mrf.mxu0  ;;  %v7516_v47 = vor.u32 %v9079_v40, %v7513_v44  ;;  %3688 = vmatpush.bf16.msrb.mxu2 %v7404_v59  ;;  %v7492_v37 = vor.u32 %v9072_v29, %v7489_v33  ;;  %v9096_v40 = vld [vmem:[%s14035_s5 + $0x18c] sm:$0xf] }
 0x26e   :  { %v2757_v26 = vadd.f32 %v2756_v54, %v2744_v17  ;;  %v7636_v54 = vor.u32 %v9108_v49, %v7633_v51  ;;  %3721 = vmatpush.bf16.msra.mxu1 %v7632_v50  ;;  %v9076_v17 = vld [vmem:[%s14035_s5 + $0xec] sm:$0xf]  ;;  %v7471_v49 = vld [vmem:[%s14035_s5 + $0xa8] sm:$0xf]  ;;  %v7588_v51 = vor.u32 %v9096_v40, %v7585_v3 }
 0x26f   :  { %v2771_v62 = vpop.f32.mrf.mxu1  ;;  %3702 = vmatpush.bf16.msrb.mxu3 %v7516_v47  ;;  %v7508_v11 = vor.u32 %v9076_v17, %v7505_v21  ;;  %v7584_v47 = vor.u32 %v9098_v43, %v7583_v39  ;;  %v9062_v17 = vld [vmem:[%s14035_s5 + $0x74] sm:$0xf0]  ;;  %v9056_v39 = vld [vmem:[%s14035_s5 + $0x4c] sm:$0xf] }
 0x270   :  { %v2770_v46 = vadd.f32 %v11905_v30, %v2757_v26  ;;  %v7399_v30 = vld [vmem:[%s14035_s5 + $0x20] sm:$0xf]  ;;  %v7601_v26 = vld [vmem:[%s14035_s5 + $0x1b8] sm:$0xf0]  ;;  %v7440_v29 = vor.u32 %v9062_v17, %v7439_v16  ;;  %v9080_v3 = vld [vmem:[%s14035_s5 + $0x10c] sm:$0xf] }
 0x271   :  { %v7400_v55 = vor.u32 %v9053_v52, %v7399_v30  ;;  %3689 = vmatpush.bf16.msrb.mxu2 %v7388_v15  ;;  %v7604_v23 = vor.u32 %v9100_v32, %v7601_v26  ;;  %v9070_v30 = vld [vmem:[%s14035_s5 + $0xb4] sm:$0xf0]  ;;  %v9068_v52 = vld [vmem:[%s14035_s5 + $0xac] sm:$0xf]  ;;  %v8119_v32 = vld [vmem:[%s14037_s7 + $0x3c0] sm:$0xf] }
 0x272   :  { %v2868_v31 = vsel %vm2825_vm2, %v2770_v46, -inf  ;;  %3722 = vmatpush.bf16.msra.mxu1 %v7616_v63  ;;  %v7476_v60 = vor.u32 %v9068_v52, %v7473_v53  ;;  %v9066_v63 = vld [vmem:[%s14035_s5 + $0x94] sm:$0xf0] }
 0x273   :  { %3747 = vmatpush.bf16.msra.mxu3 %v7636_v54  ;;  %3662 = vmatpush.bf16.msrb.mxu0 %v7400_v55  ;;  %v2869_v6 = vrot.slane %v2868_v31, 4  ;;  %v7472_v54 = vor.u32 %v9070_v30, %v7471_v49  ;;  %v7567_v55 = vld [vmem:[%s14035_s5 + $0x168] sm:$0xf]  ;;  %v7521_v49 = vld [vmem:[%s14035_s5 + $0x118] sm:$0xf0] }
 0x274   :  { %v7568_v61 = vor.u32 %v9094_v56, %v7567_v55  ;;  %v9054_v55 = vld [vmem:[%s14035_s5 + $0x34] sm:$0xf0]  ;;  %v8599_v30 = vld [vmem:[%s14037_s7 + $0x780] sm:$0xf] }
 0x275   :  { %v2758_v19 = vpop.f32.mrf.mxu0  ;;  %3734 = vmatpush.bf16.msra.mxu2 %v7508_v11  ;;  %v7535_v11 = vld [vmem:[%s14035_s5 + $0x128] sm:$0xf] }
 0x276   :  { %v2870_v19 = vmax.f32 %v2868_v31, %v2869_v6  ;;  %3723 = vmatpush.bf16.msra.mxu1 %v7600_v1  ;;  %v7569_v31 = vld [vmem:[%s14035_s5 + $0x178] sm:$0xf0]  ;;  %v9086_v1 = vld [vmem:[%s14035_s5 + $0x134] sm:$0xf0] }
 0x277   :  { %3748 = vmatpush.bf16.msra.mxu3 %v7620_v4  ;;  %3663 = vmatpush.bf16.msrb.mxu0 %v7384_v0  ;;  %v7572_v42 = vor.u32 %v9092_v57, %v7569_v31  ;;  %v7551_v4 = vld [vmem:[%s14035_s5 + $0x148] sm:$0xf]  ;;  %v9088_v0 = vld [vmem:[%s14035_s5 + $0x14c] sm:$0xf]  ;;  %v2893_v31 = vrot.slane %v11865_v9, 4 }
 0x278   :  { %v2871_v44 = vrot.slane %v2870_v19, 2  ;;  %v7552_v15 = vor.u32 %v9090_v7, %v7551_v4 }
 0x279   :  { %3735 = vmatpush.bf16.msra.mxu2 %v7492_v37  ;;  %v9058_v37 = vld [vmem:[%s14035_s5 + $0x54] sm:$0xf0] }
 0x27a   :  { %3724 = vmatpush.bf16.msra.mxu1 %v7584_v47  ;;  %v12214_v5 = vmax.f32 %v2870_v19, %v2871_v44  ;;  %v9060_v19 = vld [vmem:[%s14035_s5 + $0x6c] sm:$0xf]  ;;  %v7519_v44 = vld [vmem:[%s14035_s5 + $0x108] sm:$0xf] }
 0x27b   :  { %3708 = vmatpush.bf16.msra.mxu0 %v7504_v20  ;;  %3749 = vmatpush.bf16.msra.mxu3 %v7604_v23  ;;  %v7537_v23 = vld [vmem:[%s14035_s5 + $0x138] sm:$0xf0] }
 0x27c   :  { %v2873_v26 = vrot.slane %v12214_v5, 1  ;;  %v7540_v40 = vor.u32 %v9084_v27, %v7537_v23 }
 0x27d   :  { %v12029_v38 = vpop.f32.mrf.mxu3  ;;  %3736 = vmatpush.bf16.msra.mxu2 %v7476_v60  ;;  %v9052_v60 = vld [vmem:[%s14035_s5 + $0x2c] sm:$0xf] }
 0x27e   :  { %3725 = vmatpush.bf16.msra.mxu1 %v7568_v61  ;;  %v2874_v56 = vmax.f32 %v12214_v5, %v2873_v26  ;;  %v7409_v61 = vld [vmem:[%s14035_s5 + $0x38] sm:$0xf0]  ;;  %v7391_v5 = vld [vmem:[%s14035_s5 + $0x8] sm:$0xf] }
 0x27f   :  { %3709 = vmatpush.bf16.msra.mxu0 %v7488_v36  ;;  %3750 = vmatpush.bf16.msra.mxu3 %v7588_v51  ;;  %v7423_v36 = vld [vmem:[%s14035_s5 + $0x48] sm:$0xf]  ;;  %v7412_v4 = vor.u32 %v9052_v60, %v7409_v61  ;;  %v8023_v61 = vld [vmem:[%s14037_s7 + $0x300] sm:$0xf] }
 0x280   :  { %v7424_v51 = vor.u32 %v9058_v37, %v7423_v36  ;;  %v9227_v36 = vld [vmem:[%s14037_s7 + $0x39c] sm:$0xf0] }
 0x282   :  { %3726 = vmatpush.bf16.msra.mxu1 %v7552_v15  ;;  %v2949_v15 = vld [vmem:[%s14040_s9] sm:$0xff] }
 0x283   :  { %v2782_v62 = vpop.f32.mrf.mxu2  ;;  %3710 = vmatpush.bf16.msra.mxu0 %v7472_v54  ;;  %3751 = vmatpush.bf16.msra.mxu3 %v7572_v42  ;;  %v7407_v54 = vld [vmem:[%s14035_s5 + $0x28] sm:$0xf] }
 0x284   :  { %v2783_v13 = vadd.f32 %v2782_v62, %v1120_v2  ;;  %v7455_v62 = vld [vmem:[%s14035_s5 + $0x88] sm:$0xf]  ;;  %v7457_v2 = vld [vmem:[%s14035_s5 + $0x98] sm:$0xf0] }
 0x285   :  { %v2797_v18 = vpop.f32.mrf.mxu3  ;;  %v7456_v10 = vor.u32 %v9066_v63, %v7455_v62  ;;  %v2894_v62 = vrot.slane %v11865_v9, 7 }
 0x286   :  { %v2796_v35 = vadd.f32 %v12029_v38, %v2783_v13  ;;  %v7553_v13 = vld [vmem:[%s14035_s5 + $0x158] sm:$0xf0] }
 0x287   :  { %v2821_v14 = vpop.f32.mrf.mxu1  ;;  %v7556_v24 = vor.u32 %v9088_v0, %v7553_v13  ;;  %3711 = vmatpush.bf16.msra.mxu0 %v7456_v10  ;;  %v7425_v38 = vld [vmem:[%s14035_s5 + $0x58] sm:$0xf0]  ;;  %v2909_v10 = vsel %vm2906_vm6, %v2893_v31, %v2894_v62  ;;  %v9211_v31 = vld [vmem:[%s14037_s7 + $0x31c] sm:$0xf0] }
 0x288   :  { %v7428_v52 = vor.u32 %v9056_v39, %v7425_v38  ;;  %v9363_v38 = vld [vmem:[%s14037_s7 + $0x7dc] sm:$0xf0] }
 0x289   :  { %3752 = vmatpush.bf16.msra.mxu3 %v7556_v24  ;;  %v8343_v62 = vld [vmem:[%s14037_s7 + $0x580] sm:$0xf] }
 0x28b   :  { %v2784_v25 = vpop.f32.mrf.mxu2  ;;  %3712 = vmatpush.bf16.msra.mxu0 %v7440_v29 }
 0x28c   :  { %v7441_v25 = vld [vmem:[%s14035_s5 + $0x78] sm:$0xf0] }
 0x28d   :  { %v2808_v45 = vpop.f32.mrf.mxu0  ;;  %v12166_v46 = vpop.f32.mrf.mxu3  ;;  %v7444_v33 = vor.u32 %v9060_v19, %v7441_v25  ;;  %3753 = vmatpush.bf16.msra.mxu3 %v7540_v40  ;;  %v8631_v40 = vld [vmem:[%s14037_s7 + $0x7c0] sm:$0xf] }
 0x28e   :  { %v2809_v50 = vadd.f32 %v2808_v45, %v2796_v35  ;;  %v7536_v35 = vor.u32 %v9086_v1, %v7535_v11  ;;  %v9082_v45 = vld [vmem:[%s14035_s5 + $0x114] sm:$0xf0] }
 0x28f   :  { %v2823_v59 = vpop.f32.mrf.mxu1  ;;  %v7520_v53 = vor.u32 %v9082_v45, %v7519_v44  ;;  %3713 = vmatpush.bf16.msra.mxu0 %v7424_v51  ;;  %v9171_v45 = vld [vmem:[%s14037_s7 + $0x1dc] sm:$0xf0] }
 0x290   :  { %v2822_v58 = vadd.f32 %v2821_v14, %v2809_v50  ;;  %v7460_v14 = vor.u32 %v9064_v41, %v7457_v2  ;;  %3727 = vmatpush.bf16.msra.mxu1 %v7536_v35  ;;  %v7524_v59 = vor.u32 %v9080_v3, %v7521_v49  ;;  %v3247_v41 = vld [vmem:[%s14036_s4] sm:$0x3]  ;;  %v7408_v2 = vor.u32 %v9054_v55, %v7407_v54 }
 0x291   :  { %v3250_v17 = vperm.slane %v3247_v41, 1  ;;  %v8087_v35 = vld [vmem:[%s14037_s7 + $0x380] sm:$0xf]  ;;  %v8632_v49 = vor.u32 %v9363_v38, %v8631_v40 }
 0x292   :  { %v2875_v6 = vsel %vm2825_vm2, %v2822_v58, -inf  ;;  %3737 = vmatpush.bf16.msra.mxu2 %v7460_v14  ;;  %3754 = vmatpush.bf16.msra.mxu3 %v7524_v59  ;;  %v9219_v3 = vld [vmem:[%s14037_s7 + $0x35c] sm:$0xf0] }
 0x293   :  { %v12217_v18 = vpop.f32.mrf.mxu2  ;;  %v2876_v8 = vrot.slane %v2875_v6, 4  ;;  %3714 = vmatpush.bf16.msra.mxu0 %v7408_v2  ;;  %v9299_v51 = vld [vmem:[%s14037_s7 + $0x5dc] sm:$0xf0] }
 0x294   :  { %3728 = vmatpush.bf16.msra.mxu1 %v7520_v53  ;;  %v9355_v53 = vld [vmem:[%s14037_s7 + $0x79c] sm:$0xf0] }
 0x295   :  { %v2877_v20 = vmax.f32 %v2875_v6, %v2876_v8  ;;  %v2810_v21 = vpop.f32.mrf.mxu0  ;;  %v3027_v22 = vpop.f32.mrf.mxu3  ;;  %v9050_v6 = vld [vmem:[%s14035_s5 + $0x14] sm:$0xf0]  ;;  %v7393_v8 = vld [vmem:[%s14035_s5 + $0x18] sm:$0xf0]  ;;  %v8567_v2 = vld [vmem:[%s14037_s7 + $0x740] sm:$0xf] }
 0x296   :  { %3738 = vmatpush.bf16.msra.mxu2 %v7444_v33  ;;  %v7392_v19 = vor.u32 %v9050_v6, %v7391_v5  ;;  %v7396_v21 = vor.u32 %v9048_v48, %v7393_v8  ;;  %v3249_v33 = vperm.slane %v3247_v41, 0  ;;  %v9291_v41 = vld [vmem:[%s14037_s7 + $0x59c] sm:$0xf0] }
 0x297   :  { %v2878_v28 = vrot.slane %v2877_v20, 2  ;;  %v7799_v6 = vld [vmem:[%s14037_s7 + $0x140] sm:$0xf]  ;;  %v8344_v48 = vor.u32 %v9291_v41, %v8343_v62 }
 0x298   :  { %3715 = vmatpush.bf16.msra.mxu0 %v7392_v19  ;;  %v7991_v8 = vld [vmem:[%s14037_s7 + $0x2c0] sm:$0xf] }
 0x299   :  { %v2879_v43 = vmax.f32 %v2877_v20, %v2878_v28  ;;  %v9131_v40 = vld [vmem:[%s14037_s7 + $0x9c] sm:$0xf0] }
 0x29a   :  { %3739 = vmatpush.bf16.msra.mxu2 %v7428_v52  ;;  %v9115_v62 = vld [vmem:[%s14037_s7 + $0x1c] sm:$0xf0] }
 0x29b   :  { %v3014_v47 = vpop.f32.mrf.mxu2  ;;  %v2880_v50 = vrot.slane %v2879_v43, 1 }
 0x29c   :  { %v8055_v47 = vld [vmem:[%s14037_s7 + $0x340] sm:$0xf] }
 0x29d   :  { %v2881_v57 = vmax.f32 %v2879_v43, %v2880_v50  ;;  %v7863_v43 = vld [vmem:[%s14037_s7 + $0x1c0] sm:$0xf] }
 0x29e   :  { %3740 = vmatpush.bf16.msra.mxu2 %v7412_v4  ;;  %v8375_v50 = vld [vmem:[%s14037_s7 + $0x5c0] sm:$0xf]  ;;  %v7864_v55 = vor.u32 %v9171_v45, %v7863_v43 }
 0x29f   :  { %v2885_v63 = vpack.c.bf16 %v2881_v57, %v2874_v56  ;;  %v7831_v56 = vld [vmem:[%s14037_s7 + $0x180] sm:$0xf]  ;;  %v8376_v60 = vor.u32 %v9299_v51, %v8375_v50 }
 0x2a0   :  { %v9163_v57 = vld [vmem:[%s14037_s7 + $0x19c] sm:$0xf0] }
 0x2a1   :  { %v3243_v58 = vpop.f32.mrf.mxu3  ;;  %v2895_v7 = vrot.slane %v2885_v63, 2  ;;  %v2896_v0 = vrot.slane %v2885_v63, 5  ;;  %v8600_v63 = vor.u32 %v9355_v53, %v8599_v30  ;;  %v9347_v4 = vld [vmem:[%s14037_s7 + $0x75c] sm:$0xf0]  ;;  %v7832_v5 = vor.u32 %v9163_v57, %v7831_v56  ;;  %v9223_v57 = vld [vmem:[%s14037_s7 + $0x384] sm:$0xf] }
 0x2a2   :  { %3741 = vmatpush.bf16.msra.mxu2 %v7396_v21  ;;  %v9147_v21 = vld [vmem:[%s14037_s7 + $0x11c] sm:$0xf0] }
 0x2a3   :  { %v2913_v14 = vsel %vm2910_vm12, %v2895_v7, %v2896_v0  ;;  %v9155_v7 = vld [vmem:[%s14037_s7 + $0x15c] sm:$0xf0]  ;;  %v8024_v0 = vor.u32 %v9211_v31, %v8023_v61 }
 0x2a4   :  { %v2915_v20 = vsel %vm2914_vm9, %v2909_v10, %v2913_v14  ;;  %v9203_v10 = vld [vmem:[%s14037_s7 + $0x2dc] sm:$0xf0]  ;;  %v8568_v14 = vor.u32 %v9347_v4, %v8567_v2  ;;  %v7800_v19 = vor.u32 %v9155_v7, %v7799_v6  ;;  %v9167_v2 = vld [vmem:[%s14037_s7 + $0x1c4] sm:$0xf] }
 0x2a5   :  { %v2916_v22 = vsel %vm77_vm0, %v11846_v34, %v2915_v20  ;;  %v9235_v34 = vld [vmem:[%s14037_s7 + $0x3dc] sm:$0xf0]  ;;  %v7865_v4 = vld [vmem:[%s14037_s7 + $0x1e0] sm:$0xf0] }
 0x2a6   :  { %v2950_v1 = vsel %vm2948_vm11, %v2916_v22, %v2949_v15  ;;  %v8120_v28 = vor.u32 %v9235_v34, %v8119_v32  ;;  %v9283_v15 = vld [vmem:[%s14037_s7 + $0x55c] sm:$0xf0]  ;;  %v7992_v22 = vor.u32 %v9203_v10, %v7991_v8  ;;  %v7868_v6 = vor.u32 %v9167_v2, %v7865_v4  ;;  %v9159_v7 = vld [vmem:[%s14037_s7 + $0x184] sm:$0xf] }
 0x2a7   :  { %v3230_v13 = vpop.f32.mrf.mxu2  ;;  %v3217_v24 = vpop.f32.mrf.mxu1  ;;  %2951 = vst [vmem:[%s14040_s9] sm:$0xff] %v2950_v1  ;;  %v7767_v20 = vld [vmem:[%s14037_s7 + $0x100] sm:$0xf]  ;;  %v9151_v8 = vld [vmem:[%s14037_s7 + $0x144] sm:$0xf] }
 0x2a8   :  { %v3231_v16 = vadd.f32 %v3230_v13, %v12166_v46  ;;  %v8311_v13 = vld [vmem:[%s14037_s7 + $0x540] sm:$0xf]  ;;  %v7801_v10 = vld [vmem:[%s14037_s7 + $0x160] sm:$0xf0] }
 0x2a9   :  { %v3245_v11 = vpop.f32.mrf.mxu3  ;;  %v8279_v1 = vld [vmem:[%s14037_s7 + $0x500] sm:$0xf]  ;;  %v7641_v2 = vld [vmem:[%s14037_s7 + $0x20] sm:$0xf0] }
 0x2aa   :  { %v3244_v25 = vadd.f32 %v3243_v58, %v3231_v16  ;;  %v8056_v58 = vor.u32 %v9219_v3, %v8055_v47  ;;  %v8535_v16 = vld [vmem:[%s14037_s7 + $0x700] sm:$0xf]  ;;  %v9231_v3 = vld [vmem:[%s14037_s7 + $0x3c4] sm:$0xf] }
 0x2ab   :  { %v9195_v11 = vld [vmem:[%s14037_s7 + $0x29c] sm:$0xf0] }
 0x2ac   :  { %v3254_v46 = vadd.f32 %v3250_v17, %v3244_v25  ;;  %v9339_v17 = vld [vmem:[%s14037_s7 + $0x71c] sm:$0xf0] }
 0x2ad   :  { %v3204_v27 = vpop.f32.mrf.mxu0  ;;  %v7959_v25 = vld [vmem:[%s14037_s7 + $0x280] sm:$0xf] }
 0x2ae   :  { %v3259_v26 = vmax.f32 %v3254_v46, 0.0  ;;  %v3205_v29 = vadd.f32 %v3204_v27, %v12217_v18  ;;  %v8088_v18 = vor.u32 %v9227_v36, %v8087_v35  ;;  %v8536_v46 = vor.u32 %v9339_v17, %v8535_v16  ;;  %v9275_v32 = vld [vmem:[%s14037_s7 + $0x51c] sm:$0xf0] }
 0x2af   :  { %v3232_v23 = vpop.f32.mrf.mxu2  ;;  %v3219_v39 = vpop.f32.mrf.mxu1  ;;  %v8503_v34 = vld [vmem:[%s14037_s7 + $0x6c0] sm:$0xf]  ;;  %v7768_v27 = vor.u32 %v9147_v21, %v7767_v20  ;;  %v9215_v21 = vld [vmem:[%s14037_s7 + $0x344] sm:$0xf] }
 0x2b0   :  { %v12384_v12 = vpack.c.bf16 %v3259_v26, %v3259_v26  ;;  %v3218_v37 = vadd.f32 %v3217_v24, %v3205_v29  ;;  %v8312_v24 = vor.u32 %v9283_v15, %v8311_v13  ;;  %v9331_v26 = vld [vmem:[%s14037_s7 + $0x6dc] sm:$0xf0]  ;;  %v7804_v13 = vor.u32 %v9151_v8, %v7801_v10  ;;  %v7769_v15 = vld [vmem:[%s14037_s7 + $0x120] sm:$0xf0] }
 0x2b1   :  { %v7735_v23 = vld [vmem:[%s14037_s7 + $0xc0] sm:$0xf]  ;;  %v8504_v36 = vor.u32 %v9331_v26, %v8503_v34  ;;  %v9295_v26 = vld [vmem:[%s14037_s7 + $0x5c4] sm:$0xf] }
 0x2b2   :  { %3677 = vmatmul.bf16.vlgmr.msrb.gmra.mxu1 %v12384_v12  ;;  %3703 = vmatmul.bf16.vlgmr.msrb.gmra.mxu3 %v12384_v12  ;;  %v3253_v44 = vadd.f32 %v3249_v33, %v3218_v37  ;;  %v9139_v29 = vld [vmem:[%s14037_s7 + $0xdc] sm:$0xf0]  ;;  %v8280_v33 = vor.u32 %v9275_v32, %v8279_v1  ;;  %v9135_v1 = vld [vmem:[%s14037_s7 + $0xc4] sm:$0xf] }
 0x2b3   :  { %5341 = vmatpush.bf16.msrb.mxu1 %v8120_v28  ;;  %5367 = vmatpush.bf16.msrb.mxu3 %v8632_v49  ;;  %v7960_v28 = vor.u32 %v9195_v11, %v7959_v25  ;;  %v7927_v35 = vld [vmem:[%s14037_s7 + $0x240] sm:$0xf]  ;;  %v7736_v43 = vor.u32 %v9139_v29, %v7735_v23  ;;  %v8121_v49 = vld [vmem:[%s14037_s7 + $0x3e0] sm:$0xf0] }
 0x2b4   :  { %v3258_v52 = vmax.f32 %v3253_v44, 0.0  ;;  %v8247_v37 = vld [vmem:[%s14037_s7 + $0x4c0] sm:$0xf]  ;;  %v9343_v10 = vld [vmem:[%s14037_s7 + $0x744] sm:$0xf] }
 0x2b5   :  { %v3206_v54 = vpop.f32.mrf.mxu0  ;;  %v9267_v39 = vld [vmem:[%s14037_s7 + $0x4dc] sm:$0xf0] }
 0x2b6   :  { %v12431_v59 = vpack.c.bf16 %v3258_v52, %v3258_v52  ;;  %v8248_v44 = vor.u32 %v9267_v39, %v8247_v37  ;;  %v7895_v45 = vld [vmem:[%s14037_s7 + $0x200] sm:$0xf]  ;;  %v9127_v37 = vld [vmem:[%s14037_s7 + $0x84] sm:$0xf] }
 0x2b7   :  { %5342 = vmatpush.bf16.msrb.mxu1 %v8088_v18  ;;  %5368 = vmatpush.bf16.msrb.mxu3 %v8600_v63  ;;  %v7703_v18 = vld [vmem:[%s14037_s7 + $0x80] sm:$0xf]  ;;  %v7705_v39 = vld [vmem:[%s14037_s7 + $0xa0] sm:$0xf0] }
 0x2b8   :  { %3664 = vmatmul.bf16.vlgmr.msrb.gmra.mxu0 %v12431_v59  ;;  %3690 = vmatmul.bf16.vlgmr.msrb.gmra.mxu2 %v12431_v59  ;;  %v9179_v47 = vld [vmem:[%s14037_s7 + $0x21c] sm:$0xf0]  ;;  %v7704_v30 = vor.u32 %v9131_v40, %v7703_v18  ;;  %v9287_v18 = vld [vmem:[%s14037_s7 + $0x584] sm:$0xf] }
 0x2b9   :  { %5328 = vmatpush.bf16.msrb.mxu0 %v7864_v55  ;;  %5354 = vmatpush.bf16.msrb.mxu2 %v8376_v60  ;;  %v8215_v50 = vld [vmem:[%s14037_s7 + $0x480] sm:$0xf]  ;;  %v7896_v52 = vor.u32 %v9179_v47, %v7895_v45  ;;  %v8124_v55 = vor.u32 %v9231_v3, %v8121_v49  ;;  %v8345_v40 = vld [vmem:[%s14037_s7 + $0x5a0] sm:$0xf0] }
 0x2ba   :  { %v9259_v51 = vld [vmem:[%s14037_s7 + $0x49c] sm:$0xf0]  ;;  %v9199_v47 = vld [vmem:[%s14037_s7 + $0x2c4] sm:$0xf] }
 0x2bb   :  { %5343 = vmatpush.bf16.msrb.mxu1 %v8056_v58  ;;  %5369 = vmatpush.bf16.msrb.mxu3 %v8568_v14  ;;  %v7671_v53 = vld [vmem:[%s14037_s7 + $0x40] sm:$0xf]  ;;  %v8216_v56 = vor.u32 %v9259_v51, %v8215_v50  ;;  %v8089_v58 = vld [vmem:[%s14037_s7 + $0x3a0] sm:$0xf0] }
 0x2bc   :  { %v9123_v54 = vld [vmem:[%s14037_s7 + $0x5c] sm:$0xf0]  ;;  %v8092_v63 = vor.u32 %v9223_v57, %v8089_v58  ;;  %v9143_v14 = vld [vmem:[%s14037_s7 + $0x104] sm:$0xf] }
 0x2bd   :  { %5329 = vmatpush.bf16.msrb.mxu0 %v7832_v5  ;;  %5355 = vmatpush.bf16.msrb.mxu2 %v8344_v48  ;;  %v9251_v60 = vld [vmem:[%s14037_s7 + $0x45c] sm:$0xf0]  ;;  %v7672_v61 = vor.u32 %v9123_v54, %v7671_v53  ;;  %v7772_v16 = vor.u32 %v9143_v14, %v7769_v15  ;;  %v7993_v49 = vld [vmem:[%s14037_s7 + $0x2e0] sm:$0xf0] }
 0x2be   :  { %v7639_v31 = vld [vmem:[%s14037_s7] sm:$0xf]  ;;  %v9359_v50 = vld [vmem:[%s14037_s7 + $0x7c4] sm:$0xf] }
 0x2bf   :  { %5344 = vmatpush.bf16.msrb.mxu1 %v8024_v0  ;;  %5370 = vmatpush.bf16.msrb.mxu3 %v8536_v46  ;;  %v7640_v5 = vor.u32 %v9115_v62, %v7639_v31  ;;  %v7833_v0 = vld [vmem:[%s14037_s7 + $0x1a0] sm:$0xf0]  ;;  %v8471_v17 = vld [vmem:[%s14037_s7 + $0x680] sm:$0xf] }
 0x2c0   :  { %v7836_v48 = vor.u32 %v9159_v7, %v7833_v0  ;;  %v9243_v11 = vld [vmem:[%s14037_s7 + $0x41c] sm:$0xf0]  ;;  %v7737_v46 = vld [vmem:[%s14037_s7 + $0xe0] sm:$0xf0] }
 0x2c1   :  { %5330 = vmatpush.bf16.msrb.mxu0 %v7800_v19  ;;  %5356 = vmatpush.bf16.msrb.mxu2 %v8312_v24  ;;  %v9323_v19 = vld [vmem:[%s14037_s7 + $0x69c] sm:$0xf0]  ;;  %v7740_v34 = vor.u32 %v9135_v1, %v7737_v46  ;;  %v8633_v51 = vld [vmem:[%s14037_s7 + $0x7e0] sm:$0xf0] }
 0x2c2   :  { %3729 = vmatmul.bf16.vlgmr.msra.gmra.mxu1 %v12384_v12  ;;  %3755 = vmatmul.bf16.vlgmr.msra.gmra.mxu3 %v12384_v12  ;;  %v9187_v12 = vld [vmem:[%s14037_s7 + $0x25c] sm:$0xf0]  ;;  %v8472_v20 = vor.u32 %v9323_v19, %v8471_v17  ;;  %v9119_v53 = vld [vmem:[%s14037_s7 + $0x44] sm:$0xf] }
 0x2c3   :  { %5345 = vmatpush.bf16.msrb.mxu1 %v7992_v22  ;;  %v7928_v38 = vor.u32 %v9187_v12, %v7927_v35  ;;  %5371 = vmatpush.bf16.msrb.mxu3 %v8504_v36  ;;  %v8057_v22 = vld [vmem:[%s14037_s7 + $0x360] sm:$0xf0]  ;;  %v8151_v24 = vld [vmem:[%s14037_s7 + $0x400] sm:$0xf] }
 0x2c4   :  { %v8060_v25 = vor.u32 %v9215_v21, %v8057_v22  ;;  %v8152_v32 = vor.u32 %v9243_v11, %v8151_v24  ;;  %v8439_v23 = vld [vmem:[%s14037_s7 + $0x640] sm:$0xf]  ;;  %v8025_v35 = vld [vmem:[%s14037_s7 + $0x320] sm:$0xf0] }
 0x2c5   :  { %5331 = vmatpush.bf16.msrb.mxu0 %v7768_v27  ;;  %5357 = vmatpush.bf16.msrb.mxu2 %v8280_v33  ;;  %v8377_v27 = vld [vmem:[%s14037_s7 + $0x5e0] sm:$0xf0]  ;;  %v9315_v29 = vld [vmem:[%s14037_s7 + $0x65c] sm:$0xf0] }
 0x2c6   :  { %v9207_v33 = vld [vmem:[%s14037_s7 + $0x304] sm:$0xf]  ;;  %v8440_v12 = vor.u32 %v9315_v29, %v8439_v23  ;;  %v9307_v45 = vld [vmem:[%s14037_s7 + $0x61c] sm:$0xf0] }
 0x2c7   :  { %5346 = vmatpush.bf16.msrb.mxu1 %v7960_v28  ;;  %5372 = vmatpush.bf16.msrb.mxu3 %v8472_v20  ;;  %v8380_v28 = vor.u32 %v9295_v26, %v8377_v27  ;;  %v8028_v36 = vor.u32 %v9207_v33, %v8025_v35  ;;  %v7673_v54 = vld [vmem:[%s14037_s7 + $0x60] sm:$0xf0] }
 0x2c8   :  { %3716 = vmatmul.bf16.vlgmr.msra.gmra.mxu0 %v12431_v59  ;;  %3742 = vmatmul.bf16.vlgmr.msra.gmra.mxu2 %v12431_v59  ;;  %v8183_v59 = vld [vmem:[%s14037_s7 + $0x440] sm:$0xf]  ;;  %v8313_v57 = vld [vmem:[%s14037_s7 + $0x560] sm:$0xf0] }
 0x2c9   :  { %5332 = vmatpush.bf16.msrb.mxu0 %v7736_v43  ;;  %5358 = vmatpush.bf16.msrb.mxu2 %v8248_v44  ;;  %v8184_v41 = vor.u32 %v9251_v60, %v8183_v59  ;;  %v7708_v43 = vor.u32 %v9127_v37, %v7705_v39  ;;  %v8407_v44 = vld [vmem:[%s14037_s7 + $0x600] sm:$0xf]  ;;  %v9191_v59 = vld [vmem:[%s14037_s7 + $0x284] sm:$0xf] }
 0x2ca   :  { %v8408_v3 = vor.u32 %v9307_v45, %v8407_v44  ;;  %v7961_v60 = vld [vmem:[%s14037_s7 + $0x2a0] sm:$0xf0] }
 0x2cb   :  { %5347 = vmatpush.bf16.msrb.mxu1 %v7928_v38  ;;  %5373 = vmatpush.bf16.msrb.mxu3 %v8440_v12  ;;  %v8348_v38 = vor.u32 %v9287_v18, %v8345_v40  ;;  %v7964_v31 = vor.u32 %v9191_v59, %v7961_v60  ;;  %v8601_v62 = vld [vmem:[%s14037_s7 + $0x7a0] sm:$0xf0] }
 0x2cc   :  { %v9183_v0 = vld [vmem:[%s14037_s7 + $0x244] sm:$0xf] }
 0x2cd   :  { %5333 = vmatpush.bf16.msrb.mxu0 %v7704_v30  ;;  %5359 = vmatpush.bf16.msrb.mxu2 %v8216_v56  ;;  %v7996_v30 = vor.u32 %v9199_v47, %v7993_v49  ;;  %v7676_v56 = vor.u32 %v9119_v53, %v7673_v54  ;;  %v9263_v15 = vld [vmem:[%s14037_s7 + $0x4c4] sm:$0xf]  ;;  %v7871_v54 = vld [vmem:[%s14037_s7 + $0x1c8] sm:$0xf] }
 0x2ce   :  { %v9175_v19 = vld [vmem:[%s14037_s7 + $0x204] sm:$0xf] }
 0x2cf   :  { %5348 = vmatpush.bf16.msrb.mxu1 %v7896_v52  ;;  %v8636_v52 = vor.u32 %v9359_v50, %v8633_v51  ;;  %5374 = vmatpush.bf16.msrb.mxu3 %v8408_v3  ;;  %v7897_v20 = vld [vmem:[%s14037_s7 + $0x220] sm:$0xf0] }
 0x2d0   :  { %v9335_v21 = vld [vmem:[%s14037_s7 + $0x704] sm:$0xf]  ;;  %v7900_v22 = vor.u32 %v9175_v19, %v7897_v20  ;;  %v7775_v20 = vld [vmem:[%s14037_s7 + $0x108] sm:$0xf] }
 0x2d1   :  { %5334 = vmatpush.bf16.msrb.mxu0 %v7672_v61  ;;  %5360 = vmatpush.bf16.msrb.mxu2 %v8184_v41  ;;  %v9351_v61 = vld [vmem:[%s14037_s7 + $0x784] sm:$0xf] }
 0x2d2   :  { %v9111_v41 = vld [vmem:[%s14037_s7 + $0x4] sm:$0xf] }
 0x2d3   :  { %5393 = vmatpush.bf16.msra.mxu1 %v8124_v55  ;;  %v9279_v55 = vld [vmem:[%s14037_s7 + $0x544] sm:$0xf]  ;;  %5419 = vmatpush.bf16.msra.mxu3 %v8636_v52  ;;  %v7644_v4 = vor.u32 %v9111_v41, %v7641_v2 }
 0x2d4   :  { %v8316_v58 = vor.u32 %v9279_v55, %v8313_v57  ;;  %v8537_v24 = vld [vmem:[%s14037_s7 + $0x720] sm:$0xf0]  ;;  %v9172_v55 = vld [vmem:[%s14037_s7 + $0x1e4] sm:$0xf0] }
 0x2d5   :  { %5335 = vmatpush.bf16.msrb.mxu0 %v7640_v5  ;;  %5361 = vmatpush.bf16.msrb.mxu2 %v8152_v32  ;;  %v9271_v5 = vld [vmem:[%s14037_s7 + $0x504] sm:$0xf]  ;;  %v7872_v59 = vor.u32 %v9172_v55, %v7871_v54  ;;  %v9364_v54 = vld [vmem:[%s14037_s7 + $0x7e4] sm:$0xf0] }
 0x2d6   :  { %v9255_v11 = vld [vmem:[%s14037_s7 + $0x484] sm:$0xf] }
 0x2d7   :  { %5394 = vmatpush.bf16.msra.mxu1 %v8092_v63  ;;  %v8604_v63 = vor.u32 %v9351_v61, %v8601_v62  ;;  %v8217_v1 = vld [vmem:[%s14037_s7 + $0x4a0] sm:$0xf0]  ;;  %v9164_v62 = vld [vmem:[%s14037_s7 + $0x1a4] sm:$0xf0] }
 0x2d8   :  { %v8220_v46 = vor.u32 %v9255_v11, %v8217_v1  ;;  %v9327_v32 = vld [vmem:[%s14037_s7 + $0x6c4] sm:$0xf]  ;;  %v8063_v1 = vld [vmem:[%s14037_s7 + $0x348] sm:$0xf] }
 0x2d9   :  { %5380 = vmatpush.bf16.msra.mxu0 %v7868_v6  ;;  %5406 = vmatpush.bf16.msra.mxu2 %v8380_v28  ;;  %v8281_v6 = vld [vmem:[%s14037_s7 + $0x520] sm:$0xf0] }
 0x2da   :  { %5420 = vmatpush.bf16.msra.mxu3 %v8604_v63  ;;  %v8284_v7 = vor.u32 %v9271_v5, %v8281_v6  ;;  %v9247_v27 = vld [vmem:[%s14037_s7 + $0x444] sm:$0xf]  ;;  %v9236_v5 = vld [vmem:[%s14037_s7 + $0x3e4] sm:$0xf0] }
 0x2db   :  { %5395 = vmatpush.bf16.msra.mxu1 %v8060_v25  ;;  %v8540_v25 = vor.u32 %v9335_v21, %v8537_v24  ;;  %v8185_v23 = vld [vmem:[%s14037_s7 + $0x460] sm:$0xf0]  ;;  %v9148_v21 = vld [vmem:[%s14037_s7 + $0x124] sm:$0xf0] }
 0x2dc   :  { %v8188_v28 = vor.u32 %v9247_v27, %v8185_v23  ;;  %v9319_v29 = vld [vmem:[%s14037_s7 + $0x684] sm:$0xf]  ;;  %v9140_v23 = vld [vmem:[%s14037_s7 + $0xe4] sm:$0xf0] }
 0x2dd   :  { %5381 = vmatpush.bf16.msra.mxu0 %v7836_v48  ;;  %5407 = vmatpush.bf16.msra.mxu2 %v8348_v38  ;;  %v7929_v48 = vld [vmem:[%s14037_s7 + $0x260] sm:$0xf0]  ;;  %v12772_v38 = vld [vmem:[%s14038_s6] sm:$0xf] }
 0x2de   :  { %v7932_v8 = vor.u32 %v9183_v0, %v7929_v48  ;;  %v8473_v33 = vld [vmem:[%s14037_s7 + $0x6a0] sm:$0xf0]  ;;  %v3328_v47 = vperm.slane %v12772_v38, 0  ;;  %v3329_v53 = vperm.slane %v12772_v38, 1  ;;  %v7807_v0 = vld [vmem:[%s14037_s7 + $0x148] sm:$0xf] }
 0x2df   :  { %5396 = vmatpush.bf16.msra.mxu1 %v8028_v36  ;;  %v8476_v35 = vor.u32 %v9319_v29, %v8473_v33  ;;  %v9239_v12 = vld [vmem:[%s14037_s7 + $0x404] sm:$0xf]  ;;  %v9156_v48 = vld [vmem:[%s14037_s7 + $0x164] sm:$0xf0] }
 0x2e0   :  { %v8153_v36 = vld [vmem:[%s14037_s7 + $0x420] sm:$0xf0]  ;;  %v7808_v19 = vor.u32 %v9156_v48, %v7807_v0  ;;  %v9300_v29 = vld [vmem:[%s14037_s7 + $0x5e4] sm:$0xf0] }
 0x2e1   :  { %5382 = vmatpush.bf16.msra.mxu0 %v7804_v13  ;;  %5408 = vmatpush.bf16.msra.mxu2 %v8316_v58  ;;  %v8569_v13 = vld [vmem:[%s14037_s7 + $0x760] sm:$0xf0]  ;;  %v8156_v37 = vor.u32 %v9239_v12, %v8153_v36  ;;  %v8031_v12 = vld [vmem:[%s14037_s7 + $0x308] sm:$0xf] }
 0x2e2   :  { %v8572_v14 = vor.u32 %v9343_v10, %v8569_v13  ;;  %v8441_v18 = vld [vmem:[%s14037_s7 + $0x660] sm:$0xf0]  ;;  %v3330_v13 = vperm.slane %v12772_v38, 2  ;;  %v9212_v36 = vld [vmem:[%s14037_s7 + $0x324] sm:$0xf0] }
 0x2e3   :  { %5397 = vmatpush.bf16.msra.mxu1 %v7996_v30  ;;  %v9303_v44 = vld [vmem:[%s14037_s7 + $0x604] sm:$0xf] }
 0x2e4   :  { %5421 = vmatpush.bf16.msra.mxu3 %v8572_v14  ;;  %v8409_v45 = vld [vmem:[%s14037_s7 + $0x620] sm:$0xf0]  ;;  %v8095_v14 = vld [vmem:[%s14037_s7 + $0x388] sm:$0xf] }
 0x2e5   :  { %5383 = vmatpush.bf16.msra.mxu0 %v7772_v16  ;;  %5409 = vmatpush.bf16.msra.mxu2 %v8284_v7  ;;  %v8249_v16 = vld [vmem:[%s14037_s7 + $0x4e0] sm:$0xf0]  ;;  %v8412_v3 = vor.u32 %v9303_v44, %v8409_v45  ;;  %v9132_v45 = vld [vmem:[%s14037_s7 + $0xa4] sm:$0xf0] }
 0x2e6   :  { %v8252_v17 = vor.u32 %v9263_v15, %v8249_v16  ;;  %v9228_v15 = vld [vmem:[%s14037_s7 + $0x3a4] sm:$0xf0] }
 0x2e7   :  { %5398 = vmatpush.bf16.msra.mxu1 %v7964_v31  ;;  %v7839_v31 = vld [vmem:[%s14037_s7 + $0x188] sm:$0xf] }
 0x2e8   :  { %5422 = vmatpush.bf16.msra.mxu3 %v8540_v25  ;;  %v7840_v6 = vor.u32 %v9164_v62, %v7839_v31  ;;  %v8096_v25 = vor.u32 %v9228_v15, %v8095_v14  ;;  %v9284_v31 = vld [vmem:[%s14037_s7 + $0x564] sm:$0xf0] }
 0x2e9   :  { %5384 = vmatpush.bf16.msra.mxu0 %v7740_v34  ;;  %5410 = vmatpush.bf16.msra.mxu2 %v8252_v17  ;;  %v8505_v34 = vld [vmem:[%s14037_s7 + $0x6e0] sm:$0xf0]  ;;  %v8287_v14 = vld [vmem:[%s14037_s7 + $0x508] sm:$0xf] }
 0x2ea   :  { %v8508_v26 = vor.u32 %v9327_v32, %v8505_v34  ;;  %v7776_v32 = vor.u32 %v9148_v21, %v7775_v20  ;;  %v3331_v34 = vperm.slane %v12772_v38, 3  ;;  %v9276_v15 = vld [vmem:[%s14037_s7 + $0x524] sm:$0xf0]  ;;  %v7873_v20 = vld [vmem:[%s14037_s7 + $0x1e8] sm:$0xf0] }
 0x2eb   :  { %5399 = vmatpush.bf16.msra.mxu1 %v7932_v8  ;;  %v7935_v21 = vld [vmem:[%s14037_s7 + $0x248] sm:$0xf] }
 0x2ec   :  { %5423 = vmatpush.bf16.msra.mxu3 %v8508_v26  ;;  %v7743_v26 = vld [vmem:[%s14037_s7 + $0xc8] sm:$0xf] }
 0x2ed   :  { %5385 = vmatpush.bf16.msra.mxu0 %v7708_v43  ;;  %5411 = vmatpush.bf16.msra.mxu2 %v8220_v46  ;;  %v9311_v43 = vld [vmem:[%s14037_s7 + $0x644] sm:$0xf]  ;;  %v9220_v46 = vld [vmem:[%s14037_s7 + $0x364] sm:$0xf0] }
 0x2ee   :  { %v8444_v40 = vor.u32 %v9311_v43, %v8441_v18  ;;  %v8064_v33 = vor.u32 %v9220_v46, %v8063_v1  ;;  %v7744_v43 = vor.u32 %v9140_v23, %v7743_v26  ;;  %v8288_v1 = vor.u32 %v9276_v15, %v8287_v14  ;;  %v9160_v23 = vld [vmem:[%s14037_s7 + $0x18c] sm:$0xf] }
 0x2ef   :  { %5400 = vmatpush.bf16.msra.mxu1 %v7900_v22  ;;  %v8385_v14 = vld [vmem:[%s14037_s7 + $0x5e8] sm:$0xf0] }
 0x2f0   :  { %5424 = vmatpush.bf16.msra.mxu3 %v8476_v35 }
 0x2f1   :  { %5386 = vmatpush.bf16.msra.mxu0 %v7676_v56  ;;  %5412 = vmatpush.bf16.msra.mxu2 %v8188_v28  ;;  %v8383_v28 = vld [vmem:[%s14037_s7 + $0x5c8] sm:$0xf] }
 0x2f2   :  { %v8384_v18 = vor.u32 %v9300_v29, %v8383_v28  ;;  %v7841_v28 = vld [vmem:[%s14037_s7 + $0x1a8] sm:$0xf0]  ;;  %v7903_v29 = vld [vmem:[%s14037_s7 + $0x208] sm:$0xf] }
 0x2f4   :  { %5425 = vmatpush.bf16.msra.mxu3 %v8444_v40  ;;  %v7711_v40 = vld [vmem:[%s14037_s7 + $0x88] sm:$0xf] }
 0x2f5   :  { %5387 = vmatpush.bf16.msra.mxu0 %v7644_v4  ;;  %5413 = vmatpush.bf16.msra.mxu2 %v8156_v37  ;;  %v8127_v4 = vld [vmem:[%s14037_s7 + $0x3c8] sm:$0xf]  ;;  %v7712_v55 = vor.u32 %v9132_v45, %v7711_v40 }
 0x2f6   :  { %v8128_v8 = vor.u32 %v9236_v5, %v8127_v4  ;;  %v9196_v4 = vld [vmem:[%s14037_s7 + $0x2a4] sm:$0xf0] }
 0x2f7   :  { %v8607_v5 = vld [vmem:[%s14037_s7 + $0x788] sm:$0xf] }
 0x2f8   :  { %5426 = vmatpush.bf16.msra.mxu3 %v8412_v3  ;;  %v9292_v3 = vld [vmem:[%s14037_s7 + $0x5a4] sm:$0xf0] }
 0x2f9   :  { %v9260_v40 = vld [vmem:[%s14037_s7 + $0x4a4] sm:$0xf0] }
 0x32f   :  { %v3678_v39 = vpop.f32.mrf.mxu1 }
 0x335   :  { %v3704_v49 = vpop.f32.mrf.mxu3  ;;  %v3665_v50 = vpop.f32.mrf.mxu0 }
 0x336   :  { %v3666_v30 = vadd.f32 %v3665_v50, %v3328_v47  ;;  %v8351_v47 = vld [vmem:[%s14037_s7 + $0x588] sm:$0xf]  ;;  %v8032_v50 = vor.u32 %v9212_v36, %v8031_v12 }
 0x337   :  { %v3680_v51 = vpop.f32.mrf.mxu1  ;;  %v9340_v12 = vld [vmem:[%s14037_s7 + $0x724] sm:$0xf0] }
 0x338   :  { %v3679_v52 = vadd.f32 %v3678_v39, %v3666_v30  ;;  %v7999_v51 = vld [vmem:[%s14037_s7 + $0x2c8] sm:$0xf] }
 0x33a   :  { %v3766_v56 = vmax.f32 %v3679_v52, 0.0  ;;  %v9204_v52 = vld [vmem:[%s14037_s7 + $0x2e4] sm:$0xf0] }
 0x33b   :  { %v3691_v57 = vpop.f32.mrf.mxu2  ;;  %v8000_v62 = vor.u32 %v9204_v52, %v7999_v51  ;;  %v9332_v51 = vld [vmem:[%s14037_s7 + $0x6e4] sm:$0xf0]  ;;  %v9224_v52 = vld [vmem:[%s14037_s7 + $0x38c] sm:$0xf] }
 0x33c   :  { %v12788_v60 = vpack.c.bf16 %v3766_v56, %v3766_v56  ;;  %v3692_v61 = vadd.f32 %v3691_v57, %v3329_v53  ;;  %v8639_v53 = vld [vmem:[%s14037_s7 + $0x7c8] sm:$0xf]  ;;  %v8352_v56 = vor.u32 %v9292_v3, %v8351_v47  ;;  %v9152_v47 = vld [vmem:[%s14037_s7 + $0x14c] sm:$0xf] }
 0x33d   :  { %v3706_v58 = vpop.f32.mrf.mxu3  ;;  %v3667_v63 = vpop.f32.mrf.mxu0  ;;  %v7679_v57 = vld [vmem:[%s14037_s7 + $0x48] sm:$0xf]  ;;  %v7809_v3 = vld [vmem:[%s14037_s7 + $0x168] sm:$0xf0] }
 0x33e   :  { %v3705_v2 = vadd.f32 %v3704_v49, %v3692_v61  ;;  %5336 = vmatmul.bf16.vlgmr.msrb.gmra.mxu0 %v12788_v60  ;;  %v9124_v58 = vld [vmem:[%s14037_s7 + $0x64] sm:$0xf0]  ;;  %v8640_v63 = vor.u32 %v9364_v54, %v8639_v53  ;;  %v8097_v53 = vld [vmem:[%s14037_s7 + $0x3a8] sm:$0xf0]  ;;  %v7812_v54 = vor.u32 %v9152_v47, %v7809_v3 }
 0x33f   :  { %v3730_v41 = vpop.f32.mrf.mxu1  ;;  %5432 = vmatpush.bf16.msrb.mxu0 %v7872_v59  ;;  %v8319_v61 = vld [vmem:[%s14037_s7 + $0x548] sm:$0xf]  ;;  %v7680_v0 = vor.u32 %v9124_v58, %v7679_v57  ;;  %v9144_v58 = vld [vmem:[%s14037_s7 + $0x10c] sm:$0xf] }
 0x340   :  { %v3767_v7 = vmax.f32 %v3705_v2, 0.0  ;;  %v8320_v48 = vor.u32 %v9284_v31, %v8319_v61  ;;  %v8100_v61 = vor.u32 %v9224_v52, %v8097_v53  ;;  %v8479_v31 = vld [vmem:[%s14037_s7 + $0x688] sm:$0xf]  ;;  %v7969_v47 = vld [vmem:[%s14037_s7 + $0x2a8] sm:$0xf0] }
 0x341   :  { %v9352_v3 = vld [vmem:[%s14037_s7 + $0x78c] sm:$0xf] }
 0x342   :  { %v12809_v10 = vpack.c.bf16 %v3767_v7, %v3767_v7  ;;  %v7649_v52 = vld [vmem:[%s14037_s7 + $0x28] sm:$0xf0] }
 0x343   :  { %5433 = vmatpush.bf16.msrb.mxu0 %v7840_v6  ;;  %v3693_v16 = vpop.f32.mrf.mxu2  ;;  %v9356_v6 = vld [vmem:[%s14037_s7 + $0x7a4] sm:$0xf0]  ;;  %v9272_v53 = vld [vmem:[%s14037_s7 + $0x50c] sm:$0xf] }
 0x344   :  { %5349 = vmatmul.bf16.vlgmr.msrb.gmra.mxu1 %v12809_v10 }
 0x345   :  { %v3756_v17 = vpop.f32.mrf.mxu3  ;;  %5445 = vmatpush.bf16.msrb.mxu1 %v8128_v8  ;;  %v3717_v22 = vpop.f32.mrf.mxu0  ;;  %v7647_v8 = vld [vmem:[%s14037_s7 + $0x8] sm:$0xf] }
 0x346   :  { %v3718_v11 = vadd.f32 %v3717_v22, %v3330_v13  ;;  %v9116_v13 = vld [vmem:[%s14037_s7 + $0x24] sm:$0xf0] }
 0x347   :  { %v3732_v24 = vpop.f32.mrf.mxu1  ;;  %5434 = vmatpush.bf16.msrb.mxu0 %v7808_v19  ;;  %v9168_v19 = vld [vmem:[%s14037_s7 + $0x1cc] sm:$0xf]  ;;  %v9188_v22 = vld [vmem:[%s14037_s7 + $0x264] sm:$0xf0] }
 0x348   :  { %v3731_v27 = vadd.f32 %v3730_v41, %v3718_v11  ;;  %v7967_v41 = vld [vmem:[%s14037_s7 + $0x288] sm:$0xf]  ;;  %v7648_v11 = vor.u32 %v9116_v13, %v7647_v8  ;;  %v7876_v46 = vor.u32 %v9168_v19, %v7873_v20  ;;  %v7936_v26 = vor.u32 %v9188_v22, %v7935_v21  ;;  %v7745_v8 = vld [vmem:[%s14037_s7 + $0xe8] sm:$0xf0] }
 0x349   :  { %5446 = vmatpush.bf16.msrb.mxu1 %v8096_v25  ;;  %v7968_v16 = vor.u32 %v9196_v4, %v7967_v41  ;;  %v8575_v24 = vld [vmem:[%s14037_s7 + $0x748] sm:$0xf]  ;;  %v9216_v41 = vld [vmem:[%s14037_s7 + $0x34c] sm:$0xf] }
 0x34a   :  { %v3768_v35 = vmax.f32 %v3731_v27, 0.0  ;;  %v9348_v25 = vld [vmem:[%s14037_s7 + $0x764] sm:$0xf0]  ;;  %v8065_v4 = vld [vmem:[%s14037_s7 + $0x368] sm:$0xf0] }
 0x34b   :  { %5435 = vmatpush.bf16.msrb.mxu0 %v7776_v32  ;;  %v3743_v37 = vpop.f32.mrf.mxu2  ;;  %v8255_v32 = vld [vmem:[%s14037_s7 + $0x4c8] sm:$0xf]  ;;  %v8576_v27 = vor.u32 %v9348_v25, %v8575_v24  ;;  %v9296_v13 = vld [vmem:[%s14037_s7 + $0x5cc] sm:$0xf]  ;;  %v8068_v15 = vor.u32 %v9216_v41, %v8065_v4 }
 0x34c   :  { %v12853_v38 = vpack.c.bf16 %v3768_v35, %v3768_v35  ;;  %v3744_v44 = vadd.f32 %v3743_v37, %v3331_v34  ;;  %v9268_v34 = vld [vmem:[%s14037_s7 + $0x4e4] sm:$0xf0]  ;;  %v9232_v37 = vld [vmem:[%s14037_s7 + $0x3cc] sm:$0xf]  ;;  %v8388_v24 = vor.u32 %v9296_v13, %v8385_v14 }
 0x34d   :  { %v3758_v39 = vpop.f32.mrf.mxu3  ;;  %5447 = vmatpush.bf16.msrb.mxu1 %v8064_v33  ;;  %v3719_v49 = vpop.f32.mrf.mxu0  ;;  %v9180_v33 = vld [vmem:[%s14037_s7 + $0x224] sm:$0xf0]  ;;  %v8256_v36 = vor.u32 %v9268_v34, %v8255_v32  ;;  %v9208_v20 = vld [vmem:[%s14037_s7 + $0x30c] sm:$0xf] }
 0x34e   :  { %v3757_v30 = vadd.f32 %v3756_v17, %v3744_v44  ;;  %5362 = vmatmul.bf16.vlgmr.msrb.gmra.mxu2 %v12853_v38  ;;  %5388 = vmatmul.bf16.vlgmr.msra.gmra.mxu0 %v12788_v60  ;;  %v8608_v17 = vor.u32 %v9356_v6, %v8607_v5  ;;  %v8543_v35 = vld [vmem:[%s14037_s7 + $0x708] sm:$0xf]  ;;  %v8129_v39 = vld [vmem:[%s14037_s7 + $0x3e8] sm:$0xf0]  ;;  %v7904_v44 = vor.u32 %v9180_v33, %v7903_v29 }
 0x34f   :  { %5436 = vmatpush.bf16.msrb.mxu0 %v7744_v43  ;;  %5458 = vmatpush.bf16.msrb.mxu2 %v8384_v18  ;;  %v7844_v43 = vor.u32 %v9160_v23, %v7841_v28  ;;  %v8223_v18 = vld [vmem:[%s14037_s7 + $0x488] sm:$0xf]  ;;  %v8544_v45 = vor.u32 %v9340_v12, %v8543_v35  ;;  %v8132_v49 = vor.u32 %v9232_v37, %v8129_v39  ;;  %v8033_v21 = vld [vmem:[%s14037_s7 + $0x328] sm:$0xf0] }
 0x350   :  { %v3769_v59 = vmax.f32 %v3757_v30, 0.0  ;;  %v8224_v30 = vor.u32 %v9260_v40, %v8223_v18  ;;  %v8159_v6 = vld [vmem:[%s14037_s7 + $0x408] sm:$0xf]  ;;  %v9128_v25 = vld [vmem:[%s14037_s7 + $0x8c] sm:$0xf]  ;;  %v8036_v34 = vor.u32 %v9208_v20, %v8033_v21 }
 0x351   :  { %5448 = vmatpush.bf16.msrb.mxu1 %v8032_v50  ;;  %v8511_v50 = vld [vmem:[%s14037_s7 + $0x6c8] sm:$0xf]  ;;  %v8353_v32 = vld [vmem:[%s14037_s7 + $0x5a8] sm:$0xf0]  ;;  %v9237_v20 = vld [vmem:[%s14037_s7 + $0x3ec] sm:$0xf0] }
 0x352   :  { %v12893_v2 = vpack.c.bf16 %v3769_v59, %v3769_v59  ;;  %v8512_v57 = vor.u32 %v9332_v51, %v8511_v50  ;;  %v7777_v59 = vld [vmem:[%s14037_s7 + $0x128] sm:$0xf0] }
 0x353   :  { %5437 = vmatpush.bf16.msrb.mxu0 %v7712_v55  ;;  %5459 = vmatpush.bf16.msrb.mxu2 %v8352_v56  ;;  %v3745_v7 = vpop.f32.mrf.mxu2  ;;  %v8191_v55 = vld [vmem:[%s14037_s7 + $0x448] sm:$0xf]  ;;  %v7780_v5 = vor.u32 %v9144_v58, %v7777_v59  ;;  %v9200_v23 = vld [vmem:[%s14037_s7 + $0x2cc] sm:$0xf]  ;;  %v9173_v58 = vld [vmem:[%s14037_s7 + $0x1ec] sm:$0xf0] }
 0x354   :  { %5375 = vmatmul.bf16.vlgmr.msrb.gmra.mxu3 %v12893_v2  ;;  %5401 = vmatmul.bf16.vlgmr.msra.gmra.mxu1 %v12809_v10  ;;  %v9252_v56 = vld [vmem:[%s14037_s7 + $0x464] sm:$0xf0]  ;;  %v8001_v28 = vld [vmem:[%s14037_s7 + $0x2e8] sm:$0xf0] }
 0x355   :  { %5449 = vmatpush.bf16.msrb.mxu1 %v8000_v62  ;;  %5471 = vmatpush.bf16.msrb.mxu3 %v8640_v63  ;;  %v9324_v62 = vld [vmem:[%s14037_s7 + $0x6a4] sm:$0xf0]  ;;  %v8192_v63 = vor.u32 %v9252_v56, %v8191_v55  ;;  %v9360_v29 = vld [vmem:[%s14037_s7 + $0x7cc] sm:$0xf]  ;;  %v8004_v40 = vor.u32 %v9200_v23, %v8001_v28  ;;  %v8103_v23 = vld [vmem:[%s14037_s7 + $0x390] sm:$0xf] }
 0x356   :  { %v9244_v7 = vld [vmem:[%s14037_s7 + $0x424] sm:$0xf0]  ;;  %v8641_v33 = vld [vmem:[%s14037_s7 + $0x7e8] sm:$0xf0]  ;;  %v9229_v28 = vld [vmem:[%s14037_s7 + $0x3ac] sm:$0xf0] }
 0x357   :  { %5438 = vmatpush.bf16.msrb.mxu0 %v7680_v0  ;;  %5460 = vmatpush.bf16.msrb.mxu2 %v8320_v48  ;;  %v9136_v0 = vld [vmem:[%s14037_s7 + $0xcc] sm:$0xf]  ;;  %v8480_v48 = vor.u32 %v9324_v62, %v8479_v31  ;;  %v8160_v19 = vor.u32 %v9244_v7, %v8159_v6 }
 0x358   :  { %v7748_v22 = vor.u32 %v9136_v0, %v7745_v8  ;;  %v7681_v39 = vld [vmem:[%s14037_s7 + $0x68] sm:$0xf0]  ;;  %v9165_v8 = vld [vmem:[%s14037_s7 + $0x1ac] sm:$0xf0] }
 0x359   :  { %5450 = vmatpush.bf16.msrb.mxu1 %v7968_v16  ;;  %5472 = vmatpush.bf16.msrb.mxu3 %v8608_v17  ;;  %v8447_v16 = vld [vmem:[%s14037_s7 + $0x648] sm:$0xf]  ;;  %v8321_v18 = vld [vmem:[%s14037_s7 + $0x568] sm:$0xf0] }
 0x35a   :  { %v9316_v17 = vld [vmem:[%s14037_s7 + $0x664] sm:$0xf0]  ;;  %v9184_v59 = vld [vmem:[%s14037_s7 + $0x24c] sm:$0xf] }
 0x35b   :  { %5439 = vmatpush.bf16.msrb.mxu0 %v7648_v11  ;;  %5461 = vmatpush.bf16.msrb.mxu2 %v8288_v1  ;;  %v8448_v11 = vor.u32 %v9316_v17, %v8447_v16  ;;  %v7713_v1 = vld [vmem:[%s14037_s7 + $0xa8] sm:$0xf0] }
 0x35c   :  { %v7716_v35 = vor.u32 %v9128_v25, %v7713_v1  ;;  %v9344_v31 = vld [vmem:[%s14037_s7 + $0x74c] sm:$0xf]  ;;  %v7815_v1 = vld [vmem:[%s14037_s7 + $0x150] sm:$0xf] }
 0x35d   :  { %5451 = vmatpush.bf16.msrb.mxu1 %v7936_v26  ;;  %5473 = vmatpush.bf16.msrb.mxu3 %v8576_v27  ;;  %v8415_v26 = vld [vmem:[%s14037_s7 + $0x608] sm:$0xf]  ;;  %v8577_v62 = vld [vmem:[%s14037_s7 + $0x768] sm:$0xf0] }
 0x35e   :  { %5414 = vmatmul.bf16.vlgmr.msra.gmra.mxu2 %v12853_v38  ;;  %5440 = vmatmul.bf16.vlgmr.msrb.gmra.mxu0 %v12788_v60  ;;  %v9308_v27 = vld [vmem:[%s14037_s7 + $0x624] sm:$0xf0]  ;;  %v8257_v6 = vld [vmem:[%s14037_s7 + $0x4e8] sm:$0xf0]  ;;  %v8580_v0 = vor.u32 %v9344_v31, %v8577_v62  ;;  %v7719_v62 = vld [vmem:[%s14037_s7 + $0x90] sm:$0xf] }
 0x35f   :  { %5484 = vmatpush.bf16.msra.mxu0 %v7876_v46  ;;  %5462 = vmatpush.bf16.msrb.mxu2 %v8256_v36  ;;  %v9288_v46 = vld [vmem:[%s14037_s7 + $0x58c] sm:$0xf]  ;;  %v8416_v37 = vor.u32 %v9308_v27, %v8415_v26 }
 0x360   :  { %v8356_v12 = vor.u32 %v9288_v46, %v8353_v32  ;;  %v9120_v36 = vld [vmem:[%s14037_s7 + $0x4c] sm:$0xf]  ;;  %v9157_v46 = vld [vmem:[%s14037_s7 + $0x16c] sm:$0xf0] }
 0x361   :  { %5452 = vmatpush.bf16.msrb.mxu1 %v7904_v44  ;;  %5474 = vmatpush.bf16.msrb.mxu3 %v8544_v45  ;;  %v8644_v44 = vor.u32 %v9360_v29, %v8641_v33  ;;  %v9192_v45 = vld [vmem:[%s14037_s7 + $0x28c] sm:$0xf]  ;;  %v7684_v50 = vor.u32 %v9120_v36, %v7681_v39  ;;  %v7816_v29 = vor.u32 %v9157_v46, %v7815_v1  ;;  %v7783_v36 = vld [vmem:[%s14037_s7 + $0x110] sm:$0xf] }
 0x362   :  { %v7972_v55 = vor.u32 %v9192_v45, %v7969_v47  ;;  %v9176_v13 = vld [vmem:[%s14037_s7 + $0x20c] sm:$0xf]  ;;  %v8104_v39 = vor.u32 %v9229_v28, %v8103_v23  ;;  %v9221_v45 = vld [vmem:[%s14037_s7 + $0x36c] sm:$0xf0] }
 0x363   :  { %5485 = vmatpush.bf16.msra.mxu0 %v7844_v43  ;;  %5463 = vmatpush.bf16.msrb.mxu2 %v8224_v30  ;;  %v9280_v43 = vld [vmem:[%s14037_s7 + $0x54c] sm:$0xf]  ;;  %v9197_v1 = vld [vmem:[%s14037_s7 + $0x2ac] sm:$0xf0] }
 0x364   :  { %5427 = vmatmul.bf16.vlgmr.msra.gmra.mxu3 %v12893_v2  ;;  %5453 = vmatmul.bf16.vlgmr.msrb.gmra.mxu1 %v12809_v10  ;;  %v8324_v51 = vor.u32 %v9280_v43, %v8321_v18  ;;  %v9112_v30 = vld [vmem:[%s14037_s7 + $0xc] sm:$0xf]  ;;  %v8615_v46 = vld [vmem:[%s14037_s7 + $0x790] sm:$0xf] }
 0x365   :  { %5497 = vmatpush.bf16.msra.mxu1 %v8132_v49  ;;  %5475 = vmatpush.bf16.msrb.mxu3 %v8512_v57  ;;  %v8609_v49 = vld [vmem:[%s14037_s7 + $0x7a8] sm:$0xf0]  ;;  %v7879_v57 = vld [vmem:[%s14037_s7 + $0x1d0] sm:$0xf] }
 0x366   :  { %v8612_v56 = vor.u32 %v9352_v3, %v8609_v49  ;;  %v7880_v4 = vor.u32 %v9173_v58, %v7879_v57  ;;  %v7905_v14 = vld [vmem:[%s14037_s7 + $0x228] sm:$0xf0]  ;;  %v8039_v58 = vld [vmem:[%s14037_s7 + $0x310] sm:$0xf] }
 0x367   :  { %5486 = vmatpush.bf16.msra.mxu0 %v7812_v54  ;;  %5464 = vmatpush.bf16.msrb.mxu2 %v8192_v63  ;;  %v8289_v54 = vld [vmem:[%s14037_s7 + $0x528] sm:$0xf0]  ;;  %v7652_v63 = vor.u32 %v9112_v30, %v7649_v52  ;;  %v7908_v25 = vor.u32 %v9176_v13, %v7905_v14  ;;  %v9141_v30 = vld [vmem:[%s14037_s7 + $0xec] sm:$0xf0] }
 0x368   :  { %v8292_v41 = vor.u32 %v9272_v53, %v8289_v54  ;;  %v8545_v16 = vld [vmem:[%s14037_s7 + $0x728] sm:$0xf0]  ;;  %v8391_v52 = vld [vmem:[%s14037_s7 + $0x5d0] sm:$0xf] }
 0x369   :  { %5498 = vmatpush.bf16.msra.mxu1 %v8100_v61  ;;  %5476 = vmatpush.bf16.msrb.mxu3 %v8480_v48  ;;  %v7937_v61 = vld [vmem:[%s14037_s7 + $0x268] sm:$0xf0]  ;;  %v7847_v48 = vld [vmem:[%s14037_s7 + $0x190] sm:$0xf] }
 0x36a   :  { %v7940_v7 = vor.u32 %v9184_v59, %v7937_v61  ;;  %v7848_v21 = vor.u32 %v9165_v8, %v7847_v48  ;;  %v8513_v26 = vld [vmem:[%s14037_s7 + $0x6e8] sm:$0xf0]  ;;  %v9301_v53 = vld [vmem:[%s14037_s7 + $0x5ec] sm:$0xf0] }
 0x36b   :  { %5487 = vmatpush.bf16.msra.mxu0 %v7780_v5  ;;  %5465 = vmatpush.bf16.msrb.mxu2 %v8160_v19  ;;  %v9264_v5 = vld [vmem:[%s14037_s7 + $0x4cc] sm:$0xf]  ;;  %v8135_v19 = vld [vmem:[%s14037_s7 + $0x3d0] sm:$0xf]  ;;  %v8392_v31 = vor.u32 %v9301_v53, %v8391_v52 }
 0x36c   :  { %v8260_v17 = vor.u32 %v9264_v5, %v8257_v6  ;;  %v8136_v32 = vor.u32 %v9237_v20, %v8135_v19  ;;  %v9248_v33 = vld [vmem:[%s14037_s7 + $0x44c] sm:$0xf]  ;;  %v9213_v59 = vld [vmem:[%s14037_s7 + $0x32c] sm:$0xf0] }
 0x36d   :  { %5499 = vmatpush.bf16.msra.mxu1 %v8068_v15  ;;  %5477 = vmatpush.bf16.msrb.mxu3 %v8448_v11  ;;  %v9336_v15 = vld [vmem:[%s14037_s7 + $0x70c] sm:$0xf]  ;;  %v9293_v5 = vld [vmem:[%s14037_s7 + $0x5ac] sm:$0xf0]  ;;  %v8040_v6 = vor.u32 %v9213_v59, %v8039_v58 }
 0x36e   :  { %5466 = vmatmul.bf16.vlgmr.msrb.gmra.mxu2 %v12853_v38  ;;  %v8548_v11 = vor.u32 %v9336_v15, %v8545_v16  ;;  %v9320_v43 = vld [vmem:[%s14037_s7 + $0x68c] sm:$0xf]  ;;  %v8007_v48 = vld [vmem:[%s14037_s7 + $0x2d0] sm:$0xf] }
 0x36f   :  { %5488 = vmatpush.bf16.msra.mxu0 %v7748_v22  ;;  %5510 = vmatpush.bf16.msra.mxu2 %v8388_v24  ;;  %v9256_v22 = vld [vmem:[%s14037_s7 + $0x48c] sm:$0xf]  ;;  %v9205_v8 = vld [vmem:[%s14037_s7 + $0x2ec] sm:$0xf0] }
 0x370   :  { %v8225_v24 = vld [vmem:[%s14037_s7 + $0x4a8] sm:$0xf0]  ;;  %v8647_v13 = vld [vmem:[%s14037_s7 + $0x7d0] sm:$0xf] }
 0x371   :  { %5500 = vmatpush.bf16.msra.mxu1 %v8036_v34  ;;  %5478 = vmatpush.bf16.msrb.mxu3 %v8416_v37  ;;  %v9328_v34 = vld [vmem:[%s14037_s7 + $0x6cc] sm:$0xf]  ;;  %v8228_v27 = vor.u32 %v9256_v22, %v8225_v24  ;;  %v9149_v37 = vld [vmem:[%s14037_s7 + $0x12c] sm:$0xf0] }
 0x372   :  { %v8481_v18 = vld [vmem:[%s14037_s7 + $0x6a8] sm:$0xf0]  ;;  %v7784_v47 = vor.u32 %v9149_v37, %v7783_v36  ;;  %v9365_v14 = vld [vmem:[%s14037_s7 + $0x7ec] sm:$0xf0]  ;;  %v7881_v36 = vld [vmem:[%s14037_s7 + $0x1f0] sm:$0xf0] }
 0x373   :  { %5489 = vmatpush.bf16.msra.mxu0 %v7716_v35  ;;  %5511 = vmatpush.bf16.msra.mxu2 %v8356_v12  ;;  %v8193_v35 = vld [vmem:[%s14037_s7 + $0x468] sm:$0xf0]  ;;  %v8516_v12 = vor.u32 %v9328_v34, %v8513_v26  ;;  %v7687_v19 = vld [vmem:[%s14037_s7 + $0x50] sm:$0xf]  ;;  %v8648_v22 = vor.u32 %v9365_v14, %v8647_v13 }
 0x374   :  { %5479 = vmatmul.bf16.vlgmr.msrb.gmra.mxu3 %v12893_v2  ;;  %v9240_v3 = vld [vmem:[%s14037_s7 + $0x40c] sm:$0xf]  ;;  %v9125_v20 = vld [vmem:[%s14037_s7 + $0x6c] sm:$0xf0] }
 0x375   :  { %5501 = vmatpush.bf16.msra.mxu1 %v8004_v40  ;;  %5523 = vmatpush.bf16.msra.mxu3 %v8644_v44  ;;  %v8196_v40 = vor.u32 %v9248_v33, %v8193_v35  ;;  %v8071_v44 = vld [vmem:[%s14037_s7 + $0x350] sm:$0xf]  ;;  %v8161_v49 = vld [vmem:[%s14037_s7 + $0x428] sm:$0xf0]  ;;  %v7688_v34 = vor.u32 %v9125_v20, %v7687_v19  ;;  %v7785_v20 = vld [vmem:[%s14037_s7 + $0x130] sm:$0xf0] }
 0x376   :  { %v8072_v54 = vor.u32 %v9221_v45, %v8071_v44  ;;  %v8164_v57 = vor.u32 %v9240_v3, %v8161_v49  ;;  %v8327_v24 = vld [vmem:[%s14037_s7 + $0x550] sm:$0xf] }
 0x377   :  { %5490 = vmatpush.bf16.msra.mxu0 %v7684_v50  ;;  %5512 = vmatpush.bf16.msra.mxu2 %v8324_v51  ;;  %v7751_v50 = vld [vmem:[%s14037_s7 + $0xd0] sm:$0xf]  ;;  %v8484_v51 = vor.u32 %v9320_v43, %v8481_v18 }
 0x378   :  { %v7752_v61 = vor.u32 %v9141_v30, %v7751_v50  ;;  %v7655_v26 = vld [vmem:[%s14037_s7 + $0x10] sm:$0xf]  ;;  %v7849_v30 = vld [vmem:[%s14037_s7 + $0x1b0] sm:$0xf0] }
 0x379   :  { %5502 = vmatpush.bf16.msra.mxu1 %v7972_v55  ;;  %5524 = vmatpush.bf16.msra.mxu3 %v8612_v56  ;;  %v9312_v55 = vld [vmem:[%s14037_s7 + $0x64c] sm:$0xf]  ;;  %v9117_v23 = vld [vmem:[%s14037_s7 + $0x2c] sm:$0xf0] }
 0x37a   :  { %v8449_v56 = vld [vmem:[%s14037_s7 + $0x668] sm:$0xf0]  ;;  %v8295_v28 = vld [vmem:[%s14037_s7 + $0x510] sm:$0xf] }
 0x37b   :  { %5491 = vmatpush.bf16.msra.mxu0 %v7652_v63  ;;  %5513 = vmatpush.bf16.msra.mxu2 %v8292_v41  ;;  %v8452_v63 = vor.u32 %v9312_v55, %v8449_v56  ;;  %v9133_v41 = vld [vmem:[%s14037_s7 + $0xac] sm:$0xf0]  ;;  %v9233_v56 = vld [vmem:[%s14037_s7 + $0x3d4] sm:$0xf] }
 0x37c   :  { %v7720_v15 = vor.u32 %v9133_v41, %v7719_v62  ;;  %v7943_v37 = vld [vmem:[%s14037_s7 + $0x250] sm:$0xf]  ;;  %v9153_v41 = vld [vmem:[%s14037_s7 + $0x154] sm:$0xf] }
 0x37d   :  { %5503 = vmatpush.bf16.msra.mxu1 %v7940_v7  ;;  %5525 = vmatpush.bf16.msra.mxu3 %v8580_v0  ;;  %v9304_v7 = vld [vmem:[%s14037_s7 + $0x60c] sm:$0xf]  ;;  %v8583_v43 = vld [vmem:[%s14037_s7 + $0x750] sm:$0xf] }
 0x37e   :  { %5492 = vmatmul.bf16.vlgmr.msra.gmra.mxu0 %v12788_v60  ;;  %v8417_v0 = vld [vmem:[%s14037_s7 + $0x628] sm:$0xf0]  ;;  %v9349_v18 = vld [vmem:[%s14037_s7 + $0x76c] sm:$0xf0] }
 0x37f   :  { %5536 = vmatpush.bf16.msrb.mxu0 %v7880_v4  ;;  %5514 = vmatpush.bf16.msra.mxu2 %v8260_v17  ;;  %v8359_v4 = vld [vmem:[%s14037_s7 + $0x590] sm:$0xf]  ;;  %v8420_v17 = vor.u32 %v9304_v7, %v8417_v0  ;;  %v8584_v50 = vor.u32 %v9349_v18, %v8583_v43  ;;  %v9225_v0 = vld [vmem:[%s14037_s7 + $0x394] sm:$0xf] }
 0x380   :  { %v8360_v16 = vor.u32 %v9293_v5, %v8359_v4  ;;  %v9269_v3 = vld [vmem:[%s14037_s7 + $0x4ec] sm:$0xf0]  ;;  %v7817_v5 = vld [vmem:[%s14037_s7 + $0x170] sm:$0xf0] }
 0x381   :  { %5504 = vmatpush.bf16.msra.mxu1 %v7908_v25  ;;  %5526 = vmatpush.bf16.msra.mxu3 %v8548_v11  ;;  %v9285_v25 = vld [vmem:[%s14037_s7 + $0x56c] sm:$0xf0]  ;;  %v7820_v13 = vor.u32 %v9153_v41, %v7817_v5  ;;  %v9129_v18 = vld [vmem:[%s14037_s7 + $0x94] sm:$0xf] }
 0x382   :  { %v7975_v11 = vld [vmem:[%s14037_s7 + $0x290] sm:$0xf]  ;;  %v7977_v41 = vld [vmem:[%s14037_s7 + $0x2b0] sm:$0xf0] }
 0x383   :  { %5537 = vmatpush.bf16.msrb.mxu0 %v7848_v21  ;;  %5515 = vmatpush.bf16.msra.mxu2 %v8228_v27  ;;  %v8008_v21 = vor.u32 %v9205_v8, %v8007_v48  ;;  %v8328_v27 = vor.u32 %v9285_v25, %v8327_v24  ;;  %v7976_v33 = vor.u32 %v9197_v1, %v7975_v11  ;;  %v7911_v52 = vld [vmem:[%s14037_s7 + $0x210] sm:$0xf]  ;;  %v8105_v48 = vld [vmem:[%s14037_s7 + $0x3b0] sm:$0xf0] }
 0x384   :  { %5505 = vmatmul.bf16.vlgmr.msra.gmra.mxu1 %v12809_v10  ;;  %v9181_v53 = vld [vmem:[%s14037_s7 + $0x22c] sm:$0xf0]  ;;  %v8108_v19 = vor.u32 %v9225_v0, %v8105_v48  ;;  %v9217_v24 = vld [vmem:[%s14037_s7 + $0x354] sm:$0xf] }
 0x385   :  { %5549 = vmatpush.bf16.msrb.mxu1 %v8136_v32  ;;  %5527 = vmatpush.bf16.msra.mxu3 %v8516_v12  ;;  %v9357_v32 = vld [vmem:[%s14037_s7 + $0x7ac] sm:$0xf0]  ;;  %v9169_v12 = vld [vmem:[%s14037_s7 + $0x1d4] sm:$0xf] }
 0x386   :  { %v8616_v35 = vor.u32 %v9357_v32, %v8615_v46  ;;  %v7884_v45 = vor.u32 %v9169_v12, %v7881_v36  ;;  %v9341_v55 = vld [vmem:[%s14037_s7 + $0x72c] sm:$0xf0]  ;;  %v8073_v25 = vld [vmem:[%s14037_s7 + $0x370] sm:$0xf0] }
 0x387   :  { %5538 = vmatpush.bf16.msrb.mxu0 %v7816_v29  ;;  %5516 = vmatpush.bf16.msra.mxu2 %v8196_v40  ;;  %v9277_v29 = vld [vmem:[%s14037_s7 + $0x52c] sm:$0xf0]  ;;  %v7656_v40 = vor.u32 %v9117_v23, %v7655_v26  ;;  %v9137_v26 = vld [vmem:[%s14037_s7 + $0xd4] sm:$0xf]  ;;  %v8076_v23 = vor.u32 %v9217_v24, %v8073_v25 }
 0x388   :  { %v8296_v44 = vor.u32 %v9277_v29, %v8295_v28  ;;  %v8231_v62 = vld [vmem:[%s14037_s7 + $0x490] sm:$0xf]  ;;  %v9297_v28 = vld [vmem:[%s14037_s7 + $0x5d4] sm:$0xf] }
 0x389   :  { %5550 = vmatpush.bf16.msrb.mxu1 %v8104_v39  ;;  %5528 = vmatpush.bf16.msra.mxu3 %v8484_v51  ;;  %v9189_v39 = vld [vmem:[%s14037_s7 + $0x26c] sm:$0xf0]  ;;  %v9161_v51 = vld [vmem:[%s14037_s7 + $0x194] sm:$0xf] }
 0x38a   :  { %v7944_v49 = vor.u32 %v9189_v39, %v7943_v37  ;;  %v7852_v59 = vor.u32 %v9161_v51, %v7849_v30  ;;  %v9333_v7 = vld [vmem:[%s14037_s7 + $0x6ec] sm:$0xf0]  ;;  %v8393_v29 = vld [vmem:[%s14037_s7 + $0x5f0] sm:$0xf0] }
 0x38b   :  { %5539 = vmatpush.bf16.msrb.mxu0 %v7784_v47  ;;  %5517 = vmatpush.bf16.msra.mxu2 %v8164_v57  ;;  %v8263_v47 = vld [vmem:[%s14037_s7 + $0x4d0] sm:$0xf]  ;;  %v8137_v57 = vld [vmem:[%s14037_s7 + $0x3f0] sm:$0xf0]  ;;  %v8396_v43 = vor.u32 %v9297_v28, %v8393_v29 }
 0x38c   :  { %v8264_v58 = vor.u32 %v9269_v3, %v8263_v47  ;;  %v8140_v4 = vor.u32 %v9233_v56, %v8137_v57  ;;  %v8167_v1 = vld [vmem:[%s14037_s7 + $0x410] sm:$0xf]  ;;  %v9209_v12 = vld [vmem:[%s14037_s7 + $0x314] sm:$0xf] }
 0x38d   :  { %5551 = vmatpush.bf16.msrb.mxu1 %v8072_v54  ;;  %5529 = vmatpush.bf16.msra.mxu3 %v8452_v63  ;;  %v8551_v54 = vld [vmem:[%s14037_s7 + $0x710] sm:$0xf]  ;;  %v8041_v36 = vld [vmem:[%s14037_s7 + $0x330] sm:$0xf0] }
 0x38e   :  { %5518 = vmatmul.bf16.vlgmr.msra.gmra.mxu2 %v12853_v38  ;;  %v9261_v63 = vld [vmem:[%s14037_s7 + $0x4ac] sm:$0xf0]  ;;  %v9289_v47 = vld [vmem:[%s14037_s7 + $0x594] sm:$0xf] }
 0x38f   :  { %5540 = vmatpush.bf16.msrb.mxu0 %v7752_v61  ;;  %5562 = vmatpush.bf16.msrb.mxu2 %v8392_v31  ;;  %v7912_v61 = vor.u32 %v9181_v53, %v7911_v52  ;;  %v8552_v31 = vor.u32 %v9341_v55, %v8551_v54  ;;  %v8232_v8 = vor.u32 %v9261_v63, %v8231_v62  ;;  %v8361_v3 = vld [vmem:[%s14037_s7 + $0x5b0] sm:$0xf0] }
 0x390   :  { %v9201_v51 = vld [vmem:[%s14037_s7 + $0x2d4] sm:$0xf]  ;;  %v8364_v55 = vor.u32 %v9289_v47, %v8361_v3  ;;  %v9158_v47 = vld [vmem:[%s14037_s7 + $0x174] sm:$0xf0] }
 0x391   :  { %5552 = vmatpush.bf16.msrb.mxu1 %v8040_v6  ;;  %5530 = vmatpush.bf16.msra.mxu3 %v8420_v17  ;;  %v8519_v6 = vld [vmem:[%s14037_s7 + $0x6d0] sm:$0xf]  ;;  %v9145_v17 = vld [vmem:[%s14037_s7 + $0x114] sm:$0xf] }
 0x392   :  { %v8520_v14 = vor.u32 %v9333_v7, %v8519_v6  ;;  %v7788_v46 = vor.u32 %v9145_v17, %v7785_v20  ;;  %v8009_v30 = vld [vmem:[%s14037_s7 + $0x2f0] sm:$0xf0]  ;;  %v9174_v17 = vld [vmem:[%s14037_s7 + $0x1f4] sm:$0xf0] }
 0x393   :  { %5541 = vmatpush.bf16.msrb.mxu0 %v7720_v15  ;;  %5563 = vmatpush.bf16.msrb.mxu2 %v8360_v16  ;;  %v8199_v15 = vld [vmem:[%s14037_s7 + $0x450] sm:$0xf]  ;;  %v9361_v52 = vld [vmem:[%s14037_s7 + $0x7d4] sm:$0xf]  ;;  %v8012_v57 = vor.u32 %v9201_v51, %v8009_v30  ;;  %v9230_v51 = vld [vmem:[%s14037_s7 + $0x3b4] sm:$0xf0] }
 0x394   :  { %5531 = vmatmul.bf16.vlgmr.msra.gmra.mxu3 %v12893_v2  ;;  %v9253_v16 = vld [vmem:[%s14037_s7 + $0x46c] sm:$0xf0]  ;;  %v8649_v53 = vld [vmem:[%s14037_s7 + $0x7f0] sm:$0xf0] }
 0x395   :  { %5553 = vmatpush.bf16.msrb.mxu1 %v8008_v21  ;;  %5575 = vmatpush.bf16.msrb.mxu3 %v8648_v22  ;;  %v8487_v21 = vld [vmem:[%s14037_s7 + $0x690] sm:$0xf]  ;;  %v8200_v11 = vor.u32 %v9253_v16, %v8199_v15  ;;  %v8329_v62 = vld [vmem:[%s14037_s7 + $0x570] sm:$0xf0]  ;;  %v7887_v16 = vld [vmem:[%s14037_s7 + $0x1d8] sm:$0xf] }
 0x396   :  { %v9325_v22 = vld [vmem:[%s14037_s7 + $0x6ac] sm:$0xf0]  ;;  %v9193_v63 = vld [vmem:[%s14037_s7 + $0x294] sm:$0xf] }
 0x397   :  { %5542 = vmatpush.bf16.msrb.mxu0 %v7688_v34  ;;  %5564 = vmatpush.bf16.msrb.mxu2 %v8328_v27  ;;  %v8488_v32 = vor.u32 %v9325_v22, %v8487_v21  ;;  %v9245_v34 = vld [vmem:[%s14037_s7 + $0x42c] sm:$0xf0]  ;;  %v7753_v27 = vld [vmem:[%s14037_s7 + $0xf0] sm:$0xf0]  ;;  %v7980_v48 = vor.u32 %v9193_v63, %v7977_v41  ;;  %v8079_v63 = vld [vmem:[%s14037_s7 + $0x358] sm:$0xf] }
 0x398   :  { %v8168_v37 = vor.u32 %v9245_v34, %v8167_v1  ;;  %v7756_v39 = vor.u32 %v9137_v26, %v7753_v27  ;;  %v8617_v5 = vld [vmem:[%s14037_s7 + $0x7b0] sm:$0xf0]  ;;  %v7855_v26 = vld [vmem:[%s14037_s7 + $0x198] sm:$0xf] }
 0x399   :  { %5554 = vmatpush.bf16.msrb.mxu1 %v7976_v33  ;;  %5576 = vmatpush.bf16.msrb.mxu3 %v8616_v35  ;;  %v8455_v33 = vld [vmem:[%s14037_s7 + $0x650] sm:$0xf]  ;;  %v9113_v7 = vld [vmem:[%s14037_s7 + $0x14] sm:$0xf]  ;;  %v9166_v27 = vld [vmem:[%s14037_s7 + $0x1b4] sm:$0xf0] }
 0x39a   :  { %v9317_v35 = vld [vmem:[%s14037_s7 + $0x66c] sm:$0xf0]  ;;  %v7945_v20 = vld [vmem:[%s14037_s7 + $0x270] sm:$0xf0]  ;;  %v9222_v41 = vld [vmem:[%s14037_s7 + $0x374] sm:$0xf0] }
 0x39b   :  { %5543 = vmatpush.bf16.msrb.mxu0 %v7656_v40  ;;  %5565 = vmatpush.bf16.msrb.mxu2 %v8296_v44  ;;  %v7721_v40 = vld [vmem:[%s14037_s7 + $0xb0] sm:$0xf0]  ;;  %v8456_v44 = vor.u32 %v9317_v35, %v8455_v33  ;;  %v8143_v35 = vld [vmem:[%s14037_s7 + $0x3d8] sm:$0xf] }
 0x39c   :  { %v7724_v54 = vor.u32 %v9129_v18, %v7721_v40  ;;  %v9345_v21 = vld [vmem:[%s14037_s7 + $0x754] sm:$0xf] }
 0x39d   :  { %5555 = vmatpush.bf16.msrb.mxu1 %v7944_v49  ;;  %5577 = vmatpush.bf16.msrb.mxu3 %v8584_v50  ;;  %v8423_v49 = vld [vmem:[%s14037_s7 + $0x610] sm:$0xf]  ;;  %v8585_v22 = vld [vmem:[%s14037_s7 + $0x770] sm:$0xf0] }
 0x39e   :  { %5544 = vmatmul.bf16.vlgmr.msrb.gmra.mxu0 %v12788_v60  ;;  %v9309_v50 = vld [vmem:[%s14037_s7 + $0x62c] sm:$0xf0]  ;;  %v9265_v1 = vld [vmem:[%s14037_s7 + $0x4d4] sm:$0xf]  ;;  %v8588_v34 = vor.u32 %v9345_v21, %v8585_v22  ;;  %v9214_v21 = vld [vmem:[%s14037_s7 + $0x334] sm:$0xf0] }
 0x39f   :  { %5588 = vmatpush.bf16.msra.mxu0 %v7884_v45  ;;  %5566 = vmatpush.bf16.msrb.mxu2 %v8264_v58  ;;  %v8044_v45 = vor.u32 %v9209_v12, %v8041_v36  ;;  %v8424_v56 = vor.u32 %v9309_v50, %v8423_v49  ;;  %v9121_v58 = vld [vmem:[%s14037_s7 + $0x54] sm:$0xf]  ;;  %v9238_v12 = vld [vmem:[%s14037_s7 + $0x3f4] sm:$0xf0] }
 0x3a0   :  { %v7913_v28 = vld [vmem:[%s14037_s7 + $0x230] sm:$0xf0]  ;;  %v8111_v50 = vld [vmem:[%s14037_s7 + $0x398] sm:$0xf] }
 0x3a1   :  { %5556 = vmatpush.bf16.msrb.mxu1 %v7912_v61  ;;  %5578 = vmatpush.bf16.msrb.mxu3 %v8552_v31  ;;  %v9281_v61 = vld [vmem:[%s14037_s7 + $0x554] sm:$0xf]  ;;  %v8652_v31 = vor.u32 %v9361_v52, %v8649_v53  ;;  %v13584_v52 = vld [vmem:[%s14039_s8] sm:$0xff] }
 0x3a2   :  { %v8332_v0 = vor.u32 %v9281_v61, %v8329_v62  ;;  %v9337_v29 = vld [vmem:[%s14037_s7 + $0x714] sm:$0xf] }
 0x3a3   :  { %5589 = vmatpush.bf16.msra.mxu0 %v7852_v59  ;;  %5567 = vmatpush.bf16.msrb.mxu2 %v8232_v8  ;;  %v7689_v59 = vld [vmem:[%s14037_s7 + $0x70] sm:$0xf0] }
 0x3a4   :  { %5557 = vmatmul.bf16.vlgmr.msrb.gmra.mxu1 %v12809_v10  ;;  %v7692_v6 = vor.u32 %v9121_v58, %v7689_v59  ;;  %v7657_v8 = vld [vmem:[%s14037_s7 + $0x30] sm:$0xf0]  ;;  %v8112_v58 = vor.u32 %v9230_v51, %v8111_v50  ;;  %v9150_v59 = vld [vmem:[%s14037_s7 + $0x134] sm:$0xf0] }
 0x3a5   :  { %5601 = vmatpush.bf16.msra.mxu1 %v8140_v4  ;;  %5579 = vmatpush.bf16.msrb.mxu3 %v8520_v14  ;;  %v9353_v4 = vld [vmem:[%s14037_s7 + $0x794] sm:$0xf]  ;;  %v7660_v24 = vor.u32 %v9113_v7, %v7657_v8  ;;  %v7759_v8 = vld [vmem:[%s14037_s7 + $0xd8] sm:$0xf] }
 0x3a6   :  { %v8297_v14 = vld [vmem:[%s14037_s7 + $0x530] sm:$0xf0]  ;;  %v8620_v15 = vor.u32 %v9353_v4, %v8617_v5  ;;  %v4032_v4 = vperm.slane %v13584_v52, 0  ;;  %v9286_v50 = vld [vmem:[%s14037_s7 + $0x574] sm:$0xf0] }
 0x3a7   :  { %5590 = vmatpush.bf16.msra.mxu0 %v7820_v13  ;;  %5568 = vmatpush.bf16.msrb.mxu2 %v8200_v11  ;;  %v9273_v13 = vld [vmem:[%s14037_s7 + $0x514] sm:$0xf]  ;;  %v7888_v11 = vor.u32 %v9174_v17, %v7887_v16  ;;  %v9302_v16 = vld [vmem:[%s14037_s7 + $0x5f4] sm:$0xf0] }
 0x3a8   :  { %v8300_v25 = vor.u32 %v9273_v13, %v8297_v14  ;;  %v8553_v33 = vld [vmem:[%s14037_s7 + $0x730] sm:$0xf0]  ;;  %v9142_v13 = vld [vmem:[%s14037_s7 + $0xf4] sm:$0xf0]  ;;  %v8080_v14 = vor.u32 %v9222_v41, %v8079_v63 }
 0x3a9   :  { %5602 = vmatpush.bf16.msra.mxu1 %v8108_v19  ;;  %5580 = vmatpush.bf16.msrb.mxu3 %v8488_v32  ;;  %v9185_v19 = vld [vmem:[%s14037_s7 + $0x254] sm:$0xf]  ;;  %v7983_v51 = vld [vmem:[%s14037_s7 + $0x298] sm:$0xf] }
 0x3aa   :  { %v7948_v32 = vor.u32 %v9185_v19, %v7945_v20  ;;  %v9257_v18 = vld [vmem:[%s14037_s7 + $0x494] sm:$0xf]  ;;  %v8047_v20 = vld [vmem:[%s14037_s7 + $0x318] sm:$0xf] }
 0x3ab   :  { %5591 = vmatpush.bf16.msra.mxu0 %v7788_v46  ;;  %5569 = vmatpush.bf16.msrb.mxu2 %v8168_v37  ;;  %v8265_v46 = vld [vmem:[%s14037_s7 + $0x4f0] sm:$0xf0]  ;;  %v7856_v37 = vor.u32 %v9166_v27, %v7855_v26  ;;  %v8048_v27 = vor.u32 %v9214_v21, %v8047_v20  ;;  %v9278_v63 = vld [vmem:[%s14037_s7 + $0x534] sm:$0xf0]  ;;  %v9162_v21 = vld [vmem:[%s14037_s7 + $0x19c] sm:$0xf] }
 0x3ac   :  { %v8268_v36 = vor.u32 %v9265_v1, %v8265_v46  ;;  %v8233_v40 = vld [vmem:[%s14037_s7 + $0x4b0] sm:$0xf0]  ;;  %v7727_v46 = vld [vmem:[%s14037_s7 + $0x98] sm:$0xf] }
 0x3ad   :  { %5603 = vmatpush.bf16.msra.mxu1 %v8076_v23  ;;  %5581 = vmatpush.bf16.msrb.mxu3 %v8456_v44  ;;  %v9177_v23 = vld [vmem:[%s14037_s7 + $0x214] sm:$0xf]  ;;  %v7823_v44 = vld [vmem:[%s14037_s7 + $0x158] sm:$0xf]  ;;  %v8236_v30 = vor.u32 %v9257_v18, %v8233_v40 }
 0x3ae   :  { %5570 = vmatmul.bf16.vlgmr.msrb.gmra.mxu2 %v12853_v38  ;;  %v9329_v3 = vld [vmem:[%s14037_s7 + $0x6d4] sm:$0xf]  ;;  %v7824_v53 = vor.u32 %v9158_v47, %v7823_v44  ;;  %v9126_v47 = vld [vmem:[%s14037_s7 + $0x74] sm:$0xf0] }
 0x3af   :  { %5592 = vmatpush.bf16.msra.mxu0 %v7756_v39  ;;  %5614 = vmatpush.bf16.msra.mxu2 %v8396_v43  ;;  %v7916_v39 = vor.u32 %v9177_v23, %v7913_v28  ;;  %v8556_v43 = vor.u32 %v9337_v29, %v8553_v33  ;;  %v8521_v49 = vld [vmem:[%s14037_s7 + $0x6f0] sm:$0xf0]  ;;  %v8367_v23 = vld [vmem:[%s14037_s7 + $0x598] sm:$0xf] }
 0x3b0   :  { %v9321_v61 = vld [vmem:[%s14037_s7 + $0x694] sm:$0xf]  ;;  %v9294_v28 = vld [vmem:[%s14037_s7 + $0x5b4] sm:$0xf0] }
 0x3b1   :  { %5604 = vmatpush.bf16.msra.mxu1 %v8044_v45  ;;  %5582 = vmatpush.bf16.msrb.mxu3 %v8424_v56  ;;  %v8144_v45 = vor.u32 %v9238_v12, %v8143_v35  ;;  %v8201_v56 = vld [vmem:[%s14037_s7 + $0x470] sm:$0xf0]  ;;  %v8015_v12 = vld [vmem:[%s14037_s7 + $0x2d8] sm:$0xf]  ;;  %v8368_v18 = vor.u32 %v9294_v28, %v8367_v23  ;;  %v9234_v23 = vld [vmem:[%s14037_s7 + $0x3dc] sm:$0xf] }
 0x3b2   :  { %v9313_v17 = vld [vmem:[%s14037_s7 + $0x654] sm:$0xf]  ;;  %v8145_v28 = vld [vmem:[%s14037_s7 + $0x3f8] sm:$0xf0] }
 0x3b3   :  { %5593 = vmatpush.bf16.msra.mxu0 %v7724_v54  ;;  %5615 = vmatpush.bf16.msra.mxu2 %v8364_v55  ;;  %v8524_v54 = vor.u32 %v9329_v3, %v8521_v49  ;;  %v9249_v55 = vld [vmem:[%s14037_s7 + $0x454] sm:$0xf]  ;;  %v8335_v3 = vld [vmem:[%s14037_s7 + $0x558] sm:$0xf] }
 0x3b4   :  { %5583 = vmatmul.bf16.vlgmr.msrb.gmra.mxu3 %v12893_v2  ;;  %v8204_v5 = vor.u32 %v9249_v55, %v8201_v56  ;;  %v8457_v19 = vld [vmem:[%s14037_s7 + $0x670] sm:$0xf0] }
 0x3b5   :  { %5605 = vmatpush.bf16.msra.mxu1 %v8012_v57  ;;  %5627 = vmatpush.bf16.msra.mxu3 %v8652_v31  ;;  %v7791_v57 = vld [vmem:[%s14037_s7 + $0x118] sm:$0xf]  ;;  %v8489_v31 = vld [vmem:[%s14037_s7 + $0x6b0] sm:$0xf0]  ;;  %v8460_v26 = vor.u32 %v9313_v17, %v8457_v19 }
 0x3b6   :  { %v7792_v7 = vor.u32 %v9150_v59, %v7791_v57  ;;  %v9305_v29 = vld [vmem:[%s14037_s7 + $0x614] sm:$0xf]  ;;  %v4033_v57 = vperm.slane %v13584_v52, 1  ;;  %v8336_v59 = vor.u32 %v9286_v50, %v8335_v3  ;;  %v9270_v17 = vld [vmem:[%s14037_s7 + $0x4f4] sm:$0xf0] }
 0x3b7   :  { %5594 = vmatpush.bf16.msra.mxu0 %v7692_v6  ;;  %5616 = vmatpush.bf16.msra.mxu2 %v8332_v0  ;;  %v9241_v6 = vld [vmem:[%s14037_s7 + $0x414] sm:$0xf]  ;;  %v8492_v0 = vor.u32 %v9321_v61, %v8489_v31  ;;  %v9118_v31 = vld [vmem:[%s14037_s7 + $0x34] sm:$0xf0]  ;;  %v8113_v3 = vld [vmem:[%s14037_s7 + $0x3b8] sm:$0xf0] }
 0x3b8   :  { %v8425_v35 = vld [vmem:[%s14037_s7 + $0x630] sm:$0xf0] }
 0x3b9   :  { %5606 = vmatpush.bf16.msra.mxu1 %v7980_v48  ;;  %5628 = vmatpush.bf16.msra.mxu3 %v8620_v15  ;;  %v8169_v48 = vld [vmem:[%s14037_s7 + $0x430] sm:$0xf0]  ;;  %v8399_v15 = vld [vmem:[%s14037_s7 + $0x5d8] sm:$0xf]  ;;  %v8428_v40 = vor.u32 %v9305_v29, %v8425_v35 }
 0x3ba   :  { %v8400_v1 = vor.u32 %v9302_v16, %v8399_v15  ;;  %v8271_v16 = vld [vmem:[%s14037_s7 + $0x4d8] sm:$0xf] }
 0x3bb   :  { %5595 = vmatpush.bf16.msra.mxu0 %v7660_v24  ;;  %5617 = vmatpush.bf16.msra.mxu2 %v8300_v25  ;;  %v5337_v62 = vpop.f32.mrf.mxu0  ;;  %v8172_v24 = vor.u32 %v9241_v6, %v8169_v48  ;;  %v7889_v6 = vld [vmem:[%s14037_s7 + $0x1f8] sm:$0xf0]  ;;  %v8591_v48 = vld [vmem:[%s14037_s7 + $0x758] sm:$0xf] }
 0x3bc   :  { %v5338_v22 = vadd.f32 %v5337_v62, %v4032_v4  ;;  %v8303_v62 = vld [vmem:[%s14037_s7 + $0x518] sm:$0xf] }
 0x3bd   :  { %5607 = vmatpush.bf16.msra.mxu1 %v7948_v32  ;;  %5629 = vmatpush.bf16.msra.mxu3 %v8588_v34  ;;  %v9134_v32 = vld [vmem:[%s14037_s7 + $0xb4] sm:$0xf0] }
 0x3be   :  { %5596 = vmatmul.bf16.vlgmr.msra.gmra.mxu0 %v12788_v60 }
 0x3bf   :  { %5640 = vmatpush.bf16.msrb.mxu0 %v7888_v11  ;;  %5618 = vmatpush.bf16.msra.mxu2 %v8268_v36  ;;  %v7760_v11 = vor.u32 %v9142_v13, %v7759_v8  ;;  %v9206_v36 = vld [vmem:[%s14037_s7 + $0x2f4] sm:$0xf0] }
 0x3c0   :  { %v8016_v44 = vor.u32 %v9206_v36, %v8015_v12  ;;  %v9350_v8 = vld [vmem:[%s14037_s7 + $0x774] sm:$0xf0] }
 0x3c1   :  { %5608 = vmatpush.bf16.msra.mxu1 %v7916_v39  ;;  %5630 = vmatpush.bf16.msra.mxu3 %v8556_v43  ;;  %v5350_v25 = vpop.f32.mrf.mxu1  ;;  %v9366_v39 = vld [vmem:[%s14037_s7 + $0x7f4] sm:$0xf0]  ;;  %v7728_v43 = vor.u32 %v9134_v32, %v7727_v46  ;;  %v8592_v20 = vor.u32 %v9350_v8, %v8591_v48 }
 0x3c2   :  { %v13648_v34 = vadd.f32 %v5350_v25, %v5338_v22  ;;  %v7857_v22 = vld [vmem:[%s14037_s7 + $0x1b8] sm:$0xf0]  ;;  %v9342_v46 = vld [vmem:[%s14037_s7 + $0x734] sm:$0xf0] }
 0x3c3   :  { %5641 = vmatpush.bf16.msrb.mxu0 %v7856_v37  ;;  %5619 = vmatpush.bf16.msra.mxu2 %v8236_v30  ;;  %v5339_v33 = vpop.f32.mrf.mxu0  ;;  %v8655_v37 = vld [vmem:[%s14037_s7 + $0x7d8] sm:$0xf]  ;;  %v7860_v35 = vor.u32 %v9162_v21, %v7857_v22  ;;  %v9210_v21 = vld [vmem:[%s14037_s7 + $0x31c] sm:$0xf] }
 0x3c4   :  { %5609 = vmatmul.bf16.vlgmr.msra.gmra.mxu1 %v12809_v10  ;;  %v8656_v49 = vor.u32 %v9366_v39, %v8655_v37  ;;  %v9198_v30 = vld [vmem:[%s14037_s7 + $0x2b4] sm:$0xf0]  ;;  %v8049_v22 = vld [vmem:[%s14037_s7 + $0x338] sm:$0xf0] }
 0x3c5   :  { %5653 = vmatpush.bf16.msrb.mxu1 %v8144_v45  ;;  %5631 = vmatpush.bf16.msra.mxu3 %v8524_v54  ;;  %v7695_v45 = vld [vmem:[%s14037_s7 + $0x58] sm:$0xf]  ;;  %v7984_v61 = vor.u32 %v9198_v30, %v7983_v51 }
 0x3c6   :  { %v9358_v54 = vld [vmem:[%s14037_s7 + $0x7b4] sm:$0xf0]  ;;  %v7696_v56 = vor.u32 %v9126_v47, %v7695_v45  ;;  %v9226_v47 = vld [vmem:[%s14037_s7 + $0x39c] sm:$0xf] }
 0x3c7   :  { %5642 = vmatpush.bf16.msrb.mxu0 %v7824_v53  ;;  %5620 = vmatpush.bf16.msra.mxu2 %v8204_v5  ;;  %v8623_v53 = vld [vmem:[%s14037_s7 + $0x798] sm:$0xf]  ;;  %v9170_v5 = vld [vmem:[%s14037_s7 + $0x1dc] sm:$0xf] }
 0x3c8   :  { %v8624_v4 = vor.u32 %v9358_v54, %v8623_v53  ;;  %v7892_v15 = vor.u32 %v9170_v5, %v7889_v6  ;;  %v8239_v39 = vld [vmem:[%s14037_s7 + $0x498] sm:$0xf]  ;;  %v4034_v5 = vperm.slane %v13584_v52, 2 }
 0x3c9   :  { %5654 = vmatpush.bf16.msrb.mxu1 %v8112_v58  ;;  %5632 = vmatpush.bf16.msra.mxu3 %v8492_v0  ;;  %v5352_v55 = vpop.f32.mrf.mxu1  ;;  %v7663_v58 = vld [vmem:[%s14037_s7 + $0x18] sm:$0xf] }
 0x3ca   :  { %v9190_v0 = vld [vmem:[%s14037_s7 + $0x274] sm:$0xf0]  ;;  %v7664_v13 = vor.u32 %v9118_v31, %v7663_v58  ;;  %v9146_v55 = vld [vmem:[%s14037_s7 + $0x11c] sm:$0xf] }
 0x3cb   :  { %5643 = vmatpush.bf16.msrb.mxu0 %v7792_v7  ;;  %5621 = vmatpush.bf16.msra.mxu2 %v8172_v24  ;;  %v5389_v41 = vpop.f32.mrf.mxu0  ;;  %v7951_v7 = vld [vmem:[%s14037_s7 + $0x258] sm:$0xf]  ;;  %v7793_v58 = vld [vmem:[%s14037_s7 + $0x138] sm:$0xf0] }
 0x3cc   :  { %v7952_v19 = vor.u32 %v9190_v0, %v7951_v7  ;;  %v7919_v24 = vld [vmem:[%s14037_s7 + $0x218] sm:$0xf]  ;;  %v5390_v25 = vadd.f32 %v5389_v41, %v4033_v57  ;;  %v8116_v57 = vor.u32 %v9226_v47, %v8113_v3  ;;  %v8081_v41 = vld [vmem:[%s14037_s7 + $0x378] sm:$0xf0]  ;;  %v7796_v0 = vor.u32 %v9146_v55, %v7793_v58 }
 0x3cd   :  { %5655 = vmatpush.bf16.msrb.mxu1 %v8080_v14  ;;  %5633 = vmatpush.bf16.msra.mxu3 %v8460_v26  ;;  %v8304_v14 = vor.u32 %v9278_v63, %v8303_v62  ;;  %v9334_v45 = vld [vmem:[%s14037_s7 + $0x6f4] sm:$0xf0]  ;;  %v9218_v63 = vld [vmem:[%s14037_s7 + $0x35c] sm:$0xf] }
 0x3ce   :  { %5622 = vmatmul.bf16.vlgmr.msra.gmra.mxu2 %v12853_v38  ;;  %v8207_v53 = vld [vmem:[%s14037_s7 + $0x458] sm:$0xf]  ;;  %v9194_v58 = vld [vmem:[%s14037_s7 + $0x29c] sm:$0xf] }
 0x3cf   :  { %5644 = vmatpush.bf16.msrb.mxu0 %v7760_v11  ;;  %5666 = vmatpush.bf16.msrb.mxu2 %v8400_v1  ;;  %v9182_v11 = vld [vmem:[%s14037_s7 + $0x234] sm:$0xf0] }
 0x3d0   :  { %v8559_v1 = vld [vmem:[%s14037_s7 + $0x718] sm:$0xf]  ;;  %v7920_v36 = vor.u32 %v9182_v11, %v7919_v24 }
 0x3d1   :  { %5656 = vmatpush.bf16.msrb.mxu1 %v8048_v27  ;;  %5634 = vmatpush.bf16.msra.mxu3 %v8428_v40  ;;  %v5363_v32 = vpop.f32.mrf.mxu2  ;;  %v5402_v26 = vpop.f32.mrf.mxu1  ;;  %v8272_v27 = vor.u32 %v9270_v17, %v8271_v16  ;;  %v8560_v37 = vor.u32 %v9342_v46, %v8559_v1  ;;  %v7825_v40 = vld [vmem:[%s14037_s7 + $0x178] sm:$0xf0]  ;;  %v9254_v54 = vld [vmem:[%s14037_s7 + $0x474] sm:$0xf0] }
 0x3d2   :  { %v5364_v29 = vadd.f32 %v5363_v32, %v13648_v34  ;;  %v13762_v33 = vadd.f32 %v5402_v26, %v5390_v25  ;;  %v9154_v34 = vld [vmem:[%s14037_s7 + $0x15c] sm:$0xf]  ;;  %v8175_v6 = vld [vmem:[%s14037_s7 + $0x418] sm:$0xf] }
 0x3d3   :  { %5645 = vmatpush.bf16.msrb.mxu0 %v7728_v43  ;;  %5667 = vmatpush.bf16.msrb.mxu2 %v8368_v18  ;;  %v5391_v12 = vpop.f32.mrf.mxu0  ;;  %v9262_v43 = vld [vmem:[%s14037_s7 + $0x4b4] sm:$0xf0]  ;;  %v8148_v18 = vor.u32 %v9234_v23, %v8145_v28  ;;  %v7828_v51 = vor.u32 %v9154_v34, %v7825_v40  ;;  %v9298_v16 = vld [vmem:[%s14037_s7 + $0x5dc] sm:$0xf]  ;;  %v8052_v28 = vor.u32 %v9210_v21, %v8049_v22 }
 0x3d4   :  { %5635 = vmatmul.bf16.vlgmr.msra.gmra.mxu3 %v12893_v2  ;;  %v9246_v8 = vld [vmem:[%s14037_s7 + $0x434] sm:$0xf0]  ;;  %v8401_v17 = vld [vmem:[%s14037_s7 + $0x5f8] sm:$0xf0] }
 0x3d5   :  { %5657 = vmatpush.bf16.msrb.mxu1 %v8016_v44  ;;  %5679 = vmatpush.bf16.msrb.mxu3 %v8656_v49  ;;  %v8527_v44 = vld [vmem:[%s14037_s7 + $0x6d8] sm:$0xf]  ;;  %v8240_v49 = vor.u32 %v9262_v43, %v8239_v39  ;;  %v8176_v25 = vor.u32 %v9246_v8, %v8175_v6  ;;  %v8404_v46 = vor.u32 %v9298_v16, %v8401_v17  ;;  %v9130_v32 = vld [vmem:[%s14037_s7 + $0x9c] sm:$0xf] }
 0x3d6   :  { %v8528_v30 = vor.u32 %v9334_v45, %v8527_v44  ;;  %v7729_v26 = vld [vmem:[%s14037_s7 + $0xb8] sm:$0xf0]  ;;  %v9310_v12 = vld [vmem:[%s14037_s7 + $0x634] sm:$0xf0] }
 0x3d7   :  { %5646 = vmatpush.bf16.msrb.mxu0 %v7696_v56  ;;  %5668 = vmatpush.bf16.msrb.mxu2 %v8336_v59  ;;  %v5376_v50 = vpop.f32.mrf.mxu3  ;;  %v8495_v59 = vld [vmem:[%s14037_s7 + $0x698] sm:$0xf]  ;;  %v9202_v43 = vld [vmem:[%s14037_s7 + $0x2dc] sm:$0xf] }
 0x3d8   :  { %v5377_v56 = vadd.f32 %v5376_v50, %v5364_v29  ;;  %v8369_v29 = vld [vmem:[%s14037_s7 + $0x5b8] sm:$0xf0] }
 0x3d9   :  { %5658 = vmatpush.bf16.msrb.mxu1 %v7984_v61  ;;  %5680 = vmatpush.bf16.msrb.mxu3 %v8624_v4  ;;  %v9326_v61 = vld [vmem:[%s14037_s7 + $0x6b4] sm:$0xf0]  ;;  %v5365_v31 = vpop.f32.mrf.mxu2  ;;  %v5404_v62 = vpop.f32.mrf.mxu1  ;;  %v8208_v4 = vor.u32 %v9254_v54, %v8207_v53  ;;  %v8017_v34 = vld [vmem:[%s14037_s7 + $0x2f8] sm:$0xf0] }
 0x3da   :  { %v8496_v48 = vor.u32 %v9326_v61, %v8495_v59  ;;  %v5744_v24 = vsel %vm2825_vm2, %v5377_v56, -inf  ;;  %v9362_v44 = vld [vmem:[%s14037_s7 + $0x7dc] sm:$0xf] }
 0x3db   :  { %5647 = vmatpush.bf16.msrb.mxu0 %v7664_v13  ;;  %5669 = vmatpush.bf16.msrb.mxu2 %v8304_v14  ;;  %v5441_v7 = vpop.f32.mrf.mxu0  ;;  %v9138_v13 = vld [vmem:[%s14037_s7 + $0xdc] sm:$0xf] }
 0x3dc   :  { %v7761_v14 = vld [vmem:[%s14037_s7 + $0xf8] sm:$0xf0] }
 0x3dd   :  { %5659 = vmatpush.bf16.msrb.mxu1 %v7952_v19  ;;  %5681 = vmatpush.bf16.msrb.mxu3 %v8592_v20  ;;  %v8463_v19 = vld [vmem:[%s14037_s7 + $0x658] sm:$0xf]  ;;  %v7764_v1 = vor.u32 %v9138_v13, %v7761_v14  ;;  %v8657_v45 = vld [vmem:[%s14037_s7 + $0x7f8] sm:$0xf0] }
 0x3de   :  { %5648 = vmatmul.bf16.vlgmr.msrb.gmra.mxu0 %v12788_v60  ;;  %v9318_v20 = vld [vmem:[%s14037_s7 + $0x674] sm:$0xf0]  ;;  %v7697_v53 = vld [vmem:[%s14037_s7 + $0x78] sm:$0xf0]  ;;  %v8660_v56 = vor.u32 %v9362_v44, %v8657_v45 }
 0x3df   :  { %5692 = vmatpush.bf16.msra.mxu0 %v7892_v15  ;;  %5670 = vmatpush.bf16.msrb.mxu2 %v8272_v27  ;;  %v8084_v15 = vor.u32 %v9218_v63, %v8081_v41  ;;  %v5378_v11 = vpop.f32.mrf.mxu3  ;;  %v9290_v27 = vld [vmem:[%s14037_s7 + $0x59c] sm:$0xf]  ;;  %v8464_v23 = vor.u32 %v9318_v20, %v8463_v19 }
 0x3e0   :  { %v8372_v50 = vor.u32 %v9290_v27, %v8369_v29  ;;  %v9282_v54 = vld [vmem:[%s14037_s7 + $0x55c] sm:$0xf] }
 0x3e1   :  { %5660 = vmatpush.bf16.msrb.mxu1 %v7920_v36  ;;  %5682 = vmatpush.bf16.msrb.mxu3 %v8560_v37  ;;  %v5745_v36 = vrot.slane %v5744_v24, 4  ;;  %v5442_v37 = vadd.f32 %v5441_v7, %v4034_v5  ;;  %v5415_v39 = vpop.f32.mrf.mxu2  ;;  %v5454_v40 = vpop.f32.mrf.mxu1  ;;  %v7985_v59 = vld [vmem:[%s14037_s7 + $0x2b8] sm:$0xf0] }
 0x3e2   :  { %v9354_v61 = vld [vmem:[%s14037_s7 + $0x79c] sm:$0xf]  ;;  %v7988_v6 = vor.u32 %v9194_v58, %v7985_v59 }
 0x3e3   :  { %5693 = vmatpush.bf16.msra.mxu0 %v7860_v35  ;;  %5671 = vmatpush.bf16.msrb.mxu2 %v8240_v49  ;;  %v8431_v35 = vld [vmem:[%s14037_s7 + $0x618] sm:$0xf]  ;;  %v13877_v47 = vadd.f32 %v5454_v40, %v5442_v37  ;;  %v5443_v3 = vpop.f32.mrf.mxu0  ;;  %v7732_v49 = vor.u32 %v9130_v32, %v7729_v26  ;;  %v5746_v55 = vmax.f32 %v5744_v24, %v5745_v36  ;;  %v8625_v31 = vld [vmem:[%s14037_s7 + $0x7b8] sm:$0xf0] }
 0x3e4   :  { %5661 = vmatmul.bf16.vlgmr.msrb.gmra.mxu1 %v12809_v10  ;;  %v9114_v41 = vld [vmem:[%s14037_s7 + $0x1c] sm:$0xf]  ;;  %v8628_v14 = vor.u32 %v9354_v61, %v8625_v31 }
 0x3e5   :  { %5705 = vmatpush.bf16.msra.mxu1 %v8148_v18  ;;  %5683 = vmatpush.bf16.msrb.mxu3 %v8528_v30  ;;  %v5416_v18 = vadd.f32 %v5415_v39, %v13762_v33  ;;  %v8020_v33 = vor.u32 %v9202_v43, %v8017_v34  ;;  %v9122_v30 = vld [vmem:[%s14037_s7 + $0x5c] sm:$0xf]  ;;  %v5747_v8 = vrot.slane %v5746_v55, 2 }
 0x3e6   :  { %v7700_v63 = vor.u32 %v9122_v30, %v7697_v53  ;;  %v7665_v7 = vld [vmem:[%s14037_s7 + $0x38] sm:$0xf0] }
 0x3e7   :  { %5694 = vmatpush.bf16.msra.mxu0 %v7828_v51  ;;  %5672 = vmatpush.bf16.msrb.mxu2 %v8208_v4  ;;  %v8432_v51 = vor.u32 %v9310_v12, %v8431_v35  ;;  %v5428_v62 = vpop.f32.mrf.mxu3  ;;  %v7953_v16 = vld [vmem:[%s14037_s7 + $0x278] sm:$0xf0]  ;;  %v7668_v24 = vor.u32 %v9114_v41, %v7665_v7 }
 0x3e8   :  { %v5429_v4 = vadd.f32 %v5428_v62, %v5416_v18  ;;  %v9346_v20 = vld [vmem:[%s14037_s7 + $0x75c] sm:$0xf]  ;;  %v4035_v62 = vperm.slane %v13584_v52, 3 }
 0x3e9   :  { %5706 = vmatpush.bf16.msra.mxu1 %v8116_v57  ;;  %5684 = vmatpush.bf16.msrb.mxu3 %v8496_v48  ;;  %v8337_v57 = vld [vmem:[%s14037_s7 + $0x578] sm:$0xf0]  ;;  %v5417_v13 = vpop.f32.mrf.mxu2  ;;  %v5456_v19 = vpop.f32.mrf.mxu1 }
 0x3ea   :  { %v8340_v5 = vor.u32 %v9282_v54, %v8337_v57  ;;  %v8305_v48 = vld [vmem:[%s14037_s7 + $0x538] sm:$0xf0]  ;;  %v5751_v17 = vsel %vm2825_vm2, %v5429_v4, -inf }
 0x3eb   :  { %5695 = vmatpush.bf16.msra.mxu0 %v7796_v0  ;;  %5673 = vmatpush.bf16.msrb.mxu2 %v8176_v25  ;;  %v9274_v0 = vld [vmem:[%s14037_s7 + $0x51c] sm:$0xf]  ;;  %v5752_v22 = vrot.slane %v5751_v17, 4 }
 0x3ec   :  { %v8593_v21 = vld [vmem:[%s14037_s7 + $0x778] sm:$0xf0]  ;;  %v8308_v25 = vor.u32 %v9274_v0, %v8305_v48 }
 0x3ed   :  { %5707 = vmatpush.bf16.msra.mxu1 %v8084_v15  ;;  %5685 = vmatpush.bf16.msrb.mxu3 %v8464_v23  ;;  %v9186_v15 = vld [vmem:[%s14037_s7 + $0x25c] sm:$0xf]  ;;  %v5753_v32 = vmax.f32 %v5751_v17, %v5752_v22  ;;  %v8596_v26 = vor.u32 %v9346_v20, %v8593_v21 }
 0x3ee   :  { %5674 = vmatmul.bf16.vlgmr.msrb.gmra.mxu2 %v12853_v38  ;;  %v7956_v11 = vor.u32 %v9186_v15, %v7953_v16  ;;  %v8273_v27 = vld [vmem:[%s14037_s7 + $0x4f8] sm:$0xf0] }
 0x3ef   :  { %5696 = vmatpush.bf16.msra.mxu0 %v7764_v1  ;;  %5718 = vmatpush.bf16.msra.mxu2 %v8404_v46  ;;  %v9266_v1 = vld [vmem:[%s14037_s7 + $0x4dc] sm:$0xf]  ;;  %v5748_v46 = vmax.f32 %v5746_v55, %v5747_v8  ;;  %v5754_v12 = vrot.slane %v5753_v32, 2  ;;  %v5430_v36 = vpop.f32.mrf.mxu3 }
 0x3f0   :  { %v9178_v23 = vld [vmem:[%s14037_s7 + $0x21c] sm:$0xf]  ;;  %v8276_v37 = vor.u32 %v9266_v1, %v8273_v27  ;;  %v4036_v27 = vperm.slane %v13584_v52, 4 }
 0x3f1   :  { %5708 = vmatpush.bf16.msra.mxu1 %v8052_v28  ;;  %5686 = vmatpush.bf16.msrb.mxu3 %v8432_v51  ;;  %v7921_v28 = vld [vmem:[%s14037_s7 + $0x238] sm:$0xf0]  ;;  %v5749_v43 = vrot.slane %v5748_v46, 1  ;;  %v5755_v34 = vmax.f32 %v5753_v32, %v5754_v12  ;;  %v5467_v18 = vpop.f32.mrf.mxu2 }
 0x3f2   :  { %v9338_v29 = vld [vmem:[%s14037_s7 + $0x71c] sm:$0xf]  ;;  %v7924_v39 = vor.u32 %v9178_v23, %v7921_v28  ;;  %v5468_v3 = vadd.f32 %v5467_v18, %v13877_v47 }
 0x3f3   :  { %5697 = vmatpush.bf16.msra.mxu0 %v7732_v49  ;;  %5719 = vmatpush.bf16.msra.mxu2 %v8372_v50  ;;  %v8561_v35 = vld [vmem:[%s14037_s7 + $0x738] sm:$0xf0]  ;;  %v5756_v51 = vrot.slane %v5755_v34, 1  ;;  %v5750_v30 = vmax.f32 %v5748_v46, %v5749_v43 }
 0x3f4   :  { %5687 = vmatmul.bf16.vlgmr.msrb.gmra.mxu3 %v12893_v2  ;;  %v8564_v40 = vor.u32 %v9338_v29, %v8561_v35  ;;  %v9258_v44 = vld [vmem:[%s14037_s7 + $0x49c] sm:$0xf] }
 0x3f5   :  { %5709 = vmatpush.bf16.msra.mxu1 %v8020_v33  ;;  %5731 = vmatpush.bf16.msra.mxu3 %v8660_v56  ;;  %v8241_v45 = vld [vmem:[%s14037_s7 + $0x4b8] sm:$0xf0]  ;;  %v5757_v53 = vmax.f32 %v5755_v34, %v5756_v51 }
 0x3f6   :  { %v9330_v49 = vld [vmem:[%s14037_s7 + $0x6dc] sm:$0xf]  ;;  %v8244_v33 = vor.u32 %v9258_v44, %v8241_v45 }
 0x3f7   :  { %5698 = vmatpush.bf16.msra.mxu0 %v7700_v63  ;;  %5720 = vmatpush.bf16.msra.mxu2 %v8340_v5  ;;  %v8529_v50 = vld [vmem:[%s14037_s7 + $0x6f8] sm:$0xf0]  ;;  %v13974_v57 = vpack.c.bf16 %v5757_v53, %v5750_v30  ;;  %v5480_v58 = vpop.f32.mrf.mxu3 }
 0x3f8   :  { %v8532_v54 = vor.u32 %v9330_v49, %v8529_v50  ;;  %v8209_v47 = vld [vmem:[%s14037_s7 + $0x478] sm:$0xf0]  ;;  %v5481_v31 = vadd.f32 %v5480_v58, %v5468_v3 }
 0x3f9   :  { %5710 = vmatpush.bf16.msra.mxu1 %v7988_v6  ;;  %5732 = vmatpush.bf16.msra.mxu3 %v8628_v14  ;;  %v9322_v55 = vld [vmem:[%s14037_s7 + $0x69c] sm:$0xf]  ;;  %v5469_v63 = vpop.f32.mrf.mxu2  ;;  %v5808_v49 = vrot.slane %v13974_v57, 3 }
 0x3fa   :  { %v8497_v56 = vld [vmem:[%s14037_s7 + $0x6b8] sm:$0xf0]  ;;  %v5758_v21 = vsel %vm2825_vm2, %v5481_v31, -inf }
 0x3fb   :  { %5699 = vmatpush.bf16.msra.mxu0 %v7668_v24  ;;  %5721 = vmatpush.bf16.msra.mxu2 %v8308_v25  ;;  %v5493_v59 = vpop.f32.mrf.mxu0  ;;  %v8500_v41 = vor.u32 %v9322_v55, %v8497_v56  ;;  %v9242_v4 = vld [vmem:[%s14037_s7 + $0x41c] sm:$0xf]  ;;  %v5759_v22 = vrot.slane %v5758_v21, 4  ;;  %v5817_v30 = vsel %vm2897_vm3, %v13974_v57, %v5808_v49 }
 0x3fc   :  { %v8177_v5 = vld [vmem:[%s14037_s7 + $0x438] sm:$0xf0]  ;;  %v5494_v0 = vadd.f32 %v5493_v59, %v4035_v62  ;;  %v4037_v59 = vperm.slane %v13584_v52, 5 }
 0x3fd   :  { %5711 = vmatpush.bf16.msra.mxu1 %v7956_v11  ;;  %5733 = vmatpush.bf16.msra.mxu3 %v8596_v26  ;;  %v8465_v6 = vld [vmem:[%s14037_s7 + $0x678] sm:$0xf0]  ;;  %v8180_v7 = vor.u32 %v9242_v4, %v8177_v5  ;;  %v5760_v11 = vmax.f32 %v5758_v21, %v5759_v22 }
 0x3fe   :  { %5700 = vmatmul.bf16.vlgmr.msra.gmra.mxu0 %v12788_v60  ;;  %v9250_v60 = vld [vmem:[%s14037_s7 + $0x45c] sm:$0xf] }
 0x3ff   :  { %5722 = vmatpush.bf16.msra.mxu2 %v8276_v37  ;;  %v8212_v61 = vor.u32 %v9250_v60, %v8209_v47  ;;  %v9306_v13 = vld [vmem:[%s14037_s7 + $0x61c] sm:$0xf]  ;;  %v5482_v16 = vpop.f32.mrf.mxu3  ;;  %v5761_v26 = vrot.slane %v5760_v11, 2 }
 0x400   :  { %v8433_v14 = vld [vmem:[%s14037_s7 + $0x638] sm:$0xf0] }
 0x401   :  { %5712 = vmatpush.bf16.msra.mxu1 %v7924_v39  ;;  %5734 = vmatpush.bf16.msra.mxu3 %v8564_v40  ;;  %v5506_v8 = vpop.f32.mrf.mxu1  ;;  %v8436_v19 = vor.u32 %v9306_v13, %v8433_v14  ;;  %v5762_v29 = vmax.f32 %v5760_v11, %v5761_v26 }
 0x402   :  { %v5507_v15 = vadd.f32 %v5506_v8, %v5494_v0 }
 0x403   :  { %5723 = vmatpush.bf16.msra.mxu2 %v8244_v33  ;;  %v5495_v17 = vpop.f32.mrf.mxu0  ;;  %v5763_v34 = vrot.slane %v5762_v29, 1 }
 0x404   :  { %5713 = vmatmul.bf16.vlgmr.msra.gmra.mxu1 %v12809_v10  ;;  %v9314_v10 = vld [vmem:[%s14037_s7 + $0x65c] sm:$0xf] }
 0x405   :  { %5735 = vmatpush.bf16.msra.mxu3 %v8532_v54  ;;  %v8468_v48 = vor.u32 %v9314_v10, %v8465_v6  ;;  %v5764_v44 = vmax.f32 %v5762_v29, %v5763_v34 }
 0x407   :  { %5724 = vmatpush.bf16.msra.mxu2 %v8212_v61 }
 0x409   :  { %5736 = vmatpush.bf16.msra.mxu3 %v8500_v41  ;;  %v5508_v20 = vpop.f32.mrf.mxu1 }
 0x40b   :  { %5725 = vmatpush.bf16.msra.mxu2 %v8180_v7 }
 0x40d   :  { %5737 = vmatpush.bf16.msra.mxu3 %v8468_v48 }
 0x40e   :  { %5726 = vmatmul.bf16.vlgmr.msra.gmra.mxu2 %v12853_v38 }
 0x411   :  { %5738 = vmatpush.bf16.msra.mxu3 %v8436_v19  ;;  %v5519_v24 = vpop.f32.mrf.mxu2 }
 0x412   :  { %v5520_v25 = vadd.f32 %v5519_v24, %v5507_v15 }
 0x414   :  { %5739 = vmatmul.bf16.vlgmr.msra.gmra.mxu3 %v12893_v2 }
 0x417   :  { %v5532_v1 = vpop.f32.mrf.mxu3 }
 0x418   :  { %v5533_v46 = vadd.f32 %v5532_v1, %v5520_v25 }
 0x419   :  { %v5521_v23 = vpop.f32.mrf.mxu2 }
 0x41a   :  { %v5765_v28 = vsel %vm2825_vm2, %v5533_v46, -inf }
 0x41b   :  { %v5545_v32 = vpop.f32.mrf.mxu0  ;;  %v5766_v38 = vrot.slane %v5765_v28, 4 }
 0x41c   :  { %v5546_v12 = vadd.f32 %v5545_v32, %v4036_v27 }
 0x41d   :  { %v5767_v35 = vmax.f32 %v5765_v28, %v5766_v38 }
 0x41f   :  { %v5768_v36 = vrot.slane %v5767_v35, 2  ;;  %v5534_v39 = vpop.f32.mrf.mxu3 }
 0x421   :  { %v5558_v2 = vpop.f32.mrf.mxu1  ;;  %v5769_v18 = vmax.f32 %v5767_v35, %v5768_v36 }
 0x422   :  { %v5559_v37 = vadd.f32 %v5558_v2, %v5546_v12  ;;  %v4038_v12 = vperm.slane %v13584_v52, 6 }
 0x423   :  { %v5547_v43 = vpop.f32.mrf.mxu0  ;;  %v5770_v40 = vrot.slane %v5769_v18, 1 }
 0x425   :  { %v5771_v45 = vmax.f32 %v5769_v18, %v5770_v40 }
 0x427   :  { %v5801_v50 = vpack.c.bf16 %v5771_v45, %v5764_v44  ;;  %v4039_v45 = vperm.slane %v13584_v52, 7 }
 0x429   :  { %v5560_v3 = vpop.f32.mrf.mxu1  ;;  %v5809_v51 = vrot.slane %v5801_v50, 6  ;;  %v5810_v33 = vrot.slane %v5801_v50, 1 }
 0x42b   :  { %v5820_v53 = vsel %vm2901_vm4, %v5809_v51, %v5810_v33 }
 0x42c   :  { %v14006_v54 = vsel %vm2825_vm2, %v5817_v30, %v5820_v53 }
 0x431   :  { %v5571_v60 = vpop.f32.mrf.mxu2 }
 0x432   :  { %v5572_v47 = vadd.f32 %v5571_v60, %v5559_v37 }
 0x437   :  { %v5584_v55 = vpop.f32.mrf.mxu3 }
 0x438   :  { %v5585_v56 = vadd.f32 %v5584_v55, %v5572_v47 }
 0x439   :  { %v5573_v61 = vpop.f32.mrf.mxu2 }
 0x43a   :  { %v5772_v57 = vsel %vm2825_vm2, %v5585_v56, -inf }
 0x43b   :  { %v5597_v58 = vpop.f32.mrf.mxu0  ;;  %v5773_v10 = vrot.slane %v5772_v57, 4 }
 0x43c   :  { %v5598_v31 = vadd.f32 %v5597_v58, %v4037_v59 }
 0x43d   :  { %v5774_v7 = vmax.f32 %v5772_v57, %v5773_v10 }
 0x43f   :  { %v5586_v41 = vpop.f32.mrf.mxu3  ;;  %v5775_v14 = vrot.slane %v5774_v7, 2 }
 0x441   :  { %v5610_v62 = vpop.f32.mrf.mxu1  ;;  %v5776_v19 = vmax.f32 %v5774_v7, %v5775_v14 }
 0x442   :  { %v5611_v63 = vadd.f32 %v5610_v62, %v5598_v31 }
 0x443   :  { %v5599_v4 = vpop.f32.mrf.mxu0  ;;  %v5777_v11 = vrot.slane %v5776_v19, 1 }
 0x445   :  { %v5778_v32 = vmax.f32 %v5776_v19, %v5777_v11 }
 0x449   :  { %v5612_v5 = vpop.f32.mrf.mxu1 }
 0x451   :  { %v5623_v6 = vpop.f32.mrf.mxu2 }
 0x452   :  { %v5624_v0 = vadd.f32 %v5623_v6, %v5611_v63 }
 0x457   :  { %v5636_v48 = vpop.f32.mrf.mxu3 }
 0x458   :  { %v5637_v8 = vadd.f32 %v5636_v48, %v5624_v0 }
 0x459   :  { %v5625_v15 = vpop.f32.mrf.mxu2 }
 0x45a   :  { %v5779_v16 = vsel %vm2825_vm2, %v5637_v8, -inf }
 0x45b   :  { %v5649_v13 = vpop.f32.mrf.mxu0  ;;  %v5780_v17 = vrot.slane %v5779_v16, 4 }
 0x45c   :  { %v5650_v39 = vadd.f32 %v5649_v13, %v4038_v12  ;;  %v8661_v13 = vld [vmem:[%s14040_s9 + $0x8] sm:$0xff] }
 0x45d   :  { %v5781_v20 = vmax.f32 %v5779_v16, %v5780_v17 }
 0x45f   :  { %v5782_v22 = vrot.slane %v5781_v20, 2  ;;  %v5638_v24 = vpop.f32.mrf.mxu3 }
 0x461   :  { %v5662_v21 = vpop.f32.mrf.mxu1  ;;  %v5783_v1 = vmax.f32 %v5781_v20, %v5782_v22 }
 0x462   :  { %v5663_v43 = vadd.f32 %v5662_v21, %v5650_v39 }
 0x463   :  { %v5651_v25 = vpop.f32.mrf.mxu0  ;;  %v5784_v46 = vrot.slane %v5783_v1, 1 }
 0x465   :  { %v5785_v26 = vmax.f32 %v5783_v1, %v5784_v46 }
 0x467   :  { %v5802_v23 = vpack.c.bf16 %v5785_v26, %v5778_v32 }
 0x469   :  { %v5664_v27 = vpop.f32.mrf.mxu1  ;;  %v5811_v57 = vrot.slane %v5802_v23, 4  ;;  %v5812_v10 = vrot.slane %v5802_v23, 7 }
 0x46b   :  { %v5824_v48 = vsel %vm2906_vm6, %v5811_v57, %v5812_v10 }
 0x471   :  { %v5675_v28 = vpop.f32.mrf.mxu2 }
 0x472   :  { %v5676_v34 = vadd.f32 %v5675_v28, %v5663_v43 }
 0x477   :  { %v5688_v38 = vpop.f32.mrf.mxu3 }
 0x478   :  { %v5689_v40 = vadd.f32 %v5688_v38, %v5676_v34 }
 0x479   :  { %v5677_v35 = vpop.f32.mrf.mxu2 }
 0x47a   :  { %v5786_v44 = vsel %vm2825_vm2, %v5689_v40, -inf }
 0x47b   :  { %v5701_v29 = vpop.f32.mrf.mxu0  ;;  %v5787_v3 = vrot.slane %v5786_v44, 4 }
 0x47c   :  { %v5702_v49 = vadd.f32 %v5701_v29, %v4039_v45 }
 0x47d   :  { %v5788_v33 = vmax.f32 %v5786_v44, %v5787_v3 }
 0x47f   :  { %v5690_v36 = vpop.f32.mrf.mxu3  ;;  %v5789_v47 = vrot.slane %v5788_v33, 2 }
 0x481   :  { %v5714_v2 = vpop.f32.mrf.mxu1  ;;  %v5790_v59 = vmax.f32 %v5788_v33, %v5789_v47 }
 0x482   :  { %v5715_v51 = vadd.f32 %v5714_v2, %v5702_v49 }
 0x483   :  { %v5703_v37 = vpop.f32.mrf.mxu0  ;;  %v5791_v63 = vrot.slane %v5790_v59, 1 }
 0x485   :  { %v5792_v4 = vmax.f32 %v5790_v59, %v5791_v63 }
 0x489   :  { %v5716_v18 = vpop.f32.mrf.mxu1 }
 0x491   :  { %v5727_v50 = vpop.f32.mrf.mxu2 }
 0x492   :  { %v5728_v30 = vadd.f32 %v5727_v50, %v5715_v51 }
 0x497   :  { %v5740_v53 = vpop.f32.mrf.mxu3 }
 0x498   :  { %v5741_v60 = vadd.f32 %v5740_v53, %v5728_v30 }
 0x499   :  { %v5729_v56 = vpop.f32.mrf.mxu2 }
 0x49a   :  { %v5793_v55 = vsel %vm2825_vm2, %v5741_v60, -inf }
 0x49b   :  { %v5794_v58 = vrot.slane %v5793_v55, 4 }
 0x49d   :  { %v5795_v61 = vmax.f32 %v5793_v55, %v5794_v58 }
 0x49f   :  { %v5796_v31 = vrot.slane %v5795_v61, 2  ;;  %v5742_v62 = vpop.f32.mrf.mxu3 }
 0x4a1   :  { %v5797_v41 = vmax.f32 %v5795_v61, %v5796_v31 }
 0x4a3   :  { %v5798_v52 = vrot.slane %v5797_v41, 1 }
 0x4a5   :  { %v5799_v5 = vmax.f32 %v5797_v41, %v5798_v52 }
 0x4a7   :  { %v5803_v6 = vpack.c.bf16 %v5799_v5, %v5792_v4 }
 0x4a9   :  { %v5813_v7 = vrot.slane %v5803_v6, 2  ;;  %v5814_v0 = vrot.slane %v5803_v6, 5 }
 0x4ab   :  { %v5827_v8 = vsel %vm2910_vm12, %v5813_v7, %v5814_v0 }
 0x4ac   :  { %v5828_v14 = vsel %vm2914_vm9, %v5824_v48, %v5827_v8 }
 0x4ad   :  { %v5829_v15 = vsel %vm77_vm0, %v14006_v54, %v5828_v14 }
 0x4ae   :  { %v5833_v16 = vsel %vm2948_vm11, %v5829_v15, %v8661_v13 }
 0x4af   :  { %8662 = vst [vmem:[%s14040_s9 + $0x8] sm:$0xff] %v5833_v16 }

</bundles_post_ra>
